<compile_context>
chip_gen: v7x
topology: tpu7x:2x2x1
jax: 0.10.0
libtpu: 0.0.40
codegen_flags: <defaults>
</compile_context>

<pallas_src>
import functools

import jax
import jax.numpy as jnp
from jax.experimental import pallas as pl
from jax.experimental.pallas import tpu as pltpu


def _round_up(v, m):
    return (v + m - 1) // m * m


def _mosaic(sem, vmem_bytes):
    # vmem_limit derived from the actual block footprint (+headroom), clamped
    # so it stays well inside v7x's 64 MiB per-core VMEM.
    return pltpu.CompilerParams(
        dimension_semantics=sem,
        vmem_limit_bytes=int(min(max(int(vmem_bytes), 8 << 20), 32 << 20)))


# ----------------------- Pallas: tiled matmul + epilogue -----------------------

def _matmul_kernel(act, x_ref, w_ref, b_ref, o_ref):
    y = jnp.dot(x_ref[...], w_ref[...], preferred_element_type=jnp.float32)
    y = y + b_ref[...]
    if act == "relu":
        y = jnp.maximum(y, 0.0)
    elif act == "tanh":
        y = jnp.tanh(y)
    o_ref[...] = y.astype(o_ref.dtype)


def _pick_tm(M):
    for t in (512, 256, 128, 64, 32, 16, 8):
        if M % t == 0:
            return t, M
    return 8, _round_up(M, 8)


def matmul_bias_act(x, w2, b, act="none", out_dtype=jnp.bfloat16):
    """(M,K)@(K,N)+b with fused activation. bf16 MXU inputs, f32 accumulate.

    Single k step (full K resident), weight block resident across the M grid.
    """
    M, K = x.shape
    N = w2.shape[1]
    x = x.astype(jnp.bfloat16)
    tm, Mp = _pick_tm(M)
    if Mp != M:                       # only tiny style-encoder tails (M < 8)
        x = jnp.zeros((Mp, K), jnp.bfloat16).at[:M].set(x)

    out_sz = jnp.dtype(out_dtype).itemsize
    vmem = (2 * tm * K * 2) + (K * N * 2) * 2 + (N * 4) * 2 \
        + (2 * tm * N * out_sz) + (2 << 20)

    out = pl.pallas_call(
        functools.partial(_matmul_kernel, act),
        out_shape=jax.ShapeDtypeStruct((Mp, N), out_dtype),
        grid_spec=pltpu.PrefetchScalarGridSpec(
            num_scalar_prefetch=0,
            grid=(Mp // tm,),
            in_specs=[pl.BlockSpec((tm, K), lambda i: (i, 0)),
                      pl.BlockSpec((K, N), lambda i: (0, 0)),
                      pl.BlockSpec((1, N), lambda i: (0, 0))],
            out_specs=pl.BlockSpec((tm, N), lambda i: (i, 0))),
        compiler_params=_mosaic(("parallel",), vmem),
        cost_estimate=pl.CostEstimate(
            flops=2 * Mp * N * K, transcendentals=0,
            bytes_accessed=Mp * K * 2 + K * N * 2 + Mp * N * out_sz),
    )(x, w2, b)
    return out[:M] if Mp != M else out


# --------------- Pallas: two-pass NHWC norm kernels (IN / AdaIN / LN) ----------

def _norm_kernel(kind, act, has_res, hw, eps, *refs):
    # refs: x, [gamma, beta], [residual], out, s1, s2
    n_extra = 2 if kind in ("adain", "ln") else 0
    x_ref = refs[0]
    g_ref = refs[1] if n_extra else None
    b_ref = refs[2] if n_extra else None
    pos = 1 + n_extra
    res_ref = refs[pos] if has_res else None
    pos += 1 if has_res else 0
    o_ref = refs[pos]
    s1_ref, s2_ref = refs[pos + 1], refs[pos + 2]

    p = pl.program_id(1)
    t = pl.program_id(2)

    @pl.when(jnp.logical_and(p == 0, t == 0))
    def _zero():
        s1_ref[...] = jnp.zeros_like(s1_ref)
        s2_ref[...] = jnp.zeros_like(s2_ref)

    @pl.when(p == 0)
    def _accumulate():
        x = x_ref[0].astype(jnp.float32)                      # (bt, C)
        s1_ref[...] += jnp.sum(x, axis=0, keepdims=True)
        s2_ref[...] += jnp.sum(x * x, axis=0, keepdims=True)

    @pl.when(p == 1)
    def _normalize():
        x = x_ref[0].astype(jnp.float32)                      # (bt, C)
        c = x.shape[-1]
        if kind == "ln":
            # MUNIT LayerNorm: per-sample stats over (C,H,W), unbiased std,
            # y = (x - mu) / (std + eps) * gamma + beta (per-channel affine).
            n_el = hw * c
            tot1 = jnp.sum(s1_ref[...], keepdims=True)        # (1,1)
            tot2 = jnp.sum(s2_ref[...], keepdims=True)
            mean = tot1 / n_el
            var = jnp.maximum((tot2 - n_el * mean * mean) / (n_el - 1.0), 0.0)
            inv = pl.reciprocal(jnp.sqrt(var) + eps, approx=True)
            y = (x - mean) * inv
            y = y * g_ref[0] + b_ref[0]
        else:
            # InstanceNorm2d / AdaIN: per-(n,c) stats over H*W, biased var.
            mean = s1_ref[...] * (1.0 / hw)                   # (1, C)
            var = jnp.maximum(s2_ref[...] * (1.0 / hw) - mean * mean, 0.0)
            y = (x - mean) * jax.lax.rsqrt(var + eps)
            if kind == "adain":
                y = y * g_ref[0] + b_ref[0]
        if act == "relu":
            y = jnp.maximum(y, 0.0)
        if has_res:
            y = y + res_ref[0].astype(jnp.float32)
        o_ref[...] = y[None].astype(o_ref.dtype)


def _pick_bt(HW, C):
    """Spatial tile so one (bt, C) bf16 block stays around <=1 MiB (v7x-safe)."""
    cap = max(8, (1 << 20) // max(1, 2 * C))
    if HW <= cap:
        return HW
    bt = cap - cap % 8
    while bt >= 8:
        if HW % bt == 0:
            return bt
        bt -= 8
    return HW


def _norm_call(kind, x4, gamma=None, beta=None, residual=None, act="none",
               eps=1e-5):
    N, H, W, C = x4.shape
    HW = H * W
    x3 = x4.reshape(N, HW, C)
    bt = _pick_bt(HW, C)
    T = HW // bt
    has_res = residual is not None

    in_specs = [pl.BlockSpec((1, bt, C), lambda n, p, t: (n, t, 0))]
    ins = [x3]
    if kind == "adain":
        in_specs += [pl.BlockSpec((1, 1, C), lambda n, p, t: (n, 0, 0)),
                     pl.BlockSpec((1, 1, C), lambda n, p, t: (n, 0, 0))]
        ins += [gamma, beta]
    elif kind == "ln":
        in_specs += [pl.BlockSpec((1, 1, C), lambda n, p, t: (0, 0, 0)),
                     pl.BlockSpec((1, 1, C), lambda n, p, t: (0, 0, 0))]
        ins += [gamma, beta]
    if has_res:
        in_specs.append(pl.BlockSpec((1, bt, C), lambda n, p, t: (n, t * p, 0)))
        ins.append(residual.reshape(N, HW, C))

    n_streams = 3 if has_res else 2
    vmem = n_streams * 2 * bt * C * 2 + 8 * C * 4 + (2 << 20)

    out = pl.pallas_call(
        functools.partial(_norm_kernel, kind, act, has_res, float(HW),
                          float(eps)),
        out_shape=jax.ShapeDtypeStruct((N, HW, C), jnp.bfloat16),
        grid_spec=pltpu.PrefetchScalarGridSpec(
            num_scalar_prefetch=0,
            grid=(N, 2, T),
            in_specs=in_specs,
            out_specs=pl.BlockSpec((1, bt, C), lambda n, p, t: (n, t * p, 0)),
            scratch_shapes=[pltpu.VMEM((1, C), jnp.float32),
                            pltpu.VMEM((1, C), jnp.float32)]),
        compiler_params=_mosaic(("parallel", "arbitrary", "arbitrary"), vmem),
    )(*ins)
    return out.reshape(N, H, W, C)


def instance_norm(x4, act="none", residual=None, eps=1e-5):
    return _norm_call("in", x4, act=act, residual=residual, eps=eps)


def adain(x4, gamma, beta, act="none", residual=None, eps=1e-5):
    N, _, _, C = x4.shape
    return _norm_call("adain", x4,
                      gamma=gamma.reshape(N, 1, C).astype(jnp.float32),
                      beta=beta.reshape(N, 1, C).astype(jnp.float32),
                      act=act, residual=residual, eps=eps)


def layer_norm(x4, gamma, beta, act="none", eps=1e-5):
    return _norm_call("ln", x4, gamma=gamma, beta=beta, act=act, eps=eps)


# ----------------------- Pallas: fused style MLP kernel -------------------------

def _mlp_kernel(x_ref, w1_ref, b1_ref, w2_ref, b2_ref, w3_ref, b3_ref, o_ref):
    h = jnp.dot(x_ref[...], w1_ref[...],
                preferred_element_type=jnp.float32) + b1_ref[...]
    h = jnp.maximum(h, 0.0).astype(jnp.bfloat16)
    h = jnp.dot(h, w2_ref[...],
                preferred_element_type=jnp.float32) + b2_ref[...]
    h = jnp.maximum(h, 0.0).astype(jnp.bfloat16)
    o_ref[...] = jnp.dot(h, w3_ref[...],
                         preferred_element_type=jnp.float32) + b3_ref[...]


def mlp_forward(style2d, mlp):
    """style2d:(N,style_dim) -> (N,num_adain); 3 Linear(+ReLU) layers, 1 kernel.

    Weights are pre-transposed/padded/cast at init; only the tiny style vector
    is padded per call.
    """
    N, sdim = style2d.shape
    d3 = mlp[2]["dout"]
    Np = _round_up(N, 8)
    k0 = mlp[0]["w"].shape[0]
    xp = jnp.zeros((Np, k0), jnp.bfloat16).at[:N, :sdim].set(
        style2d.astype(jnp.bfloat16))
    out = pl.pallas_call(
        _mlp_kernel,
        out_shape=jax.ShapeDtypeStruct((Np, mlp[2]["w"].shape[1]), jnp.float32),
    )(xp, mlp[0]["w"], mlp[0]["b"], mlp[1]["w"], mlp[1]["b"],
      mlp[2]["w"], mlp[2]["b"])
    return out[:N, :d3]


# ------------------------------ conv glue ----------------------------------

def conv2d(x, p, stride=1, pad=0, act="none", upsample=False,
           out_dtype=jnp.bfloat16):
    """NHWC conv. Reflect pad + nearest-2x upsample in plain (fused) XLA ops,
    im2col from K*K static strided slices (one concat, bf16, lane-aligned K),
    matmul + bias + activation on the MXU in one Pallas launch."""
    # TODO(synk): gather the im2col patches inside the Pallas kernel (manual
    # make_async_copy / scalar-prefetched row tables) so the K*K columns are
    # never materialized in HBM.
    N, H, W, Cin = x.shape
    ksz, Cout = p["ksz"], p["cout"]
    x = x.astype(jnp.bfloat16)
    if upsample:
        x = jnp.repeat(jnp.repeat(x, 2, axis=1), 2, axis=2)
        H, W = 2 * H, 2 * W
    if pad:
        x = jnp.pad(x, ((0, 0), (pad, pad), (pad, pad), (0, 0)), mode="reflect")
    Hp, Wp = H + 2 * pad, W + 2 * pad
    Ho = (Hp - ksz) // stride + 1
    Wo = (Wp - ksz) // stride + 1
    K = ksz * ksz * Cin
    Kp = p["w2"].shape[0]                       # lane-aligned at init
    M = N * Ho * Wo

    if ksz == 1 and stride == 1:
        cols = x.reshape(M, Cin)
        if Kp != Cin:
            cols = jnp.concatenate(
                [cols, jnp.zeros((M, Kp - Cin), jnp.bfloat16)], axis=-1)
    else:
        slabs = [x[:, ki:ki + (Ho - 1) * stride + 1:stride,
                   kj:kj + (Wo - 1) * stride + 1:stride, :]
                 for ki in range(ksz) for kj in range(ksz)]
        if Kp != K:
            slabs.append(jnp.zeros((N, Ho, Wo, Kp - K), jnp.bfloat16))
        cols = jnp.concatenate(slabs, axis=-1).reshape(M, Kp)

    y = matmul_bias_act(cols, p["w2"], p["b"], act=act, out_dtype=out_dtype)
    return y.reshape(N, Ho, Wo, Cout)


# --------------------------- parameter init --------------------------------

def _conv_params(key, cin, cout, ksz, with_ln=False):
    k1, k2 = jax.random.split(key)
    w = jax.random.normal(k1, (cout, cin, ksz, ksz), jnp.float32) * 0.02
    kdim = ksz * ksz * cin
    kp = _round_up(kdim, 128)
    w2 = jnp.zeros((kp, cout), jnp.bfloat16).at[:kdim].set(
        jnp.transpose(w, (2, 3, 1, 0)).reshape(kdim, cout).astype(jnp.bfloat16))
    p = {"w2": w2, "b": jnp.zeros((1, cout), jnp.float32),
         "ksz": ksz, "cin": cin, "cout": cout}
    if with_ln:
        p["ln_gamma"] = jax.random.uniform(k2, (1, 1, cout), jnp.float32)
        p["ln_beta"] = jnp.zeros((1, 1, cout), jnp.float32)
    return p


def _linear_params(key, din, dout):
    w = jax.random.normal(key, (dout, din), jnp.float32) * 0.02
    ki, ko = _round_up(din, 128), _round_up(dout, 128)
    wp = jnp.zeros((ki, ko), jnp.bfloat16).at[:din, :dout].set(
        w.T.astype(jnp.bfloat16))
    bp = jnp.zeros((1, ko), jnp.float32)
    return {"w": wp, "b": bp, "din": din, "dout": dout}


def init_adain_gen(key, input_dim, dim, style_dim, n_downsample, n_res, mlp_dim):
    keys = iter(jax.random.split(key, 64))
    p = {}
    # ---- content encoder ----
    ce = [_conv_params(next(keys), input_dim, dim, 7)]
    d = dim
    for _ in range(n_downsample):
        ce.append(_conv_params(next(keys), d, 2 * d, 4))
        d *= 2
    p["ce"] = ce
    p["ce_res"] = [(_conv_params(next(keys), d, d, 3),
                    _conv_params(next(keys), d, d, 3)) for _ in range(n_res)]
    content_dim = d
    # ---- style encoder (MUNIT StyleEncoder(4, ...)) ----
    se = [_conv_params(next(keys), input_dim, dim, 7)]
    sd = dim
    for _ in range(2):
        se.append(_conv_params(next(keys), sd, 2 * sd, 4))
        sd *= 2
    for _ in range(2):
        se.append(_conv_params(next(keys), sd, sd, 4))
    p["se"] = se
    p["se_out"] = _conv_params(next(keys), sd, style_dim, 1)
    # ---- decoder ----
    p["dec_res"] = [(_conv_params(next(keys), content_dim, content_dim, 3),
                     _conv_params(next(keys), content_dim, content_dim, 3))
                    for _ in range(n_res)]
    dec_up = []
    dd = content_dim
    for _ in range(n_downsample):
        dec_up.append(_conv_params(next(keys), dd, dd // 2, 5, with_ln=True))
        dd //= 2
    p["dec_up"] = dec_up
    p["dec_out"] = _conv_params(next(keys), dd, input_dim, 7)
    # ---- MLP: style -> AdaIN params (weights pre-padded/cast once) ----
    num_adain = n_res * 2 * 2 * content_dim
    p["mlp"] = [_linear_params(next(keys), style_dim, mlp_dim),
                _linear_params(next(keys), mlp_dim, mlp_dim),
                _linear_params(next(keys), mlp_dim, num_adain)]
    p["content_dim"] = content_dim
    return p


# --------------------------- encode / decode --------------------------------

def gen_encode(params, cfg, x):
    """x is NHWC bf16/f32.  Returns (content NHWC bf16, style (N, style_dim))."""
    n_down = cfg["n_downsample"]
    # content encoder: conv (bf16 out) -> IN kernel with fused ReLU / residual
    c = conv2d(x, params["ce"][0], 1, 3)
    c = instance_norm(c, act="relu")
    for i in range(n_down):
        c = conv2d(c, params["ce"][i + 1], 2, 1)
        c = instance_norm(c, act="relu")
    for (p1, p2) in params["ce_res"]:
        r = conv2d(c, p1, 1, 1)
        r = instance_norm(r, act="relu")
        r = conv2d(r, p2, 1, 1)
        c = instance_norm(r, act="none", residual=c)          # fused add
    # style encoder (no norm; ReLU fused into the matmul epilogue)
    s = conv2d(x, params["se"][0], 1, 3, act="relu")
    for i in range(1, 5):
        s = conv2d(s, params["se"][i], 2, 1, act="relu")
    s = jnp.mean(s.astype(jnp.float32), axis=(1, 2))           # AdaptiveAvgPool2d
    s = conv2d(s[:, None, None, :], params["se_out"], 1, 0,
               out_dtype=jnp.float32)                          # 1x1 conv
    return c, s.reshape(s.shape[0], -1)


def gen_decode(params, cfg, content, style):
    C = params["content_dim"]
    n_res = cfg["n_res"]
    N = content.shape[0]
    # fused 3-layer MLP -> AdaIN params, reshaped once to (N, layer, [beta|gamma], C)
    ap = mlp_forward(style.reshape(N, -1), params["mlp"])
    ap = ap.reshape(N, n_res * 2, 2, C)
    x = content
    li = 0
    for (p1, p2) in params["dec_res"]:
        beta1, gamma1 = ap[:, li, 0, :], ap[:, li, 1, :]
        li += 1
        beta2, gamma2 = ap[:, li, 0, :], ap[:, li, 1, :]
        li += 1
        r = conv2d(x, p1, 1, 1)
        r = adain(r, gamma1, beta1, act="relu")
        r = conv2d(r, p2, 1, 1)
        x = adain(r, gamma2, beta2, act="none", residual=x)    # fused add
    # upsampling blocks: nearest x2 + reflect pad + 5x5 conv + LN + ReLU
    for p in params["dec_up"]:
        y = conv2d(x, p, 1, 2, upsample=True)
        x = layer_norm(y, p["ln_gamma"], p["ln_beta"], act="relu")
    # output conv 7x7 + tanh (tanh fused into the matmul epilogue)
    x = conv2d(x, params["dec_out"], 1, 3, act="tanh", out_dtype=jnp.float32)
    return x


def munit_forward(gen_a, gen_b, cfg, x_a, x_b, s_a, s_b):
    # NCHW torch interface -> NHWC internal layout (one transpose per image).
    xa = jnp.transpose(x_a, (0, 2, 3, 1))
    xb = jnp.transpose(x_b, (0, 2, 3, 1))
    c_a, _s_a_fake = gen_encode(gen_a, cfg, xa)
    c_b, _s_b_fake = gen_encode(gen_b, cfg, xb)
    x_ba = gen_decode(gen_a, cfg, c_b, s_a)
    x_ab = gen_decode(gen_b, cfg, c_a, s_b)
    return (jnp.transpose(x_ab, (0, 3, 1, 2)),
            jnp.transpose(x_ba, (0, 3, 1, 2)))


# ------------------------------- trainer ------------------------------------

class MUNITTrainerPallas:
    """Forward pass of MUNIT_Trainer with AdaINGen generators."""

    def __init__(self, key, display_size, input_dim, dim, style_dim,
                 n_downsample, n_res, mlp_dim):
        k_a, k_b, k_sa, k_sb = jax.random.split(key, 4)
        self.cfg = dict(input_dim=input_dim, dim=dim, style_dim=style_dim,
                        n_downsample=n_downsample, n_res=n_res, mlp_dim=mlp_dim)
        self.gen_a = init_adain_gen(k_a, **self.cfg)
        self.gen_b = init_adain_gen(k_b, **self.cfg)
        self.style_dim = style_dim
        self.s_a = jax.random.normal(k_sa, (display_size, style_dim, 1, 1),
                                     jnp.float32)
        self.s_b = jax.random.normal(k_sb, (display_size, style_dim, 1, 1),
                                     jnp.float32)
        # TODO(synk): dis_a/dis_b (MsImageDis), ClassEncoder, VGG19 loss, Adam
        # optimizers and LR schedulers are construction-/training-only and are
        # not part of forward(); not implemented here.
        # TODO(synk): fp8 weight path for the large res-block convs on v7x.
        self._fwd = jax.jit(
            functools.partial(munit_forward, self.gen_a, self.gen_b, self.cfg))

    def forward(self, x_a, x_b):
        return self._fwd(x_a, x_b, self.s_a, self.s_b)


# --------------------------------- main --------------------------------------

if __name__ == "__main__":
    key = jax.random.PRNGKey(0)
    k_params, k_xa, k_xb = jax.random.split(key, 3)

    batch = 2
    trainer = MUNITTrainerPallas(
        k_params, display_size=batch,
        input_dim=3, dim=8, style_dim=8, n_downsample=2, n_res=2, mlp_dim=16)

    x_a = jax.random.normal(k_xa, (batch, 3, 16, 16), jnp.float32)
    x_b = jax.random.normal(k_xb, (batch, 3, 16, 16), jnp.float32)

    x_ab, x_ba = trainer.forward(x_a, x_b)
    jax.block_until_ready((x_ab, x_ba))

    assert x_ab.shape == (batch, 3, 16, 16) and x_ba.shape == (batch, 3, 16, 16)
    assert jnp.all(jnp.isfinite(x_ab)) and jnp.all(jnp.isfinite(x_ba))
    print("KERNEL_OK")
</pallas_src>

<mosaic_0001>
module attributes {stable_mosaic.version = 11 : i64} {
  func.func @_matmul_kernel(%arg0: i32, %arg1: memref<512x256xbf16, #tpu.memory_space<vmem>>, %arg2: memref<256x8xbf16, #tpu.memory_space<vmem>>, %arg3: memref<1x8xf32, #tpu.memory_space<vmem>>, %arg4: memref<512x8xbf16, #tpu.memory_space<vmem>>) attributes {dimension_semantics = [#tpu.dimension_semantics<parallel>], iteration_bounds = array<i64: 1>, scalar_prefetch = 0 : i64, scratch_operands = 0 : i64, tpu.core_type = #tpu.core_type<tc>, window_params = [{transform_indices = @transform_0, window_bounds = array<i64: 512, 256>}, {pipeline_mode = #tpu.pipeline_mode<synchronous>, transform_indices = @transform_1, window_bounds = array<i64: 256, 8>}, {pipeline_mode = #tpu.pipeline_mode<synchronous>, transform_indices = @transform_2, window_bounds = array<i64: 1, 8>}, {transform_indices = @transform_3, window_bounds = array<i64: 512, 8>}]} {
    %c0 = arith.constant 0 : index
    %c0_0 = arith.constant 0 : index
    %0 = vector.load %arg1[%c0, %c0_0] : memref<512x256xbf16, #tpu.memory_space<vmem>>, vector<512x256xbf16>
    %c0_1 = arith.constant 0 : index
    %c0_2 = arith.constant 0 : index
    %1 = vector.load %arg2[%c0_1, %c0_2] : memref<256x8xbf16, #tpu.memory_space<vmem>>, vector<256x8xbf16>
    %cst = arith.constant dense<0.000000e+00> : vector<512x8xf32>
    %2 = tpu.matmul %0, %1, %cst {dimension_numbers = #tpu.dot_dimension_numbers<[1], [0], [0], [1], [0, 0, 1, 1], [], []>} : vector<512x256xbf16>, vector<256x8xbf16>, vector<512x8xf32> -> vector<512x8xf32>
    %c0_3 = arith.constant 0 : index
    %c0_4 = arith.constant 0 : index
    %3 = vector.load %arg3[%c0_3, %c0_4] : memref<1x8xf32, #tpu.memory_space<vmem>>, vector<1x8xf32>
    %4 = vector.broadcast %3 : vector<1x8xf32> to vector<512x8xf32>
    %5 = arith.addf %2, %4 : vector<512x8xf32>
    %6 = arith.truncf %5 : vector<512x8xf32> to vector<512x8xbf16>
    %c0_5 = arith.constant 0 : index
    %c0_6 = arith.constant 0 : index
    %7 = vector.load %arg4[%c0_5, %c0_6] : memref<512x8xbf16, #tpu.memory_space<vmem>>, vector<512x8xbf16>
    tpu.vector_store %arg4[%c0_5, %c0_6], %6 {strides = array<i32>} : memref<512x8xbf16, #tpu.memory_space<vmem>>, vector<512x8xbf16>,
    return
  }
  func.func @transform_0(%arg0: i32) -> (i32, i32) {
    %c0_i32 = arith.constant 0 : i32
    %c0_i32_0 = arith.constant 0 : i32
    return %arg0, %c0_i32 : i32, i32
  }
  func.func @transform_1(%arg0: i32) -> (i32, i32) {
    %c0_i32 = arith.constant 0 : i32
    %c0_i32_0 = arith.constant 0 : i32
    %c0_i32_1 = arith.constant 0 : i32
    return %c0_i32, %c0_i32_0 : i32, i32
  }
  func.func @transform_2(%arg0: i32) -> (i32, i32) {
    %c0_i32 = arith.constant 0 : i32
    %c0_i32_0 = arith.constant 0 : i32
    %c0_i32_1 = arith.constant 0 : i32
    return %c0_i32, %c0_i32_0 : i32, i32
  }
  func.func @transform_3(%arg0: i32) -> (i32, i32) {
    %c0_i32 = arith.constant 0 : i32
    %c0_i32_0 = arith.constant 0 : i32
    return %arg0, %c0_i32 : i32, i32
  }
}

module attributes {stable_mosaic.version = 11 : i64} {
  func.func @_norm_kernel(%arg0: i32, %arg1: i32, %arg2: i32, %arg3: memref<1x256x8xbf16, #tpu.memory_space<vmem>>, %arg4: memref<1x256x8xbf16, #tpu.memory_space<vmem>>, %arg5: memref<1x8xf32, #tpu.memory_space<vmem>>, %arg6: memref<1x8xf32, #tpu.memory_space<vmem>>) attributes {dimension_semantics = [#tpu.dimension_semantics<parallel>, #tpu.dimension_semantics<arbitrary>, #tpu.dimension_semantics<arbitrary>], iteration_bounds = array<i64: 2, 2, 1>, scalar_prefetch = 0 : i64, scratch_operands = 2 : i64, tpu.core_type = #tpu.core_type<tc>, window_params = [{transform_indices = @transform_0, window_bounds = array<i64: 1, 256, 8>}, {transform_indices = @transform_1, window_bounds = array<i64: 1, 256, 8>}]} {
    %c0_i32 = arith.constant 0 : i32
    %0 = arith.cmpi eq, %arg1, %c0_i32 : i32
    %c0_i32_0 = arith.constant 0 : i32
    %1 = arith.cmpi eq, %arg2, %c0_i32_0 : i32
    %2 = arith.andi %0, %1 : i1
    %3 = arith.extui %2 : i1 to i32
    %c0_i32_1 = arith.constant 0 : i32
    %4 = arith.cmpi ne, %3, %c0_i32_1 : i32
    scf.if %4 {
      %cst = arith.constant 0.000000e+00 : f32
      %11 = vector.broadcast %cst : f32 to vector<1x8xf32>
      %c0 = arith.constant 0 : index
      %c0_5 = arith.constant 0 : index
      %12 = vector.load %arg5[%c0, %c0_5] : memref<1x8xf32, #tpu.memory_space<vmem>>, vector<1x8xf32>
      tpu.vector_store %arg5[%c0, %c0_5], %11 {strides = array<i32>} : memref<1x8xf32, #tpu.memory_space<vmem>>, vector<1x8xf32>,
      %cst_6 = arith.constant 0.000000e+00 : f32
      %13 = vector.broadcast %cst_6 : f32 to vector<1x8xf32>
      %c0_7 = arith.constant 0 : index
      %c0_8 = arith.constant 0 : index
      %14 = vector.load %arg6[%c0_7, %c0_8] : memref<1x8xf32, #tpu.memory_space<vmem>>, vector<1x8xf32>
      tpu.vector_store %arg6[%c0_7, %c0_8], %13 {strides = array<i32>} : memref<1x8xf32, #tpu.memory_space<vmem>>, vector<1x8xf32>,
    } else {
    }
    %c0_i32_2 = arith.constant 0 : i32
    %5 = arith.cmpi eq, %arg1, %c0_i32_2 : i32
    %6 = arith.extui %5 : i1 to i32
    %c0_i32_3 = arith.constant 0 : i32
    %7 = arith.cmpi ne, %6, %c0_i32_3 : i32
    scf.if %7 {
      %c0 = arith.constant 0 : index
      %c0_5 = arith.constant 0 : index
      %c0_6 = arith.constant 0 : index
      %11 = vector.load %arg3[%c0, %c0_5, %c0_6] : memref<1x256x8xbf16, #tpu.memory_space<vmem>>, vector<1x256x8xbf16>
      %12 = vector.shape_cast %11 : vector<1x256x8xbf16> to vector<256x8xbf16>
      %13 = arith.extf %12 : vector<256x8xbf16> to vector<256x8xf32>
      %c0_7 = arith.constant 0 : index
      %c0_8 = arith.constant 0 : index
      %14 = vector.load %arg5[%c0_7, %c0_8] : memref<1x8xf32, #tpu.memory_space<vmem>>, vector<1x8xf32>
      %cst = arith.constant dense<0.000000e+00> : vector<8xf32>
      %15 = vector.multi_reduction <add>, %13, %cst [0] : vector<256x8xf32> to vector<8xf32>
      %16 = vector.shape_cast %15 : vector<8xf32> to vector<1x8xf32>
      %17 = arith.addf %14, %16 : vector<1x8xf32>
      %c0_9 = arith.constant 0 : index
      %c0_10 = arith.constant 0 : index
      %18 = vector.load %arg5[%c0_9, %c0_10] : memref<1x8xf32, #tpu.memory_space<vmem>>, vector<1x8xf32>
      tpu.vector_store %arg5[%c0_9, %c0_10], %17 {strides = array<i32>} : memref<1x8xf32, #tpu.memory_space<vmem>>, vector<1x8xf32>,
      %c0_11 = arith.constant 0 : index
      %c0_12 = arith.constant 0 : index
      %19 = vector.load %arg6[%c0_11, %c0_12] : memref<1x8xf32, #tpu.memory_space<vmem>>, vector<1x8xf32>
      %20 = arith.mulf %13, %13 : vector<256x8xf32>
      %cst_13 = arith.constant dense<0.000000e+00> : vector<8xf32>
      %21 = vector.multi_reduction <add>, %20, %cst_13 [0] : vector<256x8xf32> to vector<8xf32>
      %22 = vector.shape_cast %21 : vector<8xf32> to vector<1x8xf32>
      %23 = arith.addf %19, %22 : vector<1x8xf32>
      %c0_14 = arith.constant 0 : index
      %c0_15 = arith.constant 0 : index
      %24 = vector.load %arg6[%c0_14, %c0_15] : memref<1x8xf32, #tpu.memory_space<vmem>>, vector<1x8xf32>
      tpu.vector_store %arg6[%c0_14, %c0_15], %23 {strides = array<i32>} : memref<1x8xf32, #tpu.memory_space<vmem>>, vector<1x8xf32>,
    } else {
    }
    %c1_i32 = arith.constant 1 : i32
    %8 = arith.cmpi eq, %arg1, %c1_i32 : i32
    %9 = arith.extui %8 : i1 to i32
    %c0_i32_4 = arith.constant 0 : i32
    %10 = arith.cmpi ne, %9, %c0_i32_4 : i32
    scf.if %10 {
      %c0 = arith.constant 0 : index
      %c0_5 = arith.constant 0 : index
      %c0_6 = arith.constant 0 : index
      %11 = vector.load %arg3[%c0, %c0_5, %c0_6] : memref<1x256x8xbf16, #tpu.memory_space<vmem>>, vector<1x256x8xbf16>
      %12 = vector.shape_cast %11 : vector<1x256x8xbf16> to vector<256x8xbf16>
      %13 = arith.extf %12 : vector<256x8xbf16> to vector<256x8xf32>
      %c0_7 = arith.constant 0 : index
      %c0_8 = arith.constant 0 : index
      %14 = vector.load %arg5[%c0_7, %c0_8] : memref<1x8xf32, #tpu.memory_space<vmem>>, vector<1x8xf32>
      %cst = arith.constant 3.906250e-03 : f32
      %15 = vector.broadcast %cst : f32 to vector<1x8xf32>
      %16 = arith.mulf %14, %15 : vector<1x8xf32>
      %c0_9 = arith.constant 0 : index
      %c0_10 = arith.constant 0 : index
      %17 = vector.load %arg6[%c0_9, %c0_10] : memref<1x8xf32, #tpu.memory_space<vmem>>, vector<1x8xf32>
      %cst_11 = arith.constant 3.906250e-03 : f32
      %18 = vector.broadcast %cst_11 : f32 to vector<1x8xf32>
      %19 = arith.mulf %17, %18 : vector<1x8xf32>
      %20 = arith.mulf %16, %16 : vector<1x8xf32>
      %21 = arith.subf %19, %20 : vector<1x8xf32>
      %cst_12 = arith.constant 0.000000e+00 : f32
      %22 = vector.broadcast %cst_12 : f32 to vector<1x8xf32>
      %23 = arith.maximumf %21, %22 : vector<1x8xf32>
      %24 = vector.broadcast %16 : vector<1x8xf32> to vector<256x8xf32>
      %25 = arith.subf %13, %24 : vector<256x8xf32>
      %cst_13 = arith.constant 9.99999974E-6 : f32
      %26 = vector.broadcast %cst_13 : f32 to vector<1x8xf32>
      %27 = arith.addf %23, %26 : vector<1x8xf32>
      %28 = math.rsqrt %27 : vector<1x8xf32>
      %29 = vector.broadcast %28 : vector<1x8xf32> to vector<256x8xf32>
      %30 = arith.mulf %25, %29 : vector<256x8xf32>
      %cst_14 = arith.constant 0.000000e+00 : f32
      %31 = vector.broadcast %cst_14 : f32 to vector<256x8xf32>
      %32 = arith.maximumf %30, %31 : vector<256x8xf32>
      %33 = vector.shape_cast %32 : vector<256x8xf32> to vector<1x256x8xf32>
      %34 = arith.truncf %33 : vector<1x256x8xf32> to vector<1x256x8xbf16>
      %c0_15 = arith.constant 0 : index
      %c0_16 = arith.constant 0 : index
      %c0_17 = arith.constant 0 : index
      %35 = vector.load %arg4[%c0_15, %c0_16, %c0_17] : memref<1x256x8xbf16, #tpu.memory_space<vmem>>, vector<1x256x8xbf16>
      tpu.vector_store %arg4[%c0_15, %c0_16, %c0_17], %34 {strides = array<i32>} : memref<1x256x8xbf16, #tpu.memory_space<vmem>>, vector<1x256x8xbf16>,
    } else {
    }
    return
  }
  func.func @transform_0(%arg0: i32, %arg1: i32, %arg2: i32) -> (i32, i32, i32) {
    %c0_i32 = arith.constant 0 : i32
    %c0_i32_0 = arith.constant 0 : i32
    return %arg0, %arg2, %c0_i32 : i32, i32, i32
  }
  func.func @transform_1(%arg0: i32, %arg1: i32, %arg2: i32) -> (i32, i32, i32) {
    %0 = arith.muli %arg2, %arg1 : i32
    %c0_i32 = arith.constant 0 : i32
    %c0_i32_0 = arith.constant 0 : i32
    return %arg0, %0, %c0_i32 : i32, i32, i32
  }
}

module attributes {stable_mosaic.version = 11 : i64} {
  func.func @_matmul_kernel(%arg0: i32, %arg1: memref<128x128xbf16, #tpu.memory_space<vmem>>, %arg2: memref<128x16xbf16, #tpu.memory_space<vmem>>, %arg3: memref<1x16xf32, #tpu.memory_space<vmem>>, %arg4: memref<128x16xbf16, #tpu.memory_space<vmem>>) attributes {dimension_semantics = [#tpu.dimension_semantics<parallel>], iteration_bounds = array<i64: 1>, scalar_prefetch = 0 : i64, scratch_operands = 0 : i64, tpu.core_type = #tpu.core_type<tc>, window_params = [{transform_indices = @transform_0, window_bounds = array<i64: 128, 128>}, {pipeline_mode = #tpu.pipeline_mode<synchronous>, transform_indices = @transform_1, window_bounds = array<i64: 128, 16>}, {pipeline_mode = #tpu.pipeline_mode<synchronous>, transform_indices = @transform_2, window_bounds = array<i64: 1, 16>}, {transform_indices = @transform_3, window_bounds = array<i64: 128, 16>}]} {
    %c0 = arith.constant 0 : index
    %c0_0 = arith.constant 0 : index
    %0 = vector.load %arg1[%c0, %c0_0] : memref<128x128xbf16, #tpu.memory_space<vmem>>, vector<128x128xbf16>
    %c0_1 = arith.constant 0 : index
    %c0_2 = arith.constant 0 : index
    %1 = vector.load %arg2[%c0_1, %c0_2] : memref<128x16xbf16, #tpu.memory_space<vmem>>, vector<128x16xbf16>
    %cst = arith.constant dense<0.000000e+00> : vector<128x16xf32>
    %2 = tpu.matmul %0, %1, %cst {dimension_numbers = #tpu.dot_dimension_numbers<[1], [0], [0], [1], [0, 0, 1, 1], [], []>} : vector<128x128xbf16>, vector<128x16xbf16>, vector<128x16xf32> -> vector<128x16xf32>
    %c0_3 = arith.constant 0 : index
    %c0_4 = arith.constant 0 : index
    %3 = vector.load %arg3[%c0_3, %c0_4] : memref<1x16xf32, #tpu.memory_space<vmem>>, vector<1x16xf32>
    %4 = vector.broadcast %3 : vector<1x16xf32> to vector<128x16xf32>
    %5 = arith.addf %2, %4 : vector<128x16xf32>
    %6 = arith.truncf %5 : vector<128x16xf32> to vector<128x16xbf16>
    %c0_5 = arith.constant 0 : index
    %c0_6 = arith.constant 0 : index
    %7 = vector.load %arg4[%c0_5, %c0_6] : memref<128x16xbf16, #tpu.memory_space<vmem>>, vector<128x16xbf16>
    tpu.vector_store %arg4[%c0_5, %c0_6], %6 {strides = array<i32>} : memref<128x16xbf16, #tpu.memory_space<vmem>>, vector<128x16xbf16>,
    return
  }
  func.func @transform_0(%arg0: i32) -> (i32, i32) {
    %c0_i32 = arith.constant 0 : i32
    %c0_i32_0 = arith.constant 0 : i32
    return %arg0, %c0_i32 : i32, i32
  }
  func.func @transform_1(%arg0: i32) -> (i32, i32) {
    %c0_i32 = arith.constant 0 : i32
    %c0_i32_0 = arith.constant 0 : i32
    %c0_i32_1 = arith.constant 0 : i32
    return %c0_i32, %c0_i32_0 : i32, i32
  }
  func.func @transform_2(%arg0: i32) -> (i32, i32) {
    %c0_i32 = arith.constant 0 : i32
    %c0_i32_0 = arith.constant 0 : i32
    %c0_i32_1 = arith.constant 0 : i32
    return %c0_i32, %c0_i32_0 : i32, i32
  }
  func.func @transform_3(%arg0: i32) -> (i32, i32) {
    %c0_i32 = arith.constant 0 : i32
    %c0_i32_0 = arith.constant 0 : i32
    return %arg0, %c0_i32 : i32, i32
  }
}

module attributes {stable_mosaic.version = 11 : i64} {
  func.func @_norm_kernel(%arg0: i32, %arg1: i32, %arg2: i32, %arg3: memref<1x64x16xbf16, #tpu.memory_space<vmem>>, %arg4: memref<1x64x16xbf16, #tpu.memory_space<vmem>>, %arg5: memref<1x16xf32, #tpu.memory_space<vmem>>, %arg6: memref<1x16xf32, #tpu.memory_space<vmem>>) attributes {dimension_semantics = [#tpu.dimension_semantics<parallel>, #tpu.dimension_semantics<arbitrary>, #tpu.dimension_semantics<arbitrary>], iteration_bounds = array<i64: 2, 2, 1>, scalar_prefetch = 0 : i64, scratch_operands = 2 : i64, tpu.core_type = #tpu.core_type<tc>, window_params = [{transform_indices = @transform_0, window_bounds = array<i64: 1, 64, 16>}, {transform_indices = @transform_1, window_bounds = array<i64: 1, 64, 16>}]} {
    %c0_i32 = arith.constant 0 : i32
    %0 = arith.cmpi eq, %arg1, %c0_i32 : i32
    %c0_i32_0 = arith.constant 0 : i32
    %1 = arith.cmpi eq, %arg2, %c0_i32_0 : i32
    %2 = arith.andi %0, %1 : i1
    %3 = arith.extui %2 : i1 to i32
    %c0_i32_1 = arith.constant 0 : i32
    %4 = arith.cmpi ne, %3, %c0_i32_1 : i32
    scf.if %4 {
      %cst = arith.constant 0.000000e+00 : f32
      %11 = vector.broadcast %cst : f32 to vector<1x16xf32>
      %c0 = arith.constant 0 : index
      %c0_5 = arith.constant 0 : index
      %12 = vector.load %arg5[%c0, %c0_5] : memref<1x16xf32, #tpu.memory_space<vmem>>, vector<1x16xf32>
      tpu.vector_store %arg5[%c0, %c0_5], %11 {strides = array<i32>} : memref<1x16xf32, #tpu.memory_space<vmem>>, vector<1x16xf32>,
      %cst_6 = arith.constant 0.000000e+00 : f32
      %13 = vector.broadcast %cst_6 : f32 to vector<1x16xf32>
      %c0_7 = arith.constant 0 : index
      %c0_8 = arith.constant 0 : index
      %14 = vector.load %arg6[%c0_7, %c0_8] : memref<1x16xf32, #tpu.memory_space<vmem>>, vector<1x16xf32>
      tpu.vector_store %arg6[%c0_7, %c0_8], %13 {strides = array<i32>} : memref<1x16xf32, #tpu.memory_space<vmem>>, vector<1x16xf32>,
    } else {
    }
    %c0_i32_2 = arith.constant 0 : i32
    %5 = arith.cmpi eq, %arg1, %c0_i32_2 : i32
    %6 = arith.extui %5 : i1 to i32
    %c0_i32_3 = arith.constant 0 : i32
    %7 = arith.cmpi ne, %6, %c0_i32_3 : i32
    scf.if %7 {
      %c0 = arith.constant 0 : index
      %c0_5 = arith.constant 0 : index
      %c0_6 = arith.constant 0 : index
      %11 = vector.load %arg3[%c0, %c0_5, %c0_6] : memref<1x64x16xbf16, #tpu.memory_space<vmem>>, vector<1x64x16xbf16>
      %12 = vector.shape_cast %11 : vector<1x64x16xbf16> to vector<64x16xbf16>
      %13 = arith.extf %12 : vector<64x16xbf16> to vector<64x16xf32>
      %c0_7 = arith.constant 0 : index
      %c0_8 = arith.constant 0 : index
      %14 = vector.load %arg5[%c0_7, %c0_8] : memref<1x16xf32, #tpu.memory_space<vmem>>, vector<1x16xf32>
      %cst = arith.constant dense<0.000000e+00> : vector<16xf32>
      %15 = vector.multi_reduction <add>, %13, %cst [0] : vector<64x16xf32> to vector<16xf32>
      %16 = vector.shape_cast %15 : vector<16xf32> to vector<1x16xf32>
      %17 = arith.addf %14, %16 : vector<1x16xf32>
      %c0_9 = arith.constant 0 : index
      %c0_10 = arith.constant 0 : index
      %18 = vector.load %arg5[%c0_9, %c0_10] : memref<1x16xf32, #tpu.memory_space<vmem>>, vector<1x16xf32>
      tpu.vector_store %arg5[%c0_9, %c0_10], %17 {strides = array<i32>} : memref<1x16xf32, #tpu.memory_space<vmem>>, vector<1x16xf32>,
      %c0_11 = arith.constant 0 : index
      %c0_12 = arith.constant 0 : index
      %19 = vector.load %arg6[%c0_11, %c0_12] : memref<1x16xf32, #tpu.memory_space<vmem>>, vector<1x16xf32>
      %20 = arith.mulf %13, %13 : vector<64x16xf32>
      %cst_13 = arith.constant dense<0.000000e+00> : vector<16xf32>
      %21 = vector.multi_reduction <add>, %20, %cst_13 [0] : vector<64x16xf32> to vector<16xf32>
      %22 = vector.shape_cast %21 : vector<16xf32> to vector<1x16xf32>
      %23 = arith.addf %19, %22 : vector<1x16xf32>
      %c0_14 = arith.constant 0 : index
      %c0_15 = arith.constant 0 : index
      %24 = vector.load %arg6[%c0_14, %c0_15] : memref<1x16xf32, #tpu.memory_space<vmem>>, vector<1x16xf32>
      tpu.vector_store %arg6[%c0_14, %c0_15], %23 {strides = array<i32>} : memref<1x16xf32, #tpu.memory_space<vmem>>, vector<1x16xf32>,
    } else {
    }
    %c1_i32 = arith.constant 1 : i32
    %8 = arith.cmpi eq, %arg1, %c1_i32 : i32
    %9 = arith.extui %8 : i1 to i32
    %c0_i32_4 = arith.constant 0 : i32
    %10 = arith.cmpi ne, %9, %c0_i32_4 : i32
    scf.if %10 {
      %c0 = arith.constant 0 : index
      %c0_5 = arith.constant 0 : index
      %c0_6 = arith.constant 0 : index
      %11 = vector.load %arg3[%c0, %c0_5, %c0_6] : memref<1x64x16xbf16, #tpu.memory_space<vmem>>, vector<1x64x16xbf16>
      %12 = vector.shape_cast %11 : vector<1x64x16xbf16> to vector<64x16xbf16>
      %13 = arith.extf %12 : vector<64x16xbf16> to vector<64x16xf32>
      %c0_7 = arith.constant 0 : index
      %c0_8 = arith.constant 0 : index
      %14 = vector.load %arg5[%c0_7, %c0_8] : memref<1x16xf32, #tpu.memory_space<vmem>>, vector<1x16xf32>
      %cst = arith.constant 1.562500e-02 : f32
      %15 = vector.broadcast %cst : f32 to vector<1x16xf32>
      %16 = arith.mulf %14, %15 : vector<1x16xf32>
      %c0_9 = arith.constant 0 : index
      %c0_10 = arith.constant 0 : index
      %17 = vector.load %arg6[%c0_9, %c0_10] : memref<1x16xf32, #tpu.memory_space<vmem>>, vector<1x16xf32>
      %cst_11 = arith.constant 1.562500e-02 : f32
      %18 = vector.broadcast %cst_11 : f32 to vector<1x16xf32>
      %19 = arith.mulf %17, %18 : vector<1x16xf32>
      %20 = arith.mulf %16, %16 : vector<1x16xf32>
      %21 = arith.subf %19, %20 : vector<1x16xf32>
      %cst_12 = arith.constant 0.000000e+00 : f32
      %22 = vector.broadcast %cst_12 : f32 to vector<1x16xf32>
      %23 = arith.maximumf %21, %22 : vector<1x16xf32>
      %24 = vector.broadcast %16 : vector<1x16xf32> to vector<64x16xf32>
      %25 = arith.subf %13, %24 : vector<64x16xf32>
      %cst_13 = arith.constant 9.99999974E-6 : f32
      %26 = vector.broadcast %cst_13 : f32 to vector<1x16xf32>
      %27 = arith.addf %23, %26 : vector<1x16xf32>
      %28 = math.rsqrt %27 : vector<1x16xf32>
      %29 = vector.broadcast %28 : vector<1x16xf32> to vector<64x16xf32>
      %30 = arith.mulf %25, %29 : vector<64x16xf32>
      %cst_14 = arith.constant 0.000000e+00 : f32
      %31 = vector.broadcast %cst_14 : f32 to vector<64x16xf32>
      %32 = arith.maximumf %30, %31 : vector<64x16xf32>
      %33 = vector.shape_cast %32 : vector<64x16xf32> to vector<1x64x16xf32>
      %34 = arith.truncf %33 : vector<1x64x16xf32> to vector<1x64x16xbf16>
      %c0_15 = arith.constant 0 : index
      %c0_16 = arith.constant 0 : index
      %c0_17 = arith.constant 0 : index
      %35 = vector.load %arg4[%c0_15, %c0_16, %c0_17] : memref<1x64x16xbf16, #tpu.memory_space<vmem>>, vector<1x64x16xbf16>
      tpu.vector_store %arg4[%c0_15, %c0_16, %c0_17], %34 {strides = array<i32>} : memref<1x64x16xbf16, #tpu.memory_space<vmem>>, vector<1x64x16xbf16>,
    } else {
    }
    return
  }
  func.func @transform_0(%arg0: i32, %arg1: i32, %arg2: i32) -> (i32, i32, i32) {
    %c0_i32 = arith.constant 0 : i32
    %c0_i32_0 = arith.constant 0 : i32
    return %arg0, %arg2, %c0_i32 : i32, i32, i32
  }
  func.func @transform_1(%arg0: i32, %arg1: i32, %arg2: i32) -> (i32, i32, i32) {
    %0 = arith.muli %arg2, %arg1 : i32
    %c0_i32 = arith.constant 0 : i32
    %c0_i32_0 = arith.constant 0 : i32
    return %arg0, %0, %c0_i32 : i32, i32, i32
  }
}

module attributes {stable_mosaic.version = 11 : i64} {
  func.func @_matmul_kernel(%arg0: i32, %arg1: memref<32x256xbf16, #tpu.memory_space<vmem>>, %arg2: memref<256x32xbf16, #tpu.memory_space<vmem>>, %arg3: memref<1x32xf32, #tpu.memory_space<vmem>>, %arg4: memref<32x32xbf16, #tpu.memory_space<vmem>>) attributes {dimension_semantics = [#tpu.dimension_semantics<parallel>], iteration_bounds = array<i64: 1>, scalar_prefetch = 0 : i64, scratch_operands = 0 : i64, tpu.core_type = #tpu.core_type<tc>, window_params = [{transform_indices = @transform_0, window_bounds = array<i64: 32, 256>}, {pipeline_mode = #tpu.pipeline_mode<synchronous>, transform_indices = @transform_1, window_bounds = array<i64: 256, 32>}, {pipeline_mode = #tpu.pipeline_mode<synchronous>, transform_indices = @transform_2, window_bounds = array<i64: 1, 32>}, {transform_indices = @transform_3, window_bounds = array<i64: 32, 32>}]} {
    %c0 = arith.constant 0 : index
    %c0_0 = arith.constant 0 : index
    %0 = vector.load %arg1[%c0, %c0_0] : memref<32x256xbf16, #tpu.memory_space<vmem>>, vector<32x256xbf16>
    %c0_1 = arith.constant 0 : index
    %c0_2 = arith.constant 0 : index
    %1 = vector.load %arg2[%c0_1, %c0_2] : memref<256x32xbf16, #tpu.memory_space<vmem>>, vector<256x32xbf16>
    %cst = arith.constant dense<0.000000e+00> : vector<32x32xf32>
    %2 = tpu.matmul %0, %1, %cst {dimension_numbers = #tpu.dot_dimension_numbers<[1], [0], [0], [1], [0, 0, 1, 1], [], []>} : vector<32x256xbf16>, vector<256x32xbf16>, vector<32x32xf32> -> vector<32x32xf32>
    %c0_3 = arith.constant 0 : index
    %c0_4 = arith.constant 0 : index
    %3 = vector.load %arg3[%c0_3, %c0_4] : memref<1x32xf32, #tpu.memory_space<vmem>>, vector<1x32xf32>
    %4 = vector.broadcast %3 : vector<1x32xf32> to vector<32x32xf32>
    %5 = arith.addf %2, %4 : vector<32x32xf32>
    %6 = arith.truncf %5 : vector<32x32xf32> to vector<32x32xbf16>
    %c0_5 = arith.constant 0 : index
    %c0_6 = arith.constant 0 : index
    %7 = vector.load %arg4[%c0_5, %c0_6] : memref<32x32xbf16, #tpu.memory_space<vmem>>, vector<32x32xbf16>
    tpu.vector_store %arg4[%c0_5, %c0_6], %6 {strides = array<i32>} : memref<32x32xbf16, #tpu.memory_space<vmem>>, vector<32x32xbf16>,
    return
  }
  func.func @transform_0(%arg0: i32) -> (i32, i32) {
    %c0_i32 = arith.constant 0 : i32
    %c0_i32_0 = arith.constant 0 : i32
    return %arg0, %c0_i32 : i32, i32
  }
  func.func @transform_1(%arg0: i32) -> (i32, i32) {
    %c0_i32 = arith.constant 0 : i32
    %c0_i32_0 = arith.constant 0 : i32
    %c0_i32_1 = arith.constant 0 : i32
    return %c0_i32, %c0_i32_0 : i32, i32
  }
  func.func @transform_2(%arg0: i32) -> (i32, i32) {
    %c0_i32 = arith.constant 0 : i32
    %c0_i32_0 = arith.constant 0 : i32
    %c0_i32_1 = arith.constant 0 : i32
    return %c0_i32, %c0_i32_0 : i32, i32
  }
  func.func @transform_3(%arg0: i32) -> (i32, i32) {
    %c0_i32 = arith.constant 0 : i32
    %c0_i32_0 = arith.constant 0 : i32
    return %arg0, %c0_i32 : i32, i32
  }
}

module attributes {stable_mosaic.version = 11 : i64} {
  func.func @_norm_kernel(%arg0: i32, %arg1: i32, %arg2: i32, %arg3: memref<1x16x32xbf16, #tpu.memory_space<vmem>>, %arg4: memref<1x16x32xbf16, #tpu.memory_space<vmem>>, %arg5: memref<1x32xf32, #tpu.memory_space<vmem>>, %arg6: memref<1x32xf32, #tpu.memory_space<vmem>>) attributes {dimension_semantics = [#tpu.dimension_semantics<parallel>, #tpu.dimension_semantics<arbitrary>, #tpu.dimension_semantics<arbitrary>], iteration_bounds = array<i64: 2, 2, 1>, scalar_prefetch = 0 : i64, scratch_operands = 2 : i64, tpu.core_type = #tpu.core_type<tc>, window_params = [{transform_indices = @transform_0, window_bounds = array<i64: 1, 16, 32>}, {transform_indices = @transform_1, window_bounds = array<i64: 1, 16, 32>}]} {
    %c0_i32 = arith.constant 0 : i32
    %0 = arith.cmpi eq, %arg1, %c0_i32 : i32
    %c0_i32_0 = arith.constant 0 : i32
    %1 = arith.cmpi eq, %arg2, %c0_i32_0 : i32
    %2 = arith.andi %0, %1 : i1
    %3 = arith.extui %2 : i1 to i32
    %c0_i32_1 = arith.constant 0 : i32
    %4 = arith.cmpi ne, %3, %c0_i32_1 : i32
    scf.if %4 {
      %cst = arith.constant 0.000000e+00 : f32
      %11 = vector.broadcast %cst : f32 to vector<1x32xf32>
      %c0 = arith.constant 0 : index
      %c0_5 = arith.constant 0 : index
      %12 = vector.load %arg5[%c0, %c0_5] : memref<1x32xf32, #tpu.memory_space<vmem>>, vector<1x32xf32>
      tpu.vector_store %arg5[%c0, %c0_5], %11 {strides = array<i32>} : memref<1x32xf32, #tpu.memory_space<vmem>>, vector<1x32xf32>,
      %cst_6 = arith.constant 0.000000e+00 : f32
      %13 = vector.broadcast %cst_6 : f32 to vector<1x32xf32>
      %c0_7 = arith.constant 0 : index
      %c0_8 = arith.constant 0 : index
      %14 = vector.load %arg6[%c0_7, %c0_8] : memref<1x32xf32, #tpu.memory_space<vmem>>, vector<1x32xf32>
      tpu.vector_store %arg6[%c0_7, %c0_8], %13 {strides = array<i32>} : memref<1x32xf32, #tpu.memory_space<vmem>>, vector<1x32xf32>,
    } else {
    }
    %c0_i32_2 = arith.constant 0 : i32
    %5 = arith.cmpi eq, %arg1, %c0_i32_2 : i32
    %6 = arith.extui %5 : i1 to i32
    %c0_i32_3 = arith.constant 0 : i32
    %7 = arith.cmpi ne, %6, %c0_i32_3 : i32
    scf.if %7 {
      %c0 = arith.constant 0 : index
      %c0_5 = arith.constant 0 : index
      %c0_6 = arith.constant 0 : index
      %11 = vector.load %arg3[%c0, %c0_5, %c0_6] : memref<1x16x32xbf16, #tpu.memory_space<vmem>>, vector<1x16x32xbf16>
      %12 = vector.shape_cast %11 : vector<1x16x32xbf16> to vector<16x32xbf16>
      %13 = arith.extf %12 : vector<16x32xbf16> to vector<16x32xf32>
      %c0_7 = arith.constant 0 : index
      %c0_8 = arith.constant 0 : index
      %14 = vector.load %arg5[%c0_7, %c0_8] : memref<1x32xf32, #tpu.memory_space<vmem>>, vector<1x32xf32>
      %cst = arith.constant dense<0.000000e+00> : vector<32xf32>
      %15 = vector.multi_reduction <add>, %13, %cst [0] : vector<16x32xf32> to vector<32xf32>
      %16 = vector.shape_cast %15 : vector<32xf32> to vector<1x32xf32>
      %17 = arith.addf %14, %16 : vector<1x32xf32>
      %c0_9 = arith.constant 0 : index
      %c0_10 = arith.constant 0 : index
      %18 = vector.load %arg5[%c0_9, %c0_10] : memref<1x32xf32, #tpu.memory_space<vmem>>, vector<1x32xf32>
      tpu.vector_store %arg5[%c0_9, %c0_10], %17 {strides = array<i32>} : memref<1x32xf32, #tpu.memory_space<vmem>>, vector<1x32xf32>,
      %c0_11 = arith.constant 0 : index
      %c0_12 = arith.constant 0 : index
      %19 = vector.load %arg6[%c0_11, %c0_12] : memref<1x32xf32, #tpu.memory_space<vmem>>, vector<1x32xf32>
      %20 = arith.mulf %13, %13 : vector<16x32xf32>
      %cst_13 = arith.constant dense<0.000000e+00> : vector<32xf32>
      %21 = vector.multi_reduction <add>, %20, %cst_13 [0] : vector<16x32xf32> to vector<32xf32>
      %22 = vector.shape_cast %21 : vector<32xf32> to vector<1x32xf32>
      %23 = arith.addf %19, %22 : vector<1x32xf32>
      %c0_14 = arith.constant 0 : index
      %c0_15 = arith.constant 0 : index
      %24 = vector.load %arg6[%c0_14, %c0_15] : memref<1x32xf32, #tpu.memory_space<vmem>>, vector<1x32xf32>
      tpu.vector_store %arg6[%c0_14, %c0_15], %23 {strides = array<i32>} : memref<1x32xf32, #tpu.memory_space<vmem>>, vector<1x32xf32>,
    } else {
    }
    %c1_i32 = arith.constant 1 : i32
    %8 = arith.cmpi eq, %arg1, %c1_i32 : i32
    %9 = arith.extui %8 : i1 to i32
    %c0_i32_4 = arith.constant 0 : i32
    %10 = arith.cmpi ne, %9, %c0_i32_4 : i32
    scf.if %10 {
      %c0 = arith.constant 0 : index
      %c0_5 = arith.constant 0 : index
      %c0_6 = arith.constant 0 : index
      %11 = vector.load %arg3[%c0, %c0_5, %c0_6] : memref<1x16x32xbf16, #tpu.memory_space<vmem>>, vector<1x16x32xbf16>
      %12 = vector.shape_cast %11 : vector<1x16x32xbf16> to vector<16x32xbf16>
      %13 = arith.extf %12 : vector<16x32xbf16> to vector<16x32xf32>
      %c0_7 = arith.constant 0 : index
      %c0_8 = arith.constant 0 : index
      %14 = vector.load %arg5[%c0_7, %c0_8] : memref<1x32xf32, #tpu.memory_space<vmem>>, vector<1x32xf32>
      %cst = arith.constant 6.250000e-02 : f32
      %15 = vector.broadcast %cst : f32 to vector<1x32xf32>
      %16 = arith.mulf %14, %15 : vector<1x32xf32>
      %c0_9 = arith.constant 0 : index
      %c0_10 = arith.constant 0 : index
      %17 = vector.load %arg6[%c0_9, %c0_10] : memref<1x32xf32, #tpu.memory_space<vmem>>, vector<1x32xf32>
      %cst_11 = arith.constant 6.250000e-02 : f32
      %18 = vector.broadcast %cst_11 : f32 to vector<1x32xf32>
      %19 = arith.mulf %17, %18 : vector<1x32xf32>
      %20 = arith.mulf %16, %16 : vector<1x32xf32>
      %21 = arith.subf %19, %20 : vector<1x32xf32>
      %cst_12 = arith.constant 0.000000e+00 : f32
      %22 = vector.broadcast %cst_12 : f32 to vector<1x32xf32>
      %23 = arith.maximumf %21, %22 : vector<1x32xf32>
      %24 = vector.broadcast %16 : vector<1x32xf32> to vector<16x32xf32>
      %25 = arith.subf %13, %24 : vector<16x32xf32>
      %cst_13 = arith.constant 9.99999974E-6 : f32
      %26 = vector.broadcast %cst_13 : f32 to vector<1x32xf32>
      %27 = arith.addf %23, %26 : vector<1x32xf32>
      %28 = math.rsqrt %27 : vector<1x32xf32>
      %29 = vector.broadcast %28 : vector<1x32xf32> to vector<16x32xf32>
      %30 = arith.mulf %25, %29 : vector<16x32xf32>
      %cst_14 = arith.constant 0.000000e+00 : f32
      %31 = vector.broadcast %cst_14 : f32 to vector<16x32xf32>
      %32 = arith.maximumf %30, %31 : vector<16x32xf32>
      %33 = vector.shape_cast %32 : vector<16x32xf32> to vector<1x16x32xf32>
      %34 = arith.truncf %33 : vector<1x16x32xf32> to vector<1x16x32xbf16>
      %c0_15 = arith.constant 0 : index
      %c0_16 = arith.constant 0 : index
      %c0_17 = arith.constant 0 : index
      %35 = vector.load %arg4[%c0_15, %c0_16, %c0_17] : memref<1x16x32xbf16, #tpu.memory_space<vmem>>, vector<1x16x32xbf16>
      tpu.vector_store %arg4[%c0_15, %c0_16, %c0_17], %34 {strides = array<i32>} : memref<1x16x32xbf16, #tpu.memory_space<vmem>>, vector<1x16x32xbf16>,
    } else {
    }
    return
  }
  func.func @transform_0(%arg0: i32, %arg1: i32, %arg2: i32) -> (i32, i32, i32) {
    %c0_i32 = arith.constant 0 : i32
    %c0_i32_0 = arith.constant 0 : i32
    return %arg0, %arg2, %c0_i32 : i32, i32, i32
  }
  func.func @transform_1(%arg0: i32, %arg1: i32, %arg2: i32) -> (i32, i32, i32) {
    %0 = arith.muli %arg2, %arg1 : i32
    %c0_i32 = arith.constant 0 : i32
    %c0_i32_0 = arith.constant 0 : i32
    return %arg0, %0, %c0_i32 : i32, i32, i32
  }
}

module attributes {stable_mosaic.version = 11 : i64} {
  func.func @_matmul_kernel(%arg0: i32, %arg1: memref<32x384xbf16, #tpu.memory_space<vmem>>, %arg2: memref<384x32xbf16, #tpu.memory_space<vmem>>, %arg3: memref<1x32xf32, #tpu.memory_space<vmem>>, %arg4: memref<32x32xbf16, #tpu.memory_space<vmem>>) attributes {dimension_semantics = [#tpu.dimension_semantics<parallel>], iteration_bounds = array<i64: 1>, scalar_prefetch = 0 : i64, scratch_operands = 0 : i64, tpu.core_type = #tpu.core_type<tc>, window_params = [{transform_indices = @transform_0, window_bounds = array<i64: 32, 384>}, {pipeline_mode = #tpu.pipeline_mode<synchronous>, transform_indices = @transform_1, window_bounds = array<i64: 384, 32>}, {pipeline_mode = #tpu.pipeline_mode<synchronous>, transform_indices = @transform_2, window_bounds = array<i64: 1, 32>}, {transform_indices = @transform_3, window_bounds = array<i64: 32, 32>}]} {
    %c0 = arith.constant 0 : index
    %c0_0 = arith.constant 0 : index
    %0 = vector.load %arg1[%c0, %c0_0] : memref<32x384xbf16, #tpu.memory_space<vmem>>, vector<32x384xbf16>
    %c0_1 = arith.constant 0 : index
    %c0_2 = arith.constant 0 : index
    %1 = vector.load %arg2[%c0_1, %c0_2] : memref<384x32xbf16, #tpu.memory_space<vmem>>, vector<384x32xbf16>
    %cst = arith.constant dense<0.000000e+00> : vector<32x32xf32>
    %2 = tpu.matmul %0, %1, %cst {dimension_numbers = #tpu.dot_dimension_numbers<[1], [0], [0], [1], [0, 0, 1, 1], [], []>} : vector<32x384xbf16>, vector<384x32xbf16>, vector<32x32xf32> -> vector<32x32xf32>
    %c0_3 = arith.constant 0 : index
    %c0_4 = arith.constant 0 : index
    %3 = vector.load %arg3[%c0_3, %c0_4] : memref<1x32xf32, #tpu.memory_space<vmem>>, vector<1x32xf32>
    %4 = vector.broadcast %3 : vector<1x32xf32> to vector<32x32xf32>
    %5 = arith.addf %2, %4 : vector<32x32xf32>
    %6 = arith.truncf %5 : vector<32x32xf32> to vector<32x32xbf16>
    %c0_5 = arith.constant 0 : index
    %c0_6 = arith.constant 0 : index
    %7 = vector.load %arg4[%c0_5, %c0_6] : memref<32x32xbf16, #tpu.memory_space<vmem>>, vector<32x32xbf16>
    tpu.vector_store %arg4[%c0_5, %c0_6], %6 {strides = array<i32>} : memref<32x32xbf16, #tpu.memory_space<vmem>>, vector<32x32xbf16>,
    return
  }
  func.func @transform_0(%arg0: i32) -> (i32, i32) {
    %c0_i32 = arith.constant 0 : i32
    %c0_i32_0 = arith.constant 0 : i32
    return %arg0, %c0_i32 : i32, i32
  }
  func.func @transform_1(%arg0: i32) -> (i32, i32) {
    %c0_i32 = arith.constant 0 : i32
    %c0_i32_0 = arith.constant 0 : i32
    %c0_i32_1 = arith.constant 0 : i32
    return %c0_i32, %c0_i32_0 : i32, i32
  }
  func.func @transform_2(%arg0: i32) -> (i32, i32) {
    %c0_i32 = arith.constant 0 : i32
    %c0_i32_0 = arith.constant 0 : i32
    %c0_i32_1 = arith.constant 0 : i32
    return %c0_i32, %c0_i32_0 : i32, i32
  }
  func.func @transform_3(%arg0: i32) -> (i32, i32) {
    %c0_i32 = arith.constant 0 : i32
    %c0_i32_0 = arith.constant 0 : i32
    return %arg0, %c0_i32 : i32, i32
  }
}

module attributes {stable_mosaic.version = 11 : i64} {
  func.func @_norm_kernel(%arg0: i32, %arg1: i32, %arg2: i32, %arg3: memref<1x16x32xbf16, #tpu.memory_space<vmem>>, %arg4: memref<1x16x32xbf16, #tpu.memory_space<vmem>>, %arg5: memref<1x16x32xbf16, #tpu.memory_space<vmem>>, %arg6: memref<1x32xf32, #tpu.memory_space<vmem>>, %arg7: memref<1x32xf32, #tpu.memory_space<vmem>>) attributes {dimension_semantics = [#tpu.dimension_semantics<parallel>, #tpu.dimension_semantics<arbitrary>, #tpu.dimension_semantics<arbitrary>], iteration_bounds = array<i64: 2, 2, 1>, scalar_prefetch = 0 : i64, scratch_operands = 2 : i64, tpu.core_type = #tpu.core_type<tc>, window_params = [{transform_indices = @transform_0, window_bounds = array<i64: 1, 16, 32>}, {transform_indices = @transform_1, window_bounds = array<i64: 1, 16, 32>}, {transform_indices = @transform_2, window_bounds = array<i64: 1, 16, 32>}]} {
    %c0_i32 = arith.constant 0 : i32
    %0 = arith.cmpi eq, %arg1, %c0_i32 : i32
    %c0_i32_0 = arith.constant 0 : i32
    %1 = arith.cmpi eq, %arg2, %c0_i32_0 : i32
    %2 = arith.andi %0, %1 : i1
    %3 = arith.extui %2 : i1 to i32
    %c0_i32_1 = arith.constant 0 : i32
    %4 = arith.cmpi ne, %3, %c0_i32_1 : i32
    scf.if %4 {
      %cst = arith.constant 0.000000e+00 : f32
      %11 = vector.broadcast %cst : f32 to vector<1x32xf32>
      %c0 = arith.constant 0 : index
      %c0_5 = arith.constant 0 : index
      %12 = vector.load %arg6[%c0, %c0_5] : memref<1x32xf32, #tpu.memory_space<vmem>>, vector<1x32xf32>
      tpu.vector_store %arg6[%c0, %c0_5], %11 {strides = array<i32>} : memref<1x32xf32, #tpu.memory_space<vmem>>, vector<1x32xf32>,
      %cst_6 = arith.constant 0.000000e+00 : f32
      %13 = vector.broadcast %cst_6 : f32 to vector<1x32xf32>
      %c0_7 = arith.constant 0 : index
      %c0_8 = arith.constant 0 : index
      %14 = vector.load %arg7[%c0_7, %c0_8] : memref<1x32xf32, #tpu.memory_space<vmem>>, vector<1x32xf32>
      tpu.vector_store %arg7[%c0_7, %c0_8], %13 {strides = array<i32>} : memref<1x32xf32, #tpu.memory_space<vmem>>, vector<1x32xf32>,
    } else {
    }
    %c0_i32_2 = arith.constant 0 : i32
    %5 = arith.cmpi eq, %arg1, %c0_i32_2 : i32
    %6 = arith.extui %5 : i1 to i32
    %c0_i32_3 = arith.constant 0 : i32
    %7 = arith.cmpi ne, %6, %c0_i32_3 : i32
    scf.if %7 {
      %c0 = arith.constant 0 : index
      %c0_5 = arith.constant 0 : index
      %c0_6 = arith.constant 0 : index
      %11 = vector.load %arg3[%c0, %c0_5, %c0_6] : memref<1x16x32xbf16, #tpu.memory_space<vmem>>, vector<1x16x32xbf16>
      %12 = vector.shape_cast %11 : vector<1x16x32xbf16> to vector<16x32xbf16>
      %13 = arith.extf %12 : vector<16x32xbf16> to vector<16x32xf32>
      %c0_7 = arith.constant 0 : index
      %c0_8 = arith.constant 0 : index
      %14 = vector.load %arg6[%c0_7, %c0_8] : memref<1x32xf32, #tpu.memory_space<vmem>>, vector<1x32xf32>
      %cst = arith.constant dense<0.000000e+00> : vector<32xf32>
      %15 = vector.multi_reduction <add>, %13, %cst [0] : vector<16x32xf32> to vector<32xf32>
      %16 = vector.shape_cast %15 : vector<32xf32> to vector<1x32xf32>
      %17 = arith.addf %14, %16 : vector<1x32xf32>
      %c0_9 = arith.constant 0 : index
      %c0_10 = arith.constant 0 : index
      %18 = vector.load %arg6[%c0_9, %c0_10] : memref<1x32xf32, #tpu.memory_space<vmem>>, vector<1x32xf32>
      tpu.vector_store %arg6[%c0_9, %c0_10], %17 {strides = array<i32>} : memref<1x32xf32, #tpu.memory_space<vmem>>, vector<1x32xf32>,
      %c0_11 = arith.constant 0 : index
      %c0_12 = arith.constant 0 : index
      %19 = vector.load %arg7[%c0_11, %c0_12] : memref<1x32xf32, #tpu.memory_space<vmem>>, vector<1x32xf32>
      %20 = arith.mulf %13, %13 : vector<16x32xf32>
      %cst_13 = arith.constant dense<0.000000e+00> : vector<32xf32>
      %21 = vector.multi_reduction <add>, %20, %cst_13 [0] : vector<16x32xf32> to vector<32xf32>
      %22 = vector.shape_cast %21 : vector<32xf32> to vector<1x32xf32>
      %23 = arith.addf %19, %22 : vector<1x32xf32>
      %c0_14 = arith.constant 0 : index
      %c0_15 = arith.constant 0 : index
      %24 = vector.load %arg7[%c0_14, %c0_15] : memref<1x32xf32, #tpu.memory_space<vmem>>, vector<1x32xf32>
      tpu.vector_store %arg7[%c0_14, %c0_15], %23 {strides = array<i32>} : memref<1x32xf32, #tpu.memory_space<vmem>>, vector<1x32xf32>,
    } else {
    }
    %c1_i32 = arith.constant 1 : i32
    %8 = arith.cmpi eq, %arg1, %c1_i32 : i32
    %9 = arith.extui %8 : i1 to i32
    %c0_i32_4 = arith.constant 0 : i32
    %10 = arith.cmpi ne, %9, %c0_i32_4 : i32
    scf.if %10 {
      %c0 = arith.constant 0 : index
      %c0_5 = arith.constant 0 : index
      %c0_6 = arith.constant 0 : index
      %11 = vector.load %arg3[%c0, %c0_5, %c0_6] : memref<1x16x32xbf16, #tpu.memory_space<vmem>>, vector<1x16x32xbf16>
      %12 = vector.shape_cast %11 : vector<1x16x32xbf16> to vector<16x32xbf16>
      %13 = arith.extf %12 : vector<16x32xbf16> to vector<16x32xf32>
      %c0_7 = arith.constant 0 : index
      %c0_8 = arith.constant 0 : index
      %14 = vector.load %arg6[%c0_7, %c0_8] : memref<1x32xf32, #tpu.memory_space<vmem>>, vector<1x32xf32>
      %cst = arith.constant 6.250000e-02 : f32
      %15 = vector.broadcast %cst : f32 to vector<1x32xf32>
      %16 = arith.mulf %14, %15 : vector<1x32xf32>
      %c0_9 = arith.constant 0 : index
      %c0_10 = arith.constant 0 : index
      %17 = vector.load %arg7[%c0_9, %c0_10] : memref<1x32xf32, #tpu.memory_space<vmem>>, vector<1x32xf32>
      %cst_11 = arith.constant 6.250000e-02 : f32
      %18 = vector.broadcast %cst_11 : f32 to vector<1x32xf32>
      %19 = arith.mulf %17, %18 : vector<1x32xf32>
      %20 = arith.mulf %16, %16 : vector<1x32xf32>
      %21 = arith.subf %19, %20 : vector<1x32xf32>
      %cst_12 = arith.constant 0.000000e+00 : f32
      %22 = vector.broadcast %cst_12 : f32 to vector<1x32xf32>
      %23 = arith.maximumf %21, %22 : vector<1x32xf32>
      %24 = vector.broadcast %16 : vector<1x32xf32> to vector<16x32xf32>
      %25 = arith.subf %13, %24 : vector<16x32xf32>
      %cst_13 = arith.constant 9.99999974E-6 : f32
      %26 = vector.broadcast %cst_13 : f32 to vector<1x32xf32>
      %27 = arith.addf %23, %26 : vector<1x32xf32>
      %28 = math.rsqrt %27 : vector<1x32xf32>
      %29 = vector.broadcast %28 : vector<1x32xf32> to vector<16x32xf32>
      %30 = arith.mulf %25, %29 : vector<16x32xf32>
      %c0_14 = arith.constant 0 : index
      %c0_15 = arith.constant 0 : index
      %c0_16 = arith.constant 0 : index
      %31 = vector.load %arg4[%c0_14, %c0_15, %c0_16] : memref<1x16x32xbf16, #tpu.memory_space<vmem>>, vector<1x16x32xbf16>
      %32 = vector.shape_cast %31 : vector<1x16x32xbf16> to vector<16x32xbf16>
      %33 = arith.extf %32 : vector<16x32xbf16> to vector<16x32xf32>
      %34 = arith.addf %30, %33 : vector<16x32xf32>
      %35 = vector.shape_cast %34 : vector<16x32xf32> to vector<1x16x32xf32>
      %36 = arith.truncf %35 : vector<1x16x32xf32> to vector<1x16x32xbf16>
      %c0_17 = arith.constant 0 : index
      %c0_18 = arith.constant 0 : index
      %c0_19 = arith.constant 0 : index
      %37 = vector.load %arg5[%c0_17, %c0_18, %c0_19] : memref<1x16x32xbf16, #tpu.memory_space<vmem>>, vector<1x16x32xbf16>
      tpu.vector_store %arg5[%c0_17, %c0_18, %c0_19], %36 {strides = array<i32>} : memref<1x16x32xbf16, #tpu.memory_space<vmem>>, vector<1x16x32xbf16>,
    } else {
    }
    return
  }
  func.func @transform_0(%arg0: i32, %arg1: i32, %arg2: i32) -> (i32, i32, i32) {
    %c0_i32 = arith.constant 0 : i32
    %c0_i32_0 = arith.constant 0 : i32
    return %arg0, %arg2, %c0_i32 : i32, i32, i32
  }
  func.func @transform_1(%arg0: i32, %arg1: i32, %arg2: i32) -> (i32, i32, i32) {
    %0 = arith.muli %arg2, %arg1 : i32
    %c0_i32 = arith.constant 0 : i32
    %c0_i32_0 = arith.constant 0 : i32
    return %arg0, %0, %c0_i32 : i32, i32, i32
  }
  func.func @transform_2(%arg0: i32, %arg1: i32, %arg2: i32) -> (i32, i32, i32) {
    %0 = arith.muli %arg2, %arg1 : i32
    %c0_i32 = arith.constant 0 : i32
    %c0_i32_0 = arith.constant 0 : i32
    return %arg0, %0, %c0_i32 : i32, i32, i32
  }
}

module attributes {stable_mosaic.version = 11 : i64} {
  func.func @_norm_kernel(%arg0: i32, %arg1: i32, %arg2: i32, %arg3: memref<1x16x32xbf16, #tpu.memory_space<vmem>>, %arg4: memref<1x1x32xf32, #tpu.memory_space<vmem>>, %arg5: memref<1x1x32xf32, #tpu.memory_space<vmem>>, %arg6: memref<1x16x32xbf16, #tpu.memory_space<vmem>>, %arg7: memref<1x32xf32, #tpu.memory_space<vmem>>, %arg8: memref<1x32xf32, #tpu.memory_space<vmem>>) attributes {dimension_semantics = [#tpu.dimension_semantics<parallel>, #tpu.dimension_semantics<arbitrary>, #tpu.dimension_semantics<arbitrary>], iteration_bounds = array<i64: 2, 2, 1>, scalar_prefetch = 0 : i64, scratch_operands = 2 : i64, tpu.core_type = #tpu.core_type<tc>, window_params = [{transform_indices = @transform_0, window_bounds = array<i64: 1, 16, 32>}, {transform_indices = @transform_1, window_bounds = array<i64: 1, 1, 32>}, {transform_indices = @transform_2, window_bounds = array<i64: 1, 1, 32>}, {transform_indices = @transform_3, window_bounds = array<i64: 1, 16, 32>}]} {
    %c0_i32 = arith.constant 0 : i32
    %0 = arith.cmpi eq, %arg1, %c0_i32 : i32
    %c0_i32_0 = arith.constant 0 : i32
    %1 = arith.cmpi eq, %arg2, %c0_i32_0 : i32
    %2 = arith.andi %0, %1 : i1
    %3 = arith.extui %2 : i1 to i32
    %c0_i32_1 = arith.constant 0 : i32
    %4 = arith.cmpi ne, %3, %c0_i32_1 : i32
    scf.if %4 {
      %cst = arith.constant 0.000000e+00 : f32
      %11 = vector.broadcast %cst : f32 to vector<1x32xf32>
      %c0 = arith.constant 0 : index
      %c0_5 = arith.constant 0 : index
      %12 = vector.load %arg7[%c0, %c0_5] : memref<1x32xf32, #tpu.memory_space<vmem>>, vector<1x32xf32>
      tpu.vector_store %arg7[%c0, %c0_5], %11 {strides = array<i32>} : memref<1x32xf32, #tpu.memory_space<vmem>>, vector<1x32xf32>,
      %cst_6 = arith.constant 0.000000e+00 : f32
      %13 = vector.broadcast %cst_6 : f32 to vector<1x32xf32>
      %c0_7 = arith.constant 0 : index
      %c0_8 = arith.constant 0 : index
      %14 = vector.load %arg8[%c0_7, %c0_8] : memref<1x32xf32, #tpu.memory_space<vmem>>, vector<1x32xf32>
      tpu.vector_store %arg8[%c0_7, %c0_8], %13 {strides = array<i32>} : memref<1x32xf32, #tpu.memory_space<vmem>>, vector<1x32xf32>,
    } else {
    }
    %c0_i32_2 = arith.constant 0 : i32
    %5 = arith.cmpi eq, %arg1, %c0_i32_2 : i32
    %6 = arith.extui %5 : i1 to i32
    %c0_i32_3 = arith.constant 0 : i32
    %7 = arith.cmpi ne, %6, %c0_i32_3 : i32
    scf.if %7 {
      %c0 = arith.constant 0 : index
      %c0_5 = arith.constant 0 : index
      %c0_6 = arith.constant 0 : index
      %11 = vector.load %arg3[%c0, %c0_5, %c0_6] : memref<1x16x32xbf16, #tpu.memory_space<vmem>>, vector<1x16x32xbf16>
      %12 = vector.shape_cast %11 : vector<1x16x32xbf16> to vector<16x32xbf16>
      %13 = arith.extf %12 : vector<16x32xbf16> to vector<16x32xf32>
      %c0_7 = arith.constant 0 : index
      %c0_8 = arith.constant 0 : index
      %14 = vector.load %arg7[%c0_7, %c0_8] : memref<1x32xf32, #tpu.memory_space<vmem>>, vector<1x32xf32>
      %cst = arith.constant dense<0.000000e+00> : vector<32xf32>
      %15 = vector.multi_reduction <add>, %13, %cst [0] : vector<16x32xf32> to vector<32xf32>
      %16 = vector.shape_cast %15 : vector<32xf32> to vector<1x32xf32>
      %17 = arith.addf %14, %16 : vector<1x32xf32>
      %c0_9 = arith.constant 0 : index
      %c0_10 = arith.constant 0 : index
      %18 = vector.load %arg7[%c0_9, %c0_10] : memref<1x32xf32, #tpu.memory_space<vmem>>, vector<1x32xf32>
      tpu.vector_store %arg7[%c0_9, %c0_10], %17 {strides = array<i32>} : memref<1x32xf32, #tpu.memory_space<vmem>>, vector<1x32xf32>,
      %c0_11 = arith.constant 0 : index
      %c0_12 = arith.constant 0 : index
      %19 = vector.load %arg8[%c0_11, %c0_12] : memref<1x32xf32, #tpu.memory_space<vmem>>, vector<1x32xf32>
      %20 = arith.mulf %13, %13 : vector<16x32xf32>
      %cst_13 = arith.constant dense<0.000000e+00> : vector<32xf32>
      %21 = vector.multi_reduction <add>, %20, %cst_13 [0] : vector<16x32xf32> to vector<32xf32>
      %22 = vector.shape_cast %21 : vector<32xf32> to vector<1x32xf32>
      %23 = arith.addf %19, %22 : vector<1x32xf32>
      %c0_14 = arith.constant 0 : index
      %c0_15 = arith.constant 0 : index
      %24 = vector.load %arg8[%c0_14, %c0_15] : memref<1x32xf32, #tpu.memory_space<vmem>>, vector<1x32xf32>
      tpu.vector_store %arg8[%c0_14, %c0_15], %23 {strides = array<i32>} : memref<1x32xf32, #tpu.memory_space<vmem>>, vector<1x32xf32>,
    } else {
    }
    %c1_i32 = arith.constant 1 : i32
    %8 = arith.cmpi eq, %arg1, %c1_i32 : i32
    %9 = arith.extui %8 : i1 to i32
    %c0_i32_4 = arith.constant 0 : i32
    %10 = arith.cmpi ne, %9, %c0_i32_4 : i32
    scf.if %10 {
      %c0 = arith.constant 0 : index
      %c0_5 = arith.constant 0 : index
      %c0_6 = arith.constant 0 : index
      %11 = vector.load %arg3[%c0, %c0_5, %c0_6] : memref<1x16x32xbf16, #tpu.memory_space<vmem>>, vector<1x16x32xbf16>
      %12 = vector.shape_cast %11 : vector<1x16x32xbf16> to vector<16x32xbf16>
      %13 = arith.extf %12 : vector<16x32xbf16> to vector<16x32xf32>
      %c0_7 = arith.constant 0 : index
      %c0_8 = arith.constant 0 : index
      %14 = vector.load %arg7[%c0_7, %c0_8] : memref<1x32xf32, #tpu.memory_space<vmem>>, vector<1x32xf32>
      %cst = arith.constant 6.250000e-02 : f32
      %15 = vector.broadcast %cst : f32 to vector<1x32xf32>
      %16 = arith.mulf %14, %15 : vector<1x32xf32>
      %c0_9 = arith.constant 0 : index
      %c0_10 = arith.constant 0 : index
      %17 = vector.load %arg8[%c0_9, %c0_10] : memref<1x32xf32, #tpu.memory_space<vmem>>, vector<1x32xf32>
      %cst_11 = arith.constant 6.250000e-02 : f32
      %18 = vector.broadcast %cst_11 : f32 to vector<1x32xf32>
      %19 = arith.mulf %17, %18 : vector<1x32xf32>
      %20 = arith.mulf %16, %16 : vector<1x32xf32>
      %21 = arith.subf %19, %20 : vector<1x32xf32>
      %cst_12 = arith.constant 0.000000e+00 : f32
      %22 = vector.broadcast %cst_12 : f32 to vector<1x32xf32>
      %23 = arith.maximumf %21, %22 : vector<1x32xf32>
      %24 = vector.broadcast %16 : vector<1x32xf32> to vector<16x32xf32>
      %25 = arith.subf %13, %24 : vector<16x32xf32>
      %cst_13 = arith.constant 9.99999974E-6 : f32
      %26 = vector.broadcast %cst_13 : f32 to vector<1x32xf32>
      %27 = arith.addf %23, %26 : vector<1x32xf32>
      %28 = math.rsqrt %27 : vector<1x32xf32>
      %29 = vector.broadcast %28 : vector<1x32xf32> to vector<16x32xf32>
      %30 = arith.mulf %25, %29 : vector<16x32xf32>
      %c0_14 = arith.constant 0 : index
      %c0_15 = arith.constant 0 : index
      %c0_16 = arith.constant 0 : index
      %31 = vector.load %arg4[%c0_14, %c0_15, %c0_16] : memref<1x1x32xf32, #tpu.memory_space<vmem>>, vector<1x1x32xf32>
      %32 = vector.shape_cast %31 : vector<1x1x32xf32> to vector<1x32xf32>
      %33 = vector.broadcast %32 : vector<1x32xf32> to vector<16x32xf32>
      %34 = arith.mulf %30, %33 : vector<16x32xf32>
      %c0_17 = arith.constant 0 : index
      %c0_18 = arith.constant 0 : index
      %c0_19 = arith.constant 0 : index
      %35 = vector.load %arg5[%c0_17, %c0_18, %c0_19] : memref<1x1x32xf32, #tpu.memory_space<vmem>>, vector<1x1x32xf32>
      %36 = vector.shape_cast %35 : vector<1x1x32xf32> to vector<1x32xf32>
      %37 = vector.broadcast %36 : vector<1x32xf32> to vector<16x32xf32>
      %38 = arith.addf %34, %37 : vector<16x32xf32>
      %cst_20 = arith.constant 0.000000e+00 : f32
      %39 = vector.broadcast %cst_20 : f32 to vector<16x32xf32>
      %40 = arith.maximumf %38, %39 : vector<16x32xf32>
      %41 = vector.shape_cast %40 : vector<16x32xf32> to vector<1x16x32xf32>
      %42 = arith.truncf %41 : vector<1x16x32xf32> to vector<1x16x32xbf16>
      %c0_21 = arith.constant 0 : index
      %c0_22 = arith.constant 0 : index
      %c0_23 = arith.constant 0 : index
      %43 = vector.load %arg6[%c0_21, %c0_22, %c0_23] : memref<1x16x32xbf16, #tpu.memory_space<vmem>>, vector<1x16x32xbf16>
      tpu.vector_store %arg6[%c0_21, %c0_22, %c0_23], %42 {strides = array<i32>} : memref<1x16x32xbf16, #tpu.memory_space<vmem>>, vector<1x16x32xbf16>,
    } else {
    }
    return
  }
  func.func @transform_0(%arg0: i32, %arg1: i32, %arg2: i32) -> (i32, i32, i32) {
    %c0_i32 = arith.constant 0 : i32
    %c0_i32_0 = arith.constant 0 : i32
    return %arg0, %arg2, %c0_i32 : i32, i32, i32
  }
  func.func @transform_1(%arg0: i32, %arg1: i32, %arg2: i32) -> (i32, i32, i32) {
    %c0_i32 = arith.constant 0 : i32
    %c0_i32_0 = arith.constant 0 : i32
    %c0_i32_1 = arith.constant 0 : i32
    return %arg0, %c0_i32, %c0_i32_0 : i32, i32, i32
  }
  func.func @transform_2(%arg0: i32, %arg1: i32, %arg2: i32) -> (i32, i32, i32) {
    %c0_i32 = arith.constant 0 : i32
    %c0_i32_0 = arith.constant 0 : i32
    %c0_i32_1 = arith.constant 0 : i32
    return %arg0, %c0_i32, %c0_i32_0 : i32, i32, i32
  }
  func.func @transform_3(%arg0: i32, %arg1: i32, %arg2: i32) -> (i32, i32, i32) {
    %0 = arith.muli %arg2, %arg1 : i32
    %c0_i32 = arith.constant 0 : i32
    %c0_i32_0 = arith.constant 0 : i32
    return %arg0, %0, %c0_i32 : i32, i32, i32
  }
}

module attributes {stable_mosaic.version = 11 : i64} {
  func.func @_mlp_kernel(%arg0: memref<8x128xbf16, #tpu.memory_space<vmem>>, %arg1: memref<128x128xbf16, #tpu.memory_space<vmem>>, %arg2: memref<1x128xf32, #tpu.memory_space<vmem>>, %arg3: memref<128x128xbf16, #tpu.memory_space<vmem>>, %arg4: memref<1x128xf32, #tpu.memory_space<vmem>>, %arg5: memref<128x256xbf16, #tpu.memory_space<vmem>>, %arg6: memref<1x256xf32, #tpu.memory_space<vmem>>, %arg7: memref<8x256xf32, #tpu.memory_space<vmem>>) attributes {dimension_semantics = [], scalar_prefetch = 0 : i64, scratch_operands = 0 : i64, tpu.core_type = #tpu.core_type<tc>} {
    %c0 = arith.constant 0 : index
    %c0_0 = arith.constant 0 : index
    %0 = vector.load %arg0[%c0, %c0_0] : memref<8x128xbf16, #tpu.memory_space<vmem>>, vector<8x128xbf16>
    %c0_1 = arith.constant 0 : index
    %c0_2 = arith.constant 0 : index
    %1 = vector.load %arg1[%c0_1, %c0_2] : memref<128x128xbf16, #tpu.memory_space<vmem>>, vector<128x128xbf16>
    %cst = arith.constant dense<0.000000e+00> : vector<8x128xf32>
    %2 = tpu.matmul %0, %1, %cst {dimension_numbers = #tpu.dot_dimension_numbers<[1], [0], [0], [1], [0, 0, 1, 1], [], []>} : vector<8x128xbf16>, vector<128x128xbf16>, vector<8x128xf32> -> vector<8x128xf32>
    %c0_3 = arith.constant 0 : index
    %c0_4 = arith.constant 0 : index
    %3 = vector.load %arg2[%c0_3, %c0_4] : memref<1x128xf32, #tpu.memory_space<vmem>>, vector<1x128xf32>
    %4 = vector.broadcast %3 : vector<1x128xf32> to vector<8x128xf32>
    %5 = arith.addf %2, %4 : vector<8x128xf32>
    %cst_5 = arith.constant 0.000000e+00 : f32
    %6 = vector.broadcast %cst_5 : f32 to vector<8x128xf32>
    %7 = arith.maximumf %5, %6 : vector<8x128xf32>
    %8 = arith.truncf %7 : vector<8x128xf32> to vector<8x128xbf16>
    %c0_6 = arith.constant 0 : index
    %c0_7 = arith.constant 0 : index
    %9 = vector.load %arg3[%c0_6, %c0_7] : memref<128x128xbf16, #tpu.memory_space<vmem>>, vector<128x128xbf16>
    %cst_8 = arith.constant dense<0.000000e+00> : vector<8x128xf32>
    %10 = tpu.matmul %8, %9, %cst_8 {dimension_numbers = #tpu.dot_dimension_numbers<[1], [0], [0], [1], [0, 0, 1, 1], [], []>} : vector<8x128xbf16>, vector<128x128xbf16>, vector<8x128xf32> -> vector<8x128xf32>
    %c0_9 = arith.constant 0 : index
    %c0_10 = arith.constant 0 : index
    %11 = vector.load %arg4[%c0_9, %c0_10] : memref<1x128xf32, #tpu.memory_space<vmem>>, vector<1x128xf32>
    %12 = vector.broadcast %11 : vector<1x128xf32> to vector<8x128xf32>
    %13 = arith.addf %10, %12 : vector<8x128xf32>
    %cst_11 = arith.constant 0.000000e+00 : f32
    %14 = vector.broadcast %cst_11 : f32 to vector<8x128xf32>
    %15 = arith.maximumf %13, %14 : vector<8x128xf32>
    %16 = arith.truncf %15 : vector<8x128xf32> to vector<8x128xbf16>
    %c0_12 = arith.constant 0 : index
    %c0_13 = arith.constant 0 : index
    %17 = vector.load %arg5[%c0_12, %c0_13] : memref<128x256xbf16, #tpu.memory_space<vmem>>, vector<128x256xbf16>
    %cst_14 = arith.constant dense<0.000000e+00> : vector<8x256xf32>
    %18 = tpu.matmul %16, %17, %cst_14 {dimension_numbers = #tpu.dot_dimension_numbers<[1], [0], [0], [1], [0, 0, 1, 1], [], []>} : vector<8x128xbf16>, vector<128x256xbf16>, vector<8x256xf32> -> vector<8x256xf32>
    %c0_15 = arith.constant 0 : index
    %c0_16 = arith.constant 0 : index
    %19 = vector.load %arg6[%c0_15, %c0_16] : memref<1x256xf32, #tpu.memory_space<vmem>>, vector<1x256xf32>
    %20 = vector.broadcast %19 : vector<1x256xf32> to vector<8x256xf32>
    %21 = arith.addf %18, %20 : vector<8x256xf32>
    %c0_17 = arith.constant 0 : index
    %c0_18 = arith.constant 0 : index
    %22 = vector.load %arg7[%c0_17, %c0_18] : memref<8x256xf32, #tpu.memory_space<vmem>>, vector<8x256xf32>
    tpu.vector_store %arg7[%c0_17, %c0_18], %21 {strides = array<i32>} : memref<8x256xf32, #tpu.memory_space<vmem>>, vector<8x256xf32>,
    return
  }
}

module attributes {stable_mosaic.version = 11 : i64} {
  func.func @_norm_kernel(%arg0: i32, %arg1: i32, %arg2: i32, %arg3: memref<1x16x32xbf16, #tpu.memory_space<vmem>>, %arg4: memref<1x1x32xf32, #tpu.memory_space<vmem>>, %arg5: memref<1x1x32xf32, #tpu.memory_space<vmem>>, %arg6: memref<1x16x32xbf16, #tpu.memory_space<vmem>>, %arg7: memref<1x16x32xbf16, #tpu.memory_space<vmem>>, %arg8: memref<1x32xf32, #tpu.memory_space<vmem>>, %arg9: memref<1x32xf32, #tpu.memory_space<vmem>>) attributes {dimension_semantics = [#tpu.dimension_semantics<parallel>, #tpu.dimension_semantics<arbitrary>, #tpu.dimension_semantics<arbitrary>], iteration_bounds = array<i64: 2, 2, 1>, scalar_prefetch = 0 : i64, scratch_operands = 2 : i64, tpu.core_type = #tpu.core_type<tc>, window_params = [{transform_indices = @transform_0, window_bounds = array<i64: 1, 16, 32>}, {transform_indices = @transform_1, window_bounds = array<i64: 1, 1, 32>}, {transform_indices = @transform_2, window_bounds = array<i64: 1, 1, 32>}, {transform_indices = @transform_3, window_bounds = array<i64: 1, 16, 32>}, {transform_indices = @transform_4, window_bounds = array<i64: 1, 16, 32>}]} {
    %c0_i32 = arith.constant 0 : i32
    %0 = arith.cmpi eq, %arg1, %c0_i32 : i32
    %c0_i32_0 = arith.constant 0 : i32
    %1 = arith.cmpi eq, %arg2, %c0_i32_0 : i32
    %2 = arith.andi %0, %1 : i1
    %3 = arith.extui %2 : i1 to i32
    %c0_i32_1 = arith.constant 0 : i32
    %4 = arith.cmpi ne, %3, %c0_i32_1 : i32
    scf.if %4 {
      %cst = arith.constant 0.000000e+00 : f32
      %11 = vector.broadcast %cst : f32 to vector<1x32xf32>
      %c0 = arith.constant 0 : index
      %c0_5 = arith.constant 0 : index
      %12 = vector.load %arg8[%c0, %c0_5] : memref<1x32xf32, #tpu.memory_space<vmem>>, vector<1x32xf32>
      tpu.vector_store %arg8[%c0, %c0_5], %11 {strides = array<i32>} : memref<1x32xf32, #tpu.memory_space<vmem>>, vector<1x32xf32>,
      %cst_6 = arith.constant 0.000000e+00 : f32
      %13 = vector.broadcast %cst_6 : f32 to vector<1x32xf32>
      %c0_7 = arith.constant 0 : index
      %c0_8 = arith.constant 0 : index
      %14 = vector.load %arg9[%c0_7, %c0_8] : memref<1x32xf32, #tpu.memory_space<vmem>>, vector<1x32xf32>
      tpu.vector_store %arg9[%c0_7, %c0_8], %13 {strides = array<i32>} : memref<1x32xf32, #tpu.memory_space<vmem>>, vector<1x32xf32>,
    } else {
    }
    %c0_i32_2 = arith.constant 0 : i32
    %5 = arith.cmpi eq, %arg1, %c0_i32_2 : i32
    %6 = arith.extui %5 : i1 to i32
    %c0_i32_3 = arith.constant 0 : i32
    %7 = arith.cmpi ne, %6, %c0_i32_3 : i32
    scf.if %7 {
      %c0 = arith.constant 0 : index
      %c0_5 = arith.constant 0 : index
      %c0_6 = arith.constant 0 : index
      %11 = vector.load %arg3[%c0, %c0_5, %c0_6] : memref<1x16x32xbf16, #tpu.memory_space<vmem>>, vector<1x16x32xbf16>
      %12 = vector.shape_cast %11 : vector<1x16x32xbf16> to vector<16x32xbf16>
      %13 = arith.extf %12 : vector<16x32xbf16> to vector<16x32xf32>
      %c0_7 = arith.constant 0 : index
      %c0_8 = arith.constant 0 : index
      %14 = vector.load %arg8[%c0_7, %c0_8] : memref<1x32xf32, #tpu.memory_space<vmem>>, vector<1x32xf32>
      %cst = arith.constant dense<0.000000e+00> : vector<32xf32>
      %15 = vector.multi_reduction <add>, %13, %cst [0] : vector<16x32xf32> to vector<32xf32>
      %16 = vector.shape_cast %15 : vector<32xf32> to vector<1x32xf32>
      %17 = arith.addf %14, %16 : vector<1x32xf32>
      %c0_9 = arith.constant 0 : index
      %c0_10 = arith.constant 0 : index
      %18 = vector.load %arg8[%c0_9, %c0_10] : memref<1x32xf32, #tpu.memory_space<vmem>>, vector<1x32xf32>
      tpu.vector_store %arg8[%c0_9, %c0_10], %17 {strides = array<i32>} : memref<1x32xf32, #tpu.memory_space<vmem>>, vector<1x32xf32>,
      %c0_11 = arith.constant 0 : index
      %c0_12 = arith.constant 0 : index
      %19 = vector.load %arg9[%c0_11, %c0_12] : memref<1x32xf32, #tpu.memory_space<vmem>>, vector<1x32xf32>
      %20 = arith.mulf %13, %13 : vector<16x32xf32>
      %cst_13 = arith.constant dense<0.000000e+00> : vector<32xf32>
      %21 = vector.multi_reduction <add>, %20, %cst_13 [0] : vector<16x32xf32> to vector<32xf32>
      %22 = vector.shape_cast %21 : vector<32xf32> to vector<1x32xf32>
      %23 = arith.addf %19, %22 : vector<1x32xf32>
      %c0_14 = arith.constant 0 : index
      %c0_15 = arith.constant 0 : index
      %24 = vector.load %arg9[%c0_14, %c0_15] : memref<1x32xf32, #tpu.memory_space<vmem>>, vector<1x32xf32>
      tpu.vector_store %arg9[%c0_14, %c0_15], %23 {strides = array<i32>} : memref<1x32xf32, #tpu.memory_space<vmem>>, vector<1x32xf32>,
    } else {
    }
    %c1_i32 = arith.constant 1 : i32
    %8 = arith.cmpi eq, %arg1, %c1_i32 : i32
    %9 = arith.extui %8 : i1 to i32
    %c0_i32_4 = arith.constant 0 : i32
    %10 = arith.cmpi ne, %9, %c0_i32_4 : i32
    scf.if %10 {
      %c0 = arith.constant 0 : index
      %c0_5 = arith.constant 0 : index
      %c0_6 = arith.constant 0 : index
      %11 = vector.load %arg3[%c0, %c0_5, %c0_6] : memref<1x16x32xbf16, #tpu.memory_space<vmem>>, vector<1x16x32xbf16>
      %12 = vector.shape_cast %11 : vector<1x16x32xbf16> to vector<16x32xbf16>
      %13 = arith.extf %12 : vector<16x32xbf16> to vector<16x32xf32>
      %c0_7 = arith.constant 0 : index
      %c0_8 = arith.constant 0 : index
      %14 = vector.load %arg8[%c0_7, %c0_8] : memref<1x32xf32, #tpu.memory_space<vmem>>, vector<1x32xf32>
      %cst = arith.constant 6.250000e-02 : f32
      %15 = vector.broadcast %cst : f32 to vector<1x32xf32>
      %16 = arith.mulf %14, %15 : vector<1x32xf32>
      %c0_9 = arith.constant 0 : index
      %c0_10 = arith.constant 0 : index
      %17 = vector.load %arg9[%c0_9, %c0_10] : memref<1x32xf32, #tpu.memory_space<vmem>>, vector<1x32xf32>
      %cst_11 = arith.constant 6.250000e-02 : f32
      %18 = vector.broadcast %cst_11 : f32 to vector<1x32xf32>
      %19 = arith.mulf %17, %18 : vector<1x32xf32>
      %20 = arith.mulf %16, %16 : vector<1x32xf32>
      %21 = arith.subf %19, %20 : vector<1x32xf32>
      %cst_12 = arith.constant 0.000000e+00 : f32
      %22 = vector.broadcast %cst_12 : f32 to vector<1x32xf32>
      %23 = arith.maximumf %21, %22 : vector<1x32xf32>
      %24 = vector.broadcast %16 : vector<1x32xf32> to vector<16x32xf32>
      %25 = arith.subf %13, %24 : vector<16x32xf32>
      %cst_13 = arith.constant 9.99999974E-6 : f32
      %26 = vector.broadcast %cst_13 : f32 to vector<1x32xf32>
      %27 = arith.addf %23, %26 : vector<1x32xf32>
      %28 = math.rsqrt %27 : vector<1x32xf32>
      %29 = vector.broadcast %28 : vector<1x32xf32> to vector<16x32xf32>
      %30 = arith.mulf %25, %29 : vector<16x32xf32>
      %c0_14 = arith.constant 0 : index
      %c0_15 = arith.constant 0 : index
      %c0_16 = arith.constant 0 : index
      %31 = vector.load %arg4[%c0_14, %c0_15, %c0_16] : memref<1x1x32xf32, #tpu.memory_space<vmem>>, vector<1x1x32xf32>
      %32 = vector.shape_cast %31 : vector<1x1x32xf32> to vector<1x32xf32>
      %33 = vector.broadcast %32 : vector<1x32xf32> to vector<16x32xf32>
      %34 = arith.mulf %30, %33 : vector<16x32xf32>
      %c0_17 = arith.constant 0 : index
      %c0_18 = arith.constant 0 : index
      %c0_19 = arith.constant 0 : index
      %35 = vector.load %arg5[%c0_17, %c0_18, %c0_19] : memref<1x1x32xf32, #tpu.memory_space<vmem>>, vector<1x1x32xf32>
      %36 = vector.shape_cast %35 : vector<1x1x32xf32> to vector<1x32xf32>
      %37 = vector.broadcast %36 : vector<1x32xf32> to vector<16x32xf32>
      %38 = arith.addf %34, %37 : vector<16x32xf32>
      %c0_20 = arith.constant 0 : index
      %c0_21 = arith.constant 0 : index
      %c0_22 = arith.constant 0 : index
      %39 = vector.load %arg6[%c0_20, %c0_21, %c0_22] : memref<1x16x32xbf16, #tpu.memory_space<vmem>>, vector<1x16x32xbf16>
      %40 = vector.shape_cast %39 : vector<1x16x32xbf16> to vector<16x32xbf16>
      %41 = arith.extf %40 : vector<16x32xbf16> to vector<16x32xf32>
      %42 = arith.addf %38, %41 : vector<16x32xf32>
      %43 = vector.shape_cast %42 : vector<16x32xf32> to vector<1x16x32xf32>
      %44 = arith.truncf %43 : vector<1x16x32xf32> to vector<1x16x32xbf16>
      %c0_23 = arith.constant 0 : index
      %c0_24 = arith.constant 0 : index
      %c0_25 = arith.constant 0 : index
      %45 = vector.load %arg7[%c0_23, %c0_24, %c0_25] : memref<1x16x32xbf16, #tpu.memory_space<vmem>>, vector<1x16x32xbf16>
      tpu.vector_store %arg7[%c0_23, %c0_24, %c0_25], %44 {strides = array<i32>} : memref<1x16x32xbf16, #tpu.memory_space<vmem>>, vector<1x16x32xbf16>,
    } else {
    }
    return
  }
  func.func @transform_0(%arg0: i32, %arg1: i32, %arg2: i32) -> (i32, i32, i32) {
    %c0_i32 = arith.constant 0 : i32
    %c0_i32_0 = arith.constant 0 : i32
    return %arg0, %arg2, %c0_i32 : i32, i32, i32
  }
  func.func @transform_1(%arg0: i32, %arg1: i32, %arg2: i32) -> (i32, i32, i32) {
    %c0_i32 = arith.constant 0 : i32
    %c0_i32_0 = arith.constant 0 : i32
    %c0_i32_1 = arith.constant 0 : i32
    return %arg0, %c0_i32, %c0_i32_0 : i32, i32, i32
  }
  func.func @transform_2(%arg0: i32, %arg1: i32, %arg2: i32) -> (i32, i32, i32) {
    %c0_i32 = arith.constant 0 : i32
    %c0_i32_0 = arith.constant 0 : i32
    %c0_i32_1 = arith.constant 0 : i32
    return %arg0, %c0_i32, %c0_i32_0 : i32, i32, i32
  }
  func.func @transform_3(%arg0: i32, %arg1: i32, %arg2: i32) -> (i32, i32, i32) {
    %0 = arith.muli %arg2, %arg1 : i32
    %c0_i32 = arith.constant 0 : i32
    %c0_i32_0 = arith.constant 0 : i32
    return %arg0, %0, %c0_i32 : i32, i32, i32
  }
  func.func @transform_4(%arg0: i32, %arg1: i32, %arg2: i32) -> (i32, i32, i32) {
    %0 = arith.muli %arg2, %arg1 : i32
    %c0_i32 = arith.constant 0 : i32
    %c0_i32_0 = arith.constant 0 : i32
    return %arg0, %0, %c0_i32 : i32, i32, i32
  }
}

module attributes {stable_mosaic.version = 11 : i64} {
  func.func @_matmul_kernel(%arg0: i32, %arg1: memref<128x896xbf16, #tpu.memory_space<vmem>>, %arg2: memref<896x16xbf16, #tpu.memory_space<vmem>>, %arg3: memref<1x16xf32, #tpu.memory_space<vmem>>, %arg4: memref<128x16xbf16, #tpu.memory_space<vmem>>) attributes {dimension_semantics = [#tpu.dimension_semantics<parallel>], iteration_bounds = array<i64: 1>, scalar_prefetch = 0 : i64, scratch_operands = 0 : i64, tpu.core_type = #tpu.core_type<tc>, window_params = [{transform_indices = @transform_0, window_bounds = array<i64: 128, 896>}, {pipeline_mode = #tpu.pipeline_mode<synchronous>, transform_indices = @transform_1, window_bounds = array<i64: 896, 16>}, {pipeline_mode = #tpu.pipeline_mode<synchronous>, transform_indices = @transform_2, window_bounds = array<i64: 1, 16>}, {transform_indices = @transform_3, window_bounds = array<i64: 128, 16>}]} {
    %c0 = arith.constant 0 : index
    %c0_0 = arith.constant 0 : index
    %0 = vector.load %arg1[%c0, %c0_0] : memref<128x896xbf16, #tpu.memory_space<vmem>>, vector<128x896xbf16>
    %c0_1 = arith.constant 0 : index
    %c0_2 = arith.constant 0 : index
    %1 = vector.load %arg2[%c0_1, %c0_2] : memref<896x16xbf16, #tpu.memory_space<vmem>>, vector<896x16xbf16>
    %cst = arith.constant dense<0.000000e+00> : vector<128x16xf32>
    %2 = tpu.matmul %0, %1, %cst {dimension_numbers = #tpu.dot_dimension_numbers<[1], [0], [0], [1], [0, 0, 1, 1], [], []>} : vector<128x896xbf16>, vector<896x16xbf16>, vector<128x16xf32> -> vector<128x16xf32>
    %c0_3 = arith.constant 0 : index
    %c0_4 = arith.constant 0 : index
    %3 = vector.load %arg3[%c0_3, %c0_4] : memref<1x16xf32, #tpu.memory_space<vmem>>, vector<1x16xf32>
    %4 = vector.broadcast %3 : vector<1x16xf32> to vector<128x16xf32>
    %5 = arith.addf %2, %4 : vector<128x16xf32>
    %6 = arith.truncf %5 : vector<128x16xf32> to vector<128x16xbf16>
    %c0_5 = arith.constant 0 : index
    %c0_6 = arith.constant 0 : index
    %7 = vector.load %arg4[%c0_5, %c0_6] : memref<128x16xbf16, #tpu.memory_space<vmem>>, vector<128x16xbf16>
    tpu.vector_store %arg4[%c0_5, %c0_6], %6 {strides = array<i32>} : memref<128x16xbf16, #tpu.memory_space<vmem>>, vector<128x16xbf16>,
    return
  }
  func.func @transform_0(%arg0: i32) -> (i32, i32) {
    %c0_i32 = arith.constant 0 : i32
    %c0_i32_0 = arith.constant 0 : i32
    return %arg0, %c0_i32 : i32, i32
  }
  func.func @transform_1(%arg0: i32) -> (i32, i32) {
    %c0_i32 = arith.constant 0 : i32
    %c0_i32_0 = arith.constant 0 : i32
    %c0_i32_1 = arith.constant 0 : i32
    return %c0_i32, %c0_i32_0 : i32, i32
  }
  func.func @transform_2(%arg0: i32) -> (i32, i32) {
    %c0_i32 = arith.constant 0 : i32
    %c0_i32_0 = arith.constant 0 : i32
    %c0_i32_1 = arith.constant 0 : i32
    return %c0_i32, %c0_i32_0 : i32, i32
  }
  func.func @transform_3(%arg0: i32) -> (i32, i32) {
    %c0_i32 = arith.constant 0 : i32
    %c0_i32_0 = arith.constant 0 : i32
    return %arg0, %c0_i32 : i32, i32
  }
}

module attributes {stable_mosaic.version = 11 : i64} {
  func.func @_norm_kernel(%arg0: i32, %arg1: i32, %arg2: i32, %arg3: memref<1x64x16xbf16, #tpu.memory_space<vmem>>, %arg4: memref<1x1x16xf32, #tpu.memory_space<vmem>>, %arg5: memref<1x1x16xf32, #tpu.memory_space<vmem>>, %arg6: memref<1x64x16xbf16, #tpu.memory_space<vmem>>, %arg7: memref<1x16xf32, #tpu.memory_space<vmem>>, %arg8: memref<1x16xf32, #tpu.memory_space<vmem>>) attributes {dimension_semantics = [#tpu.dimension_semantics<parallel>, #tpu.dimension_semantics<arbitrary>, #tpu.dimension_semantics<arbitrary>], iteration_bounds = array<i64: 2, 2, 1>, scalar_prefetch = 0 : i64, scratch_operands = 2 : i64, tpu.core_type = #tpu.core_type<tc>, window_params = [{transform_indices = @transform_0, window_bounds = array<i64: 1, 64, 16>}, {pipeline_mode = #tpu.pipeline_mode<synchronous>, transform_indices = @transform_1, window_bounds = array<i64: 1, 1, 16>}, {pipeline_mode = #tpu.pipeline_mode<synchronous>, transform_indices = @transform_2, window_bounds = array<i64: 1, 1, 16>}, {transform_indices = @transform_3, window_bounds = array<i64: 1, 64, 16>}]} {
    %c0_i32 = arith.constant 0 : i32
    %0 = arith.cmpi eq, %arg1, %c0_i32 : i32
    %c0_i32_0 = arith.constant 0 : i32
    %1 = arith.cmpi eq, %arg2, %c0_i32_0 : i32
    %2 = arith.andi %0, %1 : i1
    %3 = arith.extui %2 : i1 to i32
    %c0_i32_1 = arith.constant 0 : i32
    %4 = arith.cmpi ne, %3, %c0_i32_1 : i32
    scf.if %4 {
      %cst = arith.constant 0.000000e+00 : f32
      %11 = vector.broadcast %cst : f32 to vector<1x16xf32>
      %c0 = arith.constant 0 : index
      %c0_5 = arith.constant 0 : index
      %12 = vector.load %arg7[%c0, %c0_5] : memref<1x16xf32, #tpu.memory_space<vmem>>, vector<1x16xf32>
      tpu.vector_store %arg7[%c0, %c0_5], %11 {strides = array<i32>} : memref<1x16xf32, #tpu.memory_space<vmem>>, vector<1x16xf32>,
      %cst_6 = arith.constant 0.000000e+00 : f32
      %13 = vector.broadcast %cst_6 : f32 to vector<1x16xf32>
      %c0_7 = arith.constant 0 : index
      %c0_8 = arith.constant 0 : index
      %14 = vector.load %arg8[%c0_7, %c0_8] : memref<1x16xf32, #tpu.memory_space<vmem>>, vector<1x16xf32>
      tpu.vector_store %arg8[%c0_7, %c0_8], %13 {strides = array<i32>} : memref<1x16xf32, #tpu.memory_space<vmem>>, vector<1x16xf32>,
    } else {
    }
    %c0_i32_2 = arith.constant 0 : i32
    %5 = arith.cmpi eq, %arg1, %c0_i32_2 : i32
    %6 = arith.extui %5 : i1 to i32
    %c0_i32_3 = arith.constant 0 : i32
    %7 = arith.cmpi ne, %6, %c0_i32_3 : i32
    scf.if %7 {
      %c0 = arith.constant 0 : index
      %c0_5 = arith.constant 0 : index
      %c0_6 = arith.constant 0 : index
      %11 = vector.load %arg3[%c0, %c0_5, %c0_6] : memref<1x64x16xbf16, #tpu.memory_space<vmem>>, vector<1x64x16xbf16>
      %12 = vector.shape_cast %11 : vector<1x64x16xbf16> to vector<64x16xbf16>
      %13 = arith.extf %12 : vector<64x16xbf16> to vector<64x16xf32>
      %c0_7 = arith.constant 0 : index
      %c0_8 = arith.constant 0 : index
      %14 = vector.load %arg7[%c0_7, %c0_8] : memref<1x16xf32, #tpu.memory_space<vmem>>, vector<1x16xf32>
      %cst = arith.constant dense<0.000000e+00> : vector<16xf32>
      %15 = vector.multi_reduction <add>, %13, %cst [0] : vector<64x16xf32> to vector<16xf32>
      %16 = vector.shape_cast %15 : vector<16xf32> to vector<1x16xf32>
      %17 = arith.addf %14, %16 : vector<1x16xf32>
      %c0_9 = arith.constant 0 : index
      %c0_10 = arith.constant 0 : index
      %18 = vector.load %arg7[%c0_9, %c0_10] : memref<1x16xf32, #tpu.memory_space<vmem>>, vector<1x16xf32>
      tpu.vector_store %arg7[%c0_9, %c0_10], %17 {strides = array<i32>} : memref<1x16xf32, #tpu.memory_space<vmem>>, vector<1x16xf32>,
      %c0_11 = arith.constant 0 : index
      %c0_12 = arith.constant 0 : index
      %19 = vector.load %arg8[%c0_11, %c0_12] : memref<1x16xf32, #tpu.memory_space<vmem>>, vector<1x16xf32>
      %20 = arith.mulf %13, %13 : vector<64x16xf32>
      %cst_13 = arith.constant dense<0.000000e+00> : vector<16xf32>
      %21 = vector.multi_reduction <add>, %20, %cst_13 [0] : vector<64x16xf32> to vector<16xf32>
      %22 = vector.shape_cast %21 : vector<16xf32> to vector<1x16xf32>
      %23 = arith.addf %19, %22 : vector<1x16xf32>
      %c0_14 = arith.constant 0 : index
      %c0_15 = arith.constant 0 : index
      %24 = vector.load %arg8[%c0_14, %c0_15] : memref<1x16xf32, #tpu.memory_space<vmem>>, vector<1x16xf32>
      tpu.vector_store %arg8[%c0_14, %c0_15], %23 {strides = array<i32>} : memref<1x16xf32, #tpu.memory_space<vmem>>, vector<1x16xf32>,
    } else {
    }
    %c1_i32 = arith.constant 1 : i32
    %8 = arith.cmpi eq, %arg1, %c1_i32 : i32
    %9 = arith.extui %8 : i1 to i32
    %c0_i32_4 = arith.constant 0 : i32
    %10 = arith.cmpi ne, %9, %c0_i32_4 : i32
    scf.if %10 {
      %c0 = arith.constant 0 : index
      %c0_5 = arith.constant 0 : index
      %c0_6 = arith.constant 0 : index
      %11 = vector.load %arg3[%c0, %c0_5, %c0_6] : memref<1x64x16xbf16, #tpu.memory_space<vmem>>, vector<1x64x16xbf16>
      %12 = vector.shape_cast %11 : vector<1x64x16xbf16> to vector<64x16xbf16>
      %13 = arith.extf %12 : vector<64x16xbf16> to vector<64x16xf32>
      %c0_7 = arith.constant 0 : index
      %c0_8 = arith.constant 0 : index
      %14 = vector.load %arg7[%c0_7, %c0_8] : memref<1x16xf32, #tpu.memory_space<vmem>>, vector<1x16xf32>
      %15 = vector.shape_cast %14 : vector<1x16xf32> to vector<1x1x16xf32>
      %cst = arith.constant dense<0.000000e+00> : vector<1xf32>
      %16 = vector.multi_reduction <add>, %15, %cst [1, 2] : vector<1x1x16xf32> to vector<1xf32>
      %17 = vector.shape_cast %16 : vector<1xf32> to vector<1x1x1xf32>
      %18 = vector.extract %17[0, 0, 0] : f32 from vector<1x1x1xf32>
      %19 = vector.broadcast %18 : f32 to vector<1x1xf32>
      %c0_9 = arith.constant 0 : index
      %c0_10 = arith.constant 0 : index
      %20 = vector.load %arg8[%c0_9, %c0_10] : memref<1x16xf32, #tpu.memory_space<vmem>>, vector<1x16xf32>
      %21 = vector.shape_cast %20 : vector<1x16xf32> to vector<1x1x16xf32>
      %cst_11 = arith.constant dense<0.000000e+00> : vector<1xf32>
      %22 = vector.multi_reduction <add>, %21, %cst_11 [1, 2] : vector<1x1x16xf32> to vector<1xf32>
      %23 = vector.shape_cast %22 : vector<1xf32> to vector<1x1x1xf32>
      %24 = vector.extract %23[0, 0, 0] : f32 from vector<1x1x1xf32>
      %25 = vector.broadcast %24 : f32 to vector<1x1xf32>
      %cst_12 = arith.constant 1.024000e+03 : f32
      %26 = vector.broadcast %cst_12 : f32 to vector<1x1xf32>
      %27 = arith.divf %19, %26 : vector<1x1xf32>
      %cst_13 = arith.constant 1.024000e+03 : f32
      %28 = vector.broadcast %cst_13 : f32 to vector<1x1xf32>
      %29 = arith.mulf %28, %27 : vector<1x1xf32>
      %30 = arith.mulf %29, %27 : vector<1x1xf32>
      %31 = arith.subf %25, %30 : vector<1x1xf32>
      %cst_14 = arith.constant 1.023000e+03 : f32
      %32 = vector.broadcast %cst_14 : f32 to vector<1x1xf32>
      %33 = arith.divf %31, %32 : vector<1x1xf32>
      %cst_15 = arith.constant 0.000000e+00 : f32
      %34 = vector.broadcast %cst_15 : f32 to vector<1x1xf32>
      %35 = arith.maximumf %33, %34 : vector<1x1xf32>
      %36 = math.sqrt %35 : vector<1x1xf32>
      %cst_16 = arith.constant 9.99999974E-6 : f32
      %37 = vector.broadcast %cst_16 : f32 to vector<1x1xf32>
      %38 = arith.addf %36, %37 : vector<1x1xf32>
      %39 = tpu.reciprocal %38 {approx = true} : vector<1x1xf32> -> vector<1x1xf32>
      %40 = vector.broadcast %27 : vector<1x1xf32> to vector<64x16xf32>
      %41 = arith.subf %13, %40 : vector<64x16xf32>
      %42 = vector.broadcast %39 : vector<1x1xf32> to vector<64x16xf32>
      %43 = arith.mulf %41, %42 : vector<64x16xf32>
      %c0_17 = arith.constant 0 : index
      %c0_18 = arith.constant 0 : index
      %c0_19 = arith.constant 0 : index
      %44 = vector.load %arg4[%c0_17, %c0_18, %c0_19] : memref<1x1x16xf32, #tpu.memory_space<vmem>>, vector<1x1x16xf32>
      %45 = vector.shape_cast %44 : vector<1x1x16xf32> to vector<1x16xf32>
      %46 = vector.broadcast %45 : vector<1x16xf32> to vector<64x16xf32>
      %47 = arith.mulf %43, %46 : vector<64x16xf32>
      %c0_20 = arith.constant 0 : index
      %c0_21 = arith.constant 0 : index
      %c0_22 = arith.constant 0 : index
      %48 = vector.load %arg5[%c0_20, %c0_21, %c0_22] : memref<1x1x16xf32, #tpu.memory_space<vmem>>, vector<1x1x16xf32>
      %49 = vector.shape_cast %48 : vector<1x1x16xf32> to vector<1x16xf32>
      %50 = vector.broadcast %49 : vector<1x16xf32> to vector<64x16xf32>
      %51 = arith.addf %47, %50 : vector<64x16xf32>
      %cst_23 = arith.constant 0.000000e+00 : f32
      %52 = vector.broadcast %cst_23 : f32 to vector<64x16xf32>
      %53 = arith.maximumf %51, %52 : vector<64x16xf32>
      %54 = vector.shape_cast %53 : vector<64x16xf32> to vector<1x64x16xf32>
      %55 = arith.truncf %54 : vector<1x64x16xf32> to vector<1x64x16xbf16>
      %c0_24 = arith.constant 0 : index
      %c0_25 = arith.constant 0 : index
      %c0_26 = arith.constant 0 : index
      %56 = vector.load %arg6[%c0_24, %c0_25, %c0_26] : memref<1x64x16xbf16, #tpu.memory_space<vmem>>, vector<1x64x16xbf16>
      tpu.vector_store %arg6[%c0_24, %c0_25, %c0_26], %55 {strides = array<i32>} : memref<1x64x16xbf16, #tpu.memory_space<vmem>>, vector<1x64x16xbf16>,
    } else {
    }
    return
  }
  func.func @transform_0(%arg0: i32, %arg1: i32, %arg2: i32) -> (i32, i32, i32) {
    %c0_i32 = arith.constant 0 : i32
    %c0_i32_0 = arith.constant 0 : i32
    return %arg0, %arg2, %c0_i32 : i32, i32, i32
  }
  func.func @transform_1(%arg0: i32, %arg1: i32, %arg2: i32) -> (i32, i32, i32) {
    %c0_i32 = arith.constant 0 : i32
    %c0_i32_0 = arith.constant 0 : i32
    %c0_i32_1 = arith.constant 0 : i32
    %c0_i32_2 = arith.constant 0 : i32
    return %c0_i32, %c0_i32_0, %c0_i32_1 : i32, i32, i32
  }
  func.func @transform_2(%arg0: i32, %arg1: i32, %arg2: i32) -> (i32, i32, i32) {
    %c0_i32 = arith.constant 0 : i32
    %c0_i32_0 = arith.constant 0 : i32
    %c0_i32_1 = arith.constant 0 : i32
    %c0_i32_2 = arith.constant 0 : i32
    return %c0_i32, %c0_i32_0, %c0_i32_1 : i32, i32, i32
  }
  func.func @transform_3(%arg0: i32, %arg1: i32, %arg2: i32) -> (i32, i32, i32) {
    %0 = arith.muli %arg2, %arg1 : i32
    %c0_i32 = arith.constant 0 : i32
    %c0_i32_0 = arith.constant 0 : i32
    return %arg0, %0, %c0_i32 : i32, i32, i32
  }
}

module attributes {stable_mosaic.version = 11 : i64} {
  func.func @_matmul_kernel(%arg0: i32, %arg1: memref<512x512xbf16, #tpu.memory_space<vmem>>, %arg2: memref<512x8xbf16, #tpu.memory_space<vmem>>, %arg3: memref<1x8xf32, #tpu.memory_space<vmem>>, %arg4: memref<512x8xbf16, #tpu.memory_space<vmem>>) attributes {dimension_semantics = [#tpu.dimension_semantics<parallel>], iteration_bounds = array<i64: 1>, scalar_prefetch = 0 : i64, scratch_operands = 0 : i64, tpu.core_type = #tpu.core_type<tc>, window_params = [{transform_indices = @transform_0, window_bounds = array<i64: 512, 512>}, {pipeline_mode = #tpu.pipeline_mode<synchronous>, transform_indices = @transform_1, window_bounds = array<i64: 512, 8>}, {pipeline_mode = #tpu.pipeline_mode<synchronous>, transform_indices = @transform_2, window_bounds = array<i64: 1, 8>}, {transform_indices = @transform_3, window_bounds = array<i64: 512, 8>}]} {
    %c0 = arith.constant 0 : index
    %c0_0 = arith.constant 0 : index
    %0 = vector.load %arg1[%c0, %c0_0] : memref<512x512xbf16, #tpu.memory_space<vmem>>, vector<512x512xbf16>
    %c0_1 = arith.constant 0 : index
    %c0_2 = arith.constant 0 : index
    %1 = vector.load %arg2[%c0_1, %c0_2] : memref<512x8xbf16, #tpu.memory_space<vmem>>, vector<512x8xbf16>
    %cst = arith.constant dense<0.000000e+00> : vector<512x8xf32>
    %2 = tpu.matmul %0, %1, %cst {dimension_numbers = #tpu.dot_dimension_numbers<[1], [0], [0], [1], [0, 0, 1, 1], [], []>} : vector<512x512xbf16>, vector<512x8xbf16>, vector<512x8xf32> -> vector<512x8xf32>
    %c0_3 = arith.constant 0 : index
    %c0_4 = arith.constant 0 : index
    %3 = vector.load %arg3[%c0_3, %c0_4] : memref<1x8xf32, #tpu.memory_space<vmem>>, vector<1x8xf32>
    %4 = vector.broadcast %3 : vector<1x8xf32> to vector<512x8xf32>
    %5 = arith.addf %2, %4 : vector<512x8xf32>
    %6 = arith.truncf %5 : vector<512x8xf32> to vector<512x8xbf16>
    %c0_5 = arith.constant 0 : index
    %c0_6 = arith.constant 0 : index
    %7 = vector.load %arg4[%c0_5, %c0_6] : memref<512x8xbf16, #tpu.memory_space<vmem>>, vector<512x8xbf16>
    tpu.vector_store %arg4[%c0_5, %c0_6], %6 {strides = array<i32>} : memref<512x8xbf16, #tpu.memory_space<vmem>>, vector<512x8xbf16>,
    return
  }
  func.func @transform_0(%arg0: i32) -> (i32, i32) {
    %c0_i32 = arith.constant 0 : i32
    %c0_i32_0 = arith.constant 0 : i32
    return %arg0, %c0_i32 : i32, i32
  }
  func.func @transform_1(%arg0: i32) -> (i32, i32) {
    %c0_i32 = arith.constant 0 : i32
    %c0_i32_0 = arith.constant 0 : i32
    %c0_i32_1 = arith.constant 0 : i32
    return %c0_i32, %c0_i32_0 : i32, i32
  }
  func.func @transform_2(%arg0: i32) -> (i32, i32) {
    %c0_i32 = arith.constant 0 : i32
    %c0_i32_0 = arith.constant 0 : i32
    %c0_i32_1 = arith.constant 0 : i32
    return %c0_i32, %c0_i32_0 : i32, i32
  }
  func.func @transform_3(%arg0: i32) -> (i32, i32) {
    %c0_i32 = arith.constant 0 : i32
    %c0_i32_0 = arith.constant 0 : i32
    return %arg0, %c0_i32 : i32, i32
  }
}

module attributes {stable_mosaic.version = 11 : i64} {
  func.func @_norm_kernel(%arg0: i32, %arg1: i32, %arg2: i32, %arg3: memref<1x256x8xbf16, #tpu.memory_space<vmem>>, %arg4: memref<1x1x8xf32, #tpu.memory_space<vmem>>, %arg5: memref<1x1x8xf32, #tpu.memory_space<vmem>>, %arg6: memref<1x256x8xbf16, #tpu.memory_space<vmem>>, %arg7: memref<1x8xf32, #tpu.memory_space<vmem>>, %arg8: memref<1x8xf32, #tpu.memory_space<vmem>>) attributes {dimension_semantics = [#tpu.dimension_semantics<parallel>, #tpu.dimension_semantics<arbitrary>, #tpu.dimension_semantics<arbitrary>], iteration_bounds = array<i64: 2, 2, 1>, scalar_prefetch = 0 : i64, scratch_operands = 2 : i64, tpu.core_type = #tpu.core_type<tc>, window_params = [{transform_indices = @transform_0, window_bounds = array<i64: 1, 256, 8>}, {pipeline_mode = #tpu.pipeline_mode<synchronous>, transform_indices = @transform_1, window_bounds = array<i64: 1, 1, 8>}, {pipeline_mode = #tpu.pipeline_mode<synchronous>, transform_indices = @transform_2, window_bounds = array<i64: 1, 1, 8>}, {transform_indices = @transform_3, window_bounds = array<i64: 1, 256, 8>}]} {
    %c0_i32 = arith.constant 0 : i32
    %0 = arith.cmpi eq, %arg1, %c0_i32 : i32
    %c0_i32_0 = arith.constant 0 : i32
    %1 = arith.cmpi eq, %arg2, %c0_i32_0 : i32
    %2 = arith.andi %0, %1 : i1
    %3 = arith.extui %2 : i1 to i32
    %c0_i32_1 = arith.constant 0 : i32
    %4 = arith.cmpi ne, %3, %c0_i32_1 : i32
    scf.if %4 {
      %cst = arith.constant 0.000000e+00 : f32
      %11 = vector.broadcast %cst : f32 to vector<1x8xf32>
      %c0 = arith.constant 0 : index
      %c0_5 = arith.constant 0 : index
      %12 = vector.load %arg7[%c0, %c0_5] : memref<1x8xf32, #tpu.memory_space<vmem>>, vector<1x8xf32>
      tpu.vector_store %arg7[%c0, %c0_5], %11 {strides = array<i32>} : memref<1x8xf32, #tpu.memory_space<vmem>>, vector<1x8xf32>,
      %cst_6 = arith.constant 0.000000e+00 : f32
      %13 = vector.broadcast %cst_6 : f32 to vector<1x8xf32>
      %c0_7 = arith.constant 0 : index
      %c0_8 = arith.constant 0 : index
      %14 = vector.load %arg8[%c0_7, %c0_8] : memref<1x8xf32, #tpu.memory_space<vmem>>, vector<1x8xf32>
      tpu.vector_store %arg8[%c0_7, %c0_8], %13 {strides = array<i32>} : memref<1x8xf32, #tpu.memory_space<vmem>>, vector<1x8xf32>,
    } else {
    }
    %c0_i32_2 = arith.constant 0 : i32
    %5 = arith.cmpi eq, %arg1, %c0_i32_2 : i32
    %6 = arith.extui %5 : i1 to i32
    %c0_i32_3 = arith.constant 0 : i32
    %7 = arith.cmpi ne, %6, %c0_i32_3 : i32
    scf.if %7 {
      %c0 = arith.constant 0 : index
      %c0_5 = arith.constant 0 : index
      %c0_6 = arith.constant 0 : index
      %11 = vector.load %arg3[%c0, %c0_5, %c0_6] : memref<1x256x8xbf16, #tpu.memory_space<vmem>>, vector<1x256x8xbf16>
      %12 = vector.shape_cast %11 : vector<1x256x8xbf16> to vector<256x8xbf16>
      %13 = arith.extf %12 : vector<256x8xbf16> to vector<256x8xf32>
      %c0_7 = arith.constant 0 : index
      %c0_8 = arith.constant 0 : index
      %14 = vector.load %arg7[%c0_7, %c0_8] : memref<1x8xf32, #tpu.memory_space<vmem>>, vector<1x8xf32>
      %cst = arith.constant dense<0.000000e+00> : vector<8xf32>
      %15 = vector.multi_reduction <add>, %13, %cst [0] : vector<256x8xf32> to vector<8xf32>
      %16 = vector.shape_cast %15 : vector<8xf32> to vector<1x8xf32>
      %17 = arith.addf %14, %16 : vector<1x8xf32>
      %c0_9 = arith.constant 0 : index
      %c0_10 = arith.constant 0 : index
      %18 = vector.load %arg7[%c0_9, %c0_10] : memref<1x8xf32, #tpu.memory_space<vmem>>, vector<1x8xf32>
      tpu.vector_store %arg7[%c0_9, %c0_10], %17 {strides = array<i32>} : memref<1x8xf32, #tpu.memory_space<vmem>>, vector<1x8xf32>,
      %c0_11 = arith.constant 0 : index
      %c0_12 = arith.constant 0 : index
      %19 = vector.load %arg8[%c0_11, %c0_12] : memref<1x8xf32, #tpu.memory_space<vmem>>, vector<1x8xf32>
      %20 = arith.mulf %13, %13 : vector<256x8xf32>
      %cst_13 = arith.constant dense<0.000000e+00> : vector<8xf32>
      %21 = vector.multi_reduction <add>, %20, %cst_13 [0] : vector<256x8xf32> to vector<8xf32>
      %22 = vector.shape_cast %21 : vector<8xf32> to vector<1x8xf32>
      %23 = arith.addf %19, %22 : vector<1x8xf32>
      %c0_14 = arith.constant 0 : index
      %c0_15 = arith.constant 0 : index
      %24 = vector.load %arg8[%c0_14, %c0_15] : memref<1x8xf32, #tpu.memory_space<vmem>>, vector<1x8xf32>
      tpu.vector_store %arg8[%c0_14, %c0_15], %23 {strides = array<i32>} : memref<1x8xf32, #tpu.memory_space<vmem>>, vector<1x8xf32>,
    } else {
    }
    %c1_i32 = arith.constant 1 : i32
    %8 = arith.cmpi eq, %arg1, %c1_i32 : i32
    %9 = arith.extui %8 : i1 to i32
    %c0_i32_4 = arith.constant 0 : i32
    %10 = arith.cmpi ne, %9, %c0_i32_4 : i32
    scf.if %10 {
      %c0 = arith.constant 0 : index
      %c0_5 = arith.constant 0 : index
      %c0_6 = arith.constant 0 : index
      %11 = vector.load %arg3[%c0, %c0_5, %c0_6] : memref<1x256x8xbf16, #tpu.memory_space<vmem>>, vector<1x256x8xbf16>
      %12 = vector.shape_cast %11 : vector<1x256x8xbf16> to vector<256x8xbf16>
      %13 = arith.extf %12 : vector<256x8xbf16> to vector<256x8xf32>
      %c0_7 = arith.constant 0 : index
      %c0_8 = arith.constant 0 : index
      %14 = vector.load %arg7[%c0_7, %c0_8] : memref<1x8xf32, #tpu.memory_space<vmem>>, vector<1x8xf32>
      %15 = vector.shape_cast %14 : vector<1x8xf32> to vector<1x1x8xf32>
      %cst = arith.constant dense<0.000000e+00> : vector<1xf32>
      %16 = vector.multi_reduction <add>, %15, %cst [1, 2] : vector<1x1x8xf32> to vector<1xf32>
      %17 = vector.shape_cast %16 : vector<1xf32> to vector<1x1x1xf32>
      %18 = vector.extract %17[0, 0, 0] : f32 from vector<1x1x1xf32>
      %19 = vector.broadcast %18 : f32 to vector<1x1xf32>
      %c0_9 = arith.constant 0 : index
      %c0_10 = arith.constant 0 : index
      %20 = vector.load %arg8[%c0_9, %c0_10] : memref<1x8xf32, #tpu.memory_space<vmem>>, vector<1x8xf32>
      %21 = vector.shape_cast %20 : vector<1x8xf32> to vector<1x1x8xf32>
      %cst_11 = arith.constant dense<0.000000e+00> : vector<1xf32>
      %22 = vector.multi_reduction <add>, %21, %cst_11 [1, 2] : vector<1x1x8xf32> to vector<1xf32>
      %23 = vector.shape_cast %22 : vector<1xf32> to vector<1x1x1xf32>
      %24 = vector.extract %23[0, 0, 0] : f32 from vector<1x1x1xf32>
      %25 = vector.broadcast %24 : f32 to vector<1x1xf32>
      %cst_12 = arith.constant 2.048000e+03 : f32
      %26 = vector.broadcast %cst_12 : f32 to vector<1x1xf32>
      %27 = arith.divf %19, %26 : vector<1x1xf32>
      %cst_13 = arith.constant 2.048000e+03 : f32
      %28 = vector.broadcast %cst_13 : f32 to vector<1x1xf32>
      %29 = arith.mulf %28, %27 : vector<1x1xf32>
      %30 = arith.mulf %29, %27 : vector<1x1xf32>
      %31 = arith.subf %25, %30 : vector<1x1xf32>
      %cst_14 = arith.constant 2.047000e+03 : f32
      %32 = vector.broadcast %cst_14 : f32 to vector<1x1xf32>
      %33 = arith.divf %31, %32 : vector<1x1xf32>
      %cst_15 = arith.constant 0.000000e+00 : f32
      %34 = vector.broadcast %cst_15 : f32 to vector<1x1xf32>
      %35 = arith.maximumf %33, %34 : vector<1x1xf32>
      %36 = math.sqrt %35 : vector<1x1xf32>
      %cst_16 = arith.constant 9.99999974E-6 : f32
      %37 = vector.broadcast %cst_16 : f32 to vector<1x1xf32>
      %38 = arith.addf %36, %37 : vector<1x1xf32>
      %39 = tpu.reciprocal %38 {approx = true} : vector<1x1xf32> -> vector<1x1xf32>
      %40 = vector.broadcast %27 : vector<1x1xf32> to vector<256x8xf32>
      %41 = arith.subf %13, %40 : vector<256x8xf32>
      %42 = vector.broadcast %39 : vector<1x1xf32> to vector<256x8xf32>
      %43 = arith.mulf %41, %42 : vector<256x8xf32>
      %c0_17 = arith.constant 0 : index
      %c0_18 = arith.constant 0 : index
      %c0_19 = arith.constant 0 : index
      %44 = vector.load %arg4[%c0_17, %c0_18, %c0_19] : memref<1x1x8xf32, #tpu.memory_space<vmem>>, vector<1x1x8xf32>
      %45 = vector.shape_cast %44 : vector<1x1x8xf32> to vector<1x8xf32>
      %46 = vector.broadcast %45 : vector<1x8xf32> to vector<256x8xf32>
      %47 = arith.mulf %43, %46 : vector<256x8xf32>
      %c0_20 = arith.constant 0 : index
      %c0_21 = arith.constant 0 : index
      %c0_22 = arith.constant 0 : index
      %48 = vector.load %arg5[%c0_20, %c0_21, %c0_22] : memref<1x1x8xf32, #tpu.memory_space<vmem>>, vector<1x1x8xf32>
      %49 = vector.shape_cast %48 : vector<1x1x8xf32> to vector<1x8xf32>
      %50 = vector.broadcast %49 : vector<1x8xf32> to vector<256x8xf32>
      %51 = arith.addf %47, %50 : vector<256x8xf32>
      %cst_23 = arith.constant 0.000000e+00 : f32
      %52 = vector.broadcast %cst_23 : f32 to vector<256x8xf32>
      %53 = arith.maximumf %51, %52 : vector<256x8xf32>
      %54 = vector.shape_cast %53 : vector<256x8xf32> to vector<1x256x8xf32>
      %55 = arith.truncf %54 : vector<1x256x8xf32> to vector<1x256x8xbf16>
      %c0_24 = arith.constant 0 : index
      %c0_25 = arith.constant 0 : index
      %c0_26 = arith.constant 0 : index
      %56 = vector.load %arg6[%c0_24, %c0_25, %c0_26] : memref<1x256x8xbf16, #tpu.memory_space<vmem>>, vector<1x256x8xbf16>
      tpu.vector_store %arg6[%c0_24, %c0_25, %c0_26], %55 {strides = array<i32>} : memref<1x256x8xbf16, #tpu.memory_space<vmem>>, vector<1x256x8xbf16>,
    } else {
    }
    return
  }
  func.func @transform_0(%arg0: i32, %arg1: i32, %arg2: i32) -> (i32, i32, i32) {
    %c0_i32 = arith.constant 0 : i32
    %c0_i32_0 = arith.constant 0 : i32
    return %arg0, %arg2, %c0_i32 : i32, i32, i32
  }
  func.func @transform_1(%arg0: i32, %arg1: i32, %arg2: i32) -> (i32, i32, i32) {
    %c0_i32 = arith.constant 0 : i32
    %c0_i32_0 = arith.constant 0 : i32
    %c0_i32_1 = arith.constant 0 : i32
    %c0_i32_2 = arith.constant 0 : i32
    return %c0_i32, %c0_i32_0, %c0_i32_1 : i32, i32, i32
  }
  func.func @transform_2(%arg0: i32, %arg1: i32, %arg2: i32) -> (i32, i32, i32) {
    %c0_i32 = arith.constant 0 : i32
    %c0_i32_0 = arith.constant 0 : i32
    %c0_i32_1 = arith.constant 0 : i32
    %c0_i32_2 = arith.constant 0 : i32
    return %c0_i32, %c0_i32_0, %c0_i32_1 : i32, i32, i32
  }
  func.func @transform_3(%arg0: i32, %arg1: i32, %arg2: i32) -> (i32, i32, i32) {
    %0 = arith.muli %arg2, %arg1 : i32
    %c0_i32 = arith.constant 0 : i32
    %c0_i32_0 = arith.constant 0 : i32
    return %arg0, %0, %c0_i32 : i32, i32, i32
  }
}

module attributes {stable_mosaic.version = 11 : i64} {
  func.func @_matmul_kernel(%arg0: i32, %arg1: memref<512x512xbf16, #tpu.memory_space<vmem>>, %arg2: memref<512x3xbf16, #tpu.memory_space<vmem>>, %arg3: memref<1x3xf32, #tpu.memory_space<vmem>>, %arg4: memref<512x3xf32, #tpu.memory_space<vmem>>) attributes {dimension_semantics = [#tpu.dimension_semantics<parallel>], iteration_bounds = array<i64: 1>, scalar_prefetch = 0 : i64, scratch_operands = 0 : i64, tpu.core_type = #tpu.core_type<tc>, window_params = [{transform_indices = @transform_0, window_bounds = array<i64: 512, 512>}, {pipeline_mode = #tpu.pipeline_mode<synchronous>, transform_indices = @transform_1, window_bounds = array<i64: 512, 3>}, {pipeline_mode = #tpu.pipeline_mode<synchronous>, transform_indices = @transform_2, window_bounds = array<i64: 1, 3>}, {transform_indices = @transform_3, window_bounds = array<i64: 512, 3>}]} {
    %c0 = arith.constant 0 : index
    %c0_0 = arith.constant 0 : index
    %0 = vector.load %arg1[%c0, %c0_0] : memref<512x512xbf16, #tpu.memory_space<vmem>>, vector<512x512xbf16>
    %c0_1 = arith.constant 0 : index
    %c0_2 = arith.constant 0 : index
    %1 = vector.load %arg2[%c0_1, %c0_2] : memref<512x3xbf16, #tpu.memory_space<vmem>>, vector<512x3xbf16>
    %cst = arith.constant dense<0.000000e+00> : vector<512x3xf32>
    %2 = tpu.matmul %0, %1, %cst {dimension_numbers = #tpu.dot_dimension_numbers<[1], [0], [0], [1], [0, 0, 1, 1], [], []>} : vector<512x512xbf16>, vector<512x3xbf16>, vector<512x3xf32> -> vector<512x3xf32>
    %c0_3 = arith.constant 0 : index
    %c0_4 = arith.constant 0 : index
    %3 = vector.load %arg3[%c0_3, %c0_4] : memref<1x3xf32, #tpu.memory_space<vmem>>, vector<1x3xf32>
    %4 = vector.broadcast %3 : vector<1x3xf32> to vector<512x3xf32>
    %5 = arith.addf %2, %4 : vector<512x3xf32>
    %6 = math.tanh %5 : vector<512x3xf32>
    %c0_5 = arith.constant 0 : index
    %c0_6 = arith.constant 0 : index
    %7 = vector.load %arg4[%c0_5, %c0_6] : memref<512x3xf32, #tpu.memory_space<vmem>>, vector<512x3xf32>
    tpu.vector_store %arg4[%c0_5, %c0_6], %6 {strides = array<i32>} : memref<512x3xf32, #tpu.memory_space<vmem>>, vector<512x3xf32>,
    return
  }
  func.func @transform_0(%arg0: i32) -> (i32, i32) {
    %c0_i32 = arith.constant 0 : i32
    %c0_i32_0 = arith.constant 0 : i32
    return %arg0, %c0_i32 : i32, i32
  }
  func.func @transform_1(%arg0: i32) -> (i32, i32) {
    %c0_i32 = arith.constant 0 : i32
    %c0_i32_0 = arith.constant 0 : i32
    %c0_i32_1 = arith.constant 0 : i32
    return %c0_i32, %c0_i32_0 : i32, i32
  }
  func.func @transform_2(%arg0: i32) -> (i32, i32) {
    %c0_i32 = arith.constant 0 : i32
    %c0_i32_0 = arith.constant 0 : i32
    %c0_i32_1 = arith.constant 0 : i32
    return %c0_i32, %c0_i32_0 : i32, i32
  }
  func.func @transform_3(%arg0: i32) -> (i32, i32) {
    %c0_i32 = arith.constant 0 : i32
    %c0_i32_0 = arith.constant 0 : i32
    return %arg0, %c0_i32 : i32, i32
  }
}

</mosaic_0001>

<bundles_post_ra>
// kernel: munit_forward.71
= control target key start
LH: loop header
LB: loop body
LE: loop exit
PB: predicated region body
PF: predicated region fallthrough
CT: control target
= control target key end

     0   :  { %s1197_s6 = smov 0   ;;  %s1199_s7 = smov 0   ;;  %s1566_s0 = inlined_call_operand.vmem [shape: bf16[2,256,8], index: 0, kind: input, shape index: {}]   ;;  %s1567_s1 = inlined_call_operand.vmem [shape: bf16[2,256,8], index: 1, kind: output, shape index: {}]  }
   0x1   :  { %s1201_s8 = smov 0   ;;  %s1203_s9 = smov 0  }
   0x2   :  { %s1205_s10 = smov 0  }
   0x3 LB: > { %s26_s11 = sadd.s32 1, %s1176_s8  ;;  %s30_s12 = sadd.s32 1, %s1180_s9  ;;  %s1184_s10 = sphi %s1205_s10, %s11_s10   ;;  %s1180_s9 = sphi %s1203_s9, %s1571_s9   ;;  %s1176_s8 = sphi %s1201_s8, %s1570_s8   ;;  %s1172_s7 = sphi %s1199_s7, %s1569_s7   ;;  %s1168_s6 = sphi %s1197_s6, %s1568_s6  }
   0x4   : > { %p28_p0 = scmp.ge.s32.totalorder %s26_s11, 2  ;;  %p868_p1 = scmp.ge.s32.totalorder %s1184_s10, 1 }
   0x5   : > { %p117_p2 = scmp.lt.s32.totalorder %s1184_s10, 5 }
   0x6   : > { %s1573_s11 = smov (%p28_p0, %s26_s11), 0  ;;  %s1575_s12 = smov (!%p28_p0, %s30_s12), %s1180_s9 }
   0x7   : > { %p118_p3 = pnand %p868_p1, %p117_p2  ;;  %p32_p4 = scmp.ge.s32.totalorder %s1575_s12, 2 }
   0x8   : > { %p147_p5 = scmp.lt.s32.totalorder (!%p118_p3), %s1172_s7, 1  ;;  %p168_p6 = scmp.eq.s32.totalorder (!%p118_p3), %s1168_s6, 0 }
   0x9   : > { %s1577_s12 = smov (%p32_p4, %s1575_s12), 0  ;;  %121 = sbr.rel (%p118_p3) target bundleno = 168 (0xa8), region = 24 }
  0x10   : > { %s1579_s7 = smov (!%p147_p5, %s1172_s7), 1  ;;  %173 = sbr.rel (!%p168_p6) target bundleno = 23 (0x17), region = 28 }
  0x11   : > { %s910_s13 = sshll.u32 %s1579_s7, 7  ;;  %vm174_vm0 = vcmask (%p168_p6), 57344   ;;  %v1186_v0 = vmov (%p168_p6), 0.0  }
  0x12   : > { %s1233_s16 = scalar_lea.vmem %s1566_s0, %s910_s13  ;;  %s1238_s19 = scalar_lea.vmem %s1567_s1, %s910_s13  ;;  %175 = vst.msk [vmem:[#allocation2] sm:$0x1] (%p168_p6), %vm174_vm0, %v1186_v0  ;;  %176 = vst.msk [vmem:[#allocation3] sm:$0x1] (%p168_p6), %vm174_vm0, %v1186_v0 }
  0x17 PF: > { %p874_p7 = scmp.ne.s32.totalorder %s1168_s6, 0 }
  0x18   : > { %v946_v1 = vld [vmem:[%s1233_s16] sm:$0xff] (!%p874_p7)   ;;  %v1073_v2 = vld [vmem:[%s1233_s16 + $0x8] sm:$0xff] (!%p874_p7)   ;;  %vm245_vm1 = vcmask (!%p874_p7), 64512   ;;  %v1074_v6 = vld [vmem:[%s1233_s16 + $0x10] sm:$0xff] (!%p874_p7)   ;;  %vm316_vm2 = vcmask (!%p874_p7), 57344  }
  0x19   : > { %179 = sbr.rel (%p874_p7) target bundleno = 111 (0x6f), region = 32  ;;  %v947_v3 = vunpack.c.l.bf16 (!%p874_p7), %v946_v1  ;;  %v948_v4 = vunpack.c.h.bf16 (!%p874_p7), %v946_v1  ;;  %v951_v5 = vunpack.c.l.bf16 (!%p874_p7), %v1073_v2  ;;  %v952_v7 = vunpack.c.h.bf16 (!%p874_p7), %v1073_v2  ;;  %v1075_v14 = vld [vmem:[%s1233_s16 + $0x18] sm:$0xff] (!%p874_p7)   ;;  %v1076_v21 = vld [vmem:[%s1233_s16 + $0x20] sm:$0xff] (!%p874_p7)   ;;  %v1077_v27 = vld [vmem:[%s1233_s16 + $0x28] sm:$0xff] (!%p874_p7)  }
  0x1a   : > { %v955_v12 = vunpack.c.l.bf16 (!%p874_p7), %v1074_v6  ;;  %v956_v16 = vunpack.c.h.bf16 (!%p874_p7), %v1074_v6  ;;  %v959_v19 = vunpack.c.l.bf16 (!%p874_p7), %v1075_v14  ;;  %v960_v23 = vunpack.c.h.bf16 (!%p874_p7), %v1075_v14  ;;  %v1078_v34 = vld [vmem:[%s1233_s16 + $0x30] sm:$0xff] (!%p874_p7)   ;;  %v1079_v50 = vld [vmem:[%s1233_s16 + $0x38] sm:$0xff] (!%p874_p7)   ;;  %v1080_v63 = vld [vmem:[%s1233_s16 + $0x40] sm:$0xff] (!%p874_p7)  }
  0x1b   : > { %v246_v8 = vsel (!%p874_p7), %vm245_vm1, %v947_v3, 0.0  ;;  %v247_v9 = vsel (!%p874_p7), %vm245_vm1, %v948_v4, 0.0  ;;  %v249_v10 = vsel (!%p874_p7), %vm245_vm1, %v951_v5, 0.0  ;;  %v251_v13 = vsel (!%p874_p7), %vm245_vm1, %v952_v7, 0.0 }
  0x1c   : > { %v248_v11 = vadd.f32 (!%p874_p7), %v247_v9, %v246_v8  ;;  %v253_v17 = vsel (!%p874_p7), %vm245_vm1, %v955_v12, 0.0  ;;  %v255_v20 = vsel (!%p874_p7), %vm245_vm1, %v956_v16, 0.0  ;;  %v257_v24 = vsel (!%p874_p7), %vm245_vm1, %v959_v19, 0.0 }
  0x1d   : > { %v963_v26 = vunpack.c.l.bf16 (!%p874_p7), %v1076_v21  ;;  %v259_v28 = vsel (!%p874_p7), %vm245_vm1, %v960_v23, 0.0  ;;  %v964_v30 = vunpack.c.h.bf16 (!%p874_p7), %v1076_v21  ;;  %v967_v32 = vunpack.c.l.bf16 (!%p874_p7), %v1077_v27 }
  0x1e   : > { %v250_v15 = vadd.f32 (!%p874_p7), %v249_v10, %v248_v11  ;;  %v319_v36 = vmul.f32 (!%p874_p7), %v947_v3, %v947_v3  ;;  %v320_v37 = vmul.f32 (!%p874_p7), %v948_v4, %v948_v4  ;;  %v321_v38 = vmul.f32 (!%p874_p7), %v951_v5, %v951_v5 }
  0x1f   : > { %v261_v31 = vsel (!%p874_p7), %vm245_vm1, %v963_v26, 0.0  ;;  %v263_v35 = vsel (!%p874_p7), %vm245_vm1, %v964_v30, 0.0  ;;  %v968_v39 = vunpack.c.h.bf16 (!%p874_p7), %v1077_v27  ;;  %v265_v41 = vsel (!%p874_p7), %vm245_vm1, %v967_v32, 0.0 }
  0x20   : > { %v252_v18 = vadd.f32 %v251_v13, %v250_v15  ;;  %v322_v42 = vmul.f32 %v952_v7, %v952_v7  ;;  %v971_v43 = vunpack.c.l.bf16 %v1078_v34  ;;  %v323_v46 = vmul.f32 %v955_v12, %v955_v12  ;;  %v1081_v12 = vld [vmem:[%s1233_s16 + $0x48] sm:$0xff]  }
  0x21   : > { %v267_v45 = vsel %vm245_vm1, %v968_v39, 0.0  ;;  %v351_v47 = vsel %vm245_vm1, %v319_v36, 0.0  ;;  %v352_v48 = vsel %vm245_vm1, %v320_v37, 0.0  ;;  %v354_v49 = vsel %vm245_vm1, %v321_v38, 0.0  ;;  %v1083_v38 = vld [vmem:[%s1233_s16 + $0x58] sm:$0xff]  }
  0x22   : > { %v254_v22 = vadd.f32 %v253_v17, %v252_v18  ;;  %v353_v52 = vadd.f32 %v352_v48, %v351_v47  ;;  %v972_v53 = vunpack.c.h.bf16 %v1078_v34  ;;  %v269_v54 = vsel %vm245_vm1, %v971_v43, 0.0 }
  0x23   : > { %v324_v55 = vmul.f32 %v956_v16, %v956_v16  ;;  %v356_v56 = vsel %vm245_vm1, %v322_v42, 0.0  ;;  %v975_v59 = vunpack.c.l.bf16 %v1079_v50  ;;  %v325_v61 = vmul.f32 %v959_v19, %v959_v19 }
  0x24   : > { %v256_v25 = vadd.f32 %v255_v20, %v254_v22  ;;  %v355_v58 = vadd.f32 %v354_v49, %v353_v52  ;;  %v271_v60 = vsel %vm245_vm1, %v972_v53, 0.0  ;;  %v358_v62 = vsel %vm245_vm1, %v323_v46, 0.0 }
  0x25   : > { %v976_v2 = vunpack.c.h.bf16 %v1079_v50  ;;  %v273_v3 = vsel %vm245_vm1, %v975_v59, 0.0  ;;  %v326_v4 = vmul.f32 %v960_v23, %v960_v23  ;;  %v360_v5 = vsel %vm245_vm1, %v324_v55, 0.0 }
  0x26   : > { %v258_v29 = vadd.f32 %v257_v24, %v256_v25  ;;  %v357_v1 = vadd.f32 %v356_v56, %v355_v58  ;;  %v979_v8 = vunpack.c.l.bf16 %v1080_v63  ;;  %v327_v10 = vmul.f32 %v963_v26, %v963_v26  ;;  %v1082_v25 = vld [vmem:[%s1233_s16 + $0x50] sm:$0xff]  }
  0x27   : > { %v275_v9 = vsel %vm245_vm1, %v976_v2, 0.0  ;;  %v362_v11 = vsel %vm245_vm1, %v325_v61, 0.0  ;;  %v980_v15 = vunpack.c.h.bf16 %v1080_v63  ;;  %v328_v17 = vmul.f32 %v964_v30, %v964_v30 }
  0x28   : > { %v260_v33 = vadd.f32 %v259_v28, %v258_v29  ;;  %v359_v7 = vadd.f32 %v358_v62, %v357_v1  ;;  %v277_v16 = vsel %vm245_vm1, %v979_v8, 0.0  ;;  %v364_v18 = vsel %vm245_vm1, %v326_v4, 0.0 }
  0x29   : > { %v983_v21 = vunpack.c.l.bf16 %v1081_v12  ;;  %v279_v22 = vsel %vm245_vm1, %v980_v15, 0.0  ;;  %v329_v23 = vmul.f32 %v967_v32, %v967_v32  ;;  %v366_v24 = vsel %vm245_vm1, %v327_v10, 0.0 }
  0x2a   : > { %v262_v40 = vadd.f32 %v261_v31, %v260_v33  ;;  %v361_v14 = vadd.f32 %v360_v5, %v359_v7  ;;  %v984_v28 = vunpack.c.h.bf16 %v1081_v12  ;;  %v330_v31 = vmul.f32 %v968_v39, %v968_v39 }
  0x2b   : > { %v281_v29 = vsel %vm245_vm1, %v983_v21, 0.0  ;;  %v368_v30 = vsel %vm245_vm1, %v328_v17, 0.0  ;;  %v331_v37 = vmul.f32 %v971_v43, %v971_v43  ;;  %v370_v32 = vsel %vm245_vm1, %v329_v23, 0.0 }
  0x2c   : > { %v264_v44 = vadd.f32 %v263_v35, %v262_v40  ;;  %v363_v20 = vadd.f32 %v362_v11, %v361_v14  ;;  %v987_v35 = vunpack.c.l.bf16 %v1082_v25  ;;  %v283_v36 = vsel %vm245_vm1, %v984_v28, 0.0 }
  0x2d   : > { %v988_v42 = vunpack.c.h.bf16 %v1082_v25  ;;  %v372_v39 = vsel %vm245_vm1, %v330_v31, 0.0  ;;  %v991_v48 = vunpack.c.l.bf16 %v1083_v38  ;;  %v333_v50 = vmul.f32 %v975_v59, %v975_v59 }
  0x2e   : > { %v266_v51 = vadd.f32 %v265_v41, %v264_v44  ;;  %v365_v27 = vadd.f32 %v364_v18, %v363_v20  ;;  %v285_v44 = vsel %vm245_vm1, %v987_v35, 0.0  ;;  %v374_v43 = vsel %vm245_vm1, %v331_v37, 0.0 }
  0x2f   : > { %v287_v49 = vsel %vm245_vm1, %v988_v42, 0.0  ;;  %v992_v55 = vunpack.c.h.bf16 %v1083_v38  ;;  %v289_v56 = vsel %vm245_vm1, %v991_v48, 0.0  ;;  %v335_v63 = vmul.f32 %v979_v8, %v979_v8 }
  0x30   : > { %v268_v57 = vadd.f32 %v267_v45, %v266_v51  ;;  %v367_v34 = vadd.f32 %v366_v24, %v365_v27  ;;  %v332_v45 = vmul.f32 %v972_v53, %v972_v53  ;;  %v1084_v51 = vld [vmem:[%s1233_s16 + $0x60] sm:$0xff]   ;;  %v378_v59 = vsel %vm245_vm1, %v333_v50, 0.0 }
  0x31   : > { %v995_v61 = vunpack.c.l.bf16 %v1084_v51  ;;  %v291_v62 = vsel %vm245_vm1, %v992_v55, 0.0  ;;  %v996_v4 = vunpack.c.h.bf16 %v1084_v51  ;;  %v337_v12 = vmul.f32 %v983_v21, %v983_v21  ;;  %v1087_v21 = vld [vmem:[%s1233_s16 + $0x78] sm:$0xff]  }
  0x32   : > { %v270_v0 = vadd.f32 %v269_v54, %v268_v57  ;;  %v369_v41 = vadd.f32 %v368_v30, %v367_v34  ;;  %v334_v57 = vmul.f32 %v976_v2, %v976_v2  ;;  %v376_v53 = vsel %vm245_vm1, %v332_v45, 0.0 }
  0x33   : > { %v293_v5 = vsel %vm245_vm1, %v995_v61, 0.0  ;;  %v295_v11 = vsel %vm245_vm1, %v996_v4, 0.0  ;;  %v382_v8 = vsel %vm245_vm1, %v335_v63, 0.0  ;;  %v339_v25 = vmul.f32 %v987_v35, %v987_v35 }
  0x34   : > { %v272_v6 = vadd.f32 %v271_v60, %v270_v0  ;;  %v371_v47 = vadd.f32 %v370_v32, %v369_v41  ;;  %v1085_v0 = vld [vmem:[%s1233_s16 + $0x68] sm:$0xff]   ;;  %v380_v2 = vsel %vm245_vm1, %v334_v57, 0.0  ;;  %v1007_v37 = vunpack.c.l.bf16 %v1087_v21 }
  0x35   : > { %v999_v10 = vunpack.c.l.bf16 %v1085_v0  ;;  %v1000_v17 = vunpack.c.h.bf16 %v1085_v0  ;;  %v341_v38 = vmul.f32 %v991_v48, %v991_v48  ;;  %v343_v50 = vmul.f32 %v995_v61, %v995_v61 }
  0x36   : > { %v274_v13 = vadd.f32 %v273_v3, %v272_v6  ;;  %v373_v54 = vadd.f32 %v372_v39, %v371_v47  ;;  %v336_v6 = vmul.f32 %v980_v15, %v980_v15  ;;  %v305_v45 = vsel %vm245_vm1, %v1007_v37, 0.0 }
  0x37   : > { %v297_v18 = vsel %vm245_vm1, %v999_v10, 0.0  ;;  %v299_v24 = vsel %vm245_vm1, %v1000_v17, 0.0  ;;  %v342_v39 = vmul.f32 %v992_v55, %v992_v55  ;;  %v344_v48 = vmul.f32 %v996_v4, %v996_v4 }
  0x38   : > { %v276_v19 = vadd.f32 %v275_v9, %v274_v13  ;;  %v375_v60 = vadd.f32 %v374_v43, %v373_v54  ;;  %v1086_v13 = vld [vmem:[%s1233_s16 + $0x70] sm:$0xff]   ;;  %v384_v15 = vsel %vm245_vm1, %v336_v6, 0.0  ;;  %v394_v43 = vsel %vm245_vm1, %v341_v38, 0.0 }
  0x39   : > { %v1003_v23 = vunpack.c.l.bf16 %v1086_v13  ;;  %v1004_v31 = vunpack.c.h.bf16 %v1086_v13  ;;  %v396_v54 = vsel %vm245_vm1, %v342_v39, 0.0  ;;  %v400_v63 = vsel %vm245_vm1, %v344_v48, 0.0 }
  0x3a   : > { %v278_v26 = vadd.f32 %v277_v16, %v276_v19  ;;  %v377_v3 = vadd.f32 %v376_v53, %v375_v60  ;;  %v338_v19 = vmul.f32 %v984_v28, %v984_v28  ;;  %v345_v53 = vmul.f32 %v999_v10, %v999_v10 }
  0x3b   : > { %v301_v30 = vsel %vm245_vm1, %v1003_v23, 0.0  ;;  %v303_v32 = vsel %vm245_vm1, %v1004_v31, 0.0  ;;  %v347_v61 = vmul.f32 %v1003_v23, %v1003_v23  ;;  %v348_v4 = vmul.f32 %v1004_v31, %v1004_v31 }
  0x3c   : > { %v280_v33 = vadd.f32 %v279_v22, %v278_v26  ;;  %v379_v9 = vadd.f32 %v378_v59, %v377_v3  ;;  %v386_v26 = vsel %vm245_vm1, %v337_v12, 0.0  ;;  %v388_v34 = vsel %vm245_vm1, %v338_v19, 0.0 }
  0x3d   : > { %v406_v10 = vsel %vm245_vm1, %v347_v61, 0.0 }
  0x3e   : > { %v282_v40 = vadd.f32 %v281_v29, %v280_v33  ;;  %v381_v16 = vadd.f32 %v380_v2, %v379_v9  ;;  %v340_v33 = vmul.f32 %v988_v42, %v988_v42  ;;  %v349_v9 = vmul.f32 %v1007_v37, %v1007_v37 }
  0x40   : > { %v284_v46 = vadd.f32 %v283_v36, %v282_v40  ;;  %v383_v22 = vadd.f32 %v382_v8, %v381_v16  ;;  %v390_v40 = vsel %vm245_vm1, %v339_v25, 0.0  ;;  %v244_v8 = vld [vmem:[#allocation2] sm:$0x1] }
  0x42   : > { %v286_v52 = vadd.f32 %v285_v44, %v284_v46  ;;  %v385_v29 = vadd.f32 %v384_v15, %v383_v22  ;;  %v1008_v44 = vunpack.c.h.bf16 %v1087_v21  ;;  %v392_v46 = vsel %vm245_vm1, %v340_v33, 0.0 }
  0x44   : > { %v288_v58 = vadd.f32 %v287_v49, %v286_v52  ;;  %v387_v36 = vadd.f32 %v386_v26, %v385_v29  ;;  %v307_v49 = vsel %vm245_vm1, %v1008_v44, 0.0  ;;  %v350_v13 = vmul.f32 %v1008_v44, %v1008_v44  ;;  %v318_v29 = vld [vmem:[#allocation3] sm:$0x1] }
  0x46   : > { %v290_v1 = vadd.f32 %v289_v56, %v288_v58  ;;  %v389_v41 = vadd.f32 %v388_v34, %v387_v36  ;;  %v398_v58 = vsel %vm245_vm1, %v343_v50, 0.0 }
  0x48   : > { %v292_v7 = vadd.f32 %v291_v62, %v290_v1  ;;  %v391_v42 = vadd.f32 %v390_v40, %v389_v41  ;;  %v346_v62 = vmul.f32 %v1000_v17, %v1000_v17  ;;  %v402_v1 = vsel %vm245_vm1, %v345_v53, 0.0 }
  0x4a   : > { %v294_v14 = vadd.f32 %v293_v5, %v292_v7  ;;  %v393_v52 = vadd.f32 %v392_v46, %v391_v42  ;;  %v404_v6 = vsel %vm245_vm1, %v346_v62, 0.0 }
  0x4c   : > { %v296_v20 = vadd.f32 %v295_v11, %v294_v14  ;;  %v395_v57 = vadd.f32 %v394_v43, %v393_v52  ;;  %v408_v14 = vsel %vm245_vm1, %v348_v4, 0.0 }
  0x4e   : > { %v298_v27 = vadd.f32 %v297_v18, %v296_v20  ;;  %v397_v60 = vadd.f32 %v396_v54, %v395_v57  ;;  %v410_v18 = vsel %vm245_vm1, %v349_v9, 0.0  ;;  %v412_v20 = vsel %vm245_vm1, %v350_v13, 0.0 }
  0x50   : > { %v300_v28 = vadd.f32 %v299_v24, %v298_v27  ;;  %v399_v0 = vadd.f32 %v398_v58, %v397_v60 }
  0x52   : > { %v302_v35 = vadd.f32 %v301_v30, %v300_v28  ;;  %v401_v5 = vadd.f32 %v400_v63, %v399_v0 }
  0x54   : > { %v304_v47 = vadd.f32 %v303_v32, %v302_v35  ;;  %v403_v7 = vadd.f32 %v402_v1, %v401_v5 }
  0x56   : > { %v306_v51 = vadd.f32 %v305_v45, %v304_v47  ;;  %v405_v12 = vadd.f32 %v404_v6, %v403_v7 }
  0x58   : > { %v308_v56 = vadd.f32 %v307_v49, %v306_v51  ;;  %v407_v17 = vadd.f32 %v406_v10, %v405_v12 }
  0x5a   : > { %v309_v55 = vrot.slane %v308_v56, 4  ;;  %v409_v15 = vadd.f32 %v408_v14, %v407_v17 }
  0x5c   : > { %v310_v59 = vadd.f32 %v309_v55, %v308_v56  ;;  %v411_v22 = vadd.f32 %v410_v18, %v409_v15 }
  0x5e   : > { %v311_v3 = vrot.slane %v310_v59, 2  ;;  %v413_v23 = vadd.f32 %v412_v20, %v411_v22 }
  0x60   : > { %v312_v2 = vadd.f32 %v311_v3, %v310_v59  ;;  %v414_v24 = vrot.slane %v413_v23, 4 }
  0x62   : > { %v313_v11 = vrot.slane %v312_v2, 1  ;;  %v415_v25 = vadd.f32 %v414_v24, %v413_v23 }
  0x64   : > { %v314_v16 = vadd.f32 %v313_v11, %v312_v2  ;;  %v416_v26 = vrot.slane %v415_v25, 2 }
  0x66   : > { %v315_v19 = vadd.f32 %v314_v16, %v244_v8  ;;  %v417_v21 = vadd.f32 %v416_v26, %v415_v25 }
  0x68   : > { %317 = vst.msk [vmem:[#allocation2] sm:$0x1] %vm316_vm2, %v315_v19  ;;  %v418_v27 = vrot.slane %v417_v21, 1 }
  0x6a   : > { %v419_v31 = vadd.f32 %v418_v27, %v417_v21 }
  0x6c   : > { %v420_v30 = vadd.f32 %v419_v31, %v318_v29 }
  0x6e   : > { %421 = vst.msk [vmem:[#allocation3] sm:$0x1] %vm316_vm2, %v420_v30 }
  0x6f PF: > { %p875_p8 = scmp.ne.s32.totalorder %s1168_s6, 1 }
  0x70   : > { %v490_v33 = vld [vmem:[#allocation2] sm:$0x1] (!%p875_p8)  ;;  %v498_v28 = vlaneseq (!%p875_p8)  ;;  %v1088_v41 = vld [vmem:[%s1233_s16 + $0x8] sm:$0xff] (!%p875_p8)   ;;  %v1089_v45 = vld [vmem:[%s1233_s16 + $0x10] sm:$0xff] (!%p875_p8)   ;;  %vm735_vm3 = vcmask (!%p875_p8), 60416  }
  0x71   : > { %425 = sbr.rel (%p875_p8) target bundleno = 168 (0xa8), region = 36  ;;  %v491_v36 = vmul.f32 (!%p875_p8), 0.00390625, %v490_v33  ;;  %v1010_v38 = vld [vmem:[%s1233_s16] sm:$0xff] (!%p875_p8)   ;;  %v1090_v39 = vld [vmem:[%s1233_s16 + $0x18] sm:$0xff] (!%p875_p8)   ;;  %v1015_v50 = vunpack.c.l.bf16 (!%p875_p8), %v1088_v41  ;;  %v1016_v43 = vunpack.c.h.bf16 (!%p875_p8), %v1088_v41  ;;  %v1092_v51 = vld [vmem:[%s1233_s16 + $0x28] sm:$0xff] (!%p875_p8)   ;;  %v1019_v54 = vunpack.c.l.bf16 (!%p875_p8), %v1089_v45 }
  0x72   : > { %v1324_v32 = vshrl.u32 (!%p875_p8), %v498_v28, 7  ;;  %v1011_v46 = vunpack.c.l.bf16 (!%p875_p8), %v1010_v38  ;;  %v1091_v47 = vld [vmem:[%s1233_s16 + $0x20] sm:$0xff] (!%p875_p8)   ;;  %v1012_v49 = vunpack.c.h.bf16 (!%p875_p8), %v1010_v38  ;;  %v1093_v52 = vld [vmem:[%s1233_s16 + $0x30] sm:$0xff] (!%p875_p8)   ;;  %v1020_v56 = vunpack.c.h.bf16 (!%p875_p8), %v1089_v45  ;;  %v1094_v53 = vld [vmem:[%s1233_s16 + $0x38] sm:$0xff] (!%p875_p8)  }
  0x73   : > { %v494_v40 = vmul.f32 (!%p875_p8), %v491_v36, %v491_v36  ;;  %v1023_v57 = vunpack.c.l.bf16 (!%p875_p8), %v1090_v39  ;;  %v1095_v58 = vld [vmem:[%s1233_s16 + $0x40] sm:$0xff] (!%p875_p8)   ;;  %v1024_v60 = vunpack.c.h.bf16 (!%p875_p8), %v1090_v39  ;;  %v1027_v62 = vunpack.c.l.bf16 (!%p875_p8), %v1091_v47  ;;  %v1096_v59 = vld [vmem:[%s1233_s16 + $0x48] sm:$0xff] (!%p875_p8)   ;;  %v1097_v14 = vld [vmem:[%s1233_s16 + $0x50] sm:$0xff] (!%p875_p8)  }
  0x74   : > { %v500_v35 = vsub.s32 (!%p875_p8), 0, %v1324_v32  ;;  %v1028_v63 = vunpack.c.h.bf16 (!%p875_p8), %v1091_v47  ;;  %v1031_v0 = vunpack.c.l.bf16 (!%p875_p8), %v1092_v51  ;;  %v1032_v61 = vunpack.c.h.bf16 (!%p875_p8), %v1092_v51  ;;  %v1098_v15 = vld [vmem:[%s1233_s16 + $0x58] sm:$0xff] (!%p875_p8)   ;;  %v1099_v20 = vld [vmem:[%s1233_s16 + $0x60] sm:$0xff] (!%p875_p8)   ;;  %v1100_v26 = vld [vmem:[%s1233_s16 + $0x68] sm:$0xff] (!%p875_p8)  }
  0x75   : > { %v492_v34 = vld [vmem:[#allocation3] sm:$0x1] (!%p875_p8)  ;;  %v1035_v1 = vunpack.c.l.bf16 (!%p875_p8), %v1093_v52  ;;  %v1036_v3 = vunpack.c.h.bf16 (!%p875_p8), %v1093_v52  ;;  %v1039_v5 = vunpack.c.l.bf16 (!%p875_p8), %v1094_v53  ;;  %v1040_v4 = vunpack.c.h.bf16 (!%p875_p8), %v1094_v53  ;;  %v1101_v30 = vld [vmem:[%s1233_s16 + $0x70] sm:$0xff] (!%p875_p8)   ;;  %v1102_v33 = vld [vmem:[%s1233_s16 + $0x78] sm:$0xff] (!%p875_p8)  }
  0x76   : > { %v493_v37 = vmul.f32 (!%p875_p8), 0.00390625, %v492_v34  ;;  %v1336_v48 = vrot.slane (!%p875_p8), %v491_v36, %v500_v35  ;;  %v1043_v6 = vunpack.c.l.bf16 (!%p875_p8), %v1095_v58  ;;  %v1044_v7 = vunpack.c.h.bf16 (!%p875_p8), %v1095_v58 }
  0x77   : > { %v1047_v9 = vunpack.c.l.bf16 (!%p875_p8), %v1096_v59  ;;  %v1048_v10 = vunpack.c.h.bf16 (!%p875_p8), %v1096_v59  ;;  %v1051_v31 = vunpack.c.l.bf16 (!%p875_p8), %v1097_v14  ;;  %v1052_v34 = vunpack.c.h.bf16 (!%p875_p8), %v1097_v14 }
  0x78   : > { %v495_v44 = vsub.f32 %v493_v37, %v494_v40  ;;  %v503_v2 = vsub.f32 %v1011_v46, %v1336_v48  ;;  %v504_v11 = vsub.f32 %v1012_v49, %v1336_v48  ;;  %v505_v12 = vsub.f32 %v1015_v50, %v1336_v48 }
  0x79   : > { %v506_v8 = vsub.f32 %v1016_v43, %v1336_v48  ;;  %v507_v13 = vsub.f32 %v1019_v54, %v1336_v48  ;;  %v508_v16 = vsub.f32 %v1020_v56, %v1336_v48  ;;  %v509_v17 = vsub.f32 %v1023_v57, %v1336_v48 }
  0x7a   : > { %v496_v42 = vmax.f32 %v495_v44, 0.0  ;;  %v510_v18 = vsub.f32 %v1024_v60, %v1336_v48  ;;  %v1351_v19 = vsub.f32 %v1027_v62, %v1336_v48  ;;  %v1356_v22 = vsub.f32 %v1028_v63, %v1336_v48 }
  0x7b   : > { %v1359_v23 = vsub.f32 %v1031_v0, %v1336_v48  ;;  %v1362_v24 = vsub.f32 %v1032_v61, %v1336_v48  ;;  %v1365_v25 = vsub.f32 %v1035_v1, %v1336_v48  ;;  %v1369_v21 = vsub.f32 %v1036_v3, %v1336_v48 }
  0x7c   : > { %v535_v55 = vadd.f32 1e-05, %v496_v42  ;;  %v1372_v27 = vsub.f32 %v1039_v5, %v1336_v48  ;;  %v1375_v29 = vsub.f32 %v1040_v4, %v1336_v48  ;;  %v1055_v28 = vunpack.c.l.bf16 %v1098_v15 }
  0x7d   : > { %v1056_v36 = vunpack.c.h.bf16 %v1098_v15  ;;  %v1059_v37 = vunpack.c.l.bf16 %v1099_v20  ;;  %v1380_v38 = vsub.f32 %v1043_v6, %v1336_v48  ;;  %v1060_v40 = vunpack.c.h.bf16 %v1099_v20 }
  0x7e   : > { %1144 = vrsqrt.f32 %v535_v55  ;;  %v1063_v41 = vunpack.c.l.bf16 %v1100_v26  ;;  %v1064_v44 = vunpack.c.h.bf16 %v1100_v26  ;;  %v1067_v45 = vunpack.c.l.bf16 %v1101_v30 }
  0x7f   : > { %v1068_v39 = vunpack.c.h.bf16 %v1101_v30  ;;  %v1071_v46 = vunpack.c.l.bf16 %v1102_v33  ;;  %v1072_v47 = vunpack.c.h.bf16 %v1102_v33  ;;  %v1383_v42 = vsub.f32 %v1044_v7, %v1336_v48 }
  0x80   : > { %v1386_v49 = vsub.f32 %v1047_v9, %v1336_v48  ;;  %v1389_v50 = vsub.f32 %v1048_v10, %v1336_v48  ;;  %v1392_v43 = vsub.f32 %v1051_v31, %v1336_v48  ;;  %v1395_v52 = vsub.f32 %v1052_v34, %v1336_v48 }
  0x81   : > { %v1398_v54 = vsub.f32 %v1055_v28, %v1336_v48  ;;  %v1401_v56 = vsub.f32 %v1056_v36, %v1336_v48  ;;  %v1404_v57 = vsub.f32 %v1059_v37, %v1336_v48  ;;  %v1411_v58 = vsub.f32 %v1060_v40, %v1336_v48 }
  0x82   : > { %v1414_v55 = vsub.f32 %v1063_v41, %v1336_v48  ;;  %v1417_v60 = vsub.f32 %v1064_v44, %v1336_v48  ;;  %v1420_v62 = vsub.f32 %v1067_v45, %v1336_v48  ;;  %v1423_v63 = vsub.f32 %v1068_v39, %v1336_v48 }
  0x83   : > { %v1426_v59 = vsub.f32 %v1071_v46, %v1336_v48  ;;  %v1429_v32 = vsub.f32 %v1072_v47, %v1336_v48 }
  0x88   : > { %v1145_v51 = vpop.eup %1144 }
  0x89   : > { %v1408_v53 = vrot.slane %v1145_v51, %v500_v35 }
  0x8b   : > { %v543_v35 = vmul.f32 %v1408_v53, %v503_v2  ;;  %v544_v0 = vmul.f32 %v1408_v53, %v504_v11  ;;  %v545_v61 = vmul.f32 %v1408_v53, %v505_v12  ;;  %v546_v1 = vmul.f32 %v1408_v53, %v506_v8 }
  0x8c   : > { %v547_v3 = vmul.f32 %v1408_v53, %v507_v13  ;;  %v548_v5 = vmul.f32 %v1408_v53, %v508_v16  ;;  %v549_v4 = vmul.f32 %v1408_v53, %v509_v17  ;;  %v550_v6 = vmul.f32 %v1408_v53, %v510_v18 }
  0x8d   : > { %v575_v7 = vmax.f32 %v543_v35, 0.0  ;;  %v576_v48 = vmax.f32 %v544_v0, 0.0  ;;  %v577_v9 = vmax.f32 %v545_v61, 0.0  ;;  %v578_v2 = vmax.f32 %v546_v1, 0.0 }
  0x8e   : > { %v579_v10 = vmax.f32 %v547_v3, 0.0  ;;  %v580_v11 = vmax.f32 %v548_v5, 0.0  ;;  %v581_v12 = vmax.f32 %v549_v4, 0.0  ;;  %v582_v8 = vmax.f32 %v550_v6, 0.0 }
  0x8f   : > { %v913_v14 = vpack.c.bf16 %v575_v7, %v575_v7  ;;  %v914_v13 = vpack.c.bf16 %v576_v48, %v576_v48  ;;  %v915_v16 = vpack.c.bf16 %v577_v9, %v577_v9  ;;  %v916_v17 = vpack.c.bf16 %v578_v2, %v578_v2 }
  0x90   : > { %v917_v18 = vpack.c.bf16 %v579_v10, %v579_v10  ;;  %v918_v15 = vpack.c.bf16 %v580_v11, %v580_v11  ;;  %v919_v20 = vpack.c.bf16 %v581_v12, %v581_v12  ;;  %v920_v26 = vpack.c.bf16 %v582_v8, %v582_v8 }
  0x91   : > { %736 = vst.msk [vmem:[%s1238_s19] sm:$0xf] %vm735_vm3, %v913_v14  ;;  %737 = vst.msk [vmem:[%s1238_s19 + $0x4] sm:$0xf] %vm735_vm3, %v914_v13  ;;  %v551_v31 = vmul.f32 %v1408_v53, %v1351_v19  ;;  %v552_v30 = vmul.f32 %v1408_v53, %v1356_v22  ;;  %v553_v33 = vmul.f32 %v1408_v53, %v1359_v23 }
  0x92   : > { %738 = vst.msk [vmem:[%s1238_s19 + $0x8] sm:$0xf] %vm735_vm3, %v915_v16  ;;  %739 = vst.msk [vmem:[%s1238_s19 + $0xc] sm:$0xf] %vm735_vm3, %v916_v17  ;;  %v554_v34 = vmul.f32 %v1408_v53, %v1362_v24  ;;  %v555_v19 = vmul.f32 %v1408_v53, %v1365_v25  ;;  %v556_v22 = vmul.f32 %v1408_v53, %v1369_v21 }
  0x93   : > { %740 = vst.msk [vmem:[%s1238_s19 + $0x10] sm:$0xf] %vm735_vm3, %v917_v18  ;;  %741 = vst.msk [vmem:[%s1238_s19 + $0x14] sm:$0xf] %vm735_vm3, %v918_v15  ;;  %v557_v23 = vmul.f32 %v1408_v53, %v1372_v27  ;;  %v558_v24 = vmul.f32 %v1408_v53, %v1375_v29  ;;  %v583_v28 = vmax.f32 %v551_v31, 0.0  ;;  %v584_v36 = vmax.f32 %v552_v30, 0.0 }
  0x94   : > { %742 = vst.msk [vmem:[%s1238_s19 + $0x18] sm:$0xf] %vm735_vm3, %v919_v20  ;;  %743 = vst.msk [vmem:[%s1238_s19 + $0x1c] sm:$0xf] %vm735_vm3, %v920_v26  ;;  %v585_v37 = vmax.f32 %v553_v33, 0.0  ;;  %v586_v40 = vmax.f32 %v554_v34, 0.0  ;;  %v559_v0 = vmul.f32 %v1408_v53, %v1380_v38  ;;  %v560_v61 = vmul.f32 %v1408_v53, %v1383_v42 }
  0x95   : > { %v587_v41 = vmax.f32 %v555_v19, 0.0  ;;  %v588_v44 = vmax.f32 %v556_v22, 0.0  ;;  %v589_v25 = vmax.f32 %v557_v23, 0.0  ;;  %v590_v45 = vmax.f32 %v558_v24, 0.0 }
  0x96   : > { %v921_v39 = vpack.c.bf16 %v583_v28, %v583_v28  ;;  %v922_v21 = vpack.c.bf16 %v584_v36, %v584_v36  ;;  %v923_v27 = vpack.c.bf16 %v585_v37, %v585_v37  ;;  %v924_v46 = vpack.c.bf16 %v586_v40, %v586_v40 }
  0x97   : > { %v925_v29 = vpack.c.bf16 %v587_v41, %v587_v41  ;;  %v926_v47 = vpack.c.bf16 %v588_v44, %v588_v44  ;;  %v927_v51 = vpack.c.bf16 %v589_v25, %v589_v25  ;;  %v928_v35 = vpack.c.bf16 %v590_v45, %v590_v45 }
  0x98   : > { %744 = vst.msk [vmem:[%s1238_s19 + $0x20] sm:$0xf] %vm735_vm3, %v921_v39  ;;  %745 = vst.msk [vmem:[%s1238_s19 + $0x24] sm:$0xf] %vm735_vm3, %v922_v21  ;;  %v561_v1 = vmul.f32 %v1408_v53, %v1386_v49  ;;  %v562_v3 = vmul.f32 %v1408_v53, %v1389_v50  ;;  %v563_v38 = vmul.f32 %v1408_v53, %v1392_v43  ;;  %v591_v5 = vmax.f32 %v559_v0, 0.0 }
  0x99   : > { %746 = vst.msk [vmem:[%s1238_s19 + $0x28] sm:$0xf] %vm735_vm3, %v923_v27  ;;  %747 = vst.msk [vmem:[%s1238_s19 + $0x2c] sm:$0xf] %vm735_vm3, %v924_v46  ;;  %v564_v42 = vmul.f32 %v1408_v53, %v1395_v52  ;;  %v565_v49 = vmul.f32 %v1408_v53, %v1398_v54  ;;  %v566_v50 = vmul.f32 %v1408_v53, %v1401_v56  ;;  %v592_v4 = vmax.f32 %v560_v61, 0.0 }
  0x9a   : > { %748 = vst.msk [vmem:[%s1238_s19 + $0x30] sm:$0xf] %vm735_vm3, %v925_v29  ;;  %749 = vst.msk [vmem:[%s1238_s19 + $0x34] sm:$0xf] %vm735_vm3, %v926_v47  ;;  %v593_v6 = vmax.f32 %v561_v1, 0.0  ;;  %v594_v7 = vmax.f32 %v562_v3, 0.0  ;;  %v929_v10 = vpack.c.bf16 %v591_v5, %v591_v5  ;;  %v567_v13 = vmul.f32 %v1408_v53, %v1404_v57 }
  0x9b   : > { %750 = vst.msk [vmem:[%s1238_s19 + $0x38] sm:$0xf] %vm735_vm3, %v927_v51  ;;  %751 = vst.msk [vmem:[%s1238_s19 + $0x3c] sm:$0xf] %vm735_vm3, %v928_v35  ;;  %v595_v48 = vmax.f32 %v563_v38, 0.0  ;;  %v596_v9 = vmax.f32 %v564_v42, 0.0  ;;  %v930_v52 = vpack.c.bf16 %v592_v4, %v592_v4  ;;  %v568_v16 = vmul.f32 %v1408_v53, %v1411_v58 }
  0x9c   : > { %v597_v43 = vmax.f32 %v565_v49, 0.0  ;;  %v598_v2 = vmax.f32 %v566_v50, 0.0  ;;  %v931_v54 = vpack.c.bf16 %v593_v6, %v593_v6  ;;  %v932_v11 = vpack.c.bf16 %v594_v7, %v594_v7  ;;  %752 = vst.msk [vmem:[%s1238_s19 + $0x40] sm:$0xf] %vm735_vm3, %v929_v10 }
  0x9d   : > { %v933_v56 = vpack.c.bf16 %v595_v48, %v595_v48  ;;  %v934_v12 = vpack.c.bf16 %v596_v9, %v596_v9  ;;  %753 = vst.msk [vmem:[%s1238_s19 + $0x44] sm:$0xf] %vm735_vm3, %v930_v52  ;;  %v569_v17 = vmul.f32 %v1408_v53, %v1414_v55  ;;  %v570_v18 = vmul.f32 %v1408_v53, %v1417_v60 }
  0x9e   : > { %v935_v8 = vpack.c.bf16 %v597_v43, %v597_v43  ;;  %v936_v14 = vpack.c.bf16 %v598_v2, %v598_v2  ;;  %754 = vst.msk [vmem:[%s1238_s19 + $0x48] sm:$0xf] %vm735_vm3, %v931_v54  ;;  %755 = vst.msk [vmem:[%s1238_s19 + $0x4c] sm:$0xf] %vm735_vm3, %v932_v11  ;;  %v571_v57 = vmul.f32 %v1408_v53, %v1420_v62  ;;  %v599_v15 = vmax.f32 %v567_v13, 0.0 }
  0x9f   : > { %756 = vst.msk [vmem:[%s1238_s19 + $0x50] sm:$0xf] %vm735_vm3, %v933_v56  ;;  %757 = vst.msk [vmem:[%s1238_s19 + $0x54] sm:$0xf] %vm735_vm3, %v934_v12  ;;  %v572_v58 = vmul.f32 %v1408_v53, %v1423_v63  ;;  %v573_v55 = vmul.f32 %v1408_v53, %v1426_v59  ;;  %v574_v60 = vmul.f32 %v1408_v53, %v1429_v32  ;;  %v600_v20 = vmax.f32 %v568_v16, 0.0 }
  0xa0   : > { %758 = vst.msk [vmem:[%s1238_s19 + $0x58] sm:$0xf] %vm735_vm3, %v935_v8  ;;  %759 = vst.msk [vmem:[%s1238_s19 + $0x5c] sm:$0xf] %vm735_vm3, %v936_v14  ;;  %v601_v26 = vmax.f32 %v569_v17, 0.0  ;;  %v602_v31 = vmax.f32 %v570_v18, 0.0  ;;  %v937_v59 = vpack.c.bf16 %v599_v15, %v599_v15 }
  0xa1   : > { %v603_v30 = vmax.f32 %v571_v57, 0.0  ;;  %v604_v62 = vmax.f32 %v572_v58, 0.0  ;;  %v605_v33 = vmax.f32 %v573_v55, 0.0  ;;  %v606_v63 = vmax.f32 %v574_v60, 0.0 }
  0xa2   : > { %v938_v34 = vpack.c.bf16 %v600_v20, %v600_v20  ;;  %v939_v19 = vpack.c.bf16 %v601_v26, %v601_v26  ;;  %v940_v53 = vpack.c.bf16 %v602_v31, %v602_v31  ;;  %760 = vst.msk [vmem:[%s1238_s19 + $0x60] sm:$0xf] %vm735_vm3, %v937_v59 }
  0xa3   : > { %v941_v32 = vpack.c.bf16 %v603_v30, %v603_v30  ;;  %v942_v22 = vpack.c.bf16 %v604_v62, %v604_v62  ;;  %v943_v23 = vpack.c.bf16 %v605_v33, %v605_v33  ;;  %v944_v24 = vpack.c.bf16 %v606_v63, %v606_v63 }
  0xa4   : > { %761 = vst.msk [vmem:[%s1238_s19 + $0x64] sm:$0xf] %vm735_vm3, %v938_v34  ;;  %762 = vst.msk [vmem:[%s1238_s19 + $0x68] sm:$0xf] %vm735_vm3, %v939_v19 }
  0xa5   : > { %763 = vst.msk [vmem:[%s1238_s19 + $0x6c] sm:$0xf] %vm735_vm3, %v940_v53  ;;  %764 = vst.msk [vmem:[%s1238_s19 + $0x70] sm:$0xf] %vm735_vm3, %v941_v32 }
  0xa6   : > { %765 = vst.msk [vmem:[%s1238_s19 + $0x74] sm:$0xf] %vm735_vm3, %v942_v22  ;;  %766 = vst.msk [vmem:[%s1238_s19 + $0x78] sm:$0xf] %vm735_vm3, %v943_v23 }
  0xa7   : > { %767 = vst.msk [vmem:[%s1238_s19 + $0x7c] sm:$0xf] %vm735_vm3, %v944_v24 }
  0xa8 PF: > { %s11_s10 = sadd.s32 1, %s1184_s10   ;;  %s1568_s6 = smov %s1176_s8 }
  0xa9   : > { %p8_p9 = scmp.ge.s32.totalorder %s11_s10, 6   ;;  %s1569_s7 = smov %s1180_s9 }
  0xaa   : > { %s1570_s8 = smov %s1573_s11  ;;  %s1571_s9 = smov %s1577_s12 }
  0xab   :  { %10 = sbr.rel (!%p8_p9) target bundleno = 3 (0x3), region = 66 }

// kernel: munit_forward.70
= control target key start
LH: loop header
LB: loop body
LE: loop exit
PB: predicated region body
PF: predicated region fallthrough
CT: control target
= control target key end

     0   :  { %v1502_v0 = vmov 0   ;;  %vm1079_vm0 = vcmask 60416   ;;  %s2120_s1 = inlined_call_operand.vmem [shape: bf16[256,8], index: 1, kind: input, shape index: {}]   ;;  %s2121_s0 = inlined_call_operand.vmem [shape: bf16[512,256], index: 0, kind: input, shape index: {}]   ;;  %s2122_s2 = inlined_call_operand.vmem [shape: f32[1,8], index: 2, kind: input, shape index: {}]   ;;  %s2123_s3 = inlined_call_operand.vmem [shape: bf16[512,8], index: 3, kind: output, shape index: {}]  }
   0x1   :  { %534 = vmatprep.subr.bf16.mxu0 %v1502_v0  ;;  %1357 = vmatprep.subr.bf16.mxu1 %v1502_v0  ;;  %v1390_v1 = vld [vmem:[%s2120_s1] sm:$0xff]   ;;  %v1391_v2 = vld [vmem:[%s2120_s1 + $0x8] sm:$0xff]   ;;  %v1392_v3 = vld [vmem:[%s2120_s1 + $0x10] sm:$0xff]  }
   0x2   :  { %535 = vmatpush1.bf16.msra.mxu0 %v1390_v1  ;;  %1373 = vmatpush1.bf16.msra.mxu1 %v1390_v1  ;;  %v1393_v4 = vld [vmem:[%s2120_s1 + $0x18] sm:$0xff]   ;;  %v1394_v5 = vld [vmem:[%s2120_s1 + $0x20] sm:$0xff]   ;;  %v1395_v7 = vld [vmem:[%s2120_s1 + $0x28] sm:$0xff]  }
   0x3   :  { %536 = vmatprep.subr.bf16.mxu0 %v1502_v0  ;;  %1358 = vmatprep.subr.bf16.mxu1 %v1502_v0  ;;  %v1408_v6 = vld [vmem:[%s2121_s0 + $0x4] ss:$8 sps:$4 sm:$0xff]   ;;  %v1396_v9 = vld [vmem:[%s2120_s1 + $0x30] sm:$0xff]   ;;  %v1397_v10 = vld [vmem:[%s2120_s1 + $0x38] sm:$0xff]  }
   0x4   :  { %v1411_v8 = vld [vmem:[%s2121_s0 + $0x104] ss:$8 sps:$4 sm:$0xff]   ;;  %566 = vmatprep.mubr.bf16.mxu0 %v1408_v6  ;;  %v1400_v13 = vld [vmem:[%s2120_s1 + $0x50] sm:$0xff]   ;;  %v1401_v14 = vld [vmem:[%s2120_s1 + $0x58] sm:$0xff]  }
   0x5   :  { %694 = vmatprep.mubr.bf16.mxu1 %v1411_v8  ;;  %v1398_v11 = vld [vmem:[%s2120_s1 + $0x40] sm:$0xff]   ;;  %v1399_v12 = vld [vmem:[%s2120_s1 + $0x48] sm:$0xff]   ;;  %v1404_v17 = vld [vmem:[%s2120_s1 + $0x70] sm:$0xff]  }
   0x6   :  { %537 = vmatpush1.bf16.msra.mxu0 %v1391_v2  ;;  %1374 = vmatpush1.bf16.msra.mxu1 %v1391_v2  ;;  %v1402_v15 = vld [vmem:[%s2120_s1 + $0x60] sm:$0xff]   ;;  %v1403_v16 = vld [vmem:[%s2120_s1 + $0x68] sm:$0xff]   ;;  %v1405_v18 = vld [vmem:[%s2120_s1 + $0x78] sm:$0xff]  }
   0x7   :  { %538 = vmatprep.subr.bf16.mxu0 %v1502_v0  ;;  %1359 = vmatprep.subr.bf16.mxu1 %v1502_v0  ;;  %v1406_v19 = vld [vmem:[%s2121_s0] ss:$8 sps:$4 sm:$0xff]   ;;  %v1412_v21 = vld [vmem:[%s2121_s0 + $0x14] ss:$8 sps:$4 sm:$0xff]   ;;  %v1416_v23 = vld [vmem:[%s2121_s0 + $0x10] ss:$8 sps:$4 sm:$0xff]  }
   0x8   :  { %v1409_v20 = vld [vmem:[%s2121_s0 + $0x100] ss:$8 sps:$4 sm:$0xff]   ;;  %v1414_v22 = vld [vmem:[%s2121_s0 + $0x114] ss:$8 sps:$4 sm:$0xff]   ;;  %v1417_v24 = vld [vmem:[%s2121_s0 + $0x110] ss:$8 sps:$4 sm:$0xff]  }
   0x9   :  { %v1418_v25 = vld [vmem:[%s2121_s0 + $0x24] ss:$8 sps:$4 sm:$0xff]   ;;  %v1422_v27 = vld [vmem:[%s2121_s0 + $0x20] ss:$8 sps:$4 sm:$0xff]   ;;  %v1424_v29 = vld [vmem:[%s2121_s0 + $0x34] ss:$8 sps:$4 sm:$0xff]  }
   0xa   :  { %539 = vmatpush1.bf16.msra.mxu0 %v1392_v3  ;;  %1375 = vmatpush1.bf16.msra.mxu1 %v1392_v3  ;;  %v1420_v26 = vld [vmem:[%s2121_s0 + $0x124] ss:$8 sps:$4 sm:$0xff]   ;;  %v1423_v28 = vld [vmem:[%s2121_s0 + $0x120] ss:$8 sps:$4 sm:$0xff]   ;;  %v1426_v30 = vld [vmem:[%s2121_s0 + $0x134] ss:$8 sps:$4 sm:$0xff]  }
   0xb   :  { %540 = vmatprep.subr.bf16.mxu0 %v1502_v0  ;;  %1360 = vmatprep.subr.bf16.mxu1 %v1502_v0  ;;  %v1428_v31 = vld [vmem:[%s2121_s0 + $0x30] ss:$8 sps:$4 sm:$0xff]   ;;  %v1430_v33 = vld [vmem:[%s2121_s0 + $0x44] ss:$8 sps:$4 sm:$0xff]   ;;  %v1434_v35 = vld [vmem:[%s2121_s0 + $0x40] ss:$8 sps:$4 sm:$0xff]  }
   0xc   :  { %v1429_v32 = vld [vmem:[%s2121_s0 + $0x130] ss:$8 sps:$4 sm:$0xff]   ;;  %v1432_v34 = vld [vmem:[%s2121_s0 + $0x144] ss:$8 sps:$4 sm:$0xff]   ;;  %v1435_v36 = vld [vmem:[%s2121_s0 + $0x140] ss:$8 sps:$4 sm:$0xff]  }
   0xd   :  { %v1436_v37 = vld [vmem:[%s2121_s0 + $0x54] ss:$8 sps:$4 sm:$0xff]   ;;  %v1440_v39 = vld [vmem:[%s2121_s0 + $0x50] ss:$8 sps:$4 sm:$0xff]   ;;  %v1442_v41 = vld [vmem:[%s2121_s0 + $0x64] ss:$8 sps:$4 sm:$0xff]  }
   0xe   :  { %541 = vmatpush1.bf16.msra.mxu0 %v1393_v4  ;;  %1376 = vmatpush1.bf16.msra.mxu1 %v1393_v4  ;;  %v1438_v38 = vld [vmem:[%s2121_s0 + $0x154] ss:$8 sps:$4 sm:$0xff]   ;;  %v1441_v40 = vld [vmem:[%s2121_s0 + $0x150] ss:$8 sps:$4 sm:$0xff]   ;;  %v1444_v42 = vld [vmem:[%s2121_s0 + $0x164] ss:$8 sps:$4 sm:$0xff]  }
   0xf   :  { %542 = vmatprep.subr.bf16.mxu0 %v1502_v0  ;;  %1361 = vmatprep.subr.bf16.mxu1 %v1502_v0  ;;  %v1446_v43 = vld [vmem:[%s2121_s0 + $0x60] ss:$8 sps:$4 sm:$0xff]   ;;  %v1448_v45 = vld [vmem:[%s2121_s0 + $0x74] ss:$8 sps:$4 sm:$0xff]   ;;  %v1452_v47 = vld [vmem:[%s2121_s0 + $0x70] ss:$8 sps:$4 sm:$0xff]  }
  0x10   :  { %v1447_v44 = vld [vmem:[%s2121_s0 + $0x160] ss:$8 sps:$4 sm:$0xff]   ;;  %v1450_v46 = vld [vmem:[%s2121_s0 + $0x174] ss:$8 sps:$4 sm:$0xff]   ;;  %v1453_v48 = vld [vmem:[%s2121_s0 + $0x170] ss:$8 sps:$4 sm:$0xff]  }
  0x11   :  { %v1454_v49 = vld [vmem:[%s2121_s0 + $0x84] ss:$8 sps:$4 sm:$0xff]   ;;  %v1458_v51 = vld [vmem:[%s2121_s0 + $0x80] ss:$8 sps:$4 sm:$0xff]   ;;  %v1460_v53 = vld [vmem:[%s2121_s0 + $0x94] ss:$8 sps:$4 sm:$0xff]  }
  0x12   :  { %543 = vmatpush1.bf16.msra.mxu0 %v1394_v5  ;;  %1377 = vmatpush1.bf16.msra.mxu1 %v1394_v5  ;;  %v1456_v50 = vld [vmem:[%s2121_s0 + $0x184] ss:$8 sps:$4 sm:$0xff]   ;;  %v1459_v52 = vld [vmem:[%s2121_s0 + $0x180] ss:$8 sps:$4 sm:$0xff]   ;;  %v1462_v54 = vld [vmem:[%s2121_s0 + $0x194] ss:$8 sps:$4 sm:$0xff]  }
  0x13   :  { %544 = vmatprep.subr.bf16.mxu0 %v1502_v0  ;;  %1362 = vmatprep.subr.bf16.mxu1 %v1502_v0  ;;  %v1464_v55 = vld [vmem:[%s2121_s0 + $0x90] ss:$8 sps:$4 sm:$0xff]   ;;  %v1466_v57 = vld [vmem:[%s2121_s0 + $0xa4] ss:$8 sps:$4 sm:$0xff]   ;;  %v1470_v59 = vld [vmem:[%s2121_s0 + $0xa0] ss:$8 sps:$4 sm:$0xff]  }
  0x14   :  { %v1465_v56 = vld [vmem:[%s2121_s0 + $0x190] ss:$8 sps:$4 sm:$0xff]   ;;  %v1468_v58 = vld [vmem:[%s2121_s0 + $0x1a4] ss:$8 sps:$4 sm:$0xff]   ;;  %v1471_v60 = vld [vmem:[%s2121_s0 + $0x1a0] ss:$8 sps:$4 sm:$0xff]  }
  0x15   :  { %v1472_v61 = vld [vmem:[%s2121_s0 + $0xb4] ss:$8 sps:$4 sm:$0xff]   ;;  %v1476_v63 = vld [vmem:[%s2121_s0 + $0xb0] ss:$8 sps:$4 sm:$0xff]   ;;  %v1478_v1 = vld [vmem:[%s2121_s0 + $0xc4] ss:$8 sps:$4 sm:$0xff]  }
  0x16   :  { %545 = vmatpush1.bf16.msra.mxu0 %v1395_v7  ;;  %1378 = vmatpush1.bf16.msra.mxu1 %v1395_v7  ;;  %v1474_v62 = vld [vmem:[%s2121_s0 + $0x1b4] ss:$8 sps:$4 sm:$0xff]   ;;  %v1480_v2 = vld [vmem:[%s2121_s0 + $0x1c4] ss:$8 sps:$4 sm:$0xff]   ;;  %v1482_v3 = vld [vmem:[%s2121_s0 + $0xc0] ss:$8 sps:$4 sm:$0xff]  }
  0x17   :  { %546 = vmatprep.subr.bf16.mxu0 %v1502_v0  ;;  %1363 = vmatprep.subr.bf16.mxu1 %v1502_v0  ;;  %v1483_v4 = vld [vmem:[%s2121_s0 + $0x1c0] ss:$8 sps:$4 sm:$0xff]   ;;  %v1484_v5 = vld [vmem:[%s2121_s0 + $0xd4] ss:$8 sps:$4 sm:$0xff]   ;;  %v1488_v7 = vld [vmem:[%s2121_s0 + $0xd0] ss:$8 sps:$4 sm:$0xff]  }
  0x18   :  { %v1486_v6 = vld [vmem:[%s2121_s0 + $0x1d4] ss:$8 sps:$4 sm:$0xff]   ;;  %v1489_v8 = vld [vmem:[%s2121_s0 + $0x1d0] ss:$8 sps:$4 sm:$0xff]  }
  0x1a   :  { %547 = vmatpush1.bf16.msra.mxu0 %v1396_v9  ;;  %1379 = vmatpush1.bf16.msra.mxu1 %v1396_v9  ;;  %v1490_v9 = vld [vmem:[%s2121_s0 + $0xe4] ss:$8 sps:$4 sm:$0xff]  }
  0x1b   :  { %548 = vmatprep.subr.bf16.mxu0 %v1502_v0  ;;  %1364 = vmatprep.subr.bf16.mxu1 %v1502_v0 }
  0x1e   :  { %549 = vmatpush1.bf16.msra.mxu0 %v1397_v10  ;;  %1380 = vmatpush1.bf16.msra.mxu1 %v1397_v10  ;;  %v1492_v10 = vld [vmem:[%s2121_s0 + $0x1e4] ss:$8 sps:$4 sm:$0xff]  }
  0x1f   :  { %550 = vmatprep.subr.bf16.mxu0 %v1502_v0  ;;  %1365 = vmatprep.subr.bf16.mxu1 %v1502_v0 }
  0x22   :  { %551 = vmatpush1.bf16.msra.mxu0 %v1398_v11  ;;  %1381 = vmatpush1.bf16.msra.mxu1 %v1398_v11  ;;  %v1494_v11 = vld [vmem:[%s2121_s0 + $0xe0] ss:$8 sps:$4 sm:$0xff]  }
  0x23   :  { %552 = vmatprep.subr.bf16.mxu0 %v1502_v0  ;;  %1366 = vmatprep.subr.bf16.mxu1 %v1502_v0 }
  0x26   :  { %553 = vmatpush1.bf16.msra.mxu0 %v1399_v12  ;;  %1382 = vmatpush1.bf16.msra.mxu1 %v1399_v12  ;;  %v1495_v12 = vld [vmem:[%s2121_s0 + $0x1e0] ss:$8 sps:$4 sm:$0xff]  }
  0x27   :  { %554 = vmatprep.subr.bf16.mxu0 %v1502_v0  ;;  %1367 = vmatprep.subr.bf16.mxu1 %v1502_v0 }
  0x2a   :  { %555 = vmatpush1.bf16.msra.mxu0 %v1400_v13  ;;  %1383 = vmatpush1.bf16.msra.mxu1 %v1400_v13  ;;  %v1496_v13 = vld [vmem:[%s2121_s0 + $0xf4] ss:$8 sps:$4 sm:$0xff]  }
  0x2b   :  { %556 = vmatprep.subr.bf16.mxu0 %v1502_v0  ;;  %1368 = vmatprep.subr.bf16.mxu1 %v1502_v0 }
  0x2e   :  { %557 = vmatpush1.bf16.msra.mxu0 %v1401_v14  ;;  %1384 = vmatpush1.bf16.msra.mxu1 %v1401_v14  ;;  %v1498_v14 = vld [vmem:[%s2121_s0 + $0x1f4] ss:$8 sps:$4 sm:$0xff]  }
  0x2f   :  { %558 = vmatprep.subr.bf16.mxu0 %v1502_v0  ;;  %1369 = vmatprep.subr.bf16.mxu1 %v1502_v0 }
  0x32   :  { %559 = vmatpush1.bf16.msra.mxu0 %v1402_v15  ;;  %1385 = vmatpush1.bf16.msra.mxu1 %v1402_v15  ;;  %v1500_v15 = vld [vmem:[%s2121_s0 + $0xf0] ss:$8 sps:$4 sm:$0xff]  }
  0x33   :  { %560 = vmatprep.subr.bf16.mxu0 %v1502_v0  ;;  %1370 = vmatprep.subr.bf16.mxu1 %v1502_v0 }
  0x36   :  { %561 = vmatpush1.bf16.msra.mxu0 %v1403_v16  ;;  %1386 = vmatpush1.bf16.msra.mxu1 %v1403_v16  ;;  %v1501_v16 = vld [vmem:[%s2121_s0 + $0x1f0] ss:$8 sps:$4 sm:$0xff]  }
  0x37   :  { %562 = vmatprep.subr.bf16.mxu0 %v1502_v0  ;;  %1371 = vmatprep.subr.bf16.mxu1 %v1502_v0 }
  0x3a   :  { %563 = vmatpush1.bf16.msra.mxu0 %v1404_v17  ;;  %1387 = vmatpush1.bf16.msra.mxu1 %v1404_v17  ;;  %v1798_v17 = vld [vmem:[%s2122_s2] ss:$0 sm:$0xff] }
  0x3b   :  { %564 = vmatprep.subr.bf16.mxu0 %v1502_v0  ;;  %1372 = vmatprep.subr.bf16.mxu1 %v1502_v0  ;;  %v1477_v0 = vld [vmem:[%s2121_s0 + $0x1b0] ss:$8 sps:$4 sm:$0xff]  }
  0x3e   :  { %565 = vmatpush1.bf16.msra.mxu0 %v1405_v18  ;;  %1388 = vmatpush1.bf16.msra.mxu1 %v1405_v18 }
  0x41   :  { %567 = vmatmul.mubr.bf16.vlgmr.msra.gmra.mrb[0].mxu0 %v1406_v19  ;;  %695 = vmatmul.mubr.bf16.vlgmr.msra.gmra.mrb[0].mxu1 %v1409_v20 }
  0x42   :  { %574 = vmatprep.mubr.bf16.mxu0 %v1412_v21  ;;  %702 = vmatprep.mubr.bf16.mxu1 %v1414_v22 }
  0x49   :  { %575 = vmatmul.mubr.bf16.gmra.mrb[4].mxu0 %v1416_v23  ;;  %703 = vmatmul.mubr.bf16.gmra.mrb[4].mxu1 %v1417_v24 }
  0x4a   :  { %582 = vmatprep.mubr.bf16.mxu0 %v1418_v25  ;;  %710 = vmatprep.mubr.bf16.mxu1 %v1420_v26 }
  0x51   :  { %583 = vmatmul.mubr.bf16.gmra.mrb[8].mxu0 %v1422_v27  ;;  %711 = vmatmul.mubr.bf16.gmra.mrb[8].mxu1 %v1423_v28 }
  0x52   :  { %590 = vmatprep.mubr.bf16.mxu0 %v1424_v29  ;;  %718 = vmatprep.mubr.bf16.mxu1 %v1426_v30 }
  0x59   :  { %591 = vmatmul.mubr.bf16.gmra.mrb[12].mxu0 %v1428_v31  ;;  %719 = vmatmul.mubr.bf16.gmra.mrb[12].mxu1 %v1429_v32 }
  0x5a   :  { %598 = vmatprep.mubr.bf16.mxu0 %v1430_v33  ;;  %726 = vmatprep.mubr.bf16.mxu1 %v1432_v34 }
  0x61   :  { %599 = vmatmul.mubr.bf16.gmra.mrb[16].mxu0 %v1434_v35  ;;  %727 = vmatmul.mubr.bf16.gmra.mrb[16].mxu1 %v1435_v36 }
  0x62   :  { %606 = vmatprep.mubr.bf16.mxu0 %v1436_v37  ;;  %734 = vmatprep.mubr.bf16.mxu1 %v1438_v38 }
  0x69   :  { %607 = vmatmul.mubr.bf16.gmra.mrb[20].mxu0 %v1440_v39  ;;  %735 = vmatmul.mubr.bf16.gmra.mrb[20].mxu1 %v1441_v40 }
  0x6a   :  { %614 = vmatprep.mubr.bf16.mxu0 %v1442_v41  ;;  %742 = vmatprep.mubr.bf16.mxu1 %v1444_v42 }
  0x71   :  { %615 = vmatmul.mubr.bf16.gmra.mrb[24].mxu0 %v1446_v43  ;;  %743 = vmatmul.mubr.bf16.gmra.mrb[24].mxu1 %v1447_v44 }
  0x72   :  { %622 = vmatprep.mubr.bf16.mxu0 %v1448_v45  ;;  %750 = vmatprep.mubr.bf16.mxu1 %v1450_v46 }
  0x79   :  { %623 = vmatmul.mubr.bf16.gmra.mrb[28].mxu0 %v1452_v47  ;;  %751 = vmatmul.mubr.bf16.gmra.mrb[28].mxu1 %v1453_v48 }
  0x7a   :  { %630 = vmatprep.mubr.bf16.mxu0 %v1454_v49  ;;  %758 = vmatprep.mubr.bf16.mxu1 %v1456_v50 }
  0x81   :  { %631 = vmatmul.mubr.bf16.gmra.mrb[32].mxu0 %v1458_v51  ;;  %759 = vmatmul.mubr.bf16.gmra.mrb[32].mxu1 %v1459_v52 }
  0x82   :  { %638 = vmatprep.mubr.bf16.mxu0 %v1460_v53  ;;  %766 = vmatprep.mubr.bf16.mxu1 %v1462_v54 }
  0x89   :  { %639 = vmatmul.mubr.bf16.gmra.mrb[36].mxu0 %v1464_v55  ;;  %767 = vmatmul.mubr.bf16.gmra.mrb[36].mxu1 %v1465_v56 }
  0x8a   :  { %646 = vmatprep.mubr.bf16.mxu0 %v1466_v57  ;;  %774 = vmatprep.mubr.bf16.mxu1 %v1468_v58 }
  0x91   :  { %647 = vmatmul.mubr.bf16.gmra.mrb[40].mxu0 %v1470_v59  ;;  %775 = vmatmul.mubr.bf16.gmra.mrb[40].mxu1 %v1471_v60 }
  0x92   :  { %654 = vmatprep.mubr.bf16.mxu0 %v1472_v61  ;;  %782 = vmatprep.mubr.bf16.mxu1 %v1474_v62 }
  0x99   :  { %655 = vmatmul.mubr.bf16.gmra.mrb[44].mxu0 %v1476_v63  ;;  %783 = vmatmul.mubr.bf16.gmra.mrb[44].mxu1 %v1477_v0 }
  0x9a   :  { %662 = vmatprep.mubr.bf16.mxu0 %v1478_v1  ;;  %790 = vmatprep.mubr.bf16.mxu1 %v1480_v2 }
  0xa1   :  { %663 = vmatmul.mubr.bf16.gmra.mrb[48].mxu0 %v1482_v3  ;;  %791 = vmatmul.mubr.bf16.gmra.mrb[48].mxu1 %v1483_v4 }
  0xa2   :  { %670 = vmatprep.mubr.bf16.mxu0 %v1484_v5  ;;  %798 = vmatprep.mubr.bf16.mxu1 %v1486_v6 }
  0xa9   :  { %671 = vmatmul.mubr.bf16.gmra.mrb[52].mxu0 %v1488_v7  ;;  %799 = vmatmul.mubr.bf16.gmra.mrb[52].mxu1 %v1489_v8 }
  0xaa   :  { %678 = vmatprep.mubr.bf16.mxu0 %v1490_v9  ;;  %806 = vmatprep.mubr.bf16.mxu1 %v1492_v10 }
  0xb1   :  { %679 = vmatmul.mubr.bf16.gmra.mrb[56].mxu0 %v1494_v11  ;;  %807 = vmatmul.mubr.bf16.gmra.mrb[56].mxu1 %v1495_v12 }
  0xb2   :  { %686 = vmatprep.mubr.bf16.mxu0 %v1496_v13  ;;  %814 = vmatprep.mubr.bf16.mxu1 %v1498_v14 }
  0xb9   :  { %687 = vmatmul.mubr.bf16.gmra.mrb[60].mxu0 %v1500_v15  ;;  %815 = vmatmul.mubr.bf16.gmra.mrb[60].mxu1 %v1501_v16 }
 0x114   :  { %v568_v18 = vpop.f32.mrb[0].mxu0  ;;  %v696_v19 = vpop.f32.mrb[0].mxu1 }
 0x115   :  { %v569_v20 = vadd.f32 %v1798_v17, %v568_v18  ;;  %v697_v21 = vadd.f32 %v1798_v17, %v696_v19  ;;  %v570_v22 = vpop.f32.mrb[1].mxu0  ;;  %v698_v23 = vpop.f32.mrb[1].mxu1 }
 0x116   :  { %v571_v24 = vpop.f32.mrb[2].mxu0  ;;  %v699_v25 = vpop.f32.mrb[2].mxu1 }
 0x117   :  { %v1293_v26 = vpack.c.bf16 %v569_v20, %v569_v20  ;;  %v1325_v27 = vpack.c.bf16 %v697_v21, %v697_v21  ;;  %v572_v28 = vadd.f32 %v1798_v17, %v571_v24  ;;  %v700_v29 = vadd.f32 %v1798_v17, %v699_v25  ;;  %v573_v30 = vpop.f32.mrb[3].mxu0  ;;  %v701_v31 = vpop.f32.mrb[3].mxu1 }
 0x119   :  { %1080 = vst.msk [vmem:[%s2123_s3] sm:$0xf] %vm1079_vm0, %v1293_v26  ;;  %1112 = vst.msk [vmem:[%s2123_s3 + $0x80] sm:$0xf] %vm1079_vm0, %v1325_v27  ;;  %v1294_v32 = vpack.c.bf16 %v572_v28, %v572_v28  ;;  %v1326_v33 = vpack.c.bf16 %v700_v29, %v700_v29 }
 0x11b   :  { %1081 = vst.msk [vmem:[%s2123_s3 + $0x4] sm:$0xf] %vm1079_vm0, %v1294_v32  ;;  %1113 = vst.msk [vmem:[%s2123_s3 + $0x84] sm:$0xf] %vm1079_vm0, %v1326_v33 }
 0x11c   :  { %v576_v34 = vpop.f32.mrb[4].mxu0  ;;  %v704_v35 = vpop.f32.mrb[4].mxu1 }
 0x11d   :  { %v577_v36 = vadd.f32 %v1798_v17, %v576_v34  ;;  %v705_v37 = vadd.f32 %v1798_v17, %v704_v35  ;;  %v578_v38 = vpop.f32.mrb[5].mxu0  ;;  %v706_v39 = vpop.f32.mrb[5].mxu1 }
 0x11e   :  { %v579_v40 = vpop.f32.mrb[6].mxu0  ;;  %v707_v41 = vpop.f32.mrb[6].mxu1 }
 0x11f   :  { %v1295_v42 = vpack.c.bf16 %v577_v36, %v577_v36  ;;  %v1327_v43 = vpack.c.bf16 %v705_v37, %v705_v37  ;;  %v580_v44 = vadd.f32 %v1798_v17, %v579_v40  ;;  %v708_v45 = vadd.f32 %v1798_v17, %v707_v41  ;;  %v581_v46 = vpop.f32.mrb[7].mxu0  ;;  %v709_v47 = vpop.f32.mrb[7].mxu1 }
 0x121   :  { %1082 = vst.msk [vmem:[%s2123_s3 + $0x8] sm:$0xf] %vm1079_vm0, %v1295_v42  ;;  %1114 = vst.msk [vmem:[%s2123_s3 + $0x88] sm:$0xf] %vm1079_vm0, %v1327_v43  ;;  %v1296_v48 = vpack.c.bf16 %v580_v44, %v580_v44  ;;  %v1328_v49 = vpack.c.bf16 %v708_v45, %v708_v45 }
 0x123   :  { %1083 = vst.msk [vmem:[%s2123_s3 + $0xc] sm:$0xf] %vm1079_vm0, %v1296_v48  ;;  %1115 = vst.msk [vmem:[%s2123_s3 + $0x8c] sm:$0xf] %vm1079_vm0, %v1328_v49 }
 0x124   :  { %v584_v50 = vpop.f32.mrb[8].mxu0  ;;  %v712_v51 = vpop.f32.mrb[8].mxu1 }
 0x125   :  { %v585_v52 = vadd.f32 %v1798_v17, %v584_v50  ;;  %v713_v53 = vadd.f32 %v1798_v17, %v712_v51  ;;  %v586_v54 = vpop.f32.mrb[9].mxu0  ;;  %v714_v55 = vpop.f32.mrb[9].mxu1 }
 0x126   :  { %v587_v56 = vpop.f32.mrb[10].mxu0  ;;  %v715_v57 = vpop.f32.mrb[10].mxu1 }
 0x127   :  { %v1297_v58 = vpack.c.bf16 %v585_v52, %v585_v52  ;;  %v1329_v59 = vpack.c.bf16 %v713_v53, %v713_v53  ;;  %v588_v60 = vadd.f32 %v1798_v17, %v587_v56  ;;  %v716_v61 = vadd.f32 %v1798_v17, %v715_v57  ;;  %v589_v62 = vpop.f32.mrb[11].mxu0  ;;  %v717_v63 = vpop.f32.mrb[11].mxu1 }
 0x129   :  { %1084 = vst.msk [vmem:[%s2123_s3 + $0x10] sm:$0xf] %vm1079_vm0, %v1297_v58  ;;  %1116 = vst.msk [vmem:[%s2123_s3 + $0x90] sm:$0xf] %vm1079_vm0, %v1329_v59  ;;  %v1298_v0 = vpack.c.bf16 %v588_v60, %v588_v60  ;;  %v1330_v1 = vpack.c.bf16 %v716_v61, %v716_v61 }
 0x12b   :  { %1085 = vst.msk [vmem:[%s2123_s3 + $0x14] sm:$0xf] %vm1079_vm0, %v1298_v0  ;;  %1117 = vst.msk [vmem:[%s2123_s3 + $0x94] sm:$0xf] %vm1079_vm0, %v1330_v1 }
 0x12c   :  { %v592_v2 = vpop.f32.mrb[12].mxu0  ;;  %v720_v3 = vpop.f32.mrb[12].mxu1 }
 0x12d   :  { %v593_v4 = vadd.f32 %v1798_v17, %v592_v2  ;;  %v721_v5 = vadd.f32 %v1798_v17, %v720_v3  ;;  %v594_v6 = vpop.f32.mrb[13].mxu0  ;;  %v722_v7 = vpop.f32.mrb[13].mxu1 }
 0x12e   :  { %v595_v8 = vpop.f32.mrb[14].mxu0  ;;  %v723_v9 = vpop.f32.mrb[14].mxu1 }
 0x12f   :  { %v1299_v10 = vpack.c.bf16 %v593_v4, %v593_v4  ;;  %v1331_v11 = vpack.c.bf16 %v721_v5, %v721_v5  ;;  %v596_v12 = vadd.f32 %v1798_v17, %v595_v8  ;;  %v724_v13 = vadd.f32 %v1798_v17, %v723_v9  ;;  %v597_v14 = vpop.f32.mrb[15].mxu0  ;;  %v725_v15 = vpop.f32.mrb[15].mxu1 }
 0x131   :  { %1086 = vst.msk [vmem:[%s2123_s3 + $0x18] sm:$0xf] %vm1079_vm0, %v1299_v10  ;;  %1118 = vst.msk [vmem:[%s2123_s3 + $0x98] sm:$0xf] %vm1079_vm0, %v1331_v11  ;;  %v1300_v16 = vpack.c.bf16 %v596_v12, %v596_v12  ;;  %v1332_v18 = vpack.c.bf16 %v724_v13, %v724_v13 }
 0x133   :  { %1087 = vst.msk [vmem:[%s2123_s3 + $0x1c] sm:$0xf] %vm1079_vm0, %v1300_v16  ;;  %1119 = vst.msk [vmem:[%s2123_s3 + $0x9c] sm:$0xf] %vm1079_vm0, %v1332_v18 }
 0x134   :  { %v600_v19 = vpop.f32.mrb[16].mxu0  ;;  %v728_v20 = vpop.f32.mrb[16].mxu1 }
 0x135   :  { %v601_v21 = vadd.f32 %v1798_v17, %v600_v19  ;;  %v729_v22 = vadd.f32 %v1798_v17, %v728_v20  ;;  %v602_v23 = vpop.f32.mrb[17].mxu0  ;;  %v730_v24 = vpop.f32.mrb[17].mxu1 }
 0x136   :  { %v603_v25 = vpop.f32.mrb[18].mxu0  ;;  %v731_v26 = vpop.f32.mrb[18].mxu1 }
 0x137   :  { %v1301_v27 = vpack.c.bf16 %v601_v21, %v601_v21  ;;  %v1333_v28 = vpack.c.bf16 %v729_v22, %v729_v22  ;;  %v604_v29 = vadd.f32 %v1798_v17, %v603_v25  ;;  %v732_v30 = vadd.f32 %v1798_v17, %v731_v26  ;;  %v605_v31 = vpop.f32.mrb[19].mxu0  ;;  %v733_v32 = vpop.f32.mrb[19].mxu1 }
 0x139   :  { %1088 = vst.msk [vmem:[%s2123_s3 + $0x20] sm:$0xf] %vm1079_vm0, %v1301_v27  ;;  %1120 = vst.msk [vmem:[%s2123_s3 + $0xa0] sm:$0xf] %vm1079_vm0, %v1333_v28  ;;  %v1302_v33 = vpack.c.bf16 %v604_v29, %v604_v29  ;;  %v1334_v34 = vpack.c.bf16 %v732_v30, %v732_v30 }
 0x13b   :  { %1089 = vst.msk [vmem:[%s2123_s3 + $0x24] sm:$0xf] %vm1079_vm0, %v1302_v33  ;;  %1121 = vst.msk [vmem:[%s2123_s3 + $0xa4] sm:$0xf] %vm1079_vm0, %v1334_v34 }
 0x13c   :  { %v608_v35 = vpop.f32.mrb[20].mxu0  ;;  %v736_v36 = vpop.f32.mrb[20].mxu1 }
 0x13d   :  { %v609_v37 = vadd.f32 %v1798_v17, %v608_v35  ;;  %v737_v38 = vadd.f32 %v1798_v17, %v736_v36  ;;  %v610_v39 = vpop.f32.mrb[21].mxu0  ;;  %v738_v40 = vpop.f32.mrb[21].mxu1 }
 0x13e   :  { %v611_v41 = vpop.f32.mrb[22].mxu0  ;;  %v739_v42 = vpop.f32.mrb[22].mxu1 }
 0x13f   :  { %v1303_v43 = vpack.c.bf16 %v609_v37, %v609_v37  ;;  %v1335_v44 = vpack.c.bf16 %v737_v38, %v737_v38  ;;  %v612_v45 = vadd.f32 %v1798_v17, %v611_v41  ;;  %v740_v46 = vadd.f32 %v1798_v17, %v739_v42  ;;  %v613_v47 = vpop.f32.mrb[23].mxu0  ;;  %v741_v48 = vpop.f32.mrb[23].mxu1 }
 0x141   :  { %1090 = vst.msk [vmem:[%s2123_s3 + $0x28] sm:$0xf] %vm1079_vm0, %v1303_v43  ;;  %1122 = vst.msk [vmem:[%s2123_s3 + $0xa8] sm:$0xf] %vm1079_vm0, %v1335_v44  ;;  %v1304_v49 = vpack.c.bf16 %v612_v45, %v612_v45  ;;  %v1336_v50 = vpack.c.bf16 %v740_v46, %v740_v46 }
 0x143   :  { %1091 = vst.msk [vmem:[%s2123_s3 + $0x2c] sm:$0xf] %vm1079_vm0, %v1304_v49  ;;  %1123 = vst.msk [vmem:[%s2123_s3 + $0xac] sm:$0xf] %vm1079_vm0, %v1336_v50 }
 0x144   :  { %v616_v51 = vpop.f32.mrb[24].mxu0  ;;  %v744_v52 = vpop.f32.mrb[24].mxu1 }
 0x145   :  { %v617_v53 = vadd.f32 %v1798_v17, %v616_v51  ;;  %v745_v54 = vadd.f32 %v1798_v17, %v744_v52  ;;  %v618_v55 = vpop.f32.mrb[25].mxu0  ;;  %v746_v56 = vpop.f32.mrb[25].mxu1 }
 0x146   :  { %v619_v57 = vpop.f32.mrb[26].mxu0  ;;  %v747_v58 = vpop.f32.mrb[26].mxu1 }
 0x147   :  { %v1305_v59 = vpack.c.bf16 %v617_v53, %v617_v53  ;;  %v1337_v60 = vpack.c.bf16 %v745_v54, %v745_v54  ;;  %v620_v61 = vadd.f32 %v1798_v17, %v619_v57  ;;  %v748_v62 = vadd.f32 %v1798_v17, %v747_v58  ;;  %v621_v63 = vpop.f32.mrb[27].mxu0  ;;  %v749_v0 = vpop.f32.mrb[27].mxu1 }
 0x149   :  { %1092 = vst.msk [vmem:[%s2123_s3 + $0x30] sm:$0xf] %vm1079_vm0, %v1305_v59  ;;  %1124 = vst.msk [vmem:[%s2123_s3 + $0xb0] sm:$0xf] %vm1079_vm0, %v1337_v60  ;;  %v1306_v1 = vpack.c.bf16 %v620_v61, %v620_v61  ;;  %v1338_v2 = vpack.c.bf16 %v748_v62, %v748_v62 }
 0x14b   :  { %1093 = vst.msk [vmem:[%s2123_s3 + $0x34] sm:$0xf] %vm1079_vm0, %v1306_v1  ;;  %1125 = vst.msk [vmem:[%s2123_s3 + $0xb4] sm:$0xf] %vm1079_vm0, %v1338_v2 }
 0x14c   :  { %v624_v3 = vpop.f32.mrb[28].mxu0  ;;  %v752_v4 = vpop.f32.mrb[28].mxu1 }
 0x14d   :  { %v625_v5 = vadd.f32 %v1798_v17, %v624_v3  ;;  %v753_v6 = vadd.f32 %v1798_v17, %v752_v4  ;;  %v626_v7 = vpop.f32.mrb[29].mxu0  ;;  %v754_v8 = vpop.f32.mrb[29].mxu1 }
 0x14e   :  { %v627_v9 = vpop.f32.mrb[30].mxu0  ;;  %v755_v10 = vpop.f32.mrb[30].mxu1 }
 0x14f   :  { %v1307_v11 = vpack.c.bf16 %v625_v5, %v625_v5  ;;  %v1339_v12 = vpack.c.bf16 %v753_v6, %v753_v6  ;;  %v628_v13 = vadd.f32 %v1798_v17, %v627_v9  ;;  %v756_v14 = vadd.f32 %v1798_v17, %v755_v10  ;;  %v629_v15 = vpop.f32.mrb[31].mxu0  ;;  %v757_v16 = vpop.f32.mrb[31].mxu1 }
 0x151   :  { %1094 = vst.msk [vmem:[%s2123_s3 + $0x38] sm:$0xf] %vm1079_vm0, %v1307_v11  ;;  %1126 = vst.msk [vmem:[%s2123_s3 + $0xb8] sm:$0xf] %vm1079_vm0, %v1339_v12  ;;  %v1308_v18 = vpack.c.bf16 %v628_v13, %v628_v13  ;;  %v1340_v19 = vpack.c.bf16 %v756_v14, %v756_v14 }
 0x153   :  { %1095 = vst.msk [vmem:[%s2123_s3 + $0x3c] sm:$0xf] %vm1079_vm0, %v1308_v18  ;;  %1127 = vst.msk [vmem:[%s2123_s3 + $0xbc] sm:$0xf] %vm1079_vm0, %v1340_v19 }
 0x154   :  { %v632_v20 = vpop.f32.mrb[32].mxu0  ;;  %v760_v21 = vpop.f32.mrb[32].mxu1 }
 0x155   :  { %v633_v22 = vadd.f32 %v1798_v17, %v632_v20  ;;  %v761_v23 = vadd.f32 %v1798_v17, %v760_v21  ;;  %v634_v24 = vpop.f32.mrb[33].mxu0  ;;  %v762_v25 = vpop.f32.mrb[33].mxu1 }
 0x156   :  { %v635_v26 = vpop.f32.mrb[34].mxu0  ;;  %v763_v27 = vpop.f32.mrb[34].mxu1 }
 0x157   :  { %v1309_v28 = vpack.c.bf16 %v633_v22, %v633_v22  ;;  %v1341_v29 = vpack.c.bf16 %v761_v23, %v761_v23  ;;  %v636_v30 = vadd.f32 %v1798_v17, %v635_v26  ;;  %v764_v31 = vadd.f32 %v1798_v17, %v763_v27  ;;  %v637_v32 = vpop.f32.mrb[35].mxu0  ;;  %v765_v33 = vpop.f32.mrb[35].mxu1 }
 0x159   :  { %1096 = vst.msk [vmem:[%s2123_s3 + $0x40] sm:$0xf] %vm1079_vm0, %v1309_v28  ;;  %1128 = vst.msk [vmem:[%s2123_s3 + $0xc0] sm:$0xf] %vm1079_vm0, %v1341_v29  ;;  %v1310_v34 = vpack.c.bf16 %v636_v30, %v636_v30  ;;  %v1342_v35 = vpack.c.bf16 %v764_v31, %v764_v31 }
 0x15b   :  { %1097 = vst.msk [vmem:[%s2123_s3 + $0x44] sm:$0xf] %vm1079_vm0, %v1310_v34  ;;  %1129 = vst.msk [vmem:[%s2123_s3 + $0xc4] sm:$0xf] %vm1079_vm0, %v1342_v35 }
 0x15c   :  { %v640_v36 = vpop.f32.mrb[36].mxu0  ;;  %v768_v37 = vpop.f32.mrb[36].mxu1 }
 0x15d   :  { %v641_v38 = vadd.f32 %v1798_v17, %v640_v36  ;;  %v769_v39 = vadd.f32 %v1798_v17, %v768_v37  ;;  %v642_v40 = vpop.f32.mrb[37].mxu0  ;;  %v770_v41 = vpop.f32.mrb[37].mxu1 }
 0x15e   :  { %v643_v42 = vpop.f32.mrb[38].mxu0  ;;  %v771_v43 = vpop.f32.mrb[38].mxu1 }
 0x15f   :  { %v1311_v44 = vpack.c.bf16 %v641_v38, %v641_v38  ;;  %v1343_v45 = vpack.c.bf16 %v769_v39, %v769_v39  ;;  %v644_v46 = vadd.f32 %v1798_v17, %v643_v42  ;;  %v772_v47 = vadd.f32 %v1798_v17, %v771_v43  ;;  %v645_v48 = vpop.f32.mrb[39].mxu0  ;;  %v773_v49 = vpop.f32.mrb[39].mxu1 }
 0x161   :  { %1098 = vst.msk [vmem:[%s2123_s3 + $0x48] sm:$0xf] %vm1079_vm0, %v1311_v44  ;;  %1130 = vst.msk [vmem:[%s2123_s3 + $0xc8] sm:$0xf] %vm1079_vm0, %v1343_v45  ;;  %v1312_v50 = vpack.c.bf16 %v644_v46, %v644_v46  ;;  %v1344_v51 = vpack.c.bf16 %v772_v47, %v772_v47 }
 0x163   :  { %1099 = vst.msk [vmem:[%s2123_s3 + $0x4c] sm:$0xf] %vm1079_vm0, %v1312_v50  ;;  %1131 = vst.msk [vmem:[%s2123_s3 + $0xcc] sm:$0xf] %vm1079_vm0, %v1344_v51 }
 0x164   :  { %v648_v52 = vpop.f32.mrb[40].mxu0  ;;  %v776_v53 = vpop.f32.mrb[40].mxu1 }
 0x165   :  { %v649_v54 = vadd.f32 %v1798_v17, %v648_v52  ;;  %v777_v55 = vadd.f32 %v1798_v17, %v776_v53  ;;  %v650_v56 = vpop.f32.mrb[41].mxu0  ;;  %v778_v57 = vpop.f32.mrb[41].mxu1 }
 0x166   :  { %v651_v58 = vpop.f32.mrb[42].mxu0  ;;  %v779_v59 = vpop.f32.mrb[42].mxu1 }
 0x167   :  { %v1313_v60 = vpack.c.bf16 %v649_v54, %v649_v54  ;;  %v1345_v61 = vpack.c.bf16 %v777_v55, %v777_v55  ;;  %v652_v62 = vadd.f32 %v1798_v17, %v651_v58  ;;  %v780_v63 = vadd.f32 %v1798_v17, %v779_v59  ;;  %v653_v0 = vpop.f32.mrb[43].mxu0  ;;  %v781_v1 = vpop.f32.mrb[43].mxu1 }
 0x169   :  { %1100 = vst.msk [vmem:[%s2123_s3 + $0x50] sm:$0xf] %vm1079_vm0, %v1313_v60  ;;  %1132 = vst.msk [vmem:[%s2123_s3 + $0xd0] sm:$0xf] %vm1079_vm0, %v1345_v61  ;;  %v1314_v2 = vpack.c.bf16 %v652_v62, %v652_v62  ;;  %v1346_v3 = vpack.c.bf16 %v780_v63, %v780_v63 }
 0x16b   :  { %1101 = vst.msk [vmem:[%s2123_s3 + $0x54] sm:$0xf] %vm1079_vm0, %v1314_v2  ;;  %1133 = vst.msk [vmem:[%s2123_s3 + $0xd4] sm:$0xf] %vm1079_vm0, %v1346_v3 }
 0x16c   :  { %v656_v4 = vpop.f32.mrb[44].mxu0  ;;  %v784_v5 = vpop.f32.mrb[44].mxu1 }
 0x16d   :  { %v657_v6 = vadd.f32 %v1798_v17, %v656_v4  ;;  %v785_v7 = vadd.f32 %v1798_v17, %v784_v5  ;;  %v658_v8 = vpop.f32.mrb[45].mxu0  ;;  %v786_v9 = vpop.f32.mrb[45].mxu1 }
 0x16e   :  { %v659_v10 = vpop.f32.mrb[46].mxu0  ;;  %v787_v11 = vpop.f32.mrb[46].mxu1 }
 0x16f   :  { %v1315_v12 = vpack.c.bf16 %v657_v6, %v657_v6  ;;  %v1347_v13 = vpack.c.bf16 %v785_v7, %v785_v7  ;;  %v660_v14 = vadd.f32 %v1798_v17, %v659_v10  ;;  %v788_v15 = vadd.f32 %v1798_v17, %v787_v11  ;;  %v661_v16 = vpop.f32.mrb[47].mxu0  ;;  %v789_v18 = vpop.f32.mrb[47].mxu1 }
 0x171   :  { %1102 = vst.msk [vmem:[%s2123_s3 + $0x58] sm:$0xf] %vm1079_vm0, %v1315_v12  ;;  %1134 = vst.msk [vmem:[%s2123_s3 + $0xd8] sm:$0xf] %vm1079_vm0, %v1347_v13  ;;  %v1316_v19 = vpack.c.bf16 %v660_v14, %v660_v14  ;;  %v1348_v20 = vpack.c.bf16 %v788_v15, %v788_v15 }
 0x173   :  { %1103 = vst.msk [vmem:[%s2123_s3 + $0x5c] sm:$0xf] %vm1079_vm0, %v1316_v19  ;;  %1135 = vst.msk [vmem:[%s2123_s3 + $0xdc] sm:$0xf] %vm1079_vm0, %v1348_v20 }
 0x174   :  { %v664_v21 = vpop.f32.mrb[48].mxu0  ;;  %v792_v22 = vpop.f32.mrb[48].mxu1 }
 0x175   :  { %v665_v23 = vadd.f32 %v1798_v17, %v664_v21  ;;  %v793_v24 = vadd.f32 %v1798_v17, %v792_v22  ;;  %v666_v25 = vpop.f32.mrb[49].mxu0  ;;  %v794_v26 = vpop.f32.mrb[49].mxu1 }
 0x176   :  { %v667_v27 = vpop.f32.mrb[50].mxu0  ;;  %v795_v28 = vpop.f32.mrb[50].mxu1 }
 0x177   :  { %v1317_v29 = vpack.c.bf16 %v665_v23, %v665_v23  ;;  %v1349_v30 = vpack.c.bf16 %v793_v24, %v793_v24  ;;  %v668_v31 = vadd.f32 %v1798_v17, %v667_v27  ;;  %v796_v32 = vadd.f32 %v1798_v17, %v795_v28  ;;  %v669_v33 = vpop.f32.mrb[51].mxu0  ;;  %v797_v34 = vpop.f32.mrb[51].mxu1 }
 0x179   :  { %1104 = vst.msk [vmem:[%s2123_s3 + $0x60] sm:$0xf] %vm1079_vm0, %v1317_v29  ;;  %1136 = vst.msk [vmem:[%s2123_s3 + $0xe0] sm:$0xf] %vm1079_vm0, %v1349_v30  ;;  %v1318_v35 = vpack.c.bf16 %v668_v31, %v668_v31  ;;  %v1350_v36 = vpack.c.bf16 %v796_v32, %v796_v32 }
 0x17b   :  { %1105 = vst.msk [vmem:[%s2123_s3 + $0x64] sm:$0xf] %vm1079_vm0, %v1318_v35  ;;  %1137 = vst.msk [vmem:[%s2123_s3 + $0xe4] sm:$0xf] %vm1079_vm0, %v1350_v36 }
 0x17c   :  { %v672_v37 = vpop.f32.mrb[52].mxu0  ;;  %v800_v38 = vpop.f32.mrb[52].mxu1 }
 0x17d   :  { %v673_v39 = vadd.f32 %v1798_v17, %v672_v37  ;;  %v801_v40 = vadd.f32 %v1798_v17, %v800_v38  ;;  %v674_v41 = vpop.f32.mrb[53].mxu0  ;;  %v802_v42 = vpop.f32.mrb[53].mxu1 }
 0x17e   :  { %v675_v43 = vpop.f32.mrb[54].mxu0  ;;  %v803_v44 = vpop.f32.mrb[54].mxu1 }
 0x17f   :  { %v1319_v45 = vpack.c.bf16 %v673_v39, %v673_v39  ;;  %v1351_v46 = vpack.c.bf16 %v801_v40, %v801_v40  ;;  %v676_v47 = vadd.f32 %v1798_v17, %v675_v43  ;;  %v804_v48 = vadd.f32 %v1798_v17, %v803_v44  ;;  %v677_v49 = vpop.f32.mrb[55].mxu0  ;;  %v805_v50 = vpop.f32.mrb[55].mxu1 }
 0x181   :  { %1106 = vst.msk [vmem:[%s2123_s3 + $0x68] sm:$0xf] %vm1079_vm0, %v1319_v45  ;;  %1138 = vst.msk [vmem:[%s2123_s3 + $0xe8] sm:$0xf] %vm1079_vm0, %v1351_v46  ;;  %v1320_v51 = vpack.c.bf16 %v676_v47, %v676_v47  ;;  %v1352_v52 = vpack.c.bf16 %v804_v48, %v804_v48 }
 0x183   :  { %1107 = vst.msk [vmem:[%s2123_s3 + $0x6c] sm:$0xf] %vm1079_vm0, %v1320_v51  ;;  %1139 = vst.msk [vmem:[%s2123_s3 + $0xec] sm:$0xf] %vm1079_vm0, %v1352_v52 }
 0x184   :  { %v680_v53 = vpop.f32.mrb[56].mxu0  ;;  %v808_v54 = vpop.f32.mrb[56].mxu1 }
 0x185   :  { %v681_v55 = vadd.f32 %v1798_v17, %v680_v53  ;;  %v809_v56 = vadd.f32 %v1798_v17, %v808_v54  ;;  %v682_v57 = vpop.f32.mrb[57].mxu0  ;;  %v810_v58 = vpop.f32.mrb[57].mxu1 }
 0x186   :  { %v683_v59 = vpop.f32.mrb[58].mxu0  ;;  %v811_v60 = vpop.f32.mrb[58].mxu1 }
 0x187   :  { %v1321_v61 = vpack.c.bf16 %v681_v55, %v681_v55  ;;  %v1353_v62 = vpack.c.bf16 %v809_v56, %v809_v56  ;;  %v684_v63 = vadd.f32 %v1798_v17, %v683_v59  ;;  %v812_v0 = vadd.f32 %v1798_v17, %v811_v60  ;;  %v685_v1 = vpop.f32.mrb[59].mxu0  ;;  %v813_v2 = vpop.f32.mrb[59].mxu1 }
 0x189   :  { %1108 = vst.msk [vmem:[%s2123_s3 + $0x70] sm:$0xf] %vm1079_vm0, %v1321_v61  ;;  %1140 = vst.msk [vmem:[%s2123_s3 + $0xf0] sm:$0xf] %vm1079_vm0, %v1353_v62  ;;  %v1322_v3 = vpack.c.bf16 %v684_v63, %v684_v63  ;;  %v1354_v4 = vpack.c.bf16 %v812_v0, %v812_v0 }
 0x18b   :  { %1109 = vst.msk [vmem:[%s2123_s3 + $0x74] sm:$0xf] %vm1079_vm0, %v1322_v3  ;;  %1141 = vst.msk [vmem:[%s2123_s3 + $0xf4] sm:$0xf] %vm1079_vm0, %v1354_v4 }
 0x18c   :  { %v688_v5 = vpop.f32.mrb[60].mxu0  ;;  %v816_v6 = vpop.f32.mrb[60].mxu1 }
 0x18d   :  { %v689_v7 = vadd.f32 %v1798_v17, %v688_v5  ;;  %v817_v8 = vadd.f32 %v1798_v17, %v816_v6  ;;  %v690_v9 = vpop.f32.mrb[61].mxu0  ;;  %v818_v10 = vpop.f32.mrb[61].mxu1 }
 0x18e   :  { %v691_v11 = vpop.f32.mrb[62].mxu0  ;;  %v819_v12 = vpop.f32.mrb[62].mxu1 }
 0x18f   :  { %v1323_v13 = vpack.c.bf16 %v689_v7, %v689_v7  ;;  %v1355_v14 = vpack.c.bf16 %v817_v8, %v817_v8  ;;  %v692_v15 = vadd.f32 %v1798_v17, %v691_v11  ;;  %v820_v16 = vadd.f32 %v1798_v17, %v819_v12  ;;  %v693_v18 = vpop.f32.mrb[63].mxu0  ;;  %v821_v19 = vpop.f32.mrb[63].mxu1 }
 0x191   :  { %1110 = vst.msk [vmem:[%s2123_s3 + $0x78] sm:$0xf] %vm1079_vm0, %v1323_v13  ;;  %1142 = vst.msk [vmem:[%s2123_s3 + $0xf8] sm:$0xf] %vm1079_vm0, %v1355_v14  ;;  %v1324_v20 = vpack.c.bf16 %v692_v15, %v692_v15  ;;  %v1356_v21 = vpack.c.bf16 %v820_v16, %v820_v16 }
 0x193   :  { %1111 = vst.msk [vmem:[%s2123_s3 + $0x7c] sm:$0xf] %vm1079_vm0, %v1324_v20  ;;  %1143 = vst.msk [vmem:[%s2123_s3 + $0xfc] sm:$0xf] %vm1079_vm0, %v1356_v21 }

// kernel: munit_forward.73
= control target key start
LH: loop header
LB: loop body
LE: loop exit
PB: predicated region body
PF: predicated region fallthrough
CT: control target
= control target key end

     0   :  { %s621_s6 = smov 0   ;;  %s623_s7 = smov 0   ;;  %s721_s0 = inlined_call_operand.vmem [shape: bf16[2,64,16], index: 0, kind: input, shape index: {}]   ;;  %s722_s1 = inlined_call_operand.vmem [shape: bf16[2,64,16], index: 1, kind: output, shape index: {}]  }
   0x1   :  { %s625_s8 = smov 0   ;;  %s627_s9 = smov 0  }
   0x2   :  { %s629_s10 = smov 0  }
   0x3 LB: > { %s26_s11 = sadd.s32 1, %s600_s8  ;;  %s30_s12 = sadd.s32 1, %s604_s9  ;;  %s608_s10 = sphi %s629_s10, %s11_s10   ;;  %s604_s9 = sphi %s627_s9, %s726_s9   ;;  %s600_s8 = sphi %s625_s8, %s725_s8   ;;  %s596_s7 = sphi %s623_s7, %s724_s7   ;;  %s592_s6 = sphi %s621_s6, %s723_s6  }
   0x4   : > { %p28_p0 = scmp.ge.s32.totalorder %s26_s11, 2  ;;  %p460_p1 = scmp.ge.s32.totalorder %s608_s10, 1 }
   0x5   : > { %p117_p2 = scmp.lt.s32.totalorder %s608_s10, 5 }
   0x6   : > { %s728_s11 = smov (%p28_p0, %s26_s11), 0  ;;  %s730_s12 = smov (!%p28_p0, %s30_s12), %s604_s9 }
   0x7   : > { %p118_p3 = pnand %p460_p1, %p117_p2  ;;  %p32_p4 = scmp.ge.s32.totalorder %s730_s12, 2 }
   0x8   : > { %p147_p5 = scmp.lt.s32.totalorder (!%p118_p3), %s596_s7, 1  ;;  %p168_p6 = scmp.eq.s32.totalorder (!%p118_p3), %s592_s6, 0 }
   0x9   : > { %s732_s12 = smov (%p32_p4, %s730_s12), 0  ;;  %121 = sbr.rel (%p118_p3) target bundleno = 98 (0x62), region = 24 }
  0x10   : > { %s734_s7 = smov (!%p147_p5, %s596_s7), 1  ;;  %173 = sbr.rel (!%p168_p6) target bundleno = 23 (0x17), region = 28 }
  0x11   : > { %s478_s13 = sshll.u32 %s734_s7, 5  ;;  %vm174_vm0 = vcmask (%p168_p6), 122880   ;;  %v610_v0 = vmov (%p168_p6), 0.0  }
  0x12   : > { %s657_s16 = scalar_lea.vmem %s721_s0, %s478_s13  ;;  %s662_s19 = scalar_lea.vmem %s722_s1, %s478_s13  ;;  %175 = vst.msk [vmem:[#allocation2] sm:$0x1] (%p168_p6), %vm174_vm0, %v610_v0  ;;  %176 = vst.msk [vmem:[#allocation3] sm:$0x1] (%p168_p6), %vm174_vm0, %v610_v0 }
  0x17 PF: > { %p466_p7 = scmp.ne.s32.totalorder %s592_s6, 0 }
  0x18   : > { %v490_v1 = vld [vmem:[%s657_s16] sm:$0xff] (!%p466_p7)   ;;  %v521_v2 = vld [vmem:[%s657_s16 + $0x8] sm:$0xff] (!%p466_p7)   ;;  %v522_v3 = vld [vmem:[%s657_s16 + $0x10] sm:$0xff] (!%p466_p7)   ;;  %vm197_vm1 = vcmask (!%p466_p7), 130048   ;;  %vm220_vm2 = vcmask (!%p466_p7), 122880  }
  0x19   : > { %179 = sbr.rel (%p466_p7) target bundleno = 60 (0x3c), region = 32  ;;  %v491_v4 = vunpack.c.l.bf16 (!%p466_p7), %v490_v1  ;;  %v492_v5 = vunpack.c.h.bf16 (!%p466_p7), %v490_v1  ;;  %v495_v6 = vunpack.c.l.bf16 (!%p466_p7), %v521_v2  ;;  %v496_v7 = vunpack.c.h.bf16 (!%p466_p7), %v521_v2  ;;  %v523_v9 = vld [vmem:[%s657_s16 + $0x18] sm:$0xff] (!%p466_p7)   ;;  %v196_v59 = vld [vmem:[#allocation2] sm:$0x1] (!%p466_p7)  ;;  %v222_v0 = vld [vmem:[#allocation3] sm:$0x1] (!%p466_p7) }
  0x1a   : > { %v499_v8 = vunpack.c.l.bf16 (!%p466_p7), %v522_v3  ;;  %v500_v13 = vunpack.c.h.bf16 (!%p466_p7), %v522_v3  ;;  %v503_v19 = vunpack.c.l.bf16 (!%p466_p7), %v523_v9  ;;  %v504_v29 = vunpack.c.h.bf16 (!%p466_p7), %v523_v9 }
  0x1b   : > { %v198_v10 = vsel (!%p466_p7), %vm197_vm1, %v491_v4, 0.0  ;;  %v199_v11 = vsel (!%p466_p7), %vm197_vm1, %v492_v5, 0.0  ;;  %v201_v12 = vsel (!%p466_p7), %vm197_vm1, %v495_v6, 0.0  ;;  %v203_v15 = vsel (!%p466_p7), %vm197_vm1, %v496_v7, 0.0 }
  0x1c   : > { %v200_v14 = vadd.f32 (!%p466_p7), %v199_v11, %v198_v10  ;;  %v223_v16 = vmul.f32 (!%p466_p7), %v491_v4, %v491_v4  ;;  %v224_v17 = vmul.f32 (!%p466_p7), %v492_v5, %v492_v5  ;;  %v225_v18 = vmul.f32 (!%p466_p7), %v495_v6, %v495_v6 }
  0x1d   : > { %v226_v21 = vmul.f32 (!%p466_p7), %v496_v7, %v496_v7  ;;  %v205_v22 = vsel (!%p466_p7), %vm197_vm1, %v499_v8, 0.0  ;;  %v227_v23 = vmul.f32 (!%p466_p7), %v499_v8, %v499_v8  ;;  %v207_v30 = vsel (!%p466_p7), %vm197_vm1, %v500_v13, 0.0 }
  0x1e   : > { %v202_v20 = vadd.f32 (!%p466_p7), %v201_v12, %v200_v14  ;;  %v231_v24 = vsel (!%p466_p7), %vm197_vm1, %v223_v16, 0.0  ;;  %v232_v25 = vsel (!%p466_p7), %vm197_vm1, %v224_v17, 0.0  ;;  %v234_v28 = vsel (!%p466_p7), %vm197_vm1, %v225_v18, 0.0 }
  0x1f   : > { %v233_v27 = vadd.f32 (!%p466_p7), %v232_v25, %v231_v24  ;;  %v228_v31 = vmul.f32 (!%p466_p7), %v500_v13, %v500_v13  ;;  %v236_v32 = vsel (!%p466_p7), %vm197_vm1, %v226_v21, 0.0  ;;  %v209_v35 = vsel (!%p466_p7), %vm197_vm1, %v503_v19, 0.0 }
  0x20   : > { %v204_v26 = vadd.f32 %v203_v15, %v202_v20  ;;  %v229_v36 = vmul.f32 %v503_v19, %v503_v19  ;;  %v238_v37 = vsel %vm197_vm1, %v227_v23, 0.0  ;;  %v211_v40 = vsel %vm197_vm1, %v504_v29, 0.0 }
  0x21   : > { %v235_v34 = vadd.f32 %v234_v28, %v233_v27  ;;  %v230_v41 = vmul.f32 %v504_v29, %v504_v29  ;;  %v240_v42 = vsel %vm197_vm1, %v228_v31, 0.0 }
  0x22   : > { %v206_v33 = vadd.f32 %v205_v22, %v204_v26  ;;  %v242_v45 = vsel %vm197_vm1, %v229_v36, 0.0 }
  0x23   : > { %v237_v39 = vadd.f32 %v236_v32, %v235_v34  ;;  %v244_v48 = vsel %vm197_vm1, %v230_v41, 0.0 }
  0x24   : > { %v208_v38 = vadd.f32 %v207_v30, %v206_v33 }
  0x25   : > { %v239_v44 = vadd.f32 %v238_v37, %v237_v39 }
  0x26   : > { %v210_v43 = vadd.f32 %v209_v35, %v208_v38 }
  0x27   : > { %v241_v47 = vadd.f32 %v240_v42, %v239_v44 }
  0x28   : > { %v212_v46 = vadd.f32 %v211_v40, %v210_v43 }
  0x29   : > { %v243_v50 = vadd.f32 %v242_v45, %v241_v47 }
  0x2a   : > { %v213_v49 = vrot.slane %v212_v46, 4 }
  0x2b   : > { %v245_v52 = vadd.f32 %v244_v48, %v243_v50 }
  0x2c   : > { %v214_v51 = vadd.f32 %v213_v49, %v212_v46 }
  0x2d   : > { %v246_v54 = vrot.slane %v245_v52, 4 }
  0x2e   : > { %v215_v53 = vrot.slane %v214_v51, 2 }
  0x2f   : > { %v247_v56 = vadd.f32 %v246_v54, %v245_v52 }
  0x30   : > { %v216_v55 = vadd.f32 %v215_v53, %v214_v51 }
  0x31   : > { %v248_v58 = vrot.slane %v247_v56, 2 }
  0x32   : > { %v217_v57 = vrot.slane %v216_v55, 1 }
  0x33   : > { %v249_v61 = vadd.f32 %v248_v58, %v247_v56 }
  0x34   : > { %v218_v60 = vadd.f32 %v217_v57, %v216_v55 }
  0x35   : > { %v250_v63 = vrot.slane %v249_v61, 1 }
  0x36   : > { %v219_v62 = vadd.f32 %v218_v60, %v196_v59 }
  0x37   : > { %v251_v1 = vadd.f32 %v250_v63, %v249_v61 }
  0x38   : > { %221 = vst.msk [vmem:[#allocation2] sm:$0x1] %vm220_vm2, %v219_v62 }
  0x39   : > { %v252_v2 = vadd.f32 %v251_v1, %v222_v0 }
  0x3b   : > { %253 = vst.msk [vmem:[#allocation3] sm:$0x1] %vm220_vm2, %v252_v2 }
  0x3c PF: > { %p467_p8 = scmp.ne.s32.totalorder %s592_s6, 1 }
  0x3d   : > { %v282_v8 = vlaneseq (!%p467_p8)  ;;  %v506_v13 = vld [vmem:[%s657_s16] sm:$0xff] (!%p467_p8)   ;;  %v524_v15 = vld [vmem:[%s657_s16 + $0x8] sm:$0xff] (!%p467_p8)   ;;  %v525_v16 = vld [vmem:[%s657_s16 + $0x10] sm:$0xff] (!%p467_p8)   ;;  %vm351_vm3 = vcmask (!%p467_p8), 125952  }
  0x3e   : > { %257 = sbr.rel (%p467_p8) target bundleno = 98 (0x62), region = 36  ;;  %v526_v17 = vld [vmem:[%s657_s16 + $0x18] sm:$0xff] (!%p467_p8)   ;;  %v507_v18 = vunpack.c.l.bf16 (!%p467_p8), %v506_v13  ;;  %v508_v20 = vunpack.c.h.bf16 (!%p467_p8), %v506_v13  ;;  %v511_v21 = vunpack.c.l.bf16 (!%p467_p8), %v524_v15  ;;  %v512_v22 = vunpack.c.h.bf16 (!%p467_p8), %v524_v15 }
  0x3f   : > { %v274_v3 = vld [vmem:[#allocation2] sm:$0x1] (!%p467_p8)  ;;  %v283_v11 = vshrl.u32 (!%p467_p8), %v282_v8, 7  ;;  %v515_v23 = vunpack.c.l.bf16 (!%p467_p8), %v525_v16  ;;  %v516_v24 = vunpack.c.h.bf16 (!%p467_p8), %v525_v16  ;;  %v519_v25 = vunpack.c.l.bf16 (!%p467_p8), %v526_v17 }
  0x40   : > { %v275_v5 = vmul.f32 (!%p467_p8), 0.015625, %v274_v3  ;;  %v520_v26 = vunpack.c.h.bf16 (!%p467_p8), %v526_v17 }
  0x41   : > { %v284_v14 = vsub.s32 (!%p467_p8), 0, %v283_v11 }
  0x42   : > { %v276_v4 = vld [vmem:[#allocation3] sm:$0x1] (!%p467_p8)  ;;  %v278_v7 = vmul.f32 (!%p467_p8), %v275_v5, %v275_v5 }
  0x43   : > { %v277_v6 = vmul.f32 (!%p467_p8), 0.015625, %v276_v4  ;;  %v285_v19 = vrot.slane (!%p467_p8), %v275_v5, %v284_v14 }
  0x45   : > { %v279_v9 = vsub.f32 %v277_v6, %v278_v7  ;;  %v287_v27 = vsub.f32 %v507_v18, %v285_v19  ;;  %v288_v28 = vsub.f32 %v508_v20, %v285_v19  ;;  %v289_v29 = vsub.f32 %v511_v21, %v285_v19 }
  0x46   : > { %v290_v30 = vsub.f32 %v512_v22, %v285_v19  ;;  %v291_v32 = vsub.f32 %v515_v23, %v285_v19  ;;  %v292_v33 = vsub.f32 %v516_v24, %v285_v19  ;;  %v293_v34 = vsub.f32 %v519_v25, %v285_v19 }
  0x47   : > { %v280_v10 = vmax.f32 %v279_v9, 0.0  ;;  %v294_v35 = vsub.f32 %v520_v26, %v285_v19 }
  0x49   : > { %v295_v12 = vadd.f32 1e-05, %v280_v10 }
  0x4b   : > { %568 = vrsqrt.f32 %v295_v12 }
  0x55   : > { %v569_v31 = vpop.eup %568 }
  0x56   : > { %v301_v36 = vrot.slane %v569_v31, %v284_v14 }
  0x58   : > { %v303_v37 = vmul.f32 %v301_v36, %v287_v27  ;;  %v304_v38 = vmul.f32 %v301_v36, %v288_v28  ;;  %v305_v39 = vmul.f32 %v301_v36, %v289_v29  ;;  %v306_v40 = vmul.f32 %v301_v36, %v290_v30 }
  0x59   : > { %v307_v41 = vmul.f32 %v301_v36, %v291_v32  ;;  %v308_v42 = vmul.f32 %v301_v36, %v292_v33  ;;  %v309_v43 = vmul.f32 %v301_v36, %v293_v34  ;;  %v310_v44 = vmul.f32 %v301_v36, %v294_v35 }
  0x5a   : > { %v311_v45 = vmax.f32 %v303_v37, 0.0  ;;  %v312_v46 = vmax.f32 %v304_v38, 0.0  ;;  %v313_v47 = vmax.f32 %v305_v39, 0.0  ;;  %v314_v48 = vmax.f32 %v306_v40, 0.0 }
  0x5b   : > { %v315_v49 = vmax.f32 %v307_v41, 0.0  ;;  %v316_v50 = vmax.f32 %v308_v42, 0.0  ;;  %v317_v51 = vmax.f32 %v309_v43, 0.0  ;;  %v318_v52 = vmax.f32 %v310_v44, 0.0 }
  0x5c   : > { %v481_v53 = vpack.c.bf16 %v311_v45, %v311_v45  ;;  %v482_v54 = vpack.c.bf16 %v312_v46, %v312_v46  ;;  %v483_v55 = vpack.c.bf16 %v313_v47, %v313_v47  ;;  %v484_v56 = vpack.c.bf16 %v314_v48, %v314_v48 }
  0x5d   : > { %v485_v57 = vpack.c.bf16 %v315_v49, %v315_v49  ;;  %v486_v58 = vpack.c.bf16 %v316_v50, %v316_v50  ;;  %v487_v59 = vpack.c.bf16 %v317_v51, %v317_v51  ;;  %v488_v60 = vpack.c.bf16 %v318_v52, %v318_v52 }
  0x5e   : > { %352 = vst.msk [vmem:[%s662_s19] sm:$0xf] %vm351_vm3, %v481_v53  ;;  %353 = vst.msk [vmem:[%s662_s19 + $0x4] sm:$0xf] %vm351_vm3, %v482_v54 }
  0x5f   : > { %354 = vst.msk [vmem:[%s662_s19 + $0x8] sm:$0xf] %vm351_vm3, %v483_v55  ;;  %355 = vst.msk [vmem:[%s662_s19 + $0xc] sm:$0xf] %vm351_vm3, %v484_v56 }
  0x60   : > { %356 = vst.msk [vmem:[%s662_s19 + $0x10] sm:$0xf] %vm351_vm3, %v485_v57  ;;  %357 = vst.msk [vmem:[%s662_s19 + $0x14] sm:$0xf] %vm351_vm3, %v486_v58 }
  0x61   : > { %358 = vst.msk [vmem:[%s662_s19 + $0x18] sm:$0xf] %vm351_vm3, %v487_v59  ;;  %359 = vst.msk [vmem:[%s662_s19 + $0x1c] sm:$0xf] %vm351_vm3, %v488_v60 }
  0x62 PF: > { %s11_s10 = sadd.s32 1, %s608_s10   ;;  %s723_s6 = smov %s600_s8 }
  0x63   : > { %p8_p9 = scmp.ge.s32.totalorder %s11_s10, 6   ;;  %s724_s7 = smov %s604_s9 }
  0x64   : > { %s725_s8 = smov %s728_s11  ;;  %s726_s9 = smov %s732_s12 }
  0x65   :  { %10 = sbr.rel (!%p8_p9) target bundleno = 3 (0x3), region = 66 }

// kernel: munit_forward.72
= control target key start
LH: loop header
LB: loop body
LE: loop exit
PB: predicated region body
PF: predicated region fallthrough
CT: control target
= control target key end

     0   :  { %vm311_vm0 = vcmask 125952   ;;  %s596_s1 = inlined_call_operand.vmem [shape: bf16[128,16], index: 1, kind: input, shape index: {}]   ;;  %s597_s0 = inlined_call_operand.vmem [shape: bf16[128,128], index: 0, kind: input, shape index: {}]   ;;  %s598_s2 = inlined_call_operand.vmem [shape: f32[1,16], index: 2, kind: input, shape index: {}]   ;;  %s599_s3 = inlined_call_operand.vmem [shape: bf16[128,16], index: 3, kind: output, shape index: {}]  }
   0x1   :  { %v445_v0 = vld [vmem:[%s596_s1] sm:$0xff]   ;;  %v446_v1 = vld [vmem:[%s596_s1 + $0x8] sm:$0xff]   ;;  %v447_v2 = vld [vmem:[%s596_s1 + $0x10] sm:$0xff]  }
   0x2   :  { %397 = vmatprep.subr.bf16.mxu0 %v445_v0  ;;  %429 = vmatprep.subr.bf16.mxu1 %v445_v0  ;;  %v448_v3 = vld [vmem:[%s596_s1 + $0x18] sm:$0xff]   ;;  %v453_v4 = vld [vmem:[%s597_s0] sm:$0xff]   ;;  %v450_v7 = vld [vmem:[%s596_s1 + $0x28] sm:$0xff]  }
   0x3   :  { %398 = vmatpush3.bf16.msra.mxu0 %v445_v0  ;;  %437 = vmatpush3.bf16.msra.mxu1 %v445_v0  ;;  %v454_v5 = vld [vmem:[%s597_s0 + $0x20] sm:$0xff]   ;;  %v451_v8 = vld [vmem:[%s596_s1 + $0x30] sm:$0xff]   ;;  %v452_v9 = vld [vmem:[%s596_s1 + $0x38] sm:$0xff]  }
   0x4   :  { %399 = vmatprep.subr.bf16.mxu0 %v446_v1  ;;  %430 = vmatprep.subr.bf16.mxu1 %v446_v1  ;;  %v449_v6 = vld [vmem:[%s596_s1 + $0x20] sm:$0xff]   ;;  %v455_v10 = vld [vmem:[%s597_s0 + $0x8] sm:$0xff]   ;;  %v457_v12 = vld [vmem:[%s597_s0 + $0x10] sm:$0xff]  }
   0x5   :  { %413 = vmatprep.mubr.bf16.mxu0 %v453_v4  ;;  %421 = vmatprep.mubr.bf16.mxu1 %v454_v5  ;;  %v456_v11 = vld [vmem:[%s597_s0 + $0x28] sm:$0xff]   ;;  %v458_v13 = vld [vmem:[%s597_s0 + $0x30] sm:$0xff]   ;;  %v459_v14 = vld [vmem:[%s597_s0 + $0x18] sm:$0xff]  }
   0x6   :  { %v460_v15 = vld [vmem:[%s597_s0 + $0x38] sm:$0xff]   ;;  %v332_v16 = vld [vmem:[%s598_s2] ss:$0 sm:$0xff] }
   0x7   :  { %400 = vmatpush3.bf16.msra.mxu0 %v446_v1  ;;  %438 = vmatpush3.bf16.msra.mxu1 %v446_v1 }
   0x8   :  { %401 = vmatprep.subr.bf16.mxu0 %v447_v2  ;;  %431 = vmatprep.subr.bf16.mxu1 %v447_v2 }
   0xb   :  { %402 = vmatpush3.bf16.msra.mxu0 %v447_v2  ;;  %439 = vmatpush3.bf16.msra.mxu1 %v447_v2 }
   0xc   :  { %403 = vmatprep.subr.bf16.mxu0 %v448_v3  ;;  %432 = vmatprep.subr.bf16.mxu1 %v448_v3 }
   0xf   :  { %404 = vmatpush3.bf16.msra.mxu0 %v448_v3  ;;  %440 = vmatpush3.bf16.msra.mxu1 %v448_v3 }
  0x10   :  { %405 = vmatprep.subr.bf16.mxu0 %v449_v6  ;;  %433 = vmatprep.subr.bf16.mxu1 %v449_v6 }
  0x13   :  { %406 = vmatpush3.bf16.msra.mxu0 %v449_v6  ;;  %441 = vmatpush3.bf16.msra.mxu1 %v449_v6 }
  0x14   :  { %407 = vmatprep.subr.bf16.mxu0 %v450_v7  ;;  %434 = vmatprep.subr.bf16.mxu1 %v450_v7 }
  0x17   :  { %408 = vmatpush3.bf16.msra.mxu0 %v450_v7  ;;  %442 = vmatpush3.bf16.msra.mxu1 %v450_v7 }
  0x18   :  { %409 = vmatprep.subr.bf16.mxu0 %v451_v8  ;;  %435 = vmatprep.subr.bf16.mxu1 %v451_v8 }
  0x1b   :  { %410 = vmatpush3.bf16.msra.mxu0 %v451_v8  ;;  %443 = vmatpush3.bf16.msra.mxu1 %v451_v8 }
  0x1c   :  { %411 = vmatprep.subr.bf16.mxu0 %v452_v9  ;;  %436 = vmatprep.subr.bf16.mxu1 %v452_v9 }
  0x1f   :  { %412 = vmatpush3.bf16.msra.mxu0 %v452_v9  ;;  %444 = vmatpush3.bf16.msra.mxu1 %v452_v9 }
  0x22   :  { %414 = vmatmul.mubr.bf16.vlgmr.msra.gmra.mrb[0].mxu0 %v455_v10  ;;  %422 = vmatmul.mubr.bf16.vlgmr.msra.gmra.mrb[0].mxu1 %v456_v11 }
  0x23   :  { %417 = vmatprep.mubr.bf16.mxu0 %v457_v12  ;;  %425 = vmatprep.mubr.bf16.mxu1 %v458_v13 }
  0x2a   :  { %418 = vmatmul.mubr.bf16.gmra.mrb[4].mxu0 %v459_v14  ;;  %426 = vmatmul.mubr.bf16.gmra.mrb[4].mxu1 %v460_v15 }
  0xf5   :  { %v415_v17 = vpop.f32.mrb[0].mxu0  ;;  %v423_v18 = vpop.f32.mrb[0].mxu1 }
  0xf6   :  { %v193_v19 = vadd.f32 %v415_v17, %v332_v16  ;;  %v225_v20 = vadd.f32 %v423_v18, %v332_v16  ;;  %v184_v21 = vpop.f32.mrb[1].mxu0  ;;  %v216_v22 = vpop.f32.mrb[1].mxu1 }
  0xf7   :  { %v185_v23 = vadd.f32 %v332_v16, %v184_v21  ;;  %v217_v24 = vadd.f32 %v332_v16, %v216_v22  ;;  %v416_v25 = vpop.f32.mrb[2].mxu0  ;;  %v424_v26 = vpop.f32.mrb[2].mxu1 }
  0xf8   :  { %v367_v27 = vpack.c.bf16 %v193_v19, %v193_v19  ;;  %v375_v28 = vpack.c.bf16 %v225_v20, %v225_v20  ;;  %v196_v29 = vadd.f32 %v416_v25, %v332_v16  ;;  %v228_v30 = vadd.f32 %v424_v26, %v332_v16  ;;  %v187_v31 = vpop.f32.mrb[3].mxu0  ;;  %v219_v32 = vpop.f32.mrb[3].mxu1 }
  0xf9   :  { %v365_v33 = vpack.c.bf16 %v185_v23, %v185_v23  ;;  %v373_v34 = vpack.c.bf16 %v217_v24, %v217_v24  ;;  %v188_v35 = vadd.f32 %v332_v16, %v187_v31  ;;  %v220_v36 = vadd.f32 %v332_v16, %v219_v32 }
  0xfa   :  { %314 = vst.msk [vmem:[%s599_s3 + $0x8] sm:$0xf] %vm311_vm0, %v367_v27  ;;  %322 = vst.msk [vmem:[%s599_s3 + $0x28] sm:$0xf] %vm311_vm0, %v375_v28  ;;  %v368_v37 = vpack.c.bf16 %v196_v29, %v196_v29  ;;  %v376_v38 = vpack.c.bf16 %v228_v30, %v228_v30 }
  0xfb   :  { %312 = vst.msk [vmem:[%s599_s3] sm:$0xf] %vm311_vm0, %v365_v33  ;;  %320 = vst.msk [vmem:[%s599_s3 + $0x20] sm:$0xf] %vm311_vm0, %v373_v34  ;;  %v366_v39 = vpack.c.bf16 %v188_v35, %v188_v35  ;;  %v374_v40 = vpack.c.bf16 %v220_v36, %v220_v36 }
  0xfc   :  { %315 = vst.msk [vmem:[%s599_s3 + $0xc] sm:$0xf] %vm311_vm0, %v368_v37  ;;  %323 = vst.msk [vmem:[%s599_s3 + $0x2c] sm:$0xf] %vm311_vm0, %v376_v38 }
  0xfd   :  { %313 = vst.msk [vmem:[%s599_s3 + $0x4] sm:$0xf] %vm311_vm0, %v366_v39  ;;  %321 = vst.msk [vmem:[%s599_s3 + $0x24] sm:$0xf] %vm311_vm0, %v374_v40  ;;  %v419_v41 = vpop.f32.mrb[4].mxu0  ;;  %v427_v42 = vpop.f32.mrb[4].mxu1 }
  0xfe   :  { %v209_v43 = vadd.f32 %v419_v41, %v332_v16  ;;  %v241_v44 = vadd.f32 %v427_v42, %v332_v16  ;;  %v200_v45 = vpop.f32.mrb[5].mxu0  ;;  %v232_v46 = vpop.f32.mrb[5].mxu1 }
  0xff   :  { %v201_v47 = vadd.f32 %v332_v16, %v200_v45  ;;  %v233_v48 = vadd.f32 %v332_v16, %v232_v46  ;;  %v420_v49 = vpop.f32.mrb[6].mxu0  ;;  %v428_v50 = vpop.f32.mrb[6].mxu1 }
 0x100   :  { %v371_v51 = vpack.c.bf16 %v209_v43, %v209_v43  ;;  %v379_v52 = vpack.c.bf16 %v241_v44, %v241_v44  ;;  %v212_v53 = vadd.f32 %v420_v49, %v332_v16  ;;  %v244_v54 = vadd.f32 %v428_v50, %v332_v16  ;;  %v203_v55 = vpop.f32.mrb[7].mxu0  ;;  %v235_v56 = vpop.f32.mrb[7].mxu1 }
 0x101   :  { %v369_v57 = vpack.c.bf16 %v201_v47, %v201_v47  ;;  %v377_v58 = vpack.c.bf16 %v233_v48, %v233_v48  ;;  %v204_v59 = vadd.f32 %v332_v16, %v203_v55  ;;  %v236_v60 = vadd.f32 %v332_v16, %v235_v56 }
 0x102   :  { %318 = vst.msk [vmem:[%s599_s3 + $0x18] sm:$0xf] %vm311_vm0, %v371_v51  ;;  %326 = vst.msk [vmem:[%s599_s3 + $0x38] sm:$0xf] %vm311_vm0, %v379_v52  ;;  %v372_v61 = vpack.c.bf16 %v212_v53, %v212_v53  ;;  %v380_v62 = vpack.c.bf16 %v244_v54, %v244_v54 }
 0x103   :  { %316 = vst.msk [vmem:[%s599_s3 + $0x10] sm:$0xf] %vm311_vm0, %v369_v57  ;;  %324 = vst.msk [vmem:[%s599_s3 + $0x30] sm:$0xf] %vm311_vm0, %v377_v58  ;;  %v370_v63 = vpack.c.bf16 %v204_v59, %v204_v59  ;;  %v378_v0 = vpack.c.bf16 %v236_v60, %v236_v60 }
 0x104   :  { %319 = vst.msk [vmem:[%s599_s3 + $0x1c] sm:$0xf] %vm311_vm0, %v372_v61  ;;  %327 = vst.msk [vmem:[%s599_s3 + $0x3c] sm:$0xf] %vm311_vm0, %v380_v62 }
 0x105   :  { %317 = vst.msk [vmem:[%s599_s3 + $0x14] sm:$0xf] %vm311_vm0, %v370_v63  ;;  %325 = vst.msk [vmem:[%s599_s3 + $0x34] sm:$0xf] %vm311_vm0, %v378_v0 }

// kernel: munit_forward.75
= control target key start
LH: loop header
LB: loop body
LE: loop exit
PB: predicated region body
PF: predicated region fallthrough
CT: control target
= control target key end

     0   :  { %s477_s6 = smov 0   ;;  %s479_s7 = smov 0   ;;  %s541_s0 = inlined_call_operand.vmem [shape: bf16[2,16,32], index: 0, kind: input, shape index: {}]   ;;  %s542_s1 = inlined_call_operand.vmem [shape: bf16[2,16,32], index: 1, kind: output, shape index: {}]  }
   0x1   :  { %s481_s8 = smov 0   ;;  %s483_s9 = smov 0  }
   0x2   :  { %s485_s10 = smov 0  }
   0x3 LB: > { %s26_s11 = sadd.s32 1, %s456_s8  ;;  %s30_s12 = sadd.s32 1, %s460_s9  ;;  %s464_s10 = sphi %s485_s10, %s11_s10   ;;  %s460_s9 = sphi %s483_s9, %s546_s9   ;;  %s456_s8 = sphi %s481_s8, %s545_s8   ;;  %s452_s7 = sphi %s479_s7, %s544_s7   ;;  %s448_s6 = sphi %s477_s6, %s543_s6  }
   0x4   : > { %p28_p0 = scmp.ge.s32.totalorder %s26_s11, 2  ;;  %p358_p1 = scmp.ge.s32.totalorder %s464_s10, 1 }
   0x5   : > { %p117_p2 = scmp.lt.s32.totalorder %s464_s10, 5 }
   0x6   : > { %s548_s11 = smov (%p28_p0, %s26_s11), 0  ;;  %s550_s12 = smov (!%p28_p0, %s30_s12), %s460_s9 }
   0x7   : > { %p118_p3 = pnand %p358_p1, %p117_p2  ;;  %p32_p4 = scmp.ge.s32.totalorder %s550_s12, 2 }
   0x8   : > { %p147_p5 = scmp.lt.s32.totalorder (!%p118_p3), %s452_s7, 1  ;;  %p168_p6 = scmp.eq.s32.totalorder (!%p118_p3), %s448_s6, 0 }
   0x9   : > { %s552_s12 = smov (%p32_p4, %s550_s12), 0  ;;  %121 = sbr.rel (%p118_p3) target bundleno = 82 (0x52), region = 24 }
  0x10   : > { %s554_s7 = smov (!%p147_p5, %s452_s7), 1  ;;  %173 = sbr.rel (!%p168_p6) target bundleno = 23 (0x17), region = 28 }
  0x11   : > { %s370_s13 = sshll.u32 %s554_s7, 3  ;;  %vm174_vm0 = vcmask (%p168_p6), 253952   ;;  %v466_v0 = vmov (%p168_p6), 0.0  }
  0x12   : > { %s513_s16 = scalar_lea.vmem %s541_s0, %s370_s13  ;;  %s518_s19 = scalar_lea.vmem %s542_s1, %s370_s13  ;;  %175 = vst.msk [vmem:[#allocation2] sm:$0x1] (%p168_p6), %vm174_vm0, %v466_v0  ;;  %176 = vst.msk [vmem:[#allocation3] sm:$0x1] (%p168_p6), %vm174_vm0, %v466_v0 }
  0x17 PF: > { %p364_p7 = scmp.ne.s32.totalorder %s448_s6, 0 }
  0x18   : > { %v376_v1 = vld [vmem:[%s513_s16] sm:$0xff] (!%p364_p7)   ;;  %vm185_vm1 = vcmask (!%p364_p7), 261120   ;;  %vm196_vm2 = vcmask (!%p364_p7), 253952  }
  0x19   : > { %179 = sbr.rel (%p364_p7) target bundleno = 47 (0x2f), region = 32  ;;  %v377_v2 = vunpack.c.l.bf16 (!%p364_p7), %v376_v1  ;;  %v378_v3 = vunpack.c.h.bf16 (!%p364_p7), %v376_v1  ;;  %v184_v21 = vld [vmem:[#allocation2] sm:$0x1] (!%p364_p7)  ;;  %v198_v24 = vld [vmem:[#allocation3] sm:$0x1] (!%p364_p7) }
  0x1b   : > { %v186_v4 = vsel (!%p364_p7), %vm185_vm1, %v377_v2, 0.0  ;;  %v187_v5 = vsel (!%p364_p7), %vm185_vm1, %v378_v3, 0.0  ;;  %v199_v6 = vmul.f32 (!%p364_p7), %v377_v2, %v377_v2  ;;  %v200_v7 = vmul.f32 (!%p364_p7), %v378_v3, %v378_v3 }
  0x1c   : > { %v188_v8 = vadd.f32 (!%p364_p7), %v187_v5, %v186_v4 }
  0x1d   : > { %v201_v9 = vsel (!%p364_p7), %vm185_vm1, %v199_v6, 0.0  ;;  %v202_v10 = vsel (!%p364_p7), %vm185_vm1, %v200_v7, 0.0 }
  0x1e   : > { %v189_v11 = vrot.slane (!%p364_p7), %v188_v8, 4  ;;  %v203_v12 = vadd.f32 (!%p364_p7), %v202_v10, %v201_v9 }
  0x20   : > { %v190_v13 = vadd.f32 %v189_v11, %v188_v8  ;;  %v204_v14 = vrot.slane %v203_v12, 4 }
  0x22   : > { %v191_v15 = vrot.slane %v190_v13, 2  ;;  %v205_v16 = vadd.f32 %v204_v14, %v203_v12 }
  0x24   : > { %v192_v17 = vadd.f32 %v191_v15, %v190_v13  ;;  %v206_v18 = vrot.slane %v205_v16, 2 }
  0x26   : > { %v193_v19 = vrot.slane %v192_v17, 1  ;;  %v207_v20 = vadd.f32 %v206_v18, %v205_v16 }
  0x28   : > { %v194_v22 = vadd.f32 %v193_v19, %v192_v17  ;;  %v208_v23 = vrot.slane %v207_v20, 1 }
  0x2a   : > { %v195_v25 = vadd.f32 %v194_v22, %v184_v21  ;;  %v209_v26 = vadd.f32 %v208_v23, %v207_v20 }
  0x2c   : > { %197 = vst.msk [vmem:[#allocation2] sm:$0x1] %vm196_vm2, %v195_v25  ;;  %v210_v27 = vadd.f32 %v209_v26, %v198_v24 }
  0x2e   : > { %211 = vst.msk [vmem:[#allocation3] sm:$0x1] %vm196_vm2, %v210_v27 }
  0x2f PF: > { %p365_p8 = scmp.ne.s32.totalorder %s448_s6, 1 }
  0x30   : > { %v228_v33 = vlaneseq (!%p365_p8)  ;;  %v380_v39 = vld [vmem:[%s513_s16] sm:$0xff] (!%p365_p8)   ;;  %vm255_vm3 = vcmask (!%p365_p8), 257024  }
  0x31   : > { %215 = sbr.rel (%p365_p8) target bundleno = 82 (0x52), region = 36  ;;  %v381_v40 = vunpack.c.l.bf16 (!%p365_p8), %v380_v39  ;;  %v382_v42 = vunpack.c.h.bf16 (!%p365_p8), %v380_v39 }
  0x32   : > { %v229_v36 = vshrl.u32 (!%p365_p8), %v228_v33, 7 }
  0x33   : > { %v220_v28 = vld [vmem:[#allocation2] sm:$0x1] (!%p365_p8) }
  0x34   : > { %v221_v30 = vmul.f32 (!%p365_p8), 0.0625, %v220_v28  ;;  %v230_v38 = vsub.s32 (!%p365_p8), 0, %v229_v36 }
  0x35   : > { %v222_v29 = vld [vmem:[#allocation3] sm:$0x1] (!%p365_p8) }
  0x36   : > { %v223_v31 = vmul.f32 (!%p365_p8), 0.0625, %v222_v29  ;;  %v224_v32 = vmul.f32 (!%p365_p8), %v221_v30, %v221_v30  ;;  %v231_v41 = vrot.slane (!%p365_p8), %v221_v30, %v230_v38 }
  0x38   : > { %v225_v34 = vsub.f32 %v223_v31, %v224_v32  ;;  %v233_v43 = vsub.f32 %v381_v40, %v231_v41  ;;  %v234_v44 = vsub.f32 %v382_v42, %v231_v41 }
  0x3a   : > { %v226_v35 = vmax.f32 %v225_v34, 0.0 }
  0x3c   : > { %v235_v37 = vadd.f32 1e-05, %v226_v35 }
  0x3e   : > { %424 = vrsqrt.f32 %v235_v37 }
  0x48   : > { %v425_v45 = vpop.eup %424 }
  0x49   : > { %v241_v46 = vrot.slane %v425_v45, %v230_v38 }
  0x4b   : > { %v243_v47 = vmul.f32 %v241_v46, %v233_v43  ;;  %v244_v48 = vmul.f32 %v241_v46, %v234_v44 }
  0x4d   : > { %v245_v49 = vmax.f32 %v243_v47, 0.0  ;;  %v246_v50 = vmax.f32 %v244_v48, 0.0 }
  0x4f   : > { %v373_v51 = vpack.c.bf16 %v245_v49, %v245_v49  ;;  %v374_v52 = vpack.c.bf16 %v246_v50, %v246_v50 }
  0x51   : > { %256 = vst.msk [vmem:[%s518_s19] sm:$0xf] %vm255_vm3, %v373_v51  ;;  %257 = vst.msk [vmem:[%s518_s19 + $0x4] sm:$0xf] %vm255_vm3, %v374_v52 }
  0x52 PF: > { %s11_s10 = sadd.s32 1, %s464_s10   ;;  %s543_s6 = smov %s456_s8 }
  0x53   : > { %p8_p9 = scmp.ge.s32.totalorder %s11_s10, 6   ;;  %s544_s7 = smov %s460_s9 }
  0x54   : > { %s545_s8 = smov %s548_s11  ;;  %s546_s9 = smov %s552_s12 }
  0x55   :  { %10 = sbr.rel (!%p8_p9) target bundleno = 3 (0x3), region = 66 }

// kernel: munit_forward.74
= control target key start
LH: loop header
LB: loop body
LE: loop exit
PB: predicated region body
PF: predicated region fallthrough
CT: control target
= control target key end

     0   :  { %vm239_vm0 = vcmask 257024   ;;  %s438_s1 = inlined_call_operand.vmem [shape: bf16[256,32], index: 1, kind: input, shape index: {}]   ;;  %s439_s0 = inlined_call_operand.vmem [shape: bf16[32,256], index: 0, kind: input, shape index: {}]   ;;  %s440_s2 = inlined_call_operand.vmem [shape: f32[1,32], index: 2, kind: input, shape index: {}]   ;;  %s441_s3 = inlined_call_operand.vmem [shape: bf16[32,32], index: 3, kind: output, shape index: {}]  }
   0x1   :  { %v321_v0 = vld [vmem:[%s438_s1 + $0x40] sm:$0xff]   ;;  %v323_v2 = vld [vmem:[%s438_s1 + $0x48] sm:$0xff]   ;;  %v325_v4 = vld [vmem:[%s438_s1 + $0x50] sm:$0xff]  }
   0x2   :  { %v322_v1 = vld [vmem:[%s438_s1] sm:$0xff]   ;;  %277 = vmatprep.subr.bf16.mxu0 %v321_v0  ;;  %305 = vmatprep.subr.bf16.mxu1 %v321_v0  ;;  %v324_v3 = vld [vmem:[%s438_s1 + $0x8] sm:$0xff]   ;;  %v326_v5 = vld [vmem:[%s438_s1 + $0x10] sm:$0xff]  }
   0x3   :  { %278 = vmatpush3.bf16.msra.mxu0 %v322_v1  ;;  %313 = vmatpush3.bf16.msra.mxu1 %v322_v1  ;;  %v327_v6 = vld [vmem:[%s438_s1 + $0x58] sm:$0xff]   ;;  %v329_v8 = vld [vmem:[%s438_s1 + $0x60] sm:$0xff]   ;;  %v331_v10 = vld [vmem:[%s438_s1 + $0x68] sm:$0xff]  }
   0x4   :  { %279 = vmatprep.subr.bf16.mxu0 %v323_v2  ;;  %306 = vmatprep.subr.bf16.mxu1 %v323_v2  ;;  %v328_v7 = vld [vmem:[%s438_s1 + $0x18] sm:$0xff]   ;;  %v330_v9 = vld [vmem:[%s438_s1 + $0x20] sm:$0xff]   ;;  %v332_v13 = vld [vmem:[%s438_s1 + $0x28] sm:$0xff]  }
   0x5   :  { %v339_v11 = vld [vmem:[%s439_s0 + $0x4] ss:$8 sps:$4 sm:$0xff]   ;;  %v342_v12 = vld [vmem:[%s439_s0 + $0x14] ss:$8 sps:$4 sm:$0xff]   ;;  %v337_v18 = vld [vmem:[%s439_s0] ss:$8 sps:$4 sm:$0xff]  }
   0x6   :  { %v333_v14 = vld [vmem:[%s438_s1 + $0x70] sm:$0xff]   ;;  %206 = vmatprep.mubr.bf16.mxu0 %v339_v11  ;;  %214 = vmatprep.mubr.bf16.mxu1 %v342_v12  ;;  %v335_v16 = vld [vmem:[%s438_s1 + $0x78] sm:$0xff]   ;;  %v248_v22 = vld [vmem:[%s440_s2] ss:$0 sm:$0xff] }
   0x7   :  { %280 = vmatpush3.bf16.msra.mxu0 %v324_v3  ;;  %314 = vmatpush3.bf16.msra.mxu1 %v324_v3  ;;  %v334_v15 = vld [vmem:[%s438_s1 + $0x30] sm:$0xff]   ;;  %v336_v17 = vld [vmem:[%s438_s1 + $0x38] sm:$0xff]  }
   0x8   :  { %281 = vmatprep.subr.bf16.mxu0 %v325_v4  ;;  %307 = vmatprep.subr.bf16.mxu1 %v325_v4  ;;  %v340_v19 = vld [vmem:[%s439_s0 + $0x10] ss:$8 sps:$4 sm:$0xff]  }
   0xb   :  { %282 = vmatpush3.bf16.msra.mxu0 %v326_v5  ;;  %315 = vmatpush3.bf16.msra.mxu1 %v326_v5 }
   0xc   :  { %283 = vmatprep.subr.bf16.mxu0 %v327_v6  ;;  %308 = vmatprep.subr.bf16.mxu1 %v327_v6 }
   0xf   :  { %284 = vmatpush3.bf16.msra.mxu0 %v328_v7  ;;  %316 = vmatpush3.bf16.msra.mxu1 %v328_v7 }
  0x10   :  { %285 = vmatprep.subr.bf16.mxu0 %v329_v8  ;;  %309 = vmatprep.subr.bf16.mxu1 %v329_v8 }
  0x13   :  { %286 = vmatpush3.bf16.msra.mxu0 %v330_v9  ;;  %317 = vmatpush3.bf16.msra.mxu1 %v330_v9 }
  0x14   :  { %287 = vmatprep.subr.bf16.mxu0 %v331_v10  ;;  %310 = vmatprep.subr.bf16.mxu1 %v331_v10 }
  0x17   :  { %288 = vmatpush3.bf16.msra.mxu0 %v332_v13  ;;  %318 = vmatpush3.bf16.msra.mxu1 %v332_v13 }
  0x18   :  { %289 = vmatprep.subr.bf16.mxu0 %v333_v14  ;;  %311 = vmatprep.subr.bf16.mxu1 %v333_v14 }
  0x1b   :  { %290 = vmatpush3.bf16.msra.mxu0 %v334_v15  ;;  %319 = vmatpush3.bf16.msra.mxu1 %v334_v15 }
  0x1c   :  { %291 = vmatprep.subr.bf16.mxu0 %v335_v16  ;;  %312 = vmatprep.subr.bf16.mxu1 %v335_v16 }
  0x1f   :  { %292 = vmatpush3.bf16.msra.mxu0 %v336_v17  ;;  %320 = vmatpush3.bf16.msra.mxu1 %v336_v17 }
  0x22   :  { %207 = vmatmul.mubr.bf16.vlgmr.msra.gmra.mrb[0].mxu0 %v337_v18  ;;  %215 = vmatmul.mubr.bf16.vlgmr.msra.gmra.mrb[0].mxu1 %v340_v19 }
  0xf5   :  { %v293_v20 = vpop.f32.mrb[0].mxu0  ;;  %v299_v21 = vpop.f32.mrb[0].mxu1 }
  0xf6   :  { %v294_v23 = vpop.f32.mrb[1].mxu0  ;;  %v300_v24 = vpop.f32.mrb[1].mxu1 }
  0xf7   :  { %v295_v25 = vadd.f32 %v294_v23, %v293_v20  ;;  %v301_v26 = vadd.f32 %v300_v24, %v299_v21  ;;  %v296_v27 = vpop.f32.mrb[2].mxu0  ;;  %v302_v28 = vpop.f32.mrb[2].mxu1 }
  0xf8   :  { %v297_v29 = vpop.f32.mrb[3].mxu0  ;;  %v303_v30 = vpop.f32.mrb[3].mxu1 }
  0xf9   :  { %v209_v31 = vadd.f32 %v295_v25, %v248_v22  ;;  %v217_v32 = vadd.f32 %v301_v26, %v248_v22  ;;  %v298_v33 = vadd.f32 %v297_v29, %v296_v27  ;;  %v304_v34 = vadd.f32 %v303_v30, %v302_v28 }
  0xfb   :  { %v273_v35 = vpack.c.bf16 %v209_v31, %v209_v31  ;;  %v275_v36 = vpack.c.bf16 %v217_v32, %v217_v32  ;;  %v212_v37 = vadd.f32 %v298_v33, %v248_v22  ;;  %v220_v38 = vadd.f32 %v304_v34, %v248_v22 }
  0xfd   :  { %240 = vst.msk [vmem:[%s441_s3] sm:$0xf] %vm239_vm0, %v273_v35  ;;  %242 = vst.msk [vmem:[%s441_s3 + $0x8] sm:$0xf] %vm239_vm0, %v275_v36  ;;  %v274_v39 = vpack.c.bf16 %v212_v37, %v212_v37  ;;  %v276_v40 = vpack.c.bf16 %v220_v38, %v220_v38 }
  0xff   :  { %241 = vst.msk [vmem:[%s441_s3 + $0x4] sm:$0xf] %vm239_vm0, %v274_v39  ;;  %243 = vst.msk [vmem:[%s441_s3 + $0xc] sm:$0xf] %vm239_vm0, %v276_v40 }

// kernel: munit_forward.79
= control target key start
LH: loop header
LB: loop body
LE: loop exit
PB: predicated region body
PF: predicated region fallthrough
CT: control target
= control target key end

     0   :  { %s581_s9 = smov 0   ;;  %s583_s10 = smov 0   ;;  %s658_s0 = inlined_call_operand.vmem [shape: bf16[2,16,32], index: 0, kind: input, shape index: {}]   ;;  %s659_s1 = inlined_call_operand.vmem [shape: bf16[2,16,32], index: 1, kind: input, shape index: {}]   ;;  %s660_s2 = inlined_call_operand.vmem [shape: bf16[2,16,32], index: 2, kind: output, shape index: {}]  }
   0x1   :  { %s585_s11 = smov 0   ;;  %s587_s12 = smov 0  }
   0x2   :  { %s589_s13 = smov 0  }
   0x3 LB: > { %s27_s14 = sadd.s32 1, %s555_s11  ;;  %s31_s15 = sadd.s32 1, %s559_s12  ;;  %s563_s13 = sphi %s589_s13, %s12_s13   ;;  %s559_s12 = sphi %s587_s12, %s664_s12   ;;  %s555_s11 = sphi %s585_s11, %s663_s11   ;;  %s551_s10 = sphi %s583_s10, %s662_s10   ;;  %s547_s9 = sphi %s581_s9, %s661_s9  }
   0x4   : > { %p29_p0 = scmp.ge.s32.totalorder %s27_s14, 2  ;;  %p450_p1 = scmp.ge.s32.totalorder %s563_s13, 1 }
   0x5   : > { %p163_p2 = scmp.lt.s32.totalorder %s563_s13, 5 }
   0x6   : > { %s666_s14 = smov (%p29_p0, %s27_s14), 0  ;;  %s668_s15 = smov (!%p29_p0, %s31_s15), %s559_s12 }
   0x7   : > { %p164_p3 = pnand %p450_p1, %p163_p2  ;;  %p33_p4 = scmp.ge.s32.totalorder %s668_s15, 2 }
   0x8   : > { %p205_p5 = scmp.lt.s32.totalorder (!%p164_p3), %s551_s10, 1  ;;  %p238_p6 = scmp.eq.s32.totalorder (!%p164_p3), %s547_s9, 0 }
   0x9   : > { %s670_s15 = smov (%p33_p4, %s668_s15), 0  ;;  %167 = sbr.rel (%p164_p3) target bundleno = 82 (0x52), region = 28 }
  0x10   : > { %s672_s10 = smov (!%p205_p5, %s551_s10), 1  ;;  %243 = sbr.rel (!%p238_p6) target bundleno = 23 (0x17), region = 32 }
  0x11   : > { %s614_s16 = sshll.u32 %s672_s10, 3  ;;  %vm244_vm0 = vcmask (%p238_p6), 253952   ;;  %v565_v0 = vmov (%p238_p6), 0.0  }
  0x12   : > { %s620_s19 = scalar_lea.vmem %s658_s0, %s614_s16  ;;  %s223_s22 = scalar_lea.vmem %s659_s1, %s614_s16  ;;  %245 = vst.msk [vmem:[#allocation2] sm:$0x1] (%p238_p6), %vm244_vm0, %v565_v0  ;;  %246 = vst.msk [vmem:[#allocation3] sm:$0x1] (%p238_p6), %vm244_vm0, %v565_v0 }
  0x13   : > { %s630_s25 = scalar_lea.vmem %s660_s2, %s614_s16 }
  0x17 PF: > { %p458_p7 = scmp.ne.s32.totalorder %s547_s9, 0 }
  0x18   : > { %v471_v1 = vld [vmem:[%s620_s19] sm:$0xff] (!%p458_p7)   ;;  %vm255_vm1 = vcmask (!%p458_p7), 261120   ;;  %vm266_vm2 = vcmask (!%p458_p7), 253952  }
  0x19   : > { %249 = sbr.rel (%p458_p7) target bundleno = 47 (0x2f), region = 36  ;;  %v472_v2 = vunpack.c.l.bf16 (!%p458_p7), %v471_v1  ;;  %v473_v3 = vunpack.c.h.bf16 (!%p458_p7), %v471_v1  ;;  %v254_v21 = vld [vmem:[#allocation2] sm:$0x1] (!%p458_p7)  ;;  %v268_v24 = vld [vmem:[#allocation3] sm:$0x1] (!%p458_p7) }
  0x1b   : > { %v256_v4 = vsel (!%p458_p7), %vm255_vm1, %v472_v2, 0.0  ;;  %v257_v5 = vsel (!%p458_p7), %vm255_vm1, %v473_v3, 0.0  ;;  %v269_v6 = vmul.f32 (!%p458_p7), %v472_v2, %v472_v2  ;;  %v270_v7 = vmul.f32 (!%p458_p7), %v473_v3, %v473_v3 }
  0x1c   : > { %v258_v8 = vadd.f32 (!%p458_p7), %v257_v5, %v256_v4 }
  0x1d   : > { %v271_v9 = vsel (!%p458_p7), %vm255_vm1, %v269_v6, 0.0  ;;  %v272_v10 = vsel (!%p458_p7), %vm255_vm1, %v270_v7, 0.0 }
  0x1e   : > { %v259_v11 = vrot.slane (!%p458_p7), %v258_v8, 4  ;;  %v273_v12 = vadd.f32 (!%p458_p7), %v272_v10, %v271_v9 }
  0x20   : > { %v260_v13 = vadd.f32 %v259_v11, %v258_v8  ;;  %v274_v14 = vrot.slane %v273_v12, 4 }
  0x22   : > { %v261_v15 = vrot.slane %v260_v13, 2  ;;  %v275_v16 = vadd.f32 %v274_v14, %v273_v12 }
  0x24   : > { %v262_v17 = vadd.f32 %v261_v15, %v260_v13  ;;  %v276_v18 = vrot.slane %v275_v16, 2 }
  0x26   : > { %v263_v19 = vrot.slane %v262_v17, 1  ;;  %v277_v20 = vadd.f32 %v276_v18, %v275_v16 }
  0x28   : > { %v264_v22 = vadd.f32 %v263_v19, %v262_v17  ;;  %v278_v23 = vrot.slane %v277_v20, 1 }
  0x2a   : > { %v265_v25 = vadd.f32 %v264_v22, %v254_v21  ;;  %v279_v26 = vadd.f32 %v278_v23, %v277_v20 }
  0x2c   : > { %267 = vst.msk [vmem:[#allocation2] sm:$0x1] %vm266_vm2, %v265_v25  ;;  %v280_v27 = vadd.f32 %v279_v26, %v268_v24 }
  0x2e   : > { %281 = vst.msk [vmem:[#allocation3] sm:$0x1] %vm266_vm2, %v280_v27 }
  0x2f PF: > { %p459_p8 = scmp.ne.s32.totalorder %s547_s9, 1 }
  0x30   : > { %v298_v33 = vlaneseq (!%p459_p8)  ;;  %v475_v39 = vld [vmem:[%s620_s19] sm:$0xff] (!%p459_p8)   ;;  %vm329_vm3 = vcmask (!%p459_p8), 257024  }
  0x31   : > { %285 = sbr.rel (%p459_p8) target bundleno = 82 (0x52), region = 40  ;;  %v476_v40 = vunpack.c.l.bf16 (!%p459_p8), %v475_v39  ;;  %v477_v42 = vunpack.c.h.bf16 (!%p459_p8), %v475_v39  ;;  %v479_v43 = vld [vmem:[%s223_s22] sm:$0xff] (!%p459_p8)  }
  0x32   : > { %v299_v36 = vshrl.u32 (!%p459_p8), %v298_v33, 7  ;;  %v480_v48 = vunpack.c.l.bf16 (!%p459_p8), %v479_v43  ;;  %v481_v49 = vunpack.c.h.bf16 (!%p459_p8), %v479_v43 }
  0x33   : > { %v290_v28 = vld [vmem:[#allocation2] sm:$0x1] (!%p459_p8) }
  0x34   : > { %v291_v30 = vmul.f32 (!%p459_p8), 0.0625, %v290_v28  ;;  %v300_v38 = vsub.s32 (!%p459_p8), 0, %v299_v36 }
  0x35   : > { %v292_v29 = vld [vmem:[#allocation3] sm:$0x1] (!%p459_p8) }
  0x36   : > { %v293_v31 = vmul.f32 (!%p459_p8), 0.0625, %v292_v29  ;;  %v294_v32 = vmul.f32 (!%p459_p8), %v291_v30, %v291_v30  ;;  %v301_v41 = vrot.slane (!%p459_p8), %v291_v30, %v300_v38 }
  0x38   : > { %v295_v34 = vsub.f32 %v293_v31, %v294_v32  ;;  %v303_v44 = vsub.f32 %v476_v40, %v301_v41  ;;  %v304_v45 = vsub.f32 %v477_v42, %v301_v41 }
  0x3a   : > { %v296_v35 = vmax.f32 %v295_v34, 0.0 }
  0x3c   : > { %v305_v37 = vadd.f32 1e-05, %v296_v35 }
  0x3e   : > { %523 = vrsqrt.f32 %v305_v37 }
  0x48   : > { %v524_v46 = vpop.eup %523 }
  0x49   : > { %v311_v47 = vrot.slane %v524_v46, %v300_v38 }
  0x4b   : > { %v313_v50 = vmul.f32 %v311_v47, %v303_v44  ;;  %v314_v51 = vmul.f32 %v311_v47, %v304_v45 }
  0x4d   : > { %v319_v52 = vadd.f32 %v480_v48, %v313_v50  ;;  %v320_v53 = vadd.f32 %v481_v49, %v314_v51 }
  0x4f   : > { %v468_v54 = vpack.c.bf16 %v319_v52, %v319_v52  ;;  %v469_v55 = vpack.c.bf16 %v320_v53, %v320_v53 }
  0x51   : > { %330 = vst.msk [vmem:[%s630_s25] sm:$0xf] %vm329_vm3, %v468_v54  ;;  %331 = vst.msk [vmem:[%s630_s25 + $0x4] sm:$0xf] %vm329_vm3, %v469_v55 }
  0x52 PF: > { %s12_s13 = sadd.s32 1, %s563_s13   ;;  %s661_s9 = smov %s555_s11 }
  0x53   : > { %p9_p9 = scmp.ge.s32.totalorder %s12_s13, 6   ;;  %s662_s10 = smov %s559_s12 }
  0x54   : > { %s663_s11 = smov %s666_s14  ;;  %s664_s12 = smov %s670_s15 }
  0x55   :  { %11 = sbr.rel (!%p9_p9) target bundleno = 3 (0x3), region = 73 }

// kernel: munit_forward.76
= control target key start
LH: loop header
LB: loop body
LE: loop exit
PB: predicated region body
PF: predicated region fallthrough
CT: control target
= control target key end

     0   :  { %vm368_vm0 = vcmask 257024   ;;  %s635_s1 = inlined_call_operand.vmem [shape: bf16[384,32], index: 1, kind: input, shape index: {}]   ;;  %s636_s0 = inlined_call_operand.vmem [shape: bf16[32,384], index: 0, kind: input, shape index: {}]   ;;  %s637_s2 = inlined_call_operand.vmem [shape: f32[1,32], index: 2, kind: input, shape index: {}]   ;;  %s638_s3 = inlined_call_operand.vmem [shape: bf16[32,32], index: 3, kind: output, shape index: {}]  }
   0x1   :  { %v474_v0 = vld [vmem:[%s635_s1 + $0x40] sm:$0xff]   ;;  %v476_v2 = vld [vmem:[%s635_s1 + $0x48] sm:$0xff]   ;;  %v479_v5 = vld [vmem:[%s635_s1 + $0x50] sm:$0xff]  }
   0x2   :  { %v475_v1 = vld [vmem:[%s635_s1] sm:$0xff]   ;;  %416 = vmatprep.subr.bf16.mxu0 %v474_v0  ;;  %v478_v4 = vld [vmem:[%s635_s1 + $0x8] sm:$0xff]   ;;  %v481_v7 = vld [vmem:[%s635_s1 + $0x10] sm:$0xff]  }
   0x3   :  { %417 = vmatpush3.bf16.msra.mxu0 %v475_v1  ;;  %v477_v3 = vld [vmem:[%s635_s1 + $0x80] sm:$0xff]   ;;  %v480_v6 = vld [vmem:[%s635_s1 + $0x88] sm:$0xff]   ;;  %v482_v8 = vld [vmem:[%s635_s1 + $0x58] sm:$0xff]  }
   0x4   :  { %418 = vmatprep.subr.bf16.mxu0 %v476_v2  ;;  %454 = vmatprep.subr.bf16.mxu1 %v477_v3  ;;  %v483_v9 = vld [vmem:[%s635_s1 + $0x90] sm:$0xff]   ;;  %v484_v10 = vld [vmem:[%s635_s1 + $0x18] sm:$0xff]   ;;  %v485_v11 = vld [vmem:[%s635_s1 + $0x60] sm:$0xff]  }
   0x5   :  { %455 = vmatpush3.bf16.msra.mxu1 %v477_v3  ;;  %v486_v12 = vld [vmem:[%s635_s1 + $0x98] sm:$0xff]   ;;  %v487_v13 = vld [vmem:[%s635_s1 + $0x20] sm:$0xff]   ;;  %v488_v15 = vld [vmem:[%s635_s1 + $0x68] sm:$0xff]  }
   0x6   :  { %456 = vmatprep.subr.bf16.mxu1 %v480_v6  ;;  %v489_v14 = vld [vmem:[%s635_s1 + $0xa0] sm:$0xff]   ;;  %v490_v16 = vld [vmem:[%s635_s1 + $0x28] sm:$0xff]   ;;  %v491_v18 = vld [vmem:[%s635_s1 + $0x70] sm:$0xff]  }
   0x7   :  { %419 = vmatpush3.bf16.msra.mxu0 %v478_v4  ;;  %v492_v17 = vld [vmem:[%s635_s1 + $0xa8] sm:$0xff]   ;;  %v493_v19 = vld [vmem:[%s635_s1 + $0x30] sm:$0xff]   ;;  %v494_v20 = vld [vmem:[%s635_s1 + $0x78] sm:$0xff]  }
   0x8   :  { %420 = vmatprep.subr.bf16.mxu0 %v479_v5  ;;  %v495_v21 = vld [vmem:[%s635_s1 + $0xb0] sm:$0xff]   ;;  %v496_v23 = vld [vmem:[%s635_s1 + $0x38] sm:$0xff]   ;;  %v497_v26 = vld [vmem:[%s636_s0] ss:$12 sps:$4 sm:$0xff]  }
   0x9   :  { %457 = vmatpush3.bf16.msra.mxu1 %v480_v6  ;;  %v499_v22 = vld [vmem:[%s636_s0 + $0x4] ss:$12 sps:$4 sm:$0xff]   ;;  %v501_v24 = vld [vmem:[%s636_s0 + $0x8] ss:$12 sps:$4 sm:$0xff]   ;;  %v500_v25 = vld [vmem:[%s635_s1 + $0xb8] sm:$0xff]  }
   0xa   :  { %458 = vmatprep.subr.bf16.mxu1 %v483_v9  ;;  %286 = vmatprep.mubr.bf16.mxu0 %v499_v22  ;;  %v503_v27 = vld [vmem:[%s636_s0 + $0x1c] ss:$12 sps:$4 sm:$0xff]   ;;  %v502_v28 = vld [vmem:[%s636_s0 + $0x20] ss:$12 sps:$4 sm:$0xff]   ;;  %v505_v29 = vld [vmem:[%s636_s0 + $0x18] ss:$12 sps:$4 sm:$0xff]  }
   0xb   :  { %421 = vmatpush3.bf16.msra.mxu0 %v481_v7  ;;  %470 = vmatprep.mubr.bf16.mxu1 %v501_v24  ;;  %v377_v32 = vld [vmem:[%s637_s2] ss:$0 sm:$0xff] }
   0xc   :  { %422 = vmatprep.subr.bf16.mxu0 %v482_v8 }
   0xd   :  { %459 = vmatpush3.bf16.msra.mxu1 %v483_v9 }
   0xe   :  { %460 = vmatprep.subr.bf16.mxu1 %v486_v12 }
   0xf   :  { %423 = vmatpush3.bf16.msra.mxu0 %v484_v10 }
  0x10   :  { %424 = vmatprep.subr.bf16.mxu0 %v485_v11 }
  0x11   :  { %461 = vmatpush3.bf16.msra.mxu1 %v486_v12 }
  0x12   :  { %462 = vmatprep.subr.bf16.mxu1 %v489_v14 }
  0x13   :  { %425 = vmatpush3.bf16.msra.mxu0 %v487_v13 }
  0x14   :  { %426 = vmatprep.subr.bf16.mxu0 %v488_v15 }
  0x15   :  { %463 = vmatpush3.bf16.msra.mxu1 %v489_v14 }
  0x16   :  { %464 = vmatprep.subr.bf16.mxu1 %v492_v17 }
  0x17   :  { %427 = vmatpush3.bf16.msra.mxu0 %v490_v16 }
  0x18   :  { %428 = vmatprep.subr.bf16.mxu0 %v491_v18 }
  0x19   :  { %465 = vmatpush3.bf16.msra.mxu1 %v492_v17 }
  0x1a   :  { %466 = vmatprep.subr.bf16.mxu1 %v495_v21 }
  0x1b   :  { %429 = vmatpush3.bf16.msra.mxu0 %v493_v19 }
  0x1c   :  { %430 = vmatprep.subr.bf16.mxu0 %v494_v20 }
  0x1d   :  { %467 = vmatpush3.bf16.msra.mxu1 %v495_v21 }
  0x1e   :  { %468 = vmatprep.subr.bf16.mxu1 %v500_v25 }
  0x1f   :  { %431 = vmatpush3.bf16.msra.mxu0 %v496_v23 }
  0x21   :  { %469 = vmatpush3.bf16.msra.mxu1 %v500_v25 }
  0x22   :  { %287 = vmatmul.mubr.bf16.vlgmr.msra.gmra.mrb[0].mxu0 %v497_v26 }
  0x23   :  { %294 = vmatprep.mubr.bf16.mxu0 %v503_v27 }
  0x24   :  { %471 = vmatmul.mubr.bf16.vlgmr.msra.gmra.mrb[0].mxu1 %v502_v28 }
  0x2a   :  { %295 = vmatmul.mubr.bf16.gmra.mrb[4].mxu0 %v505_v29 }
  0xf5   :  { %v432_v30 = vpop.f32.mrb[0].mxu0 }
  0xf6   :  { %v433_v31 = vpop.f32.mrb[1].mxu0 }
  0xf7   :  { %v434_v33 = vadd.f32 %v433_v31, %v432_v30  ;;  %v435_v34 = vpop.f32.mrb[2].mxu0  ;;  %v472_v36 = vpop.f32.mrb[0].mxu1 }
  0xf8   :  { %v436_v35 = vpop.f32.mrb[3].mxu0  ;;  %v337_v39 = vpop.f32.mrb[1].mxu1 }
  0xf9   :  { %v437_v37 = vadd.f32 %v436_v35, %v435_v34  ;;  %v289_v38 = vadd.f32 %v434_v33, %v377_v32  ;;  %v473_v40 = vpop.f32.mrb[2].mxu1 }
  0xfa   :  { %v340_v43 = vpop.f32.mrb[3].mxu1 }
  0xfb   :  { %v338_v41 = vadd.f32 %v337_v39, %v289_v38  ;;  %v292_v42 = vadd.f32 %v437_v37, %v377_v32 }
  0xfd   :  { %v412_v44 = vpack.c.bf16 %v338_v41, %v338_v41  ;;  %v341_v45 = vadd.f32 %v340_v43, %v292_v42  ;;  %v438_v46 = vpop.f32.mrb[4].mxu0 }
  0xfe   :  { %v439_v47 = vpop.f32.mrb[5].mxu0 }
  0xff   :  { %369 = vst.msk [vmem:[%s638_s3] sm:$0xf] %vm368_vm0, %v412_v44  ;;  %v413_v48 = vpack.c.bf16 %v341_v45, %v341_v45  ;;  %v440_v49 = vadd.f32 %v439_v47, %v438_v46  ;;  %v441_v50 = vpop.f32.mrb[6].mxu0 }
 0x100   :  { %v442_v51 = vpop.f32.mrb[7].mxu0 }
 0x101   :  { %370 = vst.msk [vmem:[%s638_s3 + $0x4] sm:$0xf] %vm368_vm0, %v413_v48  ;;  %v297_v52 = vadd.f32 %v440_v49, %v377_v32  ;;  %v443_v53 = vadd.f32 %v442_v51, %v441_v50 }
 0x103   :  { %v346_v54 = vadd.f32 %v472_v36, %v297_v52  ;;  %v300_v55 = vadd.f32 %v443_v53, %v377_v32 }
 0x105   :  { %v414_v56 = vpack.c.bf16 %v346_v54, %v346_v54  ;;  %v349_v57 = vadd.f32 %v473_v40, %v300_v55 }
 0x107   :  { %371 = vst.msk [vmem:[%s638_s3 + $0x8] sm:$0xf] %vm368_vm0, %v414_v56  ;;  %v415_v58 = vpack.c.bf16 %v349_v57, %v349_v57 }
 0x109   :  { %372 = vst.msk [vmem:[%s638_s3 + $0xc] sm:$0xf] %vm368_vm0, %v415_v58 }

// kernel: munit_forward.86
= control target key start
LH: loop header
LB: loop body
LE: loop exit
PB: predicated region body
PF: predicated region fallthrough
CT: control target
= control target key end

     0   :  { %s607_s12 = smov 0   ;;  %s609_s13 = smov 0   ;;  %s692_s0 = inlined_call_operand.vmem [shape: bf16[2,16,32], index: 0, kind: input, shape index: {}]   ;;  %s693_s1 = inlined_call_operand.vmem [shape: f32[2,1,32], index: 1, kind: input, shape index: {}]   ;;  %s694_s2 = inlined_call_operand.vmem [shape: f32[2,1,32], index: 2, kind: input, shape index: {}]   ;;  %s695_s3 = inlined_call_operand.vmem [shape: bf16[2,16,32], index: 3, kind: output, shape index: {}]  }
   0x1   :  { %s611_s14 = smov 0   ;;  %s613_s15 = smov 0  }
   0x2   :  { %s615_s16 = smov 0  }
   0x3 LB: > { %s28_s17 = sadd.s32 1, %s576_s14  ;;  %s32_s18 = sadd.s32 1, %s580_s15  ;;  %s584_s16 = sphi %s615_s16, %s13_s16   ;;  %s580_s15 = sphi %s613_s15, %s699_s15   ;;  %s576_s14 = sphi %s611_s14, %s698_s14   ;;  %s572_s13 = sphi %s609_s13, %s697_s13   ;;  %s568_s12 = sphi %s607_s12, %s696_s12  }
   0x4   : > { %p30_p0 = scmp.ge.s32.totalorder %s28_s17, 2  ;;  %p476_p1 = scmp.ge.s32.totalorder %s584_s16, 1 }
   0x5   : > { %p183_p2 = scmp.lt.s32.totalorder %s584_s16, 5 }
   0x6   : > { %s701_s17 = smov (%p30_p0, %s28_s17), 0  ;;  %s703_s18 = smov (!%p30_p0, %s32_s18), %s580_s15 }
   0x7   : > { %p184_p3 = pnand %p476_p1, %p183_p2  ;;  %p34_p4 = scmp.ge.s32.totalorder %s703_s18, 2 }
   0x8   : > { %p223_p5 = scmp.lt.s32.totalorder (!%p184_p3), %s572_s13, 1  ;;  %p250_p6 = scmp.eq.s32.totalorder (!%p184_p3), %s568_s12, 0 }
   0x9   : > { %s705_s18 = smov (%p34_p4, %s703_s18), 0  ;;  %187 = sbr.rel (%p184_p3) target bundleno = 86 (0x56), region = 32 }
  0x10   : > { %s707_s13 = smov (!%p223_p5, %s572_s13), 1  ;;  %255 = sbr.rel (!%p250_p6) target bundleno = 23 (0x17), region = 36 }
  0x11   : > { %s490_s19 = sshll.u32 %s707_s13, 3  ;;  %s234_s22 = scalar_lea.vmem %s693_s1, %s707_s13  ;;  %vm256_vm0 = vcmask (%p250_p6), 253952   ;;  %v586_v0 = vmov (%p250_p6), 0.0  }
  0x12   : > { %s650_s25 = scalar_lea.vmem %s692_s0, %s490_s19  ;;  %s237_s28 = scalar_lea.vmem %s694_s2, %s707_s13  ;;  %257 = vst.msk [vmem:[#allocation2] sm:$0x1] (%p250_p6), %vm256_vm0, %v586_v0  ;;  %258 = vst.msk [vmem:[#allocation3] sm:$0x1] (%p250_p6), %vm256_vm0, %v586_v0 }
  0x13   : > { %s659_s4 = scalar_lea.vmem %s695_s3, %s490_s19 }
  0x17 PF: > { %p482_p7 = scmp.ne.s32.totalorder %s568_s12, 0 }
  0x18   : > { %v496_v1 = vld [vmem:[%s650_s25] sm:$0xff] (!%p482_p7)   ;;  %vm267_vm1 = vcmask (!%p482_p7), 261120   ;;  %vm278_vm2 = vcmask (!%p482_p7), 253952  }
  0x19   : > { %261 = sbr.rel (%p482_p7) target bundleno = 47 (0x2f), region = 40  ;;  %v497_v2 = vunpack.c.l.bf16 (!%p482_p7), %v496_v1  ;;  %v498_v3 = vunpack.c.h.bf16 (!%p482_p7), %v496_v1  ;;  %v266_v21 = vld [vmem:[#allocation2] sm:$0x1] (!%p482_p7)  ;;  %v280_v24 = vld [vmem:[#allocation3] sm:$0x1] (!%p482_p7) }
  0x1b   : > { %v268_v4 = vsel (!%p482_p7), %vm267_vm1, %v497_v2, 0.0  ;;  %v269_v5 = vsel (!%p482_p7), %vm267_vm1, %v498_v3, 0.0  ;;  %v281_v6 = vmul.f32 (!%p482_p7), %v497_v2, %v497_v2  ;;  %v282_v7 = vmul.f32 (!%p482_p7), %v498_v3, %v498_v3 }
  0x1c   : > { %v270_v8 = vadd.f32 (!%p482_p7), %v269_v5, %v268_v4 }
  0x1d   : > { %v283_v9 = vsel (!%p482_p7), %vm267_vm1, %v281_v6, 0.0  ;;  %v284_v10 = vsel (!%p482_p7), %vm267_vm1, %v282_v7, 0.0 }
  0x1e   : > { %v271_v11 = vrot.slane (!%p482_p7), %v270_v8, 4  ;;  %v285_v12 = vadd.f32 (!%p482_p7), %v284_v10, %v283_v9 }
  0x20   : > { %v272_v13 = vadd.f32 %v271_v11, %v270_v8  ;;  %v286_v14 = vrot.slane %v285_v12, 4 }
  0x22   : > { %v273_v15 = vrot.slane %v272_v13, 2  ;;  %v287_v16 = vadd.f32 %v286_v14, %v285_v12 }
  0x24   : > { %v274_v17 = vadd.f32 %v273_v15, %v272_v13  ;;  %v288_v18 = vrot.slane %v287_v16, 2 }
  0x26   : > { %v275_v19 = vrot.slane %v274_v17, 1  ;;  %v289_v20 = vadd.f32 %v288_v18, %v287_v16 }
  0x28   : > { %v276_v22 = vadd.f32 %v275_v19, %v274_v17  ;;  %v290_v23 = vrot.slane %v289_v20, 1 }
  0x2a   : > { %v277_v25 = vadd.f32 %v276_v22, %v266_v21  ;;  %v291_v26 = vadd.f32 %v290_v23, %v289_v20 }
  0x2c   : > { %279 = vst.msk [vmem:[#allocation2] sm:$0x1] %vm278_vm2, %v277_v25  ;;  %v292_v27 = vadd.f32 %v291_v26, %v280_v24 }
  0x2e   : > { %293 = vst.msk [vmem:[#allocation3] sm:$0x1] %vm278_vm2, %v292_v27 }
  0x2f PF: > { %p483_p8 = scmp.ne.s32.totalorder %s568_s12, 1 }
  0x30   : > { %v310_v33 = vlaneseq (!%p483_p8)  ;;  %v500_v39 = vld [vmem:[%s650_s25] sm:$0xff] (!%p483_p8)   ;;  %vm355_vm3 = vcmask (!%p483_p8), 257024  }
  0x31   : > { %297 = sbr.rel (%p483_p8) target bundleno = 86 (0x56), region = 44  ;;  %v501_v40 = vunpack.c.l.bf16 (!%p483_p8), %v500_v39  ;;  %v502_v42 = vunpack.c.h.bf16 (!%p483_p8), %v500_v39  ;;  %v484_v47 = vld [vmem:[%s234_s22] ss:$0 sm:$0xff] (!%p483_p8) }
  0x32   : > { %v311_v36 = vshrl.u32 (!%p483_p8), %v310_v33, 7  ;;  %v485_v50 = vld [vmem:[%s237_s28] ss:$0 sm:$0xff] (!%p483_p8) }
  0x33   : > { %v302_v28 = vld [vmem:[#allocation2] sm:$0x1] (!%p483_p8) }
  0x34   : > { %v303_v30 = vmul.f32 (!%p483_p8), 0.0625, %v302_v28  ;;  %v312_v38 = vsub.s32 (!%p483_p8), 0, %v311_v36 }
  0x35   : > { %v304_v29 = vld [vmem:[#allocation3] sm:$0x1] (!%p483_p8) }
  0x36   : > { %v305_v31 = vmul.f32 (!%p483_p8), 0.0625, %v304_v29  ;;  %v306_v32 = vmul.f32 (!%p483_p8), %v303_v30, %v303_v30  ;;  %v313_v41 = vrot.slane (!%p483_p8), %v303_v30, %v312_v38 }
  0x38   : > { %v307_v34 = vsub.f32 %v305_v31, %v306_v32  ;;  %v315_v43 = vsub.f32 %v501_v40, %v313_v41  ;;  %v316_v44 = vsub.f32 %v502_v42, %v313_v41 }
  0x3a   : > { %v308_v35 = vmax.f32 %v307_v34, 0.0 }
  0x3c   : > { %v317_v37 = vadd.f32 1e-05, %v308_v35 }
  0x3e   : > { %544 = vrsqrt.f32 %v317_v37 }
  0x48   : > { %v545_v45 = vpop.eup %544 }
  0x49   : > { %v323_v46 = vrot.slane %v545_v45, %v312_v38 }
  0x4b   : > { %v325_v48 = vmul.f32 %v323_v46, %v315_v43  ;;  %v326_v49 = vmul.f32 %v323_v46, %v316_v44 }
  0x4d   : > { %v334_v51 = vmul.f32 %v484_v47, %v325_v48  ;;  %v335_v52 = vmul.f32 %v484_v47, %v326_v49 }
  0x4f   : > { %v343_v53 = vadd.f32 %v485_v50, %v334_v51  ;;  %v344_v54 = vadd.f32 %v485_v50, %v335_v52 }
  0x51   : > { %v345_v55 = vmax.f32 %v343_v53, 0.0  ;;  %v346_v56 = vmax.f32 %v344_v54, 0.0 }
  0x53   : > { %v493_v57 = vpack.c.bf16 %v345_v55, %v345_v55  ;;  %v494_v58 = vpack.c.bf16 %v346_v56, %v346_v56 }
  0x55   : > { %356 = vst.msk [vmem:[%s659_s4] sm:$0xf] %vm355_vm3, %v493_v57  ;;  %357 = vst.msk [vmem:[%s659_s4 + $0x4] sm:$0xf] %vm355_vm3, %v494_v58 }
  0x56 PF: > { %s13_s16 = sadd.s32 1, %s584_s16   ;;  %s696_s12 = smov %s576_s14 }
  0x57   : > { %p10_p9 = scmp.ge.s32.totalorder %s13_s16, 6   ;;  %s697_s13 = smov %s580_s15 }
  0x58   : > { %s698_s14 = smov %s701_s17  ;;  %s699_s15 = smov %s705_s18 }
  0x59   :  { %12 = sbr.rel (!%p10_p9) target bundleno = 3 (0x3), region = 80 }

// kernel: munit_forward.84
= control target key start
LH: loop header
LB: loop body
LE: loop exit
PB: predicated region body
PF: predicated region fallthrough
CT: control target
= control target key end

     0   :  { %v544_v0 = vmov 0.0   ;;  %vm545_vm0 = vmmov 0   ;;  %v546_v42 = vmov 0   ;;  %v272_v51 = vlaneseq  ;;  %s701_s1 = inlined_call_operand.vmem [shape: bf16[128,128], index: 1, kind: input, shape index: {}]   ;;  %s702_s3 = inlined_call_operand.vmem [shape: bf16[128,128], index: 3, kind: input, shape index: {}]   ;;  %s703_s0 = inlined_call_operand.vmem [shape: bf16[8,128], index: 0, kind: input, shape index: {}]   ;;  %s704_s5 = inlined_call_operand.vmem [shape: bf16[128,256], index: 5, kind: input, shape index: {}]   ;;  %s705_s2 = inlined_call_operand.vmem [shape: f32[1,128], index: 2, kind: input, shape index: {}, may-alias: {2,4}]   ;;  %s706_s4 = inlined_call_operand.vmem [shape: f32[1,128], index: 4, kind: input, shape index: {}, may-alias: {2,4}]   ;;  %s707_s6 = inlined_call_operand.vmem [shape: f32[1,256], index: 6, kind: input, shape index: {}]   ;;  %s708_s7 = inlined_call_operand.vmem [shape: f32[8,256], index: 7, kind: output, shape index: {}]  }
   0x1   :  { %461 = vmatprep.subr.bf16.mxu0 %v544_v0  ;;  %v504_v1 = vld [vmem:[%s701_s1] sm:$0xff]   ;;  %477 = vmatprep.mubr.msk.bf16.mxu0 %vm545_vm0, %v544_v0  ;;  %v505_v2 = vld [vmem:[%s701_s1 + $0x8] sm:$0xff]   ;;  %v506_v3 = vld [vmem:[%s701_s1 + $0x10] sm:$0xff]  }
   0x2   :  { %481 = vmatprep.subr.bf16.mxu1 %v544_v0  ;;  %497 = vmatprep.mubr.msk.bf16.mxu1 %vm545_vm0, %v544_v0  ;;  %v512_v4 = vld [vmem:[%s702_s3] sm:$0xff]   ;;  %v507_v5 = vld [vmem:[%s701_s1 + $0x18] sm:$0xff]   ;;  %v513_v6 = vld [vmem:[%s702_s3 + $0x8] sm:$0xff]   ;;  %v273_v52 = vshrl.u32 %v272_v51, 7 }
   0x3   :  { %462 = vmatpush3.bf16.msra.mxu0 %v504_v1  ;;  %482 = vmatpush3.bf16.msra.mxu1 %v512_v4  ;;  %v508_v7 = vld [vmem:[%s701_s1 + $0x20] sm:$0xff]   ;;  %v514_v8 = vld [vmem:[%s702_s3 + $0x10] sm:$0xff]   ;;  %v509_v9 = vld [vmem:[%s701_s1 + $0x28] sm:$0xff]  }
   0x4   :  { %463 = vmatprep.subr.bf16.mxu0 %v544_v0  ;;  %483 = vmatprep.subr.bf16.mxu1 %v544_v0  ;;  %v515_v10 = vld [vmem:[%s702_s3 + $0x18] sm:$0xff]   ;;  %v510_v11 = vld [vmem:[%s701_s1 + $0x30] sm:$0xff]   ;;  %v516_v12 = vld [vmem:[%s702_s3 + $0x20] sm:$0xff]   ;;  %v274_v53 = vsub.s32 0, %v273_v52  ;;  %v278_v55 = vsub.s32 1, %v273_v52 }
   0x5   :  { %v511_v13 = vld [vmem:[%s701_s1 + $0x38] sm:$0xff]   ;;  %v517_v14 = vld [vmem:[%s702_s3 + $0x28] sm:$0xff]   ;;  %v27_v15 = vld [vmem:[%s703_s0] sm:$0xf] }
   0x6   :  { %v518_v16 = vld [vmem:[%s702_s3 + $0x30] sm:$0xff]   ;;  %v519_v17 = vld [vmem:[%s702_s3 + $0x38] sm:$0xff]   ;;  %v520_v18 = vld [vmem:[%s704_s5] ss:$8 sps:$4 sm:$0xff]  }
   0x7   :  { %464 = vmatpush3.bf16.msra.mxu0 %v505_v2  ;;  %484 = vmatpush3.bf16.msra.mxu1 %v513_v6  ;;  %v522_v19 = vld [vmem:[%s704_s5 + $0x4] ss:$8 sps:$4 sm:$0xff]   ;;  %v525_v20 = vld [vmem:[%s704_s5 + $0x14] ss:$8 sps:$4 sm:$0xff]   ;;  %v523_v21 = vld [vmem:[%s704_s5 + $0x10] ss:$8 sps:$4 sm:$0xff]  }
   0x8   :  { %465 = vmatprep.subr.bf16.mxu0 %v544_v0  ;;  %485 = vmatprep.subr.bf16.mxu1 %v544_v0  ;;  %v528_v22 = vld [vmem:[%s704_s5 + $0x24] ss:$8 sps:$4 sm:$0xff]   ;;  %v526_v23 = vld [vmem:[%s704_s5 + $0x20] ss:$8 sps:$4 sm:$0xff]   ;;  %v531_v24 = vld [vmem:[%s704_s5 + $0x34] ss:$8 sps:$4 sm:$0xff]  }
   0x9   :  { %v529_v25 = vld [vmem:[%s704_s5 + $0x30] ss:$8 sps:$4 sm:$0xff]   ;;  %v534_v26 = vld [vmem:[%s704_s5 + $0x44] ss:$8 sps:$4 sm:$0xff]   ;;  %v532_v27 = vld [vmem:[%s704_s5 + $0x40] ss:$8 sps:$4 sm:$0xff]  }
   0xa   :  { %v537_v28 = vld [vmem:[%s704_s5 + $0x54] ss:$8 sps:$4 sm:$0xff]   ;;  %v535_v29 = vld [vmem:[%s704_s5 + $0x50] ss:$8 sps:$4 sm:$0xff]   ;;  %v540_v30 = vld [vmem:[%s704_s5 + $0x64] ss:$8 sps:$4 sm:$0xff]  }
   0xb   :  { %466 = vmatpush3.bf16.msra.mxu0 %v506_v3  ;;  %486 = vmatpush3.bf16.msra.mxu1 %v514_v8  ;;  %v538_v31 = vld [vmem:[%s704_s5 + $0x60] ss:$8 sps:$4 sm:$0xff]   ;;  %v543_v40 = vld [vmem:[%s704_s5 + $0x74] ss:$8 sps:$4 sm:$0xff]   ;;  %v541_v41 = vld [vmem:[%s704_s5 + $0x70] ss:$8 sps:$4 sm:$0xff]  }
   0xc   :  { %467 = vmatprep.subr.bf16.mxu0 %v544_v0  ;;  %487 = vmatprep.subr.bf16.mxu1 %v544_v0  ;;  %v409_v32 = vld [vmem:[%s705_s2] ss:$0 sm:$0xff] }
   0xd   :  { %v418_v43 = vld [vmem:[%s706_s4] ss:$0 sm:$0xff] }
   0xe   :  { %v270_v54 = vld [vmem:[%s707_s6] sm:$0x3] }
   0xf   :  { %468 = vmatpush3.bf16.msra.mxu0 %v507_v5  ;;  %488 = vmatpush3.bf16.msra.mxu1 %v515_v10  ;;  %v275_v56 = vrot.slane %v270_v54, %v274_v53  ;;  %v279_v57 = vrot.slane %v270_v54, %v278_v55 }
  0x10   :  { %469 = vmatprep.subr.bf16.mxu0 %v544_v0  ;;  %489 = vmatprep.subr.bf16.mxu1 %v544_v0 }
  0x13   :  { %470 = vmatpush3.bf16.msra.mxu0 %v508_v7  ;;  %490 = vmatpush3.bf16.msra.mxu1 %v516_v12 }
  0x14   :  { %471 = vmatprep.subr.bf16.mxu0 %v544_v0  ;;  %491 = vmatprep.subr.bf16.mxu1 %v544_v0 }
  0x17   :  { %472 = vmatpush3.bf16.msra.mxu0 %v509_v9  ;;  %492 = vmatpush3.bf16.msra.mxu1 %v517_v14 }
  0x18   :  { %473 = vmatprep.subr.bf16.mxu0 %v544_v0  ;;  %493 = vmatprep.subr.bf16.mxu1 %v544_v0 }
  0x1b   :  { %474 = vmatpush3.bf16.msra.mxu0 %v510_v11  ;;  %494 = vmatpush3.bf16.msra.mxu1 %v518_v16 }
  0x1c   :  { %475 = vmatprep.subr.bf16.mxu0 %v544_v0  ;;  %495 = vmatprep.subr.bf16.mxu1 %v544_v0 }
  0x1f   :  { %476 = vmatpush3.bf16.msra.mxu0 %v511_v13  ;;  %496 = vmatpush3.bf16.msra.mxu1 %v519_v17 }
  0x20   :  { %362 = vmatprep.subr.bf16.mxu0 %v522_v19 }
  0x22   :  { %478 = vmatmul.mubr.bf16.vlgmr.msra.gmra.mrb[0].mxu0 %v27_v15 }
  0x23   :  { %363 = vmatpush1.bf16.msra.mxu0 %v520_v18  ;;  %394 = vmatprep.mubr.bf16.mxu0 %v546_v42 }
  0x24   :  { %364 = vmatprep.subr.bf16.mxu0 %v525_v20 }
  0x27   :  { %365 = vmatpush1.bf16.msra.mxu0 %v523_v21 }
  0x28   :  { %366 = vmatprep.subr.bf16.mxu0 %v528_v22 }
  0x2b   :  { %367 = vmatpush1.bf16.msra.mxu0 %v526_v23 }
  0x2c   :  { %368 = vmatprep.subr.bf16.mxu0 %v531_v24 }
  0x2f   :  { %369 = vmatpush1.bf16.msra.mxu0 %v529_v25 }
  0x30   :  { %370 = vmatprep.subr.bf16.mxu0 %v534_v26 }
  0x33   :  { %371 = vmatpush1.bf16.msra.mxu0 %v532_v27 }
  0x34   :  { %372 = vmatprep.subr.bf16.mxu0 %v537_v28 }
  0x37   :  { %373 = vmatpush1.bf16.msra.mxu0 %v535_v29 }
  0x38   :  { %374 = vmatprep.subr.bf16.mxu0 %v540_v30 }
  0x3b   :  { %375 = vmatpush1.bf16.msra.mxu0 %v538_v31 }
  0x3c   :  { %376 = vmatprep.subr.bf16.mxu0 %v543_v40 }
  0x3f   :  { %377 = vmatpush1.bf16.msra.mxu0 %v541_v41 }
  0xf5   :  { %v133_v33 = vpop.f32.mrb[0].mxu0 }
  0xf6   :  { %v134_v34 = vadd.f32 %v409_v32, %v133_v33  ;;  %v479_v35 = vpop.f32.mrb[1].mxu0 }
  0xf7   :  { %v136_v36 = vpop.f32.mrb[2].mxu0 }
  0xf8   :  { %v139_v37 = vmax.f32 %v134_v34, 0.0  ;;  %v480_v38 = vpop.f32.mrb[3].mxu0 }
  0xfa   :  { %v140_v39 = vpack.c.bf16 %v139_v37, %v139_v37 }
  0xfc   :  { %498 = vmatmul.mubr.bf16.vlgmr.msra.gmra.mrb[0].mxu1 %v140_v39 }
 0x1cf   :  { %v246_v44 = vpop.f32.mrb[0].mxu1 }
 0x1d0   :  { %v247_v45 = vadd.f32 %v418_v43, %v246_v44  ;;  %v499_v46 = vpop.f32.mrb[1].mxu1 }
 0x1d1   :  { %v249_v47 = vpop.f32.mrb[2].mxu1 }
 0x1d2   :  { %v252_v48 = vmax.f32 %v247_v45, 0.0  ;;  %v500_v49 = vpop.f32.mrb[3].mxu1 }
 0x1d4   :  { %v253_v50 = vpack.c.bf16 %v252_v48, %v252_v48 }
 0x1d6   :  { %395 = vmatmul.mubr.bf16.vlgmr.msra.gmra.mrb[4].mxu0 %v253_v50 }
 0x2a9   :  { %v396_v58 = vpop.f32.mrb[4].mxu0 }
 0x2aa   :  { %v397_v59 = vadd.f32 %v396_v58, %v275_v56  ;;  %v398_v60 = vpop.f32.mrb[5].mxu0 }
 0x2ab   :  { %v399_v61 = vadd.f32 %v398_v60, %v279_v57  ;;  %v400_v62 = vpop.f32.mrb[6].mxu0 }
 0x2ac   :  { %403 = vst [vmem:[%s708_s7] sm:$0xff] %v397_v59  ;;  %v401_v63 = vpop.f32.mrb[7].mxu0 }
 0x2ad   :  { %404 = vst [vmem:[%s708_s7 + $0x8] sm:$0xff] %v399_v61 }

// kernel: munit_forward.88
= control target key start
LH: loop header
LB: loop body
LE: loop exit
PB: predicated region body
PF: predicated region fallthrough
CT: control target
= control target key end

     0   :  { %s711_s15 = smov 0   ;;  %s713_s16 = smov 0   ;;  %s809_s0 = inlined_call_operand.vmem [shape: bf16[2,16,32], index: 0, kind: input, shape index: {}]   ;;  %s810_s1 = inlined_call_operand.vmem [shape: f32[2,1,32], index: 1, kind: input, shape index: {}]   ;;  %s811_s2 = inlined_call_operand.vmem [shape: f32[2,1,32], index: 2, kind: input, shape index: {}]   ;;  %s812_s3 = inlined_call_operand.vmem [shape: bf16[2,16,32], index: 3, kind: input, shape index: {}]   ;;  %s813_s4 = inlined_call_operand.vmem [shape: bf16[2,16,32], index: 4, kind: output, shape index: {}]  }
   0x1   :  { %s715_s17 = smov 0   ;;  %s717_s18 = smov 0  }
   0x2   :  { %s719_s19 = smov 0  }
   0x3 LB: > { %s29_s20 = sadd.s32 1, %s675_s17  ;;  %s33_s21 = sadd.s32 1, %s679_s18  ;;  %s683_s19 = sphi %s719_s19, %s14_s19   ;;  %s679_s18 = sphi %s717_s18, %s817_s18   ;;  %s675_s17 = sphi %s715_s17, %s816_s17   ;;  %s671_s16 = sphi %s713_s16, %s815_s16   ;;  %s667_s15 = sphi %s711_s15, %s814_s15  }
   0x4   : > { %p31_p0 = scmp.ge.s32.totalorder %s29_s20, 2  ;;  %p568_p1 = scmp.ge.s32.totalorder %s683_s19, 1 }
   0x5   : > { %p229_p2 = scmp.lt.s32.totalorder %s683_s19, 5 }
   0x6   : > { %s819_s20 = smov (%p31_p0, %s29_s20), 0  ;;  %s821_s21 = smov (!%p31_p0, %s33_s21), %s679_s18 }
   0x7   : > { %p230_p3 = pnand %p568_p1, %p229_p2  ;;  %p35_p4 = scmp.ge.s32.totalorder %s821_s21, 2 }
   0x8   : > { %p281_p5 = scmp.lt.s32.totalorder (!%p230_p3), %s671_s16, 1  ;;  %p320_p6 = scmp.eq.s32.totalorder (!%p230_p3), %s667_s15, 0 }
   0x9   : > { %s823_s21 = smov (%p35_p4, %s821_s21), 0  ;;  %233 = sbr.rel (%p230_p3) target bundleno = 86 (0x56), region = 36 }
  0x10   : > { %s825_s16 = smov (!%p281_p5, %s671_s16), 1  ;;  %325 = sbr.rel (!%p320_p6) target bundleno = 23 (0x17), region = 40 }
  0x11   : > { %s747_s22 = sshll.u32 %s825_s16, 3  ;;  %s292_s25 = scalar_lea.vmem %s810_s1, %s825_s16  ;;  %vm326_vm0 = vcmask (%p320_p6), 253952   ;;  %v685_v0 = vmov (%p320_p6), 0.0  }
  0x12   : > { %s757_s28 = scalar_lea.vmem %s809_s0, %s747_s22  ;;  %s295_s5 = scalar_lea.vmem %s811_s2, %s825_s16  ;;  %327 = vst.msk [vmem:[#allocation2] sm:$0x1] (%p320_p6), %vm326_vm0, %v685_v0  ;;  %328 = vst.msk [vmem:[#allocation3] sm:$0x1] (%p320_p6), %vm326_vm0, %v685_v0 }
  0x13   : > { %s305_s8 = scalar_lea.vmem %s812_s3, %s747_s22  ;;  %s771_s11 = scalar_lea.vmem %s813_s4, %s747_s22 }
  0x17 PF: > { %p576_p7 = scmp.ne.s32.totalorder %s667_s15, 0 }
  0x18   : > { %v591_v1 = vld [vmem:[%s757_s28] sm:$0xff] (!%p576_p7)   ;;  %vm337_vm1 = vcmask (!%p576_p7), 261120   ;;  %vm348_vm2 = vcmask (!%p576_p7), 253952  }
  0x19   : > { %331 = sbr.rel (%p576_p7) target bundleno = 47 (0x2f), region = 44  ;;  %v592_v2 = vunpack.c.l.bf16 (!%p576_p7), %v591_v1  ;;  %v593_v3 = vunpack.c.h.bf16 (!%p576_p7), %v591_v1  ;;  %v336_v21 = vld [vmem:[#allocation2] sm:$0x1] (!%p576_p7)  ;;  %v350_v24 = vld [vmem:[#allocation3] sm:$0x1] (!%p576_p7) }
  0x1b   : > { %v338_v4 = vsel (!%p576_p7), %vm337_vm1, %v592_v2, 0.0  ;;  %v339_v5 = vsel (!%p576_p7), %vm337_vm1, %v593_v3, 0.0  ;;  %v351_v6 = vmul.f32 (!%p576_p7), %v592_v2, %v592_v2  ;;  %v352_v7 = vmul.f32 (!%p576_p7), %v593_v3, %v593_v3 }
  0x1c   : > { %v340_v8 = vadd.f32 (!%p576_p7), %v339_v5, %v338_v4 }
  0x1d   : > { %v353_v9 = vsel (!%p576_p7), %vm337_vm1, %v351_v6, 0.0  ;;  %v354_v10 = vsel (!%p576_p7), %vm337_vm1, %v352_v7, 0.0 }
  0x1e   : > { %v341_v11 = vrot.slane (!%p576_p7), %v340_v8, 4  ;;  %v355_v12 = vadd.f32 (!%p576_p7), %v354_v10, %v353_v9 }
  0x20   : > { %v342_v13 = vadd.f32 %v341_v11, %v340_v8  ;;  %v356_v14 = vrot.slane %v355_v12, 4 }
  0x22   : > { %v343_v15 = vrot.slane %v342_v13, 2  ;;  %v357_v16 = vadd.f32 %v356_v14, %v355_v12 }
  0x24   : > { %v344_v17 = vadd.f32 %v343_v15, %v342_v13  ;;  %v358_v18 = vrot.slane %v357_v16, 2 }
  0x26   : > { %v345_v19 = vrot.slane %v344_v17, 1  ;;  %v359_v20 = vadd.f32 %v358_v18, %v357_v16 }
  0x28   : > { %v346_v22 = vadd.f32 %v345_v19, %v344_v17  ;;  %v360_v23 = vrot.slane %v359_v20, 1 }
  0x2a   : > { %v347_v25 = vadd.f32 %v346_v22, %v336_v21  ;;  %v361_v26 = vadd.f32 %v360_v23, %v359_v20 }
  0x2c   : > { %349 = vst.msk [vmem:[#allocation2] sm:$0x1] %vm348_vm2, %v347_v25  ;;  %v362_v27 = vadd.f32 %v361_v26, %v350_v24 }
  0x2e   : > { %363 = vst.msk [vmem:[#allocation3] sm:$0x1] %vm348_vm2, %v362_v27 }
  0x2f PF: > { %p577_p8 = scmp.ne.s32.totalorder %s667_s15, 1 }
  0x30   : > { %v380_v33 = vlaneseq (!%p577_p8)  ;;  %v595_v39 = vld [vmem:[%s757_s28] sm:$0xff] (!%p577_p8)   ;;  %vm429_vm3 = vcmask (!%p577_p8), 257024  }
  0x31   : > { %367 = sbr.rel (%p577_p8) target bundleno = 86 (0x56), region = 48  ;;  %v596_v40 = vunpack.c.l.bf16 (!%p577_p8), %v595_v39  ;;  %v597_v42 = vunpack.c.h.bf16 (!%p577_p8), %v595_v39  ;;  %v578_v47 = vld [vmem:[%s292_s25] ss:$0 sm:$0xff] (!%p577_p8) }
  0x32   : > { %v381_v36 = vshrl.u32 (!%p577_p8), %v380_v33, 7  ;;  %v599_v48 = vld [vmem:[%s305_s8] sm:$0xff] (!%p577_p8)  }
  0x33   : > { %v372_v28 = vld [vmem:[#allocation2] sm:$0x1] (!%p577_p8)  ;;  %v600_v53 = vunpack.c.l.bf16 (!%p577_p8), %v599_v48  ;;  %v601_v55 = vunpack.c.h.bf16 (!%p577_p8), %v599_v48 }
  0x34   : > { %v373_v30 = vmul.f32 (!%p577_p8), 0.0625, %v372_v28  ;;  %v382_v38 = vsub.s32 (!%p577_p8), 0, %v381_v36  ;;  %v579_v51 = vld [vmem:[%s295_s5] ss:$0 sm:$0xff] (!%p577_p8) }
  0x35   : > { %v374_v29 = vld [vmem:[#allocation3] sm:$0x1] (!%p577_p8) }
  0x36   : > { %v375_v31 = vmul.f32 (!%p577_p8), 0.0625, %v374_v29  ;;  %v376_v32 = vmul.f32 (!%p577_p8), %v373_v30, %v373_v30  ;;  %v383_v41 = vrot.slane (!%p577_p8), %v373_v30, %v382_v38 }
  0x38   : > { %v377_v34 = vsub.f32 %v375_v31, %v376_v32  ;;  %v385_v43 = vsub.f32 %v596_v40, %v383_v41  ;;  %v386_v44 = vsub.f32 %v597_v42, %v383_v41 }
  0x3a   : > { %v378_v35 = vmax.f32 %v377_v34, 0.0 }
  0x3c   : > { %v387_v37 = vadd.f32 1e-05, %v378_v35 }
  0x3e   : > { %643 = vrsqrt.f32 %v387_v37 }
  0x48   : > { %v644_v45 = vpop.eup %643 }
  0x49   : > { %v393_v46 = vrot.slane %v644_v45, %v382_v38 }
  0x4b   : > { %v395_v49 = vmul.f32 %v393_v46, %v385_v43  ;;  %v396_v50 = vmul.f32 %v393_v46, %v386_v44 }
  0x4d   : > { %v404_v52 = vmul.f32 %v578_v47, %v395_v49  ;;  %v405_v54 = vmul.f32 %v578_v47, %v396_v50 }
  0x4f   : > { %v413_v56 = vadd.f32 %v579_v51, %v404_v52  ;;  %v414_v57 = vadd.f32 %v579_v51, %v405_v54 }
  0x51   : > { %v419_v58 = vadd.f32 %v600_v53, %v413_v56  ;;  %v420_v59 = vadd.f32 %v601_v55, %v414_v57 }
  0x53   : > { %v588_v60 = vpack.c.bf16 %v419_v58, %v419_v58  ;;  %v589_v61 = vpack.c.bf16 %v420_v59, %v420_v59 }
  0x55   : > { %430 = vst.msk [vmem:[%s771_s11] sm:$0xf] %vm429_vm3, %v588_v60  ;;  %431 = vst.msk [vmem:[%s771_s11 + $0x4] sm:$0xf] %vm429_vm3, %v589_v61 }
  0x56 PF: > { %s14_s19 = sadd.s32 1, %s683_s19   ;;  %s814_s15 = smov %s675_s17 }
  0x57   : > { %p11_p9 = scmp.ge.s32.totalorder %s14_s19, 6   ;;  %s815_s16 = smov %s679_s18 }
  0x58   : > { %s816_s17 = smov %s819_s20  ;;  %s817_s18 = smov %s823_s21 }
  0x59   :  { %13 = sbr.rel (!%p11_p9) target bundleno = 3 (0x3), region = 87 }

// kernel: munit_forward.94
= control target key start
LH: loop header
LB: loop body
LE: loop exit
PB: predicated region body
PF: predicated region fallthrough
CT: control target
= control target key end

     0   :  { %s744_s12 = smov 0   ;;  %s746_s13 = smov 0   ;;  %s850_s0 = inlined_call_operand.vmem [shape: bf16[2,64,16], index: 0, kind: input, shape index: {}]   ;;  %s851_s1 = inlined_call_operand.vmem [shape: f32[1,1,16], index: 1, kind: input, shape index: {}]   ;;  %s852_s2 = inlined_call_operand.vmem [shape: f32[1,1,16], index: 2, kind: input, shape index: {}]   ;;  %s853_s3 = inlined_call_operand.vmem [shape: bf16[2,64,16], index: 3, kind: output, shape index: {}]  }
   0x1   :  { %s748_s14 = smov 0   ;;  %s750_s15 = smov 0  }
   0x2   :  { %s752_s16 = smov 0  }
   0x3 LB: > { %s28_s17 = sadd.s32 1, %s713_s14  ;;  %s32_s18 = sadd.s32 1, %s717_s15  ;;  %s721_s16 = sphi %s752_s16, %s13_s16   ;;  %s717_s15 = sphi %s750_s15, %s857_s15   ;;  %s713_s14 = sphi %s748_s14, %s856_s14   ;;  %s709_s13 = sphi %s746_s13, %s855_s13   ;;  %s705_s12 = sphi %s744_s12, %s854_s12  }
   0x4   : > { %p30_p0 = scmp.ge.s32.totalorder %s28_s17, 2  ;;  %p565_p1 = scmp.ge.s32.totalorder %s721_s16, 1 }
   0x5   : > { %p167_p2 = scmp.lt.s32.totalorder %s721_s16, 5 }
   0x6   : > { %s859_s17 = smov (%p30_p0, %s28_s17), 0  ;;  %s861_s18 = smov (!%p30_p0, %s32_s18), %s717_s15 }
   0x7   : > { %p168_p3 = pnand %p565_p1, %p167_p2  ;;  %p34_p4 = scmp.ge.s32.totalorder %s861_s18, 2 }
   0x8   : > { %p201_p5 = scmp.lt.s32.totalorder (!%p168_p3), %s709_s13, 1  ;;  %p222_p6 = scmp.eq.s32.totalorder (!%p168_p3), %s705_s12, 0 }
   0x9   : > { %s863_s18 = smov (%p34_p4, %s861_s18), 0  ;;  %171 = sbr.rel (%p168_p3) target bundleno = 324 (0x144), region = 32 }
  0x10   : > { %s865_s13 = smov (!%p201_p5, %s709_s13), 1  ;;  %227 = sbr.rel (!%p222_p6) target bundleno = 23 (0x17), region = 36 }
  0x11   : > { %s585_s19 = sshll.u32 %s865_s13, 5  ;;  %vm228_vm0 = vcmask (%p222_p6), 122880   ;;  %v723_v0 = vmov (%p222_p6), 0.0  }
  0x12   : > { %s780_s22 = scalar_lea.vmem %s850_s0, %s585_s19  ;;  %s785_s25 = scalar_lea.vmem %s853_s3, %s585_s19  ;;  %229 = vst.msk [vmem:[#allocation2] sm:$0x1] (%p222_p6), %vm228_vm0, %v723_v0  ;;  %230 = vst.msk [vmem:[#allocation3] sm:$0x1] (%p222_p6), %vm228_vm0, %v723_v0 }
  0x17 PF: > { %p571_p7 = scmp.ne.s32.totalorder %s705_s12, 0 }
  0x18   : > { %v597_v1 = vld [vmem:[%s780_s22] sm:$0xff] (!%p571_p7)   ;;  %v628_v2 = vld [vmem:[%s780_s22 + $0x8] sm:$0xff] (!%p571_p7)   ;;  %v629_v3 = vld [vmem:[%s780_s22 + $0x10] sm:$0xff] (!%p571_p7)   ;;  %vm251_vm1 = vcmask (!%p571_p7), 130048   ;;  %vm274_vm2 = vcmask (!%p571_p7), 122880  }
  0x19   : > { %233 = sbr.rel (%p571_p7) target bundleno = 60 (0x3c), region = 40  ;;  %v598_v4 = vunpack.c.l.bf16 (!%p571_p7), %v597_v1  ;;  %v599_v5 = vunpack.c.h.bf16 (!%p571_p7), %v597_v1  ;;  %v602_v6 = vunpack.c.l.bf16 (!%p571_p7), %v628_v2  ;;  %v603_v7 = vunpack.c.h.bf16 (!%p571_p7), %v628_v2  ;;  %v630_v9 = vld [vmem:[%s780_s22 + $0x18] sm:$0xff] (!%p571_p7)   ;;  %v250_v59 = vld [vmem:[#allocation2] sm:$0x1] (!%p571_p7)  ;;  %v276_v0 = vld [vmem:[#allocation3] sm:$0x1] (!%p571_p7) }
  0x1a   : > { %v606_v8 = vunpack.c.l.bf16 (!%p571_p7), %v629_v3  ;;  %v607_v13 = vunpack.c.h.bf16 (!%p571_p7), %v629_v3  ;;  %v610_v19 = vunpack.c.l.bf16 (!%p571_p7), %v630_v9  ;;  %v611_v29 = vunpack.c.h.bf16 (!%p571_p7), %v630_v9 }
  0x1b   : > { %v252_v10 = vsel (!%p571_p7), %vm251_vm1, %v598_v4, 0.0  ;;  %v253_v11 = vsel (!%p571_p7), %vm251_vm1, %v599_v5, 0.0  ;;  %v255_v12 = vsel (!%p571_p7), %vm251_vm1, %v602_v6, 0.0  ;;  %v257_v15 = vsel (!%p571_p7), %vm251_vm1, %v603_v7, 0.0 }
  0x1c   : > { %v254_v14 = vadd.f32 (!%p571_p7), %v253_v11, %v252_v10  ;;  %v277_v16 = vmul.f32 (!%p571_p7), %v598_v4, %v598_v4  ;;  %v278_v17 = vmul.f32 (!%p571_p7), %v599_v5, %v599_v5  ;;  %v279_v18 = vmul.f32 (!%p571_p7), %v602_v6, %v602_v6 }
  0x1d   : > { %v280_v21 = vmul.f32 (!%p571_p7), %v603_v7, %v603_v7  ;;  %v259_v22 = vsel (!%p571_p7), %vm251_vm1, %v606_v8, 0.0  ;;  %v281_v23 = vmul.f32 (!%p571_p7), %v606_v8, %v606_v8  ;;  %v261_v30 = vsel (!%p571_p7), %vm251_vm1, %v607_v13, 0.0 }
  0x1e   : > { %v256_v20 = vadd.f32 (!%p571_p7), %v255_v12, %v254_v14  ;;  %v285_v24 = vsel (!%p571_p7), %vm251_vm1, %v277_v16, 0.0  ;;  %v286_v25 = vsel (!%p571_p7), %vm251_vm1, %v278_v17, 0.0  ;;  %v288_v28 = vsel (!%p571_p7), %vm251_vm1, %v279_v18, 0.0 }
  0x1f   : > { %v287_v27 = vadd.f32 (!%p571_p7), %v286_v25, %v285_v24  ;;  %v282_v31 = vmul.f32 (!%p571_p7), %v607_v13, %v607_v13  ;;  %v290_v32 = vsel (!%p571_p7), %vm251_vm1, %v280_v21, 0.0  ;;  %v263_v35 = vsel (!%p571_p7), %vm251_vm1, %v610_v19, 0.0 }
  0x20   : > { %v258_v26 = vadd.f32 %v257_v15, %v256_v20  ;;  %v283_v36 = vmul.f32 %v610_v19, %v610_v19  ;;  %v292_v37 = vsel %vm251_vm1, %v281_v23, 0.0  ;;  %v265_v40 = vsel %vm251_vm1, %v611_v29, 0.0 }
  0x21   : > { %v289_v34 = vadd.f32 %v288_v28, %v287_v27  ;;  %v284_v41 = vmul.f32 %v611_v29, %v611_v29  ;;  %v294_v42 = vsel %vm251_vm1, %v282_v31, 0.0 }
  0x22   : > { %v260_v33 = vadd.f32 %v259_v22, %v258_v26  ;;  %v296_v45 = vsel %vm251_vm1, %v283_v36, 0.0 }
  0x23   : > { %v291_v39 = vadd.f32 %v290_v32, %v289_v34  ;;  %v298_v48 = vsel %vm251_vm1, %v284_v41, 0.0 }
  0x24   : > { %v262_v38 = vadd.f32 %v261_v30, %v260_v33 }
  0x25   : > { %v293_v44 = vadd.f32 %v292_v37, %v291_v39 }
  0x26   : > { %v264_v43 = vadd.f32 %v263_v35, %v262_v38 }
  0x27   : > { %v295_v47 = vadd.f32 %v294_v42, %v293_v44 }
  0x28   : > { %v266_v46 = vadd.f32 %v265_v40, %v264_v43 }
  0x29   : > { %v297_v50 = vadd.f32 %v296_v45, %v295_v47 }
  0x2a   : > { %v267_v49 = vrot.slane %v266_v46, 4 }
  0x2b   : > { %v299_v52 = vadd.f32 %v298_v48, %v297_v50 }
  0x2c   : > { %v268_v51 = vadd.f32 %v267_v49, %v266_v46 }
  0x2d   : > { %v300_v54 = vrot.slane %v299_v52, 4 }
  0x2e   : > { %v269_v53 = vrot.slane %v268_v51, 2 }
  0x2f   : > { %v301_v56 = vadd.f32 %v300_v54, %v299_v52 }
  0x30   : > { %v270_v55 = vadd.f32 %v269_v53, %v268_v51 }
  0x31   : > { %v302_v58 = vrot.slane %v301_v56, 2 }
  0x32   : > { %v271_v57 = vrot.slane %v270_v55, 1 }
  0x33   : > { %v303_v61 = vadd.f32 %v302_v58, %v301_v56 }
  0x34   : > { %v272_v60 = vadd.f32 %v271_v57, %v270_v55 }
  0x35   : > { %v304_v63 = vrot.slane %v303_v61, 1 }
  0x36   : > { %v273_v62 = vadd.f32 %v272_v60, %v250_v59 }
  0x37   : > { %v305_v1 = vadd.f32 %v304_v63, %v303_v61 }
  0x38   : > { %275 = vst.msk [vmem:[#allocation2] sm:$0x1] %vm274_vm2, %v273_v62 }
  0x39   : > { %v306_v2 = vadd.f32 %v305_v1, %v276_v0 }
  0x3b   : > { %307 = vst.msk [vmem:[#allocation3] sm:$0x1] %vm274_vm2, %v306_v2 }
  0x3c PF: > { %p572_p8 = scmp.ne.s32.totalorder %s705_s12, 1 }
  0x3d   : > { %vm329_vm3 = vcmask (!%p572_p8), 122880   ;;  %v613_v35 = vld [vmem:[%s780_s22] sm:$0xff] (!%p572_p8)   ;;  %v631_v36 = vld [vmem:[%s780_s22 + $0x8] sm:$0xff] (!%p572_p8)   ;;  %v632_v37 = vld [vmem:[%s780_s22 + $0x10] sm:$0xff] (!%p572_p8)   ;;  %vm456_vm6 = vcmask (!%p572_p8), 125952  }
  0x3e   : > { %311 = sbr.rel (%p572_p8) target bundleno = 324 (0x144), region = 44  ;;  %v633_v38 = vld [vmem:[%s780_s22 + $0x18] sm:$0xff] (!%p572_p8)   ;;  %v614_v39 = vunpack.c.l.bf16 (!%p572_p8), %v613_v35  ;;  %v615_v40 = vunpack.c.h.bf16 (!%p572_p8), %v613_v35  ;;  %v618_v41 = vunpack.c.l.bf16 (!%p572_p8), %v631_v36  ;;  %v619_v42 = vunpack.c.h.bf16 (!%p572_p8), %v631_v36  ;;  %v573_v56 = vld [vmem:[%s851_s1] ss:$0 sm:$0xff] (!%p572_p8) }
  0x3f   : > { %v328_v3 = vld [vmem:[#allocation2] sm:$0x1] (!%p572_p8)  ;;  %v622_v43 = vunpack.c.l.bf16 (!%p572_p8), %v632_v37  ;;  %v623_v44 = vunpack.c.h.bf16 (!%p572_p8), %v632_v37  ;;  %v626_v45 = vunpack.c.l.bf16 (!%p572_p8), %v633_v38  ;;  %v627_v46 = vunpack.c.h.bf16 (!%p572_p8), %v633_v38 }
  0x40   : > { %v330_v5 = vsel (!%p572_p8), %vm329_vm3, %v328_v3, 0.0  ;;  %v574_v1 = vld [vmem:[%s852_s2] ss:$0 sm:$0xff] (!%p572_p8) }
  0x41   : > { %331 = vadd.xlane.f32.xlu0 (!%p572_p8), %v330_v5 }
  0x42   : > { %v341_v4 = vld [vmem:[#allocation3] sm:$0x1] (!%p572_p8) }
  0x43   : > { %v342_v6 = vsel (!%p572_p8), %vm329_vm3, %v341_v4, 0.0 }
  0x45   : > { %343 = vadd.xlane.f32.xlu0 %v342_v6 }
  0xce   : > { %v332_v7 = vpop.xlane.xlu0 %331 }
  0xcf   : > { %v333_v8 = vrot.slane %v332_v7, 4 }
  0xd1   : > { %v334_v9 = vadd.f32 %v333_v8, %v332_v7 }
  0xd2   : > { %v344_v10 = vpop.xlane.xlu0 %343 }
  0xd3   : > { %v335_v11 = vrot.slane %v334_v9, 2  ;;  %v345_v12 = vrot.slane %v344_v10, 4 }
  0xd5   : > { %v346_v13 = vadd.f32 %v345_v12, %v344_v10  ;;  %v336_v14 = vadd.f32 %v335_v11, %v334_v9 }
  0xd7   : > { %v347_v15 = vrot.slane %v346_v13, 2  ;;  %v337_v16 = vrot.slane %v336_v14, 1 }
  0xd9   : > { %v348_v17 = vadd.f32 %v347_v15, %v346_v13  ;;  %v338_v18 = vadd.f32 %v337_v16, %v336_v14 }
  0xdb   : > { %634 = vpush %v338_v18  ;;  %v349_v19 = vrot.slane %v348_v17, 1 }
  0xdd   : > { %v350_v20 = vadd.f32 %v349_v19, %v348_v17 }
  0xdf   : > { %636 = vpush %v350_v20 }
 0x10c   : > { %s635_s26 = spop %634 }
 0x10d   : > { %v340_v21 = vstv %s635_s26 }
 0x10e   : > { %v354_v22 = vmul.f32 0.0009765625, %v340_v21 }
 0x110   : > { %s637_s27 = spop %636  ;;  %v355_v23 = vmul.f32 1024.0, %v354_v22  ;;  %v370_v47 = vsub.f32 %v614_v39, %v354_v22  ;;  %v371_v48 = vsub.f32 %v615_v40, %v354_v22  ;;  %v372_v49 = vsub.f32 %v618_v41, %v354_v22 }
 0x111   : > { %v352_v25 = vstv %s637_s27  ;;  %v373_v50 = vsub.f32 %v619_v42, %v354_v22  ;;  %v374_v52 = vsub.f32 %v622_v43, %v354_v22  ;;  %v375_v53 = vsub.f32 %v623_v44, %v354_v22 }
 0x112   : > { %v356_v24 = vmul.f32 %v355_v23, %v354_v22  ;;  %v376_v54 = vsub.f32 %v626_v45, %v354_v22  ;;  %v377_v55 = vsub.f32 %v627_v46, %v354_v22 }
 0x114   : > { %v357_v26 = vsub.f32 %v352_v25, %v356_v24 }
 0x116   : > { %v359_v27 = vmul.f32 0.0009775171, %v357_v26 }
 0x118   : > { %v360_v28 = vmax.f32 %v359_v27, 0.0 }
 0x11a   : > { %679 = vrsqrt.f32 %v360_v28  ;;  %vm363_vm4 = vcmp.eq.f32.partialorder %v360_v28, inf  ;;  %v366_v31 = vand.u32 2147483648, %v360_v28  ;;  %vm365_vm5 = vcmp.eq.f32.partialorder %v360_v28, 0.0 }
 0x124   : > { %v680_v29 = vpop.eup %679 }
 0x125   : > { %v362_v30 = vmul.f32 %v680_v29, %v360_v28 }
 0x127   : > { %v364_v32 = vsel %vm363_vm4, %v360_v28, %v362_v30 }
 0x128   : > { %v367_v33 = vsel %vm365_vm5, %v366_v31, %v364_v32 }
 0x129   : > { %v368_v34 = vadd.f32 1e-05, %v367_v33 }
 0x12b   : > { %681 = vrcp.f32 %v368_v34 }
 0x135   : > { %v682_v51 = vpop.eup %681 }
 0x136   : > { %v378_v57 = vmul.f32 %v682_v51, %v370_v47  ;;  %v379_v58 = vmul.f32 %v682_v51, %v371_v48  ;;  %v380_v59 = vmul.f32 %v682_v51, %v372_v49  ;;  %v381_v60 = vmul.f32 %v682_v51, %v373_v50 }
 0x137   : > { %v382_v61 = vmul.f32 %v682_v51, %v374_v52  ;;  %v383_v62 = vmul.f32 %v682_v51, %v375_v53  ;;  %v384_v63 = vmul.f32 %v682_v51, %v376_v54  ;;  %v385_v0 = vmul.f32 %v682_v51, %v377_v55 }
 0x138   : > { %v393_v2 = vmul.f32 %v573_v56, %v378_v57  ;;  %v394_v3 = vmul.f32 %v573_v56, %v379_v58  ;;  %v395_v4 = vmul.f32 %v573_v56, %v380_v59  ;;  %v396_v5 = vmul.f32 %v573_v56, %v381_v60 }
 0x139   : > { %v397_v6 = vmul.f32 %v573_v56, %v382_v61  ;;  %v398_v7 = vmul.f32 %v573_v56, %v383_v62  ;;  %v399_v8 = vmul.f32 %v573_v56, %v384_v63  ;;  %v400_v9 = vmul.f32 %v573_v56, %v385_v0 }
 0x13a   : > { %v408_v10 = vadd.f32 %v574_v1, %v393_v2  ;;  %v409_v11 = vadd.f32 %v574_v1, %v394_v3  ;;  %v410_v12 = vadd.f32 %v574_v1, %v395_v4  ;;  %v411_v13 = vadd.f32 %v574_v1, %v396_v5 }
 0x13b   : > { %v412_v14 = vadd.f32 %v574_v1, %v397_v6  ;;  %v413_v15 = vadd.f32 %v574_v1, %v398_v7  ;;  %v414_v16 = vadd.f32 %v574_v1, %v399_v8  ;;  %v415_v17 = vadd.f32 %v574_v1, %v400_v9 }
 0x13c   : > { %v416_v18 = vmax.f32 %v408_v10, 0.0  ;;  %v417_v19 = vmax.f32 %v409_v11, 0.0  ;;  %v418_v20 = vmax.f32 %v410_v12, 0.0  ;;  %v419_v21 = vmax.f32 %v411_v13, 0.0 }
 0x13d   : > { %v420_v22 = vmax.f32 %v412_v14, 0.0  ;;  %v421_v23 = vmax.f32 %v413_v15, 0.0  ;;  %v422_v24 = vmax.f32 %v414_v16, 0.0  ;;  %v423_v25 = vmax.f32 %v415_v17, 0.0 }
 0x13e   : > { %v588_v26 = vpack.c.bf16 %v416_v18, %v416_v18  ;;  %v589_v27 = vpack.c.bf16 %v417_v19, %v417_v19  ;;  %v590_v28 = vpack.c.bf16 %v418_v20, %v418_v20  ;;  %v591_v29 = vpack.c.bf16 %v419_v21, %v419_v21 }
 0x13f   : > { %v592_v30 = vpack.c.bf16 %v420_v22, %v420_v22  ;;  %v593_v31 = vpack.c.bf16 %v421_v23, %v421_v23  ;;  %v594_v32 = vpack.c.bf16 %v422_v24, %v422_v24  ;;  %v595_v33 = vpack.c.bf16 %v423_v25, %v423_v25 }
 0x140   : > { %457 = vst.msk [vmem:[%s785_s25] sm:$0xf] %vm456_vm6, %v588_v26  ;;  %458 = vst.msk [vmem:[%s785_s25 + $0x4] sm:$0xf] %vm456_vm6, %v589_v27 }
 0x141   : > { %459 = vst.msk [vmem:[%s785_s25 + $0x8] sm:$0xf] %vm456_vm6, %v590_v28  ;;  %460 = vst.msk [vmem:[%s785_s25 + $0xc] sm:$0xf] %vm456_vm6, %v591_v29 }
 0x142   : > { %461 = vst.msk [vmem:[%s785_s25 + $0x10] sm:$0xf] %vm456_vm6, %v592_v30  ;;  %462 = vst.msk [vmem:[%s785_s25 + $0x14] sm:$0xf] %vm456_vm6, %v593_v31 }
 0x143   : > { %463 = vst.msk [vmem:[%s785_s25 + $0x18] sm:$0xf] %vm456_vm6, %v594_v32  ;;  %464 = vst.msk [vmem:[%s785_s25 + $0x1c] sm:$0xf] %vm456_vm6, %v595_v33 }
 0x144 PF: > { %s13_s16 = sadd.s32 1, %s721_s16   ;;  %s854_s12 = smov %s713_s14 }
 0x145   : > { %p10_p9 = scmp.ge.s32.totalorder %s13_s16, 6   ;;  %s855_s13 = smov %s717_s15 }
 0x146   : > { %s856_s14 = smov %s859_s17  ;;  %s857_s15 = smov %s863_s18 }
 0x147   :  { %12 = sbr.rel (!%p10_p9) target bundleno = 3 (0x3), region = 74 }

// kernel: munit_forward.93
= control target key start
LH: loop header
LB: loop body
LE: loop exit
PB: predicated region body
PF: predicated region fallthrough
CT: control target
= control target key end

     0   :  { %vm1274_vm0 = vcmask 125952   ;;  %s2308_s1 = inlined_call_operand.vmem [shape: bf16[896,16], index: 1, kind: input, shape index: {}]   ;;  %s2309_s0 = inlined_call_operand.vmem [shape: bf16[128,896], index: 0, kind: input, shape index: {}]   ;;  %s2310_s2 = inlined_call_operand.vmem [shape: f32[1,16], index: 2, kind: input, shape index: {}]   ;;  %s2311_s3 = inlined_call_operand.vmem [shape: bf16[128,16], index: 3, kind: output, shape index: {}]  }
   0x1   :  { %v1680_v0 = vld [vmem:[%s2308_s1 + $0x40] sm:$0xff]   ;;  %v1684_v4 = vld [vmem:[%s2308_s1 + $0x48] sm:$0xff]   ;;  %v1688_v8 = vld [vmem:[%s2308_s1 + $0x50] sm:$0xff]  }
   0x2   :  { %v1681_v1 = vld [vmem:[%s2308_s1] sm:$0xff]   ;;  %1440 = vmatprep.subr.bf16.mxu0 %v1680_v0  ;;  %v1685_v5 = vld [vmem:[%s2308_s1 + $0x8] sm:$0xff]   ;;  %v1689_v9 = vld [vmem:[%s2308_s1 + $0x10] sm:$0xff]  }
   0x3   :  { %v1682_v2 = vld [vmem:[%s2308_s1 + $0xc0] sm:$0xff]   ;;  %1441 = vmatpush3.bf16.msra.mxu0 %v1681_v1  ;;  %v1686_v6 = vld [vmem:[%s2308_s1 + $0xc8] sm:$0xff]   ;;  %v1690_v10 = vld [vmem:[%s2308_s1 + $0xd0] sm:$0xff]  }
   0x4   :  { %v1683_v3 = vld [vmem:[%s2308_s1 + $0x80] sm:$0xff]   ;;  %1504 = vmatprep.subr.bf16.mxu1 %v1682_v2  ;;  %1442 = vmatprep.subr.bf16.mxu0 %v1684_v4  ;;  %v1687_v7 = vld [vmem:[%s2308_s1 + $0x88] sm:$0xff]   ;;  %v1691_v11 = vld [vmem:[%s2308_s1 + $0x90] sm:$0xff]  }
   0x5   :  { %1505 = vmatpush3.bf16.msra.mxu1 %v1683_v3  ;;  %v1692_v12 = vld [vmem:[%s2308_s1 + $0x58] sm:$0xff]   ;;  %v1696_v16 = vld [vmem:[%s2308_s1 + $0x60] sm:$0xff]   ;;  %v1700_v20 = vld [vmem:[%s2308_s1 + $0x68] sm:$0xff]  }
   0x6   :  { %1506 = vmatprep.subr.bf16.mxu1 %v1686_v6  ;;  %v1693_v13 = vld [vmem:[%s2308_s1 + $0x18] sm:$0xff]   ;;  %v1697_v17 = vld [vmem:[%s2308_s1 + $0x20] sm:$0xff]   ;;  %v1701_v21 = vld [vmem:[%s2308_s1 + $0x28] sm:$0xff]  }
   0x7   :  { %1443 = vmatpush3.bf16.msra.mxu0 %v1685_v5  ;;  %v1694_v14 = vld [vmem:[%s2308_s1 + $0xd8] sm:$0xff]   ;;  %v1698_v18 = vld [vmem:[%s2308_s1 + $0xe0] sm:$0xff]   ;;  %v1702_v22 = vld [vmem:[%s2308_s1 + $0xe8] sm:$0xff]  }
   0x8   :  { %1444 = vmatprep.subr.bf16.mxu0 %v1688_v8  ;;  %v1695_v15 = vld [vmem:[%s2308_s1 + $0x98] sm:$0xff]   ;;  %v1699_v19 = vld [vmem:[%s2308_s1 + $0xa0] sm:$0xff]   ;;  %v1703_v23 = vld [vmem:[%s2308_s1 + $0xa8] sm:$0xff]  }
   0x9   :  { %1507 = vmatpush3.bf16.msra.mxu1 %v1687_v7  ;;  %v1704_v24 = vld [vmem:[%s2308_s1 + $0x70] sm:$0xff]   ;;  %v1708_v28 = vld [vmem:[%s2308_s1 + $0x78] sm:$0xff]   ;;  %v1713_v32 = vld [vmem:[%s2309_s0 + $0x4] ss:$28 sps:$4 sm:$0xff]  }
   0xa   :  { %1508 = vmatprep.subr.bf16.mxu1 %v1690_v10  ;;  %v1705_v25 = vld [vmem:[%s2308_s1 + $0x30] sm:$0xff]   ;;  %v1709_v29 = vld [vmem:[%s2308_s1 + $0x38] sm:$0xff]   ;;  %854 = vmatprep.mubr.bf16.mxu0 %v1713_v32  ;;  %v1715_v34 = vld [vmem:[%s2308_s1 + $0x140] sm:$0xff]  }
   0xb   :  { %1445 = vmatpush3.bf16.msra.mxu0 %v1689_v9  ;;  %v1706_v26 = vld [vmem:[%s2308_s1 + $0xf0] sm:$0xff]   ;;  %v1710_v30 = vld [vmem:[%s2308_s1 + $0xf8] sm:$0xff]   ;;  %v1716_v35 = vld [vmem:[%s2309_s0 + $0x8] ss:$28 sps:$4 sm:$0xff]  }
   0xc   :  { %1446 = vmatprep.subr.bf16.mxu0 %v1692_v12  ;;  %v1707_v27 = vld [vmem:[%s2308_s1 + $0xb0] sm:$0xff]   ;;  %v1711_v31 = vld [vmem:[%s2309_s0] ss:$28 sps:$4 sm:$0xff]   ;;  %v1718_v36 = vld [vmem:[%s2309_s0 + $0xc] ss:$28 sps:$4 sm:$0xff]  }
   0xd   :  { %1509 = vmatpush3.bf16.msra.mxu1 %v1691_v11  ;;  %v1714_v33 = vld [vmem:[%s2308_s1 + $0xb8] sm:$0xff]   ;;  %v1719_v37 = vld [vmem:[%s2308_s1 + $0x100] sm:$0xff]   ;;  %951 = vmatprep.mubr.bf16.mxu1 %v1718_v36  ;;  %v1723_v40 = vld [vmem:[%s2308_s1 + $0x148] sm:$0xff]  }
   0xe   :  { %1510 = vmatprep.subr.bf16.mxu1 %v1694_v14  ;;  %v1720_v38 = vld [vmem:[%s2309_s0 + $0x3c] ss:$28 sps:$4 sm:$0xff]   ;;  %v1724_v41 = vld [vmem:[%s2309_s0 + $0x44] ss:$28 sps:$4 sm:$0xff]   ;;  %v1726_v42 = vld [vmem:[%s2308_s1 + $0x108] sm:$0xff]  }
   0xf   :  { %1447 = vmatpush3.bf16.msra.mxu0 %v1693_v13  ;;  %v1722_v39 = vld [vmem:[%s2309_s0 + $0x38] ss:$28 sps:$4 sm:$0xff]   ;;  %v1727_v43 = vld [vmem:[%s2309_s0 + $0x40] ss:$28 sps:$4 sm:$0xff]   ;;  %v1730_v48 = vld [vmem:[%s2309_s0 + $0x70] ss:$28 sps:$4 sm:$0xff]  }
  0x10   :  { %1448 = vmatprep.subr.bf16.mxu0 %v1696_v16  ;;  %v1728_v44 = vld [vmem:[%s2309_s0 + $0x74] ss:$28 sps:$4 sm:$0xff]   ;;  %v1732_v46 = vld [vmem:[%s2309_s0 + $0x7c] ss:$28 sps:$4 sm:$0xff]   ;;  %v1736_v49 = vld [vmem:[%s2309_s0 + $0xac] ss:$28 sps:$4 sm:$0xff]  }
  0x11   :  { %1511 = vmatpush3.bf16.msra.mxu1 %v1695_v15  ;;  %v1731_v45 = vld [vmem:[%s2308_s1 + $0x150] sm:$0xff]   ;;  %v1739_v50 = vld [vmem:[%s2308_s1 + $0x158] sm:$0xff]   ;;  %v1747_v54 = vld [vmem:[%s2308_s1 + $0x160] sm:$0xff]  }
  0x12   :  { %1512 = vmatprep.subr.bf16.mxu1 %v1698_v18  ;;  %v1734_v47 = vld [vmem:[%s2308_s1 + $0x110] sm:$0xff]   ;;  %v1742_v52 = vld [vmem:[%s2308_s1 + $0x118] sm:$0xff]   ;;  %v1738_v55 = vld [vmem:[%s2309_s0 + $0xa8] ss:$28 sps:$4 sm:$0xff]  }
  0x13   :  { %1449 = vmatpush3.bf16.msra.mxu0 %v1697_v17  ;;  %v1735_v51 = vld [vmem:[%s2309_s0 + $0x78] ss:$28 sps:$4 sm:$0xff]   ;;  %v1750_v56 = vld [vmem:[%s2308_s1 + $0x120] sm:$0xff]   ;;  %v1743_v59 = vld [vmem:[%s2309_s0 + $0xb0] ss:$28 sps:$4 sm:$0xff]  }
  0x14   :  { %1450 = vmatprep.subr.bf16.mxu0 %v1700_v20  ;;  %v1740_v53 = vld [vmem:[%s2309_s0 + $0xb4] ss:$28 sps:$4 sm:$0xff]   ;;  %v1744_v57 = vld [vmem:[%s2309_s0 + $0xe4] ss:$28 sps:$4 sm:$0xff]   ;;  %v1748_v60 = vld [vmem:[%s2309_s0 + $0xec] ss:$28 sps:$4 sm:$0xff]  }
  0x15   :  { %1513 = vmatpush3.bf16.msra.mxu1 %v1699_v19  ;;  %v1752_v58 = vld [vmem:[%s2308_s1 + $0x180] sm:$0xff]   ;;  %v1756_v61 = vld [vmem:[%s2308_s1 + $0x168] sm:$0xff]   ;;  %v1762_v0 = vld [vmem:[%s2308_s1 + $0x190] sm:$0xff]  }
  0x16   :  { %1514 = vmatprep.subr.bf16.mxu1 %v1702_v22  ;;  %v1757_v62 = vld [vmem:[%s2308_s1 + $0x188] sm:$0xff]   ;;  %v1746_v1 = vld [vmem:[%s2309_s0 + $0xe0] ss:$28 sps:$4 sm:$0xff]   ;;  %v1766_v4 = vld [vmem:[%s2308_s1 + $0x170] sm:$0xff]  }
  0x17   :  { %1451 = vmatpush3.bf16.msra.mxu0 %v1701_v21  ;;  %v1760_v63 = vld [vmem:[%s2308_s1 + $0x128] sm:$0xff]   ;;  %v1753_v3 = vld [vmem:[%s2309_s0 + $0x11c] ss:$28 sps:$4 sm:$0xff]   ;;  %v1758_v6 = vld [vmem:[%s2309_s0 + $0x124] ss:$28 sps:$4 sm:$0xff]  }
  0x18   :  { %1452 = vmatprep.subr.bf16.mxu0 %v1704_v24  ;;  %v1751_v2 = vld [vmem:[%s2309_s0 + $0xe8] ss:$28 sps:$4 sm:$0xff]   ;;  %v1767_v5 = vld [vmem:[%s2308_s1 + $0x198] sm:$0xff]   ;;  %v1770_v7 = vld [vmem:[%s2308_s1 + $0x130] sm:$0xff]  }
  0x19   :  { %1515 = vmatpush3.bf16.msra.mxu1 %v1703_v23  ;;  %v1772_v8 = vld [vmem:[%s2308_s1 + $0x1a0] sm:$0xff]   ;;  %v1755_v9 = vld [vmem:[%s2309_s0 + $0x118] ss:$28 sps:$4 sm:$0xff]   ;;  %v1777_v13 = vld [vmem:[%s2308_s1 + $0x1a8] sm:$0xff]  }
  0x1a   :  { %1516 = vmatprep.subr.bf16.mxu1 %v1706_v26  ;;  %v1776_v10 = vld [vmem:[%s2308_s1 + $0x178] sm:$0xff]   ;;  %v1763_v12 = vld [vmem:[%s2309_s0 + $0x154] ss:$28 sps:$4 sm:$0xff]   ;;  %v1773_v18 = vld [vmem:[%s2309_s0 + $0x18c] ss:$28 sps:$4 sm:$0xff]  }
  0x1b   :  { %1453 = vmatpush3.bf16.msra.mxu0 %v1705_v25  ;;  %v1761_v11 = vld [vmem:[%s2309_s0 + $0x120] ss:$28 sps:$4 sm:$0xff]   ;;  %v1782_v16 = vld [vmem:[%s2308_s1 + $0x1b0] sm:$0xff]   ;;  %v1775_v22 = vld [vmem:[%s2309_s0 + $0x188] ss:$28 sps:$4 sm:$0xff]  }
  0x1c   :  { %1454 = vmatprep.subr.bf16.mxu0 %v1708_v28  ;;  %v1780_v14 = vld [vmem:[%s2308_s1 + $0x138] sm:$0xff]   ;;  %v1765_v17 = vld [vmem:[%s2309_s0 + $0x150] ss:$28 sps:$4 sm:$0xff]  }
  0x1d   :  { %1517 = vmatpush3.bf16.msra.mxu1 %v1707_v27  ;;  %v1768_v15 = vld [vmem:[%s2309_s0 + $0x15c] ss:$28 sps:$4 sm:$0xff]   ;;  %v1778_v21 = vld [vmem:[%s2309_s0 + $0x194] ss:$28 sps:$4 sm:$0xff]   ;;  %v1789_v27 = vld [vmem:[%s2309_s0 + $0x4c] ss:$28 sps:$4 sm:$0xff]  }
  0x1e   :  { %1518 = vmatprep.subr.bf16.mxu1 %v1710_v30  ;;  %v1786_v19 = vld [vmem:[%s2308_s1 + $0x1b8] sm:$0xff]   ;;  %v1785_v23 = vld [vmem:[%s2309_s0 + $0x14] ss:$28 sps:$4 sm:$0xff]   ;;  %v1791_v30 = vld [vmem:[%s2309_s0 + $0x48] ss:$28 sps:$4 sm:$0xff]  }
  0x1f   :  { %1455 = vmatpush3.bf16.msra.mxu0 %v1709_v29  ;;  %v1771_v20 = vld [vmem:[%s2309_s0 + $0x158] ss:$28 sps:$4 sm:$0xff]   ;;  %v1781_v24 = vld [vmem:[%s2309_s0 + $0x190] ss:$28 sps:$4 sm:$0xff]   ;;  %v1795_v29 = vld [vmem:[%s2309_s0 + $0x88] ss:$28 sps:$4 sm:$0xff]  }
  0x20   :  { %1568 = vmatprep.subr.bf16.mxu0 %v1715_v34  ;;  %v1787_v25 = vld [vmem:[%s2309_s0 + $0x18] ss:$28 sps:$4 sm:$0xff]   ;;  %v1783_v26 = vld [vmem:[%s2309_s0 + $0x10] ss:$28 sps:$4 sm:$0xff]   ;;  %v1796_v32 = vld [vmem:[%s2309_s0 + $0xc0] ss:$28 sps:$4 sm:$0xff]  }
  0x21   :  { %1519 = vmatpush3.bf16.msra.mxu1 %v1714_v33  ;;  %v1788_v28 = vld [vmem:[%s2309_s0 + $0x50] ss:$28 sps:$4 sm:$0xff]   ;;  %v1803_v33 = vld [vmem:[%s2309_s0 + $0xf8] ss:$28 sps:$4 sm:$0xff]   ;;  %v1794_v34 = vld [vmem:[%s2309_s0 + $0x80] ss:$28 sps:$4 sm:$0xff]  }
  0x22   :  { %855 = vmatmul.mubr.bf16.vlgmr.msra.gmra.mrb[0].mxu0 %v1711_v31  ;;  %1648 = vmatprep.subr.bf16.mxu1 %v1752_v58  ;;  %v1792_v31 = vld [vmem:[%s2309_s0 + $0x84] ss:$28 sps:$4 sm:$0xff]   ;;  %v1804_v36 = vld [vmem:[%s2309_s0 + $0x130] ss:$28 sps:$4 sm:$0xff]  }
  0x23   :  { %1569 = vmatpush3.bf16.msra.mxu0 %v1719_v37  ;;  %862 = vmatprep.mubr.bf16.mxu0 %v1720_v38  ;;  %v1811_v37 = vld [vmem:[%s2309_s0 + $0x168] ss:$28 sps:$4 sm:$0xff]   ;;  %v1799_v38 = vld [vmem:[%s2309_s0 + $0xb8] ss:$28 sps:$4 sm:$0xff]  }
  0x24   :  { %952 = vmatmul.mubr.bf16.vlgmr.msra.gmra.mrb[0].mxu1 %v1716_v35  ;;  %1570 = vmatprep.subr.bf16.mxu0 %v1723_v40  ;;  %v1797_v35 = vld [vmem:[%s2309_s0 + $0xbc] ss:$28 sps:$4 sm:$0xff]  }
  0x25   :  { %959 = vmatprep.mubr.bf16.mxu1 %v1724_v41  ;;  %1649 = vmatpush3.bf16.msra.mxu1 %v1752_v58  ;;  %v1812_v40 = vld [vmem:[%s2309_s0 + $0x1a0] ss:$28 sps:$4 sm:$0xff]   ;;  %v1802_v41 = vld [vmem:[%s2309_s0 + $0xf0] ss:$28 sps:$4 sm:$0xff]  }
  0x26   :  { %1650 = vmatprep.subr.bf16.mxu1 %v1757_v62 }
  0x27   :  { %1571 = vmatpush3.bf16.msra.mxu0 %v1726_v42  ;;  %v1805_v42 = vld [vmem:[%s2309_s0 + $0x12c] ss:$28 sps:$4 sm:$0xff]  }
  0x28   :  { %1572 = vmatprep.subr.bf16.mxu0 %v1731_v45  ;;  %v1810_v45 = vld [vmem:[%s2309_s0 + $0x160] ss:$28 sps:$4 sm:$0xff]  }
  0x29   :  { %1651 = vmatpush3.bf16.msra.mxu1 %v1757_v62 }
  0x2a   :  { %863 = vmatmul.mubr.bf16.gmra.mrb[4].mxu0 %v1722_v39  ;;  %1652 = vmatprep.subr.bf16.mxu1 %v1762_v0  ;;  %v1800_v39 = vld [vmem:[%s2309_s0 + $0xf4] ss:$28 sps:$4 sm:$0xff]  }
  0x2b   :  { %870 = vmatprep.mubr.bf16.mxu0 %v1728_v44  ;;  %1573 = vmatpush3.bf16.msra.mxu0 %v1734_v47  ;;  %v1808_v44 = vld [vmem:[%s2309_s0 + $0x164] ss:$28 sps:$4 sm:$0xff]   ;;  %v1815_v47 = vld [vmem:[%s2309_s0 + $0x198] ss:$28 sps:$4 sm:$0xff]  }
  0x2c   :  { %960 = vmatmul.mubr.bf16.gmra.mrb[4].mxu1 %v1727_v43  ;;  %1574 = vmatprep.subr.bf16.mxu0 %v1739_v50  ;;  %v1807_v43 = vld [vmem:[%s2309_s0 + $0x128] ss:$28 sps:$4 sm:$0xff]  }
  0x2d   :  { %967 = vmatprep.mubr.bf16.mxu1 %v1732_v46  ;;  %1653 = vmatpush3.bf16.msra.mxu1 %v1762_v0  ;;  %v1813_v46 = vld [vmem:[%s2309_s0 + $0x19c] ss:$28 sps:$4 sm:$0xff]  }
  0x2e   :  { %1654 = vmatprep.subr.bf16.mxu1 %v1767_v5 }
  0x2f   :  { %1575 = vmatpush3.bf16.msra.mxu0 %v1742_v52 }
  0x30   :  { %1576 = vmatprep.subr.bf16.mxu0 %v1747_v54 }
  0x31   :  { %1655 = vmatpush3.bf16.msra.mxu1 %v1767_v5 }
  0x32   :  { %871 = vmatmul.mubr.bf16.gmra.mrb[8].mxu0 %v1730_v48  ;;  %1656 = vmatprep.subr.bf16.mxu1 %v1772_v8 }
  0x33   :  { %878 = vmatprep.mubr.bf16.mxu0 %v1736_v49  ;;  %1577 = vmatpush3.bf16.msra.mxu0 %v1750_v56  ;;  %v2175_v49 = vld [vmem:[%s2310_s2] ss:$0 sm:$0xff] }
  0x34   :  { %968 = vmatmul.mubr.bf16.gmra.mrb[8].mxu1 %v1735_v51  ;;  %1578 = vmatprep.subr.bf16.mxu0 %v1756_v61 }
  0x35   :  { %975 = vmatprep.mubr.bf16.mxu1 %v1740_v53  ;;  %1657 = vmatpush3.bf16.msra.mxu1 %v1772_v8 }
  0x36   :  { %1658 = vmatprep.subr.bf16.mxu1 %v1777_v13 }
  0x37   :  { %1579 = vmatpush3.bf16.msra.mxu0 %v1760_v63 }
  0x38   :  { %1580 = vmatprep.subr.bf16.mxu0 %v1766_v4 }
  0x39   :  { %1659 = vmatpush3.bf16.msra.mxu1 %v1777_v13 }
  0x3a   :  { %879 = vmatmul.mubr.bf16.gmra.mrb[12].mxu0 %v1738_v55  ;;  %1660 = vmatprep.subr.bf16.mxu1 %v1782_v16 }
  0x3b   :  { %886 = vmatprep.mubr.bf16.mxu0 %v1744_v57  ;;  %1581 = vmatpush3.bf16.msra.mxu0 %v1770_v7 }
  0x3c   :  { %976 = vmatmul.mubr.bf16.gmra.mrb[12].mxu1 %v1743_v59  ;;  %1582 = vmatprep.subr.bf16.mxu0 %v1776_v10 }
  0x3d   :  { %983 = vmatprep.mubr.bf16.mxu1 %v1748_v60  ;;  %1661 = vmatpush3.bf16.msra.mxu1 %v1782_v16 }
  0x3e   :  { %1662 = vmatprep.subr.bf16.mxu1 %v1786_v19 }
  0x3f   :  { %1583 = vmatpush3.bf16.msra.mxu0 %v1780_v14 }
  0x41   :  { %1663 = vmatpush3.bf16.msra.mxu1 %v1786_v19 }
  0x42   :  { %887 = vmatmul.mubr.bf16.gmra.mrb[16].mxu0 %v1746_v1 }
  0x43   :  { %894 = vmatprep.mubr.bf16.mxu0 %v1753_v3 }
  0x44   :  { %984 = vmatmul.mubr.bf16.gmra.mrb[16].mxu1 %v1751_v2 }
  0x45   :  { %991 = vmatprep.mubr.bf16.mxu1 %v1758_v6 }
  0x4a   :  { %895 = vmatmul.mubr.bf16.gmra.mrb[20].mxu0 %v1755_v9 }
  0x4b   :  { %902 = vmatprep.mubr.bf16.mxu0 %v1763_v12 }
  0x4c   :  { %992 = vmatmul.mubr.bf16.gmra.mrb[20].mxu1 %v1761_v11 }
  0x4d   :  { %999 = vmatprep.mubr.bf16.mxu1 %v1768_v15 }
  0x52   :  { %903 = vmatmul.mubr.bf16.gmra.mrb[24].mxu0 %v1765_v17 }
  0x53   :  { %910 = vmatprep.mubr.bf16.mxu0 %v1773_v18 }
  0x54   :  { %1000 = vmatmul.mubr.bf16.gmra.mrb[24].mxu1 %v1771_v20 }
  0x55   :  { %1007 = vmatprep.mubr.bf16.mxu1 %v1778_v21 }
  0x5a   :  { %911 = vmatmul.mubr.bf16.gmra.mrb[28].mxu0 %v1775_v22 }
  0x5b   :  { %1048 = vmatprep.mubr.bf16.mxu0 %v1785_v23 }
  0x5c   :  { %1008 = vmatmul.mubr.bf16.gmra.mrb[28].mxu1 %v1781_v24 }
  0x5d   :  { %1664 = vmatprep.mubr.bf16.mxu1 %v1787_v25 }
  0x62   :  { %1049 = vmatmul.mubr.bf16.vlgmr.msra.gmra.mrb[32].mxu0 %v1783_v26 }
  0x63   :  { %1056 = vmatprep.mubr.bf16.mxu0 %v1789_v27 }
  0x64   :  { %1665 = vmatmul.mubr.bf16.vlgmr.msra.gmra.mrb[32].mxu1 %v1788_v28 }
  0x65   :  { %1668 = vmatprep.mubr.bf16.mxu1 %v1795_v29 }
  0x6a   :  { %1057 = vmatmul.mubr.bf16.gmra.mrb[36].mxu0 %v1791_v30 }
  0x6b   :  { %1064 = vmatprep.mubr.bf16.mxu0 %v1792_v31 }
  0x6c   :  { %1669 = vmatmul.mubr.bf16.gmra.mrb[36].mxu1 %v1796_v32 }
  0x6d   :  { %1672 = vmatprep.mubr.bf16.mxu1 %v1803_v33 }
  0x72   :  { %1065 = vmatmul.mubr.bf16.gmra.mrb[40].mxu0 %v1794_v34 }
  0x73   :  { %1072 = vmatprep.mubr.bf16.mxu0 %v1797_v35 }
  0x74   :  { %1673 = vmatmul.mubr.bf16.gmra.mrb[40].mxu1 %v1804_v36 }
  0x75   :  { %1676 = vmatprep.mubr.bf16.mxu1 %v1811_v37 }
  0x7a   :  { %1073 = vmatmul.mubr.bf16.gmra.mrb[44].mxu0 %v1799_v38 }
  0x7b   :  { %1080 = vmatprep.mubr.bf16.mxu0 %v1800_v39 }
  0x7c   :  { %1677 = vmatmul.mubr.bf16.gmra.mrb[44].mxu1 %v1812_v40 }
  0x82   :  { %1081 = vmatmul.mubr.bf16.gmra.mrb[48].mxu0 %v1802_v41 }
  0x83   :  { %1088 = vmatprep.mubr.bf16.mxu0 %v1805_v42 }
  0x8a   :  { %1089 = vmatmul.mubr.bf16.gmra.mrb[52].mxu0 %v1807_v43 }
  0x8b   :  { %1096 = vmatprep.mubr.bf16.mxu0 %v1808_v44 }
  0x92   :  { %1097 = vmatmul.mubr.bf16.gmra.mrb[56].mxu0 %v1810_v45 }
  0x93   :  { %1104 = vmatprep.mubr.bf16.mxu0 %v1813_v46 }
  0x9a   :  { %1105 = vmatmul.mubr.bf16.gmra.mrb[60].mxu0 %v1815_v47 }
  0xf5   :  { %v1456_v48 = vpop.f32.mrb[0].mxu0 }
  0xf6   :  { %v1457_v50 = vpop.f32.mrb[1].mxu0 }
  0xf7   :  { %v1458_v51 = vadd.f32 %v1457_v50, %v1456_v48  ;;  %v1459_v52 = vpop.f32.mrb[2].mxu0  ;;  %v1520_v53 = vpop.f32.mrb[0].mxu1 }
  0xf8   :  { %v1460_v54 = vpop.f32.mrb[3].mxu0  ;;  %v1521_v57 = vpop.f32.mrb[1].mxu1 }
  0xf9   :  { %v857_v55 = vadd.f32 %v1458_v51, %v2175_v49  ;;  %v1461_v56 = vadd.f32 %v1460_v54, %v1459_v52  ;;  %v1522_v58 = vadd.f32 %v1521_v57, %v1520_v53  ;;  %v1523_v59 = vpop.f32.mrb[2].mxu1 }
  0xfa   :  { %v1524_v61 = vpop.f32.mrb[3].mxu1 }
  0xfb   :  { %v860_v60 = vadd.f32 %v1461_v56, %v2175_v49  ;;  %v2179_v62 = vadd.f32 %v1522_v58, %v857_v55  ;;  %v1525_v63 = vadd.f32 %v1524_v61, %v1523_v59 }
  0xfd   :  { %v1462_v0 = vpop.f32.mrb[4].mxu0  ;;  %v2181_v1 = vadd.f32 %v1525_v63, %v860_v60 }
  0xfe   :  { %v1463_v2 = vpop.f32.mrb[5].mxu0 }
  0xff   :  { %v1464_v3 = vadd.f32 %v1463_v2, %v1462_v0  ;;  %v1465_v4 = vpop.f32.mrb[6].mxu0  ;;  %v1526_v5 = vpop.f32.mrb[4].mxu1 }
 0x100   :  { %v1466_v6 = vpop.f32.mrb[7].mxu0  ;;  %v1527_v9 = vpop.f32.mrb[5].mxu1 }
 0x101   :  { %v865_v7 = vadd.f32 %v1464_v3, %v2175_v49  ;;  %v1467_v8 = vadd.f32 %v1466_v6, %v1465_v4  ;;  %v1528_v10 = vadd.f32 %v1527_v9, %v1526_v5  ;;  %v1529_v11 = vpop.f32.mrb[6].mxu1 }
 0x102   :  { %v1530_v13 = vpop.f32.mrb[7].mxu1 }
 0x103   :  { %v868_v12 = vadd.f32 %v1467_v8, %v2175_v49  ;;  %v2185_v14 = vadd.f32 %v1528_v10, %v865_v7  ;;  %v1531_v15 = vadd.f32 %v1530_v13, %v1529_v11 }
 0x105   :  { %v1468_v16 = vpop.f32.mrb[8].mxu0  ;;  %v2187_v17 = vadd.f32 %v1531_v15, %v868_v12 }
 0x106   :  { %v1469_v18 = vpop.f32.mrb[9].mxu0 }
 0x107   :  { %v1470_v19 = vadd.f32 %v1469_v18, %v1468_v16  ;;  %v1471_v20 = vpop.f32.mrb[10].mxu0  ;;  %v1532_v21 = vpop.f32.mrb[8].mxu1 }
 0x108   :  { %v1472_v22 = vpop.f32.mrb[11].mxu0  ;;  %v1533_v25 = vpop.f32.mrb[9].mxu1 }
 0x109   :  { %v873_v23 = vadd.f32 %v1470_v19, %v2175_v49  ;;  %v1473_v24 = vadd.f32 %v1472_v22, %v1471_v20  ;;  %v1534_v26 = vadd.f32 %v1533_v25, %v1532_v21  ;;  %v1535_v27 = vpop.f32.mrb[10].mxu1 }
 0x10a   :  { %v1536_v29 = vpop.f32.mrb[11].mxu1 }
 0x10b   :  { %v876_v28 = vadd.f32 %v1473_v24, %v2175_v49  ;;  %v2191_v30 = vadd.f32 %v1534_v26, %v873_v23  ;;  %v1537_v31 = vadd.f32 %v1536_v29, %v1535_v27 }
 0x10d   :  { %v1474_v32 = vpop.f32.mrb[12].mxu0  ;;  %v2193_v33 = vadd.f32 %v1537_v31, %v876_v28 }
 0x10e   :  { %v1475_v34 = vpop.f32.mrb[13].mxu0 }
 0x10f   :  { %v1476_v35 = vadd.f32 %v1475_v34, %v1474_v32  ;;  %v1477_v36 = vpop.f32.mrb[14].mxu0  ;;  %v1538_v37 = vpop.f32.mrb[12].mxu1 }
 0x110   :  { %v1478_v38 = vpop.f32.mrb[15].mxu0  ;;  %v1539_v41 = vpop.f32.mrb[13].mxu1 }
 0x111   :  { %v881_v39 = vadd.f32 %v1476_v35, %v2175_v49  ;;  %v1479_v40 = vadd.f32 %v1478_v38, %v1477_v36  ;;  %v1540_v42 = vadd.f32 %v1539_v41, %v1538_v37  ;;  %v1541_v43 = vpop.f32.mrb[14].mxu1 }
 0x112   :  { %v1542_v45 = vpop.f32.mrb[15].mxu1 }
 0x113   :  { %v884_v44 = vadd.f32 %v1479_v40, %v2175_v49  ;;  %v2197_v46 = vadd.f32 %v1540_v42, %v881_v39  ;;  %v1543_v47 = vadd.f32 %v1542_v45, %v1541_v43 }
 0x115   :  { %v1480_v48 = vpop.f32.mrb[16].mxu0  ;;  %v2199_v50 = vadd.f32 %v1543_v47, %v884_v44 }
 0x116   :  { %v1481_v51 = vpop.f32.mrb[17].mxu0 }
 0x117   :  { %v1482_v52 = vadd.f32 %v1481_v51, %v1480_v48  ;;  %v1483_v53 = vpop.f32.mrb[18].mxu0  ;;  %v1544_v54 = vpop.f32.mrb[16].mxu1 }
 0x118   :  { %v1484_v55 = vpop.f32.mrb[19].mxu0  ;;  %v1545_v58 = vpop.f32.mrb[17].mxu1 }
 0x119   :  { %v889_v56 = vadd.f32 %v1482_v52, %v2175_v49  ;;  %v1485_v57 = vadd.f32 %v1484_v55, %v1483_v53  ;;  %v1546_v59 = vadd.f32 %v1545_v58, %v1544_v54  ;;  %v1547_v60 = vpop.f32.mrb[18].mxu1 }
 0x11a   :  { %v1548_v63 = vpop.f32.mrb[19].mxu1 }
 0x11b   :  { %v892_v61 = vadd.f32 %v1485_v57, %v2175_v49  ;;  %v2203_v0 = vadd.f32 %v1546_v59, %v889_v56  ;;  %v1549_v2 = vadd.f32 %v1548_v63, %v1547_v60 }
 0x11d   :  { %v1486_v3 = vpop.f32.mrb[20].mxu0  ;;  %v2205_v4 = vadd.f32 %v1549_v2, %v892_v61 }
 0x11e   :  { %v1487_v5 = vpop.f32.mrb[21].mxu0 }
 0x11f   :  { %v1488_v6 = vadd.f32 %v1487_v5, %v1486_v3  ;;  %v1489_v7 = vpop.f32.mrb[22].mxu0  ;;  %v1550_v8 = vpop.f32.mrb[20].mxu1 }
 0x120   :  { %v1490_v9 = vpop.f32.mrb[23].mxu0  ;;  %v1551_v12 = vpop.f32.mrb[21].mxu1 }
 0x121   :  { %v897_v10 = vadd.f32 %v1488_v6, %v2175_v49  ;;  %v1491_v11 = vadd.f32 %v1490_v9, %v1489_v7  ;;  %v1552_v13 = vadd.f32 %v1551_v12, %v1550_v8  ;;  %v1553_v15 = vpop.f32.mrb[22].mxu1 }
 0x122   :  { %v1554_v18 = vpop.f32.mrb[23].mxu1 }
 0x123   :  { %v900_v16 = vadd.f32 %v1491_v11, %v2175_v49  ;;  %v2209_v19 = vadd.f32 %v1552_v13, %v897_v10  ;;  %v1555_v20 = vadd.f32 %v1554_v18, %v1553_v15 }
 0x125   :  { %v1492_v21 = vpop.f32.mrb[24].mxu0  ;;  %v2211_v22 = vadd.f32 %v1555_v20, %v900_v16 }
 0x126   :  { %v1493_v23 = vpop.f32.mrb[25].mxu0 }
 0x127   :  { %v1494_v24 = vadd.f32 %v1493_v23, %v1492_v21  ;;  %v1495_v25 = vpop.f32.mrb[26].mxu0  ;;  %v1556_v26 = vpop.f32.mrb[24].mxu1 }
 0x128   :  { %v1496_v27 = vpop.f32.mrb[27].mxu0  ;;  %v1557_v31 = vpop.f32.mrb[25].mxu1 }
 0x129   :  { %v905_v28 = vadd.f32 %v1494_v24, %v2175_v49  ;;  %v1497_v29 = vadd.f32 %v1496_v27, %v1495_v25  ;;  %v1558_v32 = vadd.f32 %v1557_v31, %v1556_v26  ;;  %v1559_v34 = vpop.f32.mrb[26].mxu1 }
 0x12a   :  { %v1560_v36 = vpop.f32.mrb[27].mxu1 }
 0x12b   :  { %v908_v35 = vadd.f32 %v1497_v29, %v2175_v49  ;;  %v2215_v37 = vadd.f32 %v1558_v32, %v905_v28  ;;  %v1561_v38 = vadd.f32 %v1560_v36, %v1559_v34 }
 0x12d   :  { %v1498_v39 = vpop.f32.mrb[28].mxu0  ;;  %v2217_v40 = vadd.f32 %v1561_v38, %v908_v35 }
 0x12e   :  { %v1499_v41 = vpop.f32.mrb[29].mxu0 }
 0x12f   :  { %v1500_v42 = vadd.f32 %v1499_v41, %v1498_v39  ;;  %v1501_v43 = vpop.f32.mrb[30].mxu0  ;;  %v1562_v44 = vpop.f32.mrb[28].mxu1 }
 0x130   :  { %v1502_v45 = vpop.f32.mrb[31].mxu0  ;;  %v1563_v51 = vpop.f32.mrb[29].mxu1 }
 0x131   :  { %v913_v47 = vadd.f32 %v1500_v42, %v2175_v49  ;;  %v1503_v48 = vadd.f32 %v1502_v45, %v1501_v43  ;;  %v1564_v52 = vadd.f32 %v1563_v51, %v1562_v44  ;;  %v1565_v53 = vpop.f32.mrb[30].mxu1 }
 0x132   :  { %v1566_v55 = vpop.f32.mrb[31].mxu1 }
 0x133   :  { %v916_v54 = vadd.f32 %v1503_v48, %v2175_v49  ;;  %v2221_v56 = vadd.f32 %v1564_v52, %v913_v47  ;;  %v1567_v57 = vadd.f32 %v1566_v55, %v1565_v53 }
 0x135   :  { %v1584_v58 = vpop.f32.mrb[32].mxu0  ;;  %v2223_v59 = vadd.f32 %v1567_v57, %v916_v54 }
 0x136   :  { %v1585_v60 = vpop.f32.mrb[33].mxu0 }
 0x137   :  { %v1586_v61 = vadd.f32 %v1585_v60, %v1584_v58  ;;  %v1587_v63 = vpop.f32.mrb[34].mxu0  ;;  %v1666_v3 = vpop.f32.mrb[32].mxu1 }
 0x138   :  { %v1588_v2 = vpop.f32.mrb[35].mxu0  ;;  %v1147_v7 = vpop.f32.mrb[33].mxu1 }
 0x139   :  { %v1589_v5 = vadd.f32 %v1588_v2, %v1587_v63  ;;  %v1051_v6 = vadd.f32 %v1586_v61, %v2179_v62  ;;  %v1667_v8 = vpop.f32.mrb[34].mxu1 }
 0x13a   :  { %v1150_v10 = vpop.f32.mrb[35].mxu1 }
 0x13b   :  { %v1148_v9 = vadd.f32 %v1147_v7, %v1051_v6  ;;  %v1054_v49 = vadd.f32 %v1589_v5, %v2181_v1 }
 0x13d   :  { %v1424_v11 = vpack.c.bf16 %v1148_v9, %v1148_v9  ;;  %v1151_v12 = vadd.f32 %v1150_v10, %v1054_v49  ;;  %v1590_v13 = vpop.f32.mrb[36].mxu0 }
 0x13e   :  { %v1591_v15 = vpop.f32.mrb[37].mxu0 }
 0x13f   :  { %1275 = vst.msk [vmem:[%s2311_s3] sm:$0xf] %vm1274_vm0, %v1424_v11  ;;  %v1425_v16 = vpack.c.bf16 %v1151_v12, %v1151_v12  ;;  %v1592_v18 = vadd.f32 %v1591_v15, %v1590_v13  ;;  %v1593_v20 = vpop.f32.mrb[38].mxu0  ;;  %v1670_v21 = vpop.f32.mrb[36].mxu1 }
 0x140   :  { %v1594_v62 = vpop.f32.mrb[39].mxu0  ;;  %v1163_v24 = vpop.f32.mrb[37].mxu1 }
 0x141   :  { %1276 = vst.msk [vmem:[%s2311_s3 + $0x4] sm:$0xf] %vm1274_vm0, %v1425_v16  ;;  %v1059_v1 = vadd.f32 %v1592_v18, %v2185_v14  ;;  %v1595_v23 = vadd.f32 %v1594_v62, %v1593_v20  ;;  %v1671_v25 = vpop.f32.mrb[38].mxu1 }
 0x142   :  { %v1166_v28 = vpop.f32.mrb[39].mxu1 }
 0x143   :  { %v1156_v26 = vadd.f32 %v1666_v3, %v1059_v1  ;;  %v1062_v27 = vadd.f32 %v1595_v23, %v2187_v17 }
 0x145   :  { %v1426_v29 = vpack.c.bf16 %v1156_v26, %v1156_v26  ;;  %v1159_v31 = vadd.f32 %v1667_v8, %v1062_v27  ;;  %v1596_v32 = vpop.f32.mrb[40].mxu0 }
 0x146   :  { %v1597_v34 = vpop.f32.mrb[41].mxu0 }
 0x147   :  { %1277 = vst.msk [vmem:[%s2311_s3 + $0x8] sm:$0xf] %vm1274_vm0, %v1426_v29  ;;  %v1427_v35 = vpack.c.bf16 %v1159_v31, %v1159_v31  ;;  %v1598_v36 = vadd.f32 %v1597_v34, %v1596_v32  ;;  %v1599_v38 = vpop.f32.mrb[42].mxu0  ;;  %v1674_v39 = vpop.f32.mrb[40].mxu1 }
 0x148   :  { %v1600_v14 = vpop.f32.mrb[43].mxu0  ;;  %v1179_v42 = vpop.f32.mrb[41].mxu1 }
 0x149   :  { %1278 = vst.msk [vmem:[%s2311_s3 + $0xc] sm:$0xf] %vm1274_vm0, %v1427_v35  ;;  %v1601_v17 = vadd.f32 %v1600_v14, %v1599_v38  ;;  %v1067_v41 = vadd.f32 %v1598_v36, %v2191_v30  ;;  %v1675_v43 = vpop.f32.mrb[42].mxu1 }
 0x14a   :  { %v1182_v47 = vpop.f32.mrb[43].mxu1 }
 0x14b   :  { %v1164_v44 = vadd.f32 %v1163_v24, %v1067_v41  ;;  %v1070_v45 = vadd.f32 %v1601_v17, %v2193_v33 }
 0x14d   :  { %v1428_v48 = vpack.c.bf16 %v1164_v44, %v1164_v44  ;;  %v1167_v51 = vadd.f32 %v1166_v28, %v1070_v45  ;;  %v1602_v52 = vpop.f32.mrb[44].mxu0 }
 0x14e   :  { %v1603_v53 = vpop.f32.mrb[45].mxu0 }
 0x14f   :  { %1279 = vst.msk [vmem:[%s2311_s3 + $0x10] sm:$0xf] %vm1274_vm0, %v1428_v48  ;;  %v1429_v54 = vpack.c.bf16 %v1167_v51, %v1167_v51  ;;  %v1604_v55 = vadd.f32 %v1603_v53, %v1602_v52  ;;  %v1605_v57 = vpop.f32.mrb[46].mxu0  ;;  %v2251_v30 = vpop.f32.mrb[44].mxu1 }
 0x150   :  { %v1606_v58 = vpop.f32.mrb[47].mxu0  ;;  %v1195_v61 = vpop.f32.mrb[45].mxu1 }
 0x151   :  { %1280 = vst.msk [vmem:[%s2311_s3 + $0x14] sm:$0xf] %vm1274_vm0, %v1429_v54  ;;  %v1075_v33 = vadd.f32 %v1604_v55, %v2197_v46  ;;  %v1607_v60 = vadd.f32 %v1606_v58, %v1605_v57  ;;  %v1679_v63 = vpop.f32.mrb[46].mxu1 }
 0x152   :  { %v1198_v5 = vpop.f32.mrb[47].mxu1 }
 0x153   :  { %v1172_v2 = vadd.f32 %v1670_v21, %v1075_v33  ;;  %v1078_v3 = vadd.f32 %v1607_v60, %v2199_v50 }
 0x155   :  { %v1430_v6 = vpack.c.bf16 %v1172_v2, %v1172_v2  ;;  %v1175_v7 = vadd.f32 %v1671_v25, %v1078_v3  ;;  %v1608_v8 = vpop.f32.mrb[48].mxu0 }
 0x156   :  { %v1609_v9 = vpop.f32.mrb[49].mxu0 }
 0x157   :  { %1281 = vst.msk [vmem:[%s2311_s3 + $0x18] sm:$0xf] %vm1274_vm0, %v1430_v6  ;;  %v1431_v49 = vpack.c.bf16 %v1175_v7, %v1175_v7  ;;  %v1610_v10 = vadd.f32 %v1609_v9, %v1608_v8  ;;  %v1611_v11 = vpop.f32.mrb[50].mxu0 }
 0x158   :  { %v1612_v46 = vpop.f32.mrb[51].mxu0 }
 0x159   :  { %1282 = vst.msk [vmem:[%s2311_s3 + $0x1c] sm:$0xf] %vm1274_vm0, %v1431_v49  ;;  %v1613_v50 = vadd.f32 %v1612_v46, %v1611_v11  ;;  %v1083_v12 = vadd.f32 %v1610_v10, %v2203_v0 }
 0x15b   :  { %v1180_v13 = vadd.f32 %v1179_v42, %v1083_v12  ;;  %v1086_v15 = vadd.f32 %v1613_v50, %v2205_v4 }
 0x15d   :  { %v1432_v16 = vpack.c.bf16 %v1180_v13, %v1180_v13  ;;  %v1183_v18 = vadd.f32 %v1182_v47, %v1086_v15  ;;  %v1614_v20 = vpop.f32.mrb[52].mxu0 }
 0x15e   :  { %v1615_v62 = vpop.f32.mrb[53].mxu0 }
 0x15f   :  { %1283 = vst.msk [vmem:[%s2311_s3 + $0x20] sm:$0xf] %vm1274_vm0, %v1432_v16  ;;  %v1433_v21 = vpack.c.bf16 %v1183_v18, %v1183_v18  ;;  %v1616_v1 = vadd.f32 %v1615_v62, %v1614_v20  ;;  %v1617_v23 = vpop.f32.mrb[54].mxu0 }
 0x160   :  { %v1618_v24 = vpop.f32.mrb[55].mxu0 }
 0x161   :  { %1284 = vst.msk [vmem:[%s2311_s3 + $0x24] sm:$0xf] %vm1274_vm0, %v1433_v21  ;;  %v1091_v0 = vadd.f32 %v1616_v1, %v2209_v19  ;;  %v1619_v4 = vadd.f32 %v1618_v24, %v1617_v23 }
 0x163   :  { %v1188_v25 = vadd.f32 %v1674_v39, %v1091_v0  ;;  %v1094_v26 = vadd.f32 %v1619_v4, %v2211_v22 }
 0x165   :  { %v1434_v27 = vpack.c.bf16 %v1188_v25, %v1188_v25  ;;  %v1191_v28 = vadd.f32 %v1675_v43, %v1094_v26  ;;  %v1620_v29 = vpop.f32.mrb[56].mxu0 }
 0x166   :  { %v1621_v31 = vpop.f32.mrb[57].mxu0 }
 0x167   :  { %1285 = vst.msk [vmem:[%s2311_s3 + $0x28] sm:$0xf] %vm1274_vm0, %v1434_v27  ;;  %v1435_v32 = vpack.c.bf16 %v1191_v28, %v1191_v28  ;;  %v1622_v34 = vadd.f32 %v1621_v31, %v1620_v29  ;;  %v1623_v35 = vpop.f32.mrb[58].mxu0 }
 0x168   :  { %v1624_v36 = vpop.f32.mrb[59].mxu0 }
 0x169   :  { %1286 = vst.msk [vmem:[%s2311_s3 + $0x2c] sm:$0xf] %vm1274_vm0, %v1435_v32  ;;  %v1625_v19 = vadd.f32 %v1624_v36, %v1623_v35  ;;  %v1099_v22 = vadd.f32 %v1622_v34, %v2215_v37 }
 0x16b   :  { %v1196_v38 = vadd.f32 %v1195_v61, %v1099_v22  ;;  %v1102_v14 = vadd.f32 %v1625_v19, %v2217_v40 }
 0x16d   :  { %v1436_v39 = vpack.c.bf16 %v1196_v38, %v1196_v38  ;;  %v1199_v17 = vadd.f32 %v1198_v5, %v1102_v14  ;;  %v1626_v41 = vpop.f32.mrb[60].mxu0 }
 0x16e   :  { %v1627_v42 = vpop.f32.mrb[61].mxu0 }
 0x16f   :  { %1287 = vst.msk [vmem:[%s2311_s3 + $0x30] sm:$0xf] %vm1274_vm0, %v1436_v39  ;;  %v1437_v43 = vpack.c.bf16 %v1199_v17, %v1199_v17  ;;  %v1628_v44 = vadd.f32 %v1627_v42, %v1626_v41  ;;  %v1629_v45 = vpop.f32.mrb[62].mxu0 }
 0x170   :  { %v1630_v47 = vpop.f32.mrb[63].mxu0 }
 0x171   :  { %1288 = vst.msk [vmem:[%s2311_s3 + $0x34] sm:$0xf] %vm1274_vm0, %v1437_v43  ;;  %v1107_v37 = vadd.f32 %v1628_v44, %v2221_v56  ;;  %v1631_v40 = vadd.f32 %v1630_v47, %v1629_v45 }
 0x173   :  { %v1204_v48 = vadd.f32 %v2251_v30, %v1107_v37  ;;  %v1110_v51 = vadd.f32 %v1631_v40, %v2223_v59 }
 0x175   :  { %v1438_v52 = vpack.c.bf16 %v1204_v48, %v1204_v48  ;;  %v1207_v53 = vadd.f32 %v1679_v63, %v1110_v51 }
 0x177   :  { %1289 = vst.msk [vmem:[%s2311_s3 + $0x38] sm:$0xf] %vm1274_vm0, %v1438_v52  ;;  %v1439_v54 = vpack.c.bf16 %v1207_v53, %v1207_v53 }
 0x179   :  { %1290 = vst.msk [vmem:[%s2311_s3 + $0x3c] sm:$0xf] %vm1274_vm0, %v1439_v54 }

// kernel: munit_forward.95
= control target key start
LH: loop header
LB: loop body
LE: loop exit
PB: predicated region body
PF: predicated region fallthrough
CT: control target
= control target key end

     0   :  { %v2592_v0 = vmov 0   ;;  %vm1880_vm0 = vcmask 60416   ;;  %s3448_s1 = inlined_call_operand.vmem [shape: bf16[512,8], index: 1, kind: input, shape index: {}]   ;;  %s3449_s0 = inlined_call_operand.vmem [shape: bf16[512,512], index: 0, kind: input, shape index: {}]   ;;  %s3450_s2 = inlined_call_operand.vmem [shape: f32[1,8], index: 2, kind: input, shape index: {}]   ;;  %s3451_s3 = inlined_call_operand.vmem [shape: bf16[512,8], index: 3, kind: output, shape index: {}]  }
   0x1   :  { %1046 = vmatprep.subr.bf16.mxu1 %v2592_v0  ;;  %1335 = vmatprep.subr.bf16.mxu0 %v2592_v0  ;;  %v2367_v1 = vld [vmem:[%s3448_s1] sm:$0xff]   ;;  %v2369_v3 = vld [vmem:[%s3448_s1 + $0x8] sm:$0xff]   ;;  %v2371_v5 = vld [vmem:[%s3448_s1 + $0x10] sm:$0xff]  }
   0x2   :  { %v2368_v2 = vld [vmem:[%s3448_s1 + $0x80] sm:$0xff]   ;;  %1047 = vmatpush1.bf16.msra.mxu1 %v2367_v1  ;;  %v2370_v4 = vld [vmem:[%s3448_s1 + $0x88] sm:$0xff]   ;;  %v2372_v6 = vld [vmem:[%s3448_s1 + $0x90] sm:$0xff]  }
   0x3   :  { %1336 = vmatpush1.bf16.msra.mxu0 %v2368_v2  ;;  %1048 = vmatprep.subr.bf16.mxu1 %v2592_v0  ;;  %v2373_v7 = vld [vmem:[%s3448_s1 + $0x18] sm:$0xff]   ;;  %v2375_v9 = vld [vmem:[%s3448_s1 + $0x20] sm:$0xff]   ;;  %v2377_v11 = vld [vmem:[%s3448_s1 + $0x28] sm:$0xff]  }
   0x4   :  { %1337 = vmatprep.subr.bf16.mxu0 %v2592_v0  ;;  %v2374_v8 = vld [vmem:[%s3448_s1 + $0x98] sm:$0xff]   ;;  %v2376_v10 = vld [vmem:[%s3448_s1 + $0xa0] sm:$0xff]   ;;  %v2378_v12 = vld [vmem:[%s3448_s1 + $0xa8] sm:$0xff]  }
   0x5   :  { %v2379_v13 = vld [vmem:[%s3448_s1 + $0x30] sm:$0xff]   ;;  %v2381_v15 = vld [vmem:[%s3448_s1 + $0x38] sm:$0xff]   ;;  %v2383_v17 = vld [vmem:[%s3448_s1 + $0x40] sm:$0xff]  }
   0x6   :  { %1049 = vmatpush1.bf16.msra.mxu1 %v2369_v3  ;;  %v2380_v14 = vld [vmem:[%s3448_s1 + $0xb0] sm:$0xff]   ;;  %v2382_v16 = vld [vmem:[%s3448_s1 + $0xb8] sm:$0xff]   ;;  %v2384_v18 = vld [vmem:[%s3448_s1 + $0xc0] sm:$0xff]  }
   0x7   :  { %1338 = vmatpush1.bf16.msra.mxu0 %v2370_v4  ;;  %1050 = vmatprep.subr.bf16.mxu1 %v2592_v0  ;;  %v2401_v19 = vld [vmem:[%s3449_s0 + $0x4] ss:$16 sps:$4 sm:$0xff]   ;;  %v2385_v20 = vld [vmem:[%s3448_s1 + $0x48] sm:$0xff]   ;;  %v2389_v25 = vld [vmem:[%s3448_s1 + $0x58] sm:$0xff]  }
   0x8   :  { %1339 = vmatprep.subr.bf16.mxu0 %v2592_v0  ;;  %v2404_v21 = vld [vmem:[%s3449_s0 + $0xc] ss:$16 sps:$4 sm:$0xff]   ;;  %1078 = vmatprep.mubr.bf16.mxu1 %v2401_v19  ;;  %v2387_v23 = vld [vmem:[%s3448_s1 + $0x50] sm:$0xff]   ;;  %v2391_v27 = vld [vmem:[%s3448_s1 + $0x60] sm:$0xff]  }
   0x9   :  { %v2386_v22 = vld [vmem:[%s3448_s1 + $0xc8] sm:$0xff]   ;;  %1367 = vmatprep.mubr.bf16.mxu0 %v2404_v21  ;;  %v2388_v24 = vld [vmem:[%s3448_s1 + $0xd0] sm:$0xff]   ;;  %v2390_v26 = vld [vmem:[%s3448_s1 + $0xd8] sm:$0xff]  }
   0xa   :  { %1051 = vmatpush1.bf16.msra.mxu1 %v2371_v5  ;;  %v2392_v28 = vld [vmem:[%s3448_s1 + $0xe0] sm:$0xff]   ;;  %v2393_v29 = vld [vmem:[%s3448_s1 + $0x68] sm:$0xff]   ;;  %v2395_v31 = vld [vmem:[%s3448_s1 + $0x70] sm:$0xff]  }
   0xb   :  { %1340 = vmatpush1.bf16.msra.mxu0 %v2372_v6  ;;  %1052 = vmatprep.subr.bf16.mxu1 %v2592_v0  ;;  %v2394_v30 = vld [vmem:[%s3448_s1 + $0xe8] sm:$0xff]   ;;  %v2396_v32 = vld [vmem:[%s3448_s1 + $0xf0] sm:$0xff]   ;;  %v2397_v33 = vld [vmem:[%s3448_s1 + $0x78] sm:$0xff]  }
   0xc   :  { %1341 = vmatprep.subr.bf16.mxu0 %v2592_v0  ;;  %v2398_v34 = vld [vmem:[%s3448_s1 + $0xf8] sm:$0xff]   ;;  %v2399_v35 = vld [vmem:[%s3449_s0] ss:$16 sps:$4 sm:$0xff]   ;;  %v2405_v37 = vld [vmem:[%s3449_s0 + $0x24] ss:$16 sps:$4 sm:$0xff]  }
   0xd   :  { %v2402_v36 = vld [vmem:[%s3449_s0 + $0x8] ss:$16 sps:$4 sm:$0xff]   ;;  %v2407_v38 = vld [vmem:[%s3449_s0 + $0x2c] ss:$16 sps:$4 sm:$0xff]   ;;  %v2409_v39 = vld [vmem:[%s3449_s0 + $0x20] ss:$16 sps:$4 sm:$0xff]  }
   0xe   :  { %1053 = vmatpush1.bf16.msra.mxu1 %v2373_v7  ;;  %v2410_v40 = vld [vmem:[%s3449_s0 + $0x28] ss:$16 sps:$4 sm:$0xff]   ;;  %v2411_v41 = vld [vmem:[%s3449_s0 + $0x44] ss:$16 sps:$4 sm:$0xff]   ;;  %v2413_v42 = vld [vmem:[%s3449_s0 + $0x4c] ss:$16 sps:$4 sm:$0xff]  }
   0xf   :  { %1342 = vmatpush1.bf16.msra.mxu0 %v2374_v8  ;;  %1054 = vmatprep.subr.bf16.mxu1 %v2592_v0  ;;  %v2415_v43 = vld [vmem:[%s3449_s0 + $0x40] ss:$16 sps:$4 sm:$0xff]   ;;  %v2416_v44 = vld [vmem:[%s3449_s0 + $0x48] ss:$16 sps:$4 sm:$0xff]   ;;  %v2417_v45 = vld [vmem:[%s3449_s0 + $0x64] ss:$16 sps:$4 sm:$0xff]  }
  0x10   :  { %1343 = vmatprep.subr.bf16.mxu0 %v2592_v0  ;;  %v2419_v46 = vld [vmem:[%s3449_s0 + $0x6c] ss:$16 sps:$4 sm:$0xff]   ;;  %v2421_v47 = vld [vmem:[%s3449_s0 + $0x60] ss:$16 sps:$4 sm:$0xff]   ;;  %v2422_v48 = vld [vmem:[%s3449_s0 + $0x68] ss:$16 sps:$4 sm:$0xff]  }
  0x11   :  { %v2423_v49 = vld [vmem:[%s3449_s0 + $0x84] ss:$16 sps:$4 sm:$0xff]   ;;  %v2425_v50 = vld [vmem:[%s3449_s0 + $0x8c] ss:$16 sps:$4 sm:$0xff]   ;;  %v2427_v51 = vld [vmem:[%s3449_s0 + $0x80] ss:$16 sps:$4 sm:$0xff]  }
  0x12   :  { %1055 = vmatpush1.bf16.msra.mxu1 %v2375_v9  ;;  %v2428_v52 = vld [vmem:[%s3449_s0 + $0x88] ss:$16 sps:$4 sm:$0xff]   ;;  %v2429_v53 = vld [vmem:[%s3449_s0 + $0xa4] ss:$16 sps:$4 sm:$0xff]   ;;  %v2431_v54 = vld [vmem:[%s3449_s0 + $0xac] ss:$16 sps:$4 sm:$0xff]  }
  0x13   :  { %1344 = vmatpush1.bf16.msra.mxu0 %v2376_v10  ;;  %1056 = vmatprep.subr.bf16.mxu1 %v2592_v0  ;;  %v2433_v55 = vld [vmem:[%s3449_s0 + $0xa0] ss:$16 sps:$4 sm:$0xff]   ;;  %v2434_v56 = vld [vmem:[%s3449_s0 + $0xa8] ss:$16 sps:$4 sm:$0xff]   ;;  %v2435_v57 = vld [vmem:[%s3449_s0 + $0xc4] ss:$16 sps:$4 sm:$0xff]  }
  0x14   :  { %1345 = vmatprep.subr.bf16.mxu0 %v2592_v0  ;;  %v2437_v58 = vld [vmem:[%s3449_s0 + $0xcc] ss:$16 sps:$4 sm:$0xff]   ;;  %v2439_v59 = vld [vmem:[%s3449_s0 + $0xc0] ss:$16 sps:$4 sm:$0xff]   ;;  %v2440_v60 = vld [vmem:[%s3449_s0 + $0xc8] ss:$16 sps:$4 sm:$0xff]  }
  0x15   :  { %v2441_v61 = vld [vmem:[%s3449_s0 + $0xe4] ss:$16 sps:$4 sm:$0xff]   ;;  %v2443_v62 = vld [vmem:[%s3449_s0 + $0xec] ss:$16 sps:$4 sm:$0xff]   ;;  %v2445_v63 = vld [vmem:[%s3449_s0 + $0xe0] ss:$16 sps:$4 sm:$0xff]  }
  0x16   :  { %1057 = vmatpush1.bf16.msra.mxu1 %v2377_v11  ;;  %v2447_v1 = vld [vmem:[%s3449_s0 + $0x104] ss:$16 sps:$4 sm:$0xff]   ;;  %v2449_v2 = vld [vmem:[%s3449_s0 + $0x10c] ss:$16 sps:$4 sm:$0xff]   ;;  %v2451_v3 = vld [vmem:[%s3449_s0 + $0x100] ss:$16 sps:$4 sm:$0xff]  }
  0x17   :  { %1346 = vmatpush1.bf16.msra.mxu0 %v2378_v12  ;;  %1058 = vmatprep.subr.bf16.mxu1 %v2592_v0  ;;  %v2452_v4 = vld [vmem:[%s3449_s0 + $0x108] ss:$16 sps:$4 sm:$0xff]   ;;  %v2453_v5 = vld [vmem:[%s3449_s0 + $0x124] ss:$16 sps:$4 sm:$0xff]   ;;  %v2455_v6 = vld [vmem:[%s3449_s0 + $0x12c] ss:$16 sps:$4 sm:$0xff]  }
  0x18   :  { %1347 = vmatprep.subr.bf16.mxu0 %v2592_v0  ;;  %v2457_v7 = vld [vmem:[%s3449_s0 + $0x120] ss:$16 sps:$4 sm:$0xff]   ;;  %v2458_v8 = vld [vmem:[%s3449_s0 + $0x128] ss:$16 sps:$4 sm:$0xff]   ;;  %v2459_v9 = vld [vmem:[%s3449_s0 + $0x144] ss:$16 sps:$4 sm:$0xff]  }
  0x19   :  { %v2461_v10 = vld [vmem:[%s3449_s0 + $0x14c] ss:$16 sps:$4 sm:$0xff]   ;;  %v2463_v11 = vld [vmem:[%s3449_s0 + $0x140] ss:$16 sps:$4 sm:$0xff]   ;;  %v2464_v12 = vld [vmem:[%s3449_s0 + $0x148] ss:$16 sps:$4 sm:$0xff]  }
  0x1a   :  { %1059 = vmatpush1.bf16.msra.mxu1 %v2379_v13  ;;  %v2465_v13 = vld [vmem:[%s3449_s0 + $0x164] ss:$16 sps:$4 sm:$0xff]   ;;  %v2475_v19 = vld [vmem:[%s3449_s0 + $0x180] ss:$16 sps:$4 sm:$0xff]  }
  0x1b   :  { %1348 = vmatpush1.bf16.msra.mxu0 %v2380_v14  ;;  %1060 = vmatprep.subr.bf16.mxu1 %v2592_v0  ;;  %v2467_v14 = vld [vmem:[%s3449_s0 + $0x16c] ss:$16 sps:$4 sm:$0xff]   ;;  %v2477_v21 = vld [vmem:[%s3449_s0 + $0x1a4] ss:$16 sps:$4 sm:$0xff]  }
  0x1c   :  { %1349 = vmatprep.subr.bf16.mxu0 %v2592_v0 }
  0x1e   :  { %1061 = vmatpush1.bf16.msra.mxu1 %v2381_v15  ;;  %v2469_v15 = vld [vmem:[%s3449_s0 + $0x160] ss:$16 sps:$4 sm:$0xff]  }
  0x1f   :  { %1350 = vmatpush1.bf16.msra.mxu0 %v2382_v16  ;;  %1062 = vmatprep.subr.bf16.mxu1 %v2592_v0  ;;  %v2470_v16 = vld [vmem:[%s3449_s0 + $0x168] ss:$16 sps:$4 sm:$0xff]  }
  0x20   :  { %1351 = vmatprep.subr.bf16.mxu0 %v2592_v0 }
  0x22   :  { %1063 = vmatpush1.bf16.msra.mxu1 %v2383_v17  ;;  %v2471_v17 = vld [vmem:[%s3449_s0 + $0x184] ss:$16 sps:$4 sm:$0xff]  }
  0x23   :  { %1352 = vmatpush1.bf16.msra.mxu0 %v2384_v18  ;;  %1064 = vmatprep.subr.bf16.mxu1 %v2592_v0  ;;  %v2473_v18 = vld [vmem:[%s3449_s0 + $0x18c] ss:$16 sps:$4 sm:$0xff]  }
  0x24   :  { %1353 = vmatprep.subr.bf16.mxu0 %v2592_v0 }
  0x26   :  { %1065 = vmatpush1.bf16.msra.mxu1 %v2385_v20  ;;  %v2476_v20 = vld [vmem:[%s3449_s0 + $0x188] ss:$16 sps:$4 sm:$0xff]  }
  0x27   :  { %1354 = vmatpush1.bf16.msra.mxu0 %v2386_v22  ;;  %1066 = vmatprep.subr.bf16.mxu1 %v2592_v0  ;;  %v2479_v22 = vld [vmem:[%s3449_s0 + $0x1ac] ss:$16 sps:$4 sm:$0xff]  }
  0x28   :  { %1355 = vmatprep.subr.bf16.mxu0 %v2592_v0 }
  0x2a   :  { %1067 = vmatpush1.bf16.msra.mxu1 %v2387_v23  ;;  %v2481_v23 = vld [vmem:[%s3449_s0 + $0x1a0] ss:$16 sps:$4 sm:$0xff]  }
  0x2b   :  { %1356 = vmatpush1.bf16.msra.mxu0 %v2388_v24  ;;  %1068 = vmatprep.subr.bf16.mxu1 %v2592_v0  ;;  %v2482_v24 = vld [vmem:[%s3449_s0 + $0x1a8] ss:$16 sps:$4 sm:$0xff]  }
  0x2c   :  { %1357 = vmatprep.subr.bf16.mxu0 %v2592_v0 }
  0x2e   :  { %1069 = vmatpush1.bf16.msra.mxu1 %v2389_v25  ;;  %v2483_v25 = vld [vmem:[%s3449_s0 + $0x1c4] ss:$16 sps:$4 sm:$0xff]  }
  0x2f   :  { %1358 = vmatpush1.bf16.msra.mxu0 %v2390_v26  ;;  %1070 = vmatprep.subr.bf16.mxu1 %v2592_v0  ;;  %v2485_v26 = vld [vmem:[%s3449_s0 + $0x1cc] ss:$16 sps:$4 sm:$0xff]  }
  0x30   :  { %1359 = vmatprep.subr.bf16.mxu0 %v2592_v0 }
  0x32   :  { %1071 = vmatpush1.bf16.msra.mxu1 %v2391_v27  ;;  %v2487_v27 = vld [vmem:[%s3449_s0 + $0x1c0] ss:$16 sps:$4 sm:$0xff]  }
  0x33   :  { %1360 = vmatpush1.bf16.msra.mxu0 %v2392_v28  ;;  %1072 = vmatprep.subr.bf16.mxu1 %v2592_v0  ;;  %v2488_v28 = vld [vmem:[%s3449_s0 + $0x1c8] ss:$16 sps:$4 sm:$0xff]  }
  0x34   :  { %1361 = vmatprep.subr.bf16.mxu0 %v2592_v0 }
  0x36   :  { %1073 = vmatpush1.bf16.msra.mxu1 %v2393_v29  ;;  %v2489_v29 = vld [vmem:[%s3449_s0 + $0x1e4] ss:$16 sps:$4 sm:$0xff]  }
  0x37   :  { %1362 = vmatpush1.bf16.msra.mxu0 %v2394_v30  ;;  %1074 = vmatprep.subr.bf16.mxu1 %v2592_v0  ;;  %v2491_v30 = vld [vmem:[%s3449_s0 + $0x1ec] ss:$16 sps:$4 sm:$0xff]  }
  0x38   :  { %1363 = vmatprep.subr.bf16.mxu0 %v2592_v0 }
  0x3a   :  { %1075 = vmatpush1.bf16.msra.mxu1 %v2395_v31  ;;  %v2493_v31 = vld [vmem:[%s3449_s0 + $0x1e0] ss:$16 sps:$4 sm:$0xff]  }
  0x3b   :  { %1364 = vmatpush1.bf16.msra.mxu0 %v2396_v32  ;;  %1076 = vmatprep.subr.bf16.mxu1 %v2592_v0  ;;  %v2494_v32 = vld [vmem:[%s3449_s0 + $0x1e8] ss:$16 sps:$4 sm:$0xff]  }
  0x3c   :  { %1365 = vmatprep.subr.bf16.mxu0 %v2592_v0  ;;  %v2446_v0 = vld [vmem:[%s3449_s0 + $0xe8] ss:$16 sps:$4 sm:$0xff]  }
  0x3e   :  { %1077 = vmatpush1.bf16.msra.mxu1 %v2397_v33  ;;  %v2495_v33 = vld [vmem:[%s3449_s0 + $0x204] ss:$16 sps:$4 sm:$0xff]  }
  0x3f   :  { %1366 = vmatpush1.bf16.msra.mxu0 %v2398_v34  ;;  %v2497_v34 = vld [vmem:[%s3449_s0 + $0x20c] ss:$16 sps:$4 sm:$0xff]  }
  0x41   :  { %1079 = vmatmul.mubr.bf16.vlgmr.msra.gmra.mrb[0].mxu1 %v2399_v35  ;;  %v2499_v35 = vld [vmem:[%s3449_s0 + $0x200] ss:$16 sps:$4 sm:$0xff]  }
  0x42   :  { %1368 = vmatmul.mubr.bf16.vlgmr.msra.gmra.mrb[0].mxu0 %v2402_v36  ;;  %1086 = vmatprep.mubr.bf16.mxu1 %v2405_v37  ;;  %v2500_v36 = vld [vmem:[%s3449_s0 + $0x208] ss:$16 sps:$4 sm:$0xff]   ;;  %v2501_v37 = vld [vmem:[%s3449_s0 + $0x224] ss:$16 sps:$4 sm:$0xff]  }
  0x43   :  { %1375 = vmatprep.mubr.bf16.mxu0 %v2407_v38  ;;  %v2503_v38 = vld [vmem:[%s3449_s0 + $0x22c] ss:$16 sps:$4 sm:$0xff]  }
  0x49   :  { %1087 = vmatmul.mubr.bf16.gmra.mrb[4].mxu1 %v2409_v39  ;;  %v2505_v39 = vld [vmem:[%s3449_s0 + $0x220] ss:$16 sps:$4 sm:$0xff]  }
  0x4a   :  { %1376 = vmatmul.mubr.bf16.gmra.mrb[4].mxu0 %v2410_v40  ;;  %1094 = vmatprep.mubr.bf16.mxu1 %v2411_v41  ;;  %v2506_v40 = vld [vmem:[%s3449_s0 + $0x228] ss:$16 sps:$4 sm:$0xff]   ;;  %v2507_v41 = vld [vmem:[%s3449_s0 + $0x244] ss:$16 sps:$4 sm:$0xff]  }
  0x4b   :  { %1383 = vmatprep.mubr.bf16.mxu0 %v2413_v42  ;;  %v2509_v42 = vld [vmem:[%s3449_s0 + $0x24c] ss:$16 sps:$4 sm:$0xff]  }
  0x51   :  { %1095 = vmatmul.mubr.bf16.gmra.mrb[8].mxu1 %v2415_v43  ;;  %v2511_v43 = vld [vmem:[%s3449_s0 + $0x240] ss:$16 sps:$4 sm:$0xff]  }
  0x52   :  { %1384 = vmatmul.mubr.bf16.gmra.mrb[8].mxu0 %v2416_v44  ;;  %1102 = vmatprep.mubr.bf16.mxu1 %v2417_v45  ;;  %v2512_v44 = vld [vmem:[%s3449_s0 + $0x248] ss:$16 sps:$4 sm:$0xff]   ;;  %v2513_v45 = vld [vmem:[%s3449_s0 + $0x264] ss:$16 sps:$4 sm:$0xff]  }
  0x53   :  { %1391 = vmatprep.mubr.bf16.mxu0 %v2419_v46  ;;  %v2515_v46 = vld [vmem:[%s3449_s0 + $0x26c] ss:$16 sps:$4 sm:$0xff]  }
  0x59   :  { %1103 = vmatmul.mubr.bf16.gmra.mrb[12].mxu1 %v2421_v47  ;;  %v2517_v47 = vld [vmem:[%s3449_s0 + $0x260] ss:$16 sps:$4 sm:$0xff]  }
  0x5a   :  { %1392 = vmatmul.mubr.bf16.gmra.mrb[12].mxu0 %v2422_v48  ;;  %1110 = vmatprep.mubr.bf16.mxu1 %v2423_v49  ;;  %v2518_v48 = vld [vmem:[%s3449_s0 + $0x268] ss:$16 sps:$4 sm:$0xff]   ;;  %v2519_v49 = vld [vmem:[%s3449_s0 + $0x284] ss:$16 sps:$4 sm:$0xff]  }
  0x5b   :  { %1399 = vmatprep.mubr.bf16.mxu0 %v2425_v50  ;;  %v2521_v50 = vld [vmem:[%s3449_s0 + $0x28c] ss:$16 sps:$4 sm:$0xff]  }
  0x61   :  { %1111 = vmatmul.mubr.bf16.gmra.mrb[16].mxu1 %v2427_v51  ;;  %v2523_v51 = vld [vmem:[%s3449_s0 + $0x280] ss:$16 sps:$4 sm:$0xff]  }
  0x62   :  { %1400 = vmatmul.mubr.bf16.gmra.mrb[16].mxu0 %v2428_v52  ;;  %1118 = vmatprep.mubr.bf16.mxu1 %v2429_v53  ;;  %v2524_v52 = vld [vmem:[%s3449_s0 + $0x288] ss:$16 sps:$4 sm:$0xff]   ;;  %v2525_v53 = vld [vmem:[%s3449_s0 + $0x2a4] ss:$16 sps:$4 sm:$0xff]  }
  0x63   :  { %1407 = vmatprep.mubr.bf16.mxu0 %v2431_v54  ;;  %v2527_v54 = vld [vmem:[%s3449_s0 + $0x2ac] ss:$16 sps:$4 sm:$0xff]  }
  0x69   :  { %1119 = vmatmul.mubr.bf16.gmra.mrb[20].mxu1 %v2433_v55  ;;  %v2529_v55 = vld [vmem:[%s3449_s0 + $0x2a0] ss:$16 sps:$4 sm:$0xff]  }
  0x6a   :  { %1408 = vmatmul.mubr.bf16.gmra.mrb[20].mxu0 %v2434_v56  ;;  %1126 = vmatprep.mubr.bf16.mxu1 %v2435_v57  ;;  %v2530_v56 = vld [vmem:[%s3449_s0 + $0x2a8] ss:$16 sps:$4 sm:$0xff]   ;;  %v2531_v57 = vld [vmem:[%s3449_s0 + $0x2c4] ss:$16 sps:$4 sm:$0xff]  }
  0x6b   :  { %1415 = vmatprep.mubr.bf16.mxu0 %v2437_v58  ;;  %v2533_v58 = vld [vmem:[%s3449_s0 + $0x2cc] ss:$16 sps:$4 sm:$0xff]  }
  0x71   :  { %1127 = vmatmul.mubr.bf16.gmra.mrb[24].mxu1 %v2439_v59  ;;  %v2535_v59 = vld [vmem:[%s3449_s0 + $0x2c0] ss:$16 sps:$4 sm:$0xff]  }
  0x72   :  { %1416 = vmatmul.mubr.bf16.gmra.mrb[24].mxu0 %v2440_v60  ;;  %1134 = vmatprep.mubr.bf16.mxu1 %v2441_v61  ;;  %v2536_v60 = vld [vmem:[%s3449_s0 + $0x2c8] ss:$16 sps:$4 sm:$0xff]   ;;  %v2537_v61 = vld [vmem:[%s3449_s0 + $0x2e4] ss:$16 sps:$4 sm:$0xff]  }
  0x73   :  { %1423 = vmatprep.mubr.bf16.mxu0 %v2443_v62  ;;  %v2539_v62 = vld [vmem:[%s3449_s0 + $0x2ec] ss:$16 sps:$4 sm:$0xff]  }
  0x79   :  { %1135 = vmatmul.mubr.bf16.gmra.mrb[28].mxu1 %v2445_v63  ;;  %v2541_v63 = vld [vmem:[%s3449_s0 + $0x2e0] ss:$16 sps:$4 sm:$0xff]  }
  0x7a   :  { %1424 = vmatmul.mubr.bf16.gmra.mrb[28].mxu0 %v2446_v0  ;;  %1142 = vmatprep.mubr.bf16.mxu1 %v2447_v1  ;;  %v2542_v0 = vld [vmem:[%s3449_s0 + $0x2e8] ss:$16 sps:$4 sm:$0xff]   ;;  %v2543_v1 = vld [vmem:[%s3449_s0 + $0x304] ss:$16 sps:$4 sm:$0xff]  }
  0x7b   :  { %1431 = vmatprep.mubr.bf16.mxu0 %v2449_v2  ;;  %v2545_v2 = vld [vmem:[%s3449_s0 + $0x30c] ss:$16 sps:$4 sm:$0xff]  }
  0x81   :  { %1143 = vmatmul.mubr.bf16.gmra.mrb[32].mxu1 %v2451_v3  ;;  %v2547_v3 = vld [vmem:[%s3449_s0 + $0x300] ss:$16 sps:$4 sm:$0xff]  }
  0x82   :  { %1432 = vmatmul.mubr.bf16.gmra.mrb[32].mxu0 %v2452_v4  ;;  %1150 = vmatprep.mubr.bf16.mxu1 %v2453_v5  ;;  %v2548_v4 = vld [vmem:[%s3449_s0 + $0x308] ss:$16 sps:$4 sm:$0xff]   ;;  %v2549_v5 = vld [vmem:[%s3449_s0 + $0x324] ss:$16 sps:$4 sm:$0xff]  }
  0x83   :  { %1439 = vmatprep.mubr.bf16.mxu0 %v2455_v6  ;;  %v2551_v6 = vld [vmem:[%s3449_s0 + $0x32c] ss:$16 sps:$4 sm:$0xff]  }
  0x89   :  { %1151 = vmatmul.mubr.bf16.gmra.mrb[36].mxu1 %v2457_v7  ;;  %v2553_v7 = vld [vmem:[%s3449_s0 + $0x320] ss:$16 sps:$4 sm:$0xff]  }
  0x8a   :  { %1440 = vmatmul.mubr.bf16.gmra.mrb[36].mxu0 %v2458_v8  ;;  %1158 = vmatprep.mubr.bf16.mxu1 %v2459_v9  ;;  %v2554_v8 = vld [vmem:[%s3449_s0 + $0x328] ss:$16 sps:$4 sm:$0xff]   ;;  %v2555_v9 = vld [vmem:[%s3449_s0 + $0x344] ss:$16 sps:$4 sm:$0xff]  }
  0x8b   :  { %1447 = vmatprep.mubr.bf16.mxu0 %v2461_v10  ;;  %v2557_v10 = vld [vmem:[%s3449_s0 + $0x34c] ss:$16 sps:$4 sm:$0xff]  }
  0x91   :  { %1159 = vmatmul.mubr.bf16.gmra.mrb[40].mxu1 %v2463_v11  ;;  %v2559_v11 = vld [vmem:[%s3449_s0 + $0x340] ss:$16 sps:$4 sm:$0xff]  }
  0x92   :  { %1448 = vmatmul.mubr.bf16.gmra.mrb[40].mxu0 %v2464_v12  ;;  %1166 = vmatprep.mubr.bf16.mxu1 %v2465_v13  ;;  %v2560_v12 = vld [vmem:[%s3449_s0 + $0x348] ss:$16 sps:$4 sm:$0xff]   ;;  %v2561_v13 = vld [vmem:[%s3449_s0 + $0x364] ss:$16 sps:$4 sm:$0xff]  }
  0x93   :  { %1455 = vmatprep.mubr.bf16.mxu0 %v2467_v14  ;;  %v2563_v14 = vld [vmem:[%s3449_s0 + $0x36c] ss:$16 sps:$4 sm:$0xff]  }
  0x99   :  { %1167 = vmatmul.mubr.bf16.gmra.mrb[44].mxu1 %v2469_v15  ;;  %v3074_v15 = vld [vmem:[%s3450_s2] ss:$0 sm:$0xff] }
  0x9a   :  { %1456 = vmatmul.mubr.bf16.gmra.mrb[44].mxu0 %v2470_v16  ;;  %1174 = vmatprep.mubr.bf16.mxu1 %v2471_v17 }
  0x9b   :  { %1463 = vmatprep.mubr.bf16.mxu0 %v2473_v18 }
  0xa1   :  { %1175 = vmatmul.mubr.bf16.gmra.mrb[48].mxu1 %v2475_v19 }
  0xa2   :  { %1464 = vmatmul.mubr.bf16.gmra.mrb[48].mxu0 %v2476_v20  ;;  %1182 = vmatprep.mubr.bf16.mxu1 %v2477_v21  ;;  %v2565_v20 = vld [vmem:[%s3449_s0 + $0x360] ss:$16 sps:$4 sm:$0xff]  }
  0xa3   :  { %1471 = vmatprep.mubr.bf16.mxu0 %v2479_v22 }
  0xa9   :  { %1183 = vmatmul.mubr.bf16.gmra.mrb[52].mxu1 %v2481_v23  ;;  %v2566_v23 = vld [vmem:[%s3449_s0 + $0x368] ss:$16 sps:$4 sm:$0xff]  }
  0xaa   :  { %1472 = vmatmul.mubr.bf16.gmra.mrb[52].mxu0 %v2482_v24  ;;  %1190 = vmatprep.mubr.bf16.mxu1 %v2483_v25  ;;  %v2567_v24 = vld [vmem:[%s3449_s0 + $0x384] ss:$16 sps:$4 sm:$0xff]  }
  0xab   :  { %1479 = vmatprep.mubr.bf16.mxu0 %v2485_v26 }
  0xb1   :  { %1191 = vmatmul.mubr.bf16.gmra.mrb[56].mxu1 %v2487_v27 }
  0xb2   :  { %1480 = vmatmul.mubr.bf16.gmra.mrb[56].mxu0 %v2488_v28  ;;  %1198 = vmatprep.mubr.bf16.mxu1 %v2489_v29  ;;  %v2569_v29 = vld [vmem:[%s3449_s0 + $0x38c] ss:$16 sps:$4 sm:$0xff]  }
  0xb3   :  { %1487 = vmatprep.mubr.bf16.mxu0 %v2491_v30 }
  0xb9   :  { %1199 = vmatmul.mubr.bf16.gmra.mrb[60].mxu1 %v2493_v31 }
  0xba   :  { %1488 = vmatmul.mubr.bf16.gmra.mrb[60].mxu0 %v2494_v32  ;;  %1206 = vmatprep.mubr.bf16.mxu1 %v2495_v33 }
  0xbb   :  { %1495 = vmatprep.mubr.bf16.mxu0 %v2497_v34 }
  0xc1   :  { %1207 = vmatmul.mubr.bf16.gmra.mrb[64].mxu1 %v2499_v35 }
  0xc2   :  { %1496 = vmatmul.mubr.bf16.gmra.mrb[64].mxu0 %v2500_v36  ;;  %1214 = vmatprep.mubr.bf16.mxu1 %v2501_v37 }
  0xc3   :  { %1503 = vmatprep.mubr.bf16.mxu0 %v2503_v38  ;;  %v2571_v38 = vld [vmem:[%s3449_s0 + $0x380] ss:$16 sps:$4 sm:$0xff]  }
  0xc9   :  { %1215 = vmatmul.mubr.bf16.gmra.mrb[68].mxu1 %v2505_v39 }
  0xca   :  { %1504 = vmatmul.mubr.bf16.gmra.mrb[68].mxu0 %v2506_v40  ;;  %1222 = vmatprep.mubr.bf16.mxu1 %v2507_v41  ;;  %v2572_v41 = vld [vmem:[%s3449_s0 + $0x388] ss:$16 sps:$4 sm:$0xff]  }
  0xcb   :  { %1511 = vmatprep.mubr.bf16.mxu0 %v2509_v42  ;;  %v2573_v42 = vld [vmem:[%s3449_s0 + $0x3a4] ss:$16 sps:$4 sm:$0xff]  }
  0xd1   :  { %1223 = vmatmul.mubr.bf16.gmra.mrb[72].mxu1 %v2511_v43 }
  0xd2   :  { %1512 = vmatmul.mubr.bf16.gmra.mrb[72].mxu0 %v2512_v44  ;;  %1230 = vmatprep.mubr.bf16.mxu1 %v2513_v45 }
  0xd3   :  { %1519 = vmatprep.mubr.bf16.mxu0 %v2515_v46 }
  0xd9   :  { %1231 = vmatmul.mubr.bf16.gmra.mrb[76].mxu1 %v2517_v47  ;;  %v2575_v47 = vld [vmem:[%s3449_s0 + $0x3ac] ss:$16 sps:$4 sm:$0xff]  }
  0xda   :  { %1520 = vmatmul.mubr.bf16.gmra.mrb[76].mxu0 %v2518_v48  ;;  %1238 = vmatprep.mubr.bf16.mxu1 %v2519_v49 }
  0xdb   :  { %1527 = vmatprep.mubr.bf16.mxu0 %v2521_v50 }
  0xe1   :  { %1239 = vmatmul.mubr.bf16.gmra.mrb[80].mxu1 %v2523_v51 }
  0xe2   :  { %1528 = vmatmul.mubr.bf16.gmra.mrb[80].mxu0 %v2524_v52  ;;  %1246 = vmatprep.mubr.bf16.mxu1 %v2525_v53 }
  0xe3   :  { %1535 = vmatprep.mubr.bf16.mxu0 %v2527_v54 }
  0xe9   :  { %1247 = vmatmul.mubr.bf16.gmra.mrb[84].mxu1 %v2529_v55 }
  0xea   :  { %1536 = vmatmul.mubr.bf16.gmra.mrb[84].mxu0 %v2530_v56  ;;  %1254 = vmatprep.mubr.bf16.mxu1 %v2531_v57  ;;  %v2577_v56 = vld [vmem:[%s3449_s0 + $0x3a0] ss:$16 sps:$4 sm:$0xff]  }
  0xeb   :  { %1543 = vmatprep.mubr.bf16.mxu0 %v2533_v58 }
  0xf1   :  { %1255 = vmatmul.mubr.bf16.gmra.mrb[88].mxu1 %v2535_v59  ;;  %v2578_v59 = vld [vmem:[%s3449_s0 + $0x3a8] ss:$16 sps:$4 sm:$0xff]  }
  0xf2   :  { %1544 = vmatmul.mubr.bf16.gmra.mrb[88].mxu0 %v2536_v60  ;;  %1262 = vmatprep.mubr.bf16.mxu1 %v2537_v61  ;;  %v2579_v60 = vld [vmem:[%s3449_s0 + $0x3c4] ss:$16 sps:$4 sm:$0xff]  }
  0xf3   :  { %1551 = vmatprep.mubr.bf16.mxu0 %v2539_v62 }
  0xf9   :  { %1263 = vmatmul.mubr.bf16.gmra.mrb[92].mxu1 %v2541_v63 }
  0xfa   :  { %1552 = vmatmul.mubr.bf16.gmra.mrb[92].mxu0 %v2542_v0  ;;  %1270 = vmatprep.mubr.bf16.mxu1 %v2543_v1  ;;  %v2581_v1 = vld [vmem:[%s3449_s0 + $0x3cc] ss:$16 sps:$4 sm:$0xff]  }
  0xfb   :  { %1559 = vmatprep.mubr.bf16.mxu0 %v2545_v2 }
 0x101   :  { %1271 = vmatmul.mubr.bf16.gmra.mrb[96].mxu1 %v2547_v3 }
 0x102   :  { %1560 = vmatmul.mubr.bf16.gmra.mrb[96].mxu0 %v2548_v4  ;;  %1278 = vmatprep.mubr.bf16.mxu1 %v2549_v5 }
 0x103   :  { %1567 = vmatprep.mubr.bf16.mxu0 %v2551_v6 }
 0x109   :  { %1279 = vmatmul.mubr.bf16.gmra.mrb[100].mxu1 %v2553_v7 }
 0x10a   :  { %1568 = vmatmul.mubr.bf16.gmra.mrb[100].mxu0 %v2554_v8  ;;  %1286 = vmatprep.mubr.bf16.mxu1 %v2555_v9 }
 0x10b   :  { %1575 = vmatprep.mubr.bf16.mxu0 %v2557_v10  ;;  %v2583_v10 = vld [vmem:[%s3449_s0 + $0x3c0] ss:$16 sps:$4 sm:$0xff]  }
 0x111   :  { %1287 = vmatmul.mubr.bf16.gmra.mrb[104].mxu1 %v2559_v11 }
 0x112   :  { %1576 = vmatmul.mubr.bf16.gmra.mrb[104].mxu0 %v2560_v12  ;;  %1294 = vmatprep.mubr.bf16.mxu1 %v2561_v13  ;;  %v2584_v13 = vld [vmem:[%s3449_s0 + $0x3c8] ss:$16 sps:$4 sm:$0xff]  }
 0x113   :  { %1583 = vmatprep.mubr.bf16.mxu0 %v2563_v14  ;;  %v2585_v14 = vld [vmem:[%s3449_s0 + $0x3e4] ss:$16 sps:$4 sm:$0xff]  }
 0x114   :  { %v1080_v16 = vpop.f32.mrb[0].mxu1 }
 0x115   :  { %v1081_v17 = vadd.f32 %v3074_v15, %v1080_v16  ;;  %v1369_v18 = vpop.f32.mrb[0].mxu0  ;;  %v1082_v19 = vpop.f32.mrb[1].mxu1 }
 0x116   :  { %v1371_v21 = vpop.f32.mrb[1].mxu0  ;;  %v1083_v22 = vpop.f32.mrb[2].mxu1 }
 0x117   :  { %v1370_v25 = vadd.f32 %v1369_v18, %v1081_v17  ;;  %v1084_v26 = vadd.f32 %v3074_v15, %v1083_v22  ;;  %v1372_v27 = vpop.f32.mrb[2].mxu0  ;;  %v1085_v28 = vpop.f32.mrb[3].mxu1 }
 0x118   :  { %v1374_v30 = vpop.f32.mrb[3].mxu0 }
 0x119   :  { %v2174_v31 = vpack.c.bf16 %v1370_v25, %v1370_v25  ;;  %v1373_v32 = vadd.f32 %v1372_v27, %v1084_v26  ;;  %1295 = vmatmul.mubr.bf16.gmra.mrb[108].mxu1 %v2565_v20  ;;  %v2587_v20 = vld [vmem:[%s3449_s0 + $0x3ec] ss:$16 sps:$4 sm:$0xff]  }
 0x11a   :  { %1584 = vmatmul.mubr.bf16.gmra.mrb[108].mxu0 %v2566_v23  ;;  %1302 = vmatprep.mubr.bf16.mxu1 %v2567_v24 }
 0x11b   :  { %1881 = vst.msk [vmem:[%s3451_s3] sm:$0xf] %vm1880_vm0, %v2174_v31  ;;  %v2175_v33 = vpack.c.bf16 %v1373_v32, %v1373_v32  ;;  %1591 = vmatprep.mubr.bf16.mxu0 %v2569_v29  ;;  %v2589_v29 = vld [vmem:[%s3449_s0 + $0x3e0] ss:$16 sps:$4 sm:$0xff]   ;;  %v2590_v32 = vld [vmem:[%s3449_s0 + $0x3e8] ss:$16 sps:$4 sm:$0xff]  }
 0x11c   :  { %v1088_v34 = vpop.f32.mrb[4].mxu1 }
 0x11d   :  { %1882 = vst.msk [vmem:[%s3451_s3 + $0x4] sm:$0xf] %vm1880_vm0, %v2175_v33  ;;  %v1089_v35 = vadd.f32 %v3074_v15, %v1088_v34  ;;  %v1377_v36 = vpop.f32.mrb[4].mxu0  ;;  %v1090_v37 = vpop.f32.mrb[5].mxu1 }
 0x11e   :  { %v1379_v39 = vpop.f32.mrb[5].mxu0  ;;  %v1091_v40 = vpop.f32.mrb[6].mxu1 }
 0x11f   :  { %v1378_v43 = vadd.f32 %v1377_v36, %v1089_v35  ;;  %v1092_v44 = vadd.f32 %v3074_v15, %v1091_v40  ;;  %v1380_v45 = vpop.f32.mrb[6].mxu0  ;;  %v1093_v46 = vpop.f32.mrb[7].mxu1 }
 0x120   :  { %v1382_v48 = vpop.f32.mrb[7].mxu0 }
 0x121   :  { %v2176_v49 = vpack.c.bf16 %v1378_v43, %v1378_v43  ;;  %v1381_v50 = vadd.f32 %v1380_v45, %v1092_v44  ;;  %1303 = vmatmul.mubr.bf16.gmra.mrb[112].mxu1 %v2571_v38 }
 0x122   :  { %1592 = vmatmul.mubr.bf16.gmra.mrb[112].mxu0 %v2572_v41  ;;  %1310 = vmatprep.mubr.bf16.mxu1 %v2573_v42 }
 0x123   :  { %1883 = vst.msk [vmem:[%s3451_s3 + $0x8] sm:$0xf] %vm1880_vm0, %v2176_v49  ;;  %v2177_v51 = vpack.c.bf16 %v1381_v50, %v1381_v50  ;;  %1599 = vmatprep.mubr.bf16.mxu0 %v2575_v47 }
 0x124   :  { %v1096_v52 = vpop.f32.mrb[8].mxu1 }
 0x125   :  { %1884 = vst.msk [vmem:[%s3451_s3 + $0xc] sm:$0xf] %vm1880_vm0, %v2177_v51  ;;  %v1097_v53 = vadd.f32 %v3074_v15, %v1096_v52  ;;  %v1385_v54 = vpop.f32.mrb[8].mxu0  ;;  %v1098_v55 = vpop.f32.mrb[9].mxu1 }
 0x126   :  { %v1387_v57 = vpop.f32.mrb[9].mxu0  ;;  %v1099_v58 = vpop.f32.mrb[10].mxu1 }
 0x127   :  { %v1386_v61 = vadd.f32 %v1385_v54, %v1097_v53  ;;  %v1100_v62 = vadd.f32 %v3074_v15, %v1099_v58  ;;  %v1388_v63 = vpop.f32.mrb[10].mxu0  ;;  %v1101_v0 = vpop.f32.mrb[11].mxu1 }
 0x128   :  { %v1390_v2 = vpop.f32.mrb[11].mxu0 }
 0x129   :  { %v2178_v3 = vpack.c.bf16 %v1386_v61, %v1386_v61  ;;  %v1389_v4 = vadd.f32 %v1388_v63, %v1100_v62  ;;  %1311 = vmatmul.mubr.bf16.gmra.mrb[116].mxu1 %v2577_v56 }
 0x12a   :  { %1600 = vmatmul.mubr.bf16.gmra.mrb[116].mxu0 %v2578_v59  ;;  %1318 = vmatprep.mubr.bf16.mxu1 %v2579_v60 }
 0x12b   :  { %1885 = vst.msk [vmem:[%s3451_s3 + $0x10] sm:$0xf] %vm1880_vm0, %v2178_v3  ;;  %v2179_v5 = vpack.c.bf16 %v1389_v4, %v1389_v4  ;;  %1607 = vmatprep.mubr.bf16.mxu0 %v2581_v1 }
 0x12c   :  { %v1104_v6 = vpop.f32.mrb[12].mxu1 }
 0x12d   :  { %1886 = vst.msk [vmem:[%s3451_s3 + $0x14] sm:$0xf] %vm1880_vm0, %v2179_v5  ;;  %v1105_v7 = vadd.f32 %v3074_v15, %v1104_v6  ;;  %v1393_v8 = vpop.f32.mrb[12].mxu0  ;;  %v1106_v9 = vpop.f32.mrb[13].mxu1 }
 0x12e   :  { %v1395_v11 = vpop.f32.mrb[13].mxu0  ;;  %v1107_v12 = vpop.f32.mrb[14].mxu1 }
 0x12f   :  { %v1394_v16 = vadd.f32 %v1393_v8, %v1105_v7  ;;  %v1108_v17 = vadd.f32 %v3074_v15, %v1107_v12  ;;  %v1396_v18 = vpop.f32.mrb[14].mxu0  ;;  %v1109_v19 = vpop.f32.mrb[15].mxu1 }
 0x130   :  { %v1398_v21 = vpop.f32.mrb[15].mxu0 }
 0x131   :  { %v2180_v22 = vpack.c.bf16 %v1394_v16, %v1394_v16  ;;  %v1397_v23 = vadd.f32 %v1396_v18, %v1108_v17  ;;  %1319 = vmatmul.mubr.bf16.gmra.mrb[120].mxu1 %v2583_v10 }
 0x132   :  { %1608 = vmatmul.mubr.bf16.gmra.mrb[120].mxu0 %v2584_v13  ;;  %1326 = vmatprep.mubr.bf16.mxu1 %v2585_v14 }
 0x133   :  { %1887 = vst.msk [vmem:[%s3451_s3 + $0x18] sm:$0xf] %vm1880_vm0, %v2180_v22  ;;  %v2181_v24 = vpack.c.bf16 %v1397_v23, %v1397_v23  ;;  %1615 = vmatprep.mubr.bf16.mxu0 %v2587_v20 }
 0x134   :  { %v1112_v25 = vpop.f32.mrb[16].mxu1 }
 0x135   :  { %1888 = vst.msk [vmem:[%s3451_s3 + $0x1c] sm:$0xf] %vm1880_vm0, %v2181_v24  ;;  %v1113_v26 = vadd.f32 %v3074_v15, %v1112_v25  ;;  %v1401_v27 = vpop.f32.mrb[16].mxu0  ;;  %v1114_v28 = vpop.f32.mrb[17].mxu1 }
 0x136   :  { %v1403_v30 = vpop.f32.mrb[17].mxu0  ;;  %v1115_v31 = vpop.f32.mrb[18].mxu1 }
 0x137   :  { %v1402_v33 = vadd.f32 %v1401_v27, %v1113_v26  ;;  %v1116_v34 = vadd.f32 %v3074_v15, %v1115_v31  ;;  %v1404_v35 = vpop.f32.mrb[18].mxu0  ;;  %v1117_v36 = vpop.f32.mrb[19].mxu1 }
 0x138   :  { %v1406_v37 = vpop.f32.mrb[19].mxu0 }
 0x139   :  { %v2182_v38 = vpack.c.bf16 %v1402_v33, %v1402_v33  ;;  %v1405_v39 = vadd.f32 %v1404_v35, %v1116_v34  ;;  %1327 = vmatmul.mubr.bf16.gmra.mrb[124].mxu1 %v2589_v29 }
 0x13a   :  { %1616 = vmatmul.mubr.bf16.gmra.mrb[124].mxu0 %v2590_v32 }
 0x13b   :  { %1889 = vst.msk [vmem:[%s3451_s3 + $0x20] sm:$0xf] %vm1880_vm0, %v2182_v38  ;;  %v2183_v40 = vpack.c.bf16 %v1405_v39, %v1405_v39 }
 0x13c   :  { %v1120_v41 = vpop.f32.mrb[20].mxu1 }
 0x13d   :  { %1890 = vst.msk [vmem:[%s3451_s3 + $0x24] sm:$0xf] %vm1880_vm0, %v2183_v40  ;;  %v1121_v42 = vadd.f32 %v3074_v15, %v1120_v41  ;;  %v1409_v43 = vpop.f32.mrb[20].mxu0  ;;  %v1122_v44 = vpop.f32.mrb[21].mxu1 }
 0x13e   :  { %v1411_v45 = vpop.f32.mrb[21].mxu0  ;;  %v1123_v46 = vpop.f32.mrb[22].mxu1 }
 0x13f   :  { %v1410_v47 = vadd.f32 %v1409_v43, %v1121_v42  ;;  %v1124_v48 = vadd.f32 %v3074_v15, %v1123_v46  ;;  %v1412_v49 = vpop.f32.mrb[22].mxu0  ;;  %v1125_v50 = vpop.f32.mrb[23].mxu1 }
 0x140   :  { %v1414_v51 = vpop.f32.mrb[23].mxu0 }
 0x141   :  { %v2184_v52 = vpack.c.bf16 %v1410_v47, %v1410_v47  ;;  %v1413_v53 = vadd.f32 %v1412_v49, %v1124_v48 }
 0x143   :  { %1891 = vst.msk [vmem:[%s3451_s3 + $0x28] sm:$0xf] %vm1880_vm0, %v2184_v52  ;;  %v2185_v54 = vpack.c.bf16 %v1413_v53, %v1413_v53 }
 0x144   :  { %v1128_v55 = vpop.f32.mrb[24].mxu1 }
 0x145   :  { %1892 = vst.msk [vmem:[%s3451_s3 + $0x2c] sm:$0xf] %vm1880_vm0, %v2185_v54  ;;  %v1129_v56 = vadd.f32 %v3074_v15, %v1128_v55  ;;  %v1417_v57 = vpop.f32.mrb[24].mxu0  ;;  %v1130_v58 = vpop.f32.mrb[25].mxu1 }
 0x146   :  { %v1419_v59 = vpop.f32.mrb[25].mxu0  ;;  %v1131_v60 = vpop.f32.mrb[26].mxu1 }
 0x147   :  { %v1418_v61 = vadd.f32 %v1417_v57, %v1129_v56  ;;  %v1132_v62 = vadd.f32 %v3074_v15, %v1131_v60  ;;  %v1420_v63 = vpop.f32.mrb[26].mxu0  ;;  %v1133_v0 = vpop.f32.mrb[27].mxu1 }
 0x148   :  { %v1422_v1 = vpop.f32.mrb[27].mxu0 }
 0x149   :  { %v2186_v2 = vpack.c.bf16 %v1418_v61, %v1418_v61  ;;  %v1421_v3 = vadd.f32 %v1420_v63, %v1132_v62 }
 0x14b   :  { %1893 = vst.msk [vmem:[%s3451_s3 + $0x30] sm:$0xf] %vm1880_vm0, %v2186_v2  ;;  %v2187_v4 = vpack.c.bf16 %v1421_v3, %v1421_v3 }
 0x14c   :  { %v1136_v5 = vpop.f32.mrb[28].mxu1 }
 0x14d   :  { %1894 = vst.msk [vmem:[%s3451_s3 + $0x34] sm:$0xf] %vm1880_vm0, %v2187_v4  ;;  %v1137_v6 = vadd.f32 %v3074_v15, %v1136_v5  ;;  %v1425_v7 = vpop.f32.mrb[28].mxu0  ;;  %v1138_v8 = vpop.f32.mrb[29].mxu1 }
 0x14e   :  { %v1427_v9 = vpop.f32.mrb[29].mxu0  ;;  %v1139_v10 = vpop.f32.mrb[30].mxu1 }
 0x14f   :  { %v1426_v11 = vadd.f32 %v1425_v7, %v1137_v6  ;;  %v1140_v12 = vadd.f32 %v3074_v15, %v1139_v10  ;;  %v1428_v13 = vpop.f32.mrb[30].mxu0  ;;  %v1141_v14 = vpop.f32.mrb[31].mxu1 }
 0x150   :  { %v1430_v16 = vpop.f32.mrb[31].mxu0 }
 0x151   :  { %v2188_v17 = vpack.c.bf16 %v1426_v11, %v1426_v11  ;;  %v1429_v18 = vadd.f32 %v1428_v13, %v1140_v12 }
 0x153   :  { %1895 = vst.msk [vmem:[%s3451_s3 + $0x38] sm:$0xf] %vm1880_vm0, %v2188_v17  ;;  %v2189_v19 = vpack.c.bf16 %v1429_v18, %v1429_v18 }
 0x154   :  { %v1144_v20 = vpop.f32.mrb[32].mxu1 }
 0x155   :  { %1896 = vst.msk [vmem:[%s3451_s3 + $0x3c] sm:$0xf] %vm1880_vm0, %v2189_v19  ;;  %v1145_v21 = vadd.f32 %v3074_v15, %v1144_v20  ;;  %v1433_v22 = vpop.f32.mrb[32].mxu0  ;;  %v1146_v23 = vpop.f32.mrb[33].mxu1 }
 0x156   :  { %v1435_v24 = vpop.f32.mrb[33].mxu0  ;;  %v1147_v25 = vpop.f32.mrb[34].mxu1 }
 0x157   :  { %v1434_v26 = vadd.f32 %v1433_v22, %v1145_v21  ;;  %v1148_v27 = vadd.f32 %v3074_v15, %v1147_v25  ;;  %v1436_v28 = vpop.f32.mrb[34].mxu0  ;;  %v1149_v29 = vpop.f32.mrb[35].mxu1 }
 0x158   :  { %v1438_v30 = vpop.f32.mrb[35].mxu0 }
 0x159   :  { %v2190_v31 = vpack.c.bf16 %v1434_v26, %v1434_v26  ;;  %v1437_v32 = vadd.f32 %v1436_v28, %v1148_v27 }
 0x15b   :  { %1897 = vst.msk [vmem:[%s3451_s3 + $0x40] sm:$0xf] %vm1880_vm0, %v2190_v31  ;;  %v2191_v33 = vpack.c.bf16 %v1437_v32, %v1437_v32 }
 0x15c   :  { %v1152_v34 = vpop.f32.mrb[36].mxu1 }
 0x15d   :  { %1898 = vst.msk [vmem:[%s3451_s3 + $0x44] sm:$0xf] %vm1880_vm0, %v2191_v33  ;;  %v1153_v35 = vadd.f32 %v3074_v15, %v1152_v34  ;;  %v1441_v36 = vpop.f32.mrb[36].mxu0  ;;  %v1154_v37 = vpop.f32.mrb[37].mxu1 }
 0x15e   :  { %v1443_v38 = vpop.f32.mrb[37].mxu0  ;;  %v1155_v39 = vpop.f32.mrb[38].mxu1 }
 0x15f   :  { %v1442_v40 = vadd.f32 %v1441_v36, %v1153_v35  ;;  %v1156_v41 = vadd.f32 %v3074_v15, %v1155_v39  ;;  %v1444_v42 = vpop.f32.mrb[38].mxu0  ;;  %v1157_v43 = vpop.f32.mrb[39].mxu1 }
 0x160   :  { %v1446_v44 = vpop.f32.mrb[39].mxu0 }
 0x161   :  { %v2192_v45 = vpack.c.bf16 %v1442_v40, %v1442_v40  ;;  %v1445_v46 = vadd.f32 %v1444_v42, %v1156_v41 }
 0x163   :  { %1899 = vst.msk [vmem:[%s3451_s3 + $0x48] sm:$0xf] %vm1880_vm0, %v2192_v45  ;;  %v2193_v47 = vpack.c.bf16 %v1445_v46, %v1445_v46 }
 0x164   :  { %v1160_v48 = vpop.f32.mrb[40].mxu1 }
 0x165   :  { %1900 = vst.msk [vmem:[%s3451_s3 + $0x4c] sm:$0xf] %vm1880_vm0, %v2193_v47  ;;  %v1161_v49 = vadd.f32 %v3074_v15, %v1160_v48  ;;  %v1449_v50 = vpop.f32.mrb[40].mxu0  ;;  %v1162_v51 = vpop.f32.mrb[41].mxu1 }
 0x166   :  { %v1451_v52 = vpop.f32.mrb[41].mxu0  ;;  %v1163_v53 = vpop.f32.mrb[42].mxu1 }
 0x167   :  { %v1450_v54 = vadd.f32 %v1449_v50, %v1161_v49  ;;  %v1164_v55 = vadd.f32 %v3074_v15, %v1163_v53  ;;  %v1452_v56 = vpop.f32.mrb[42].mxu0  ;;  %v1165_v57 = vpop.f32.mrb[43].mxu1 }
 0x168   :  { %v1454_v58 = vpop.f32.mrb[43].mxu0 }
 0x169   :  { %v2194_v59 = vpack.c.bf16 %v1450_v54, %v1450_v54  ;;  %v1453_v60 = vadd.f32 %v1452_v56, %v1164_v55 }
 0x16b   :  { %1901 = vst.msk [vmem:[%s3451_s3 + $0x50] sm:$0xf] %vm1880_vm0, %v2194_v59  ;;  %v2195_v61 = vpack.c.bf16 %v1453_v60, %v1453_v60 }
 0x16c   :  { %v1168_v62 = vpop.f32.mrb[44].mxu1 }
 0x16d   :  { %1902 = vst.msk [vmem:[%s3451_s3 + $0x54] sm:$0xf] %vm1880_vm0, %v2195_v61  ;;  %v1169_v63 = vadd.f32 %v3074_v15, %v1168_v62  ;;  %v1457_v0 = vpop.f32.mrb[44].mxu0  ;;  %v1170_v1 = vpop.f32.mrb[45].mxu1 }
 0x16e   :  { %v1459_v2 = vpop.f32.mrb[45].mxu0  ;;  %v1171_v3 = vpop.f32.mrb[46].mxu1 }
 0x16f   :  { %v1458_v4 = vadd.f32 %v1457_v0, %v1169_v63  ;;  %v1172_v5 = vadd.f32 %v3074_v15, %v1171_v3  ;;  %v1460_v6 = vpop.f32.mrb[46].mxu0  ;;  %v1173_v7 = vpop.f32.mrb[47].mxu1 }
 0x170   :  { %v1462_v8 = vpop.f32.mrb[47].mxu0 }
 0x171   :  { %v2196_v9 = vpack.c.bf16 %v1458_v4, %v1458_v4  ;;  %v1461_v10 = vadd.f32 %v1460_v6, %v1172_v5 }
 0x173   :  { %1903 = vst.msk [vmem:[%s3451_s3 + $0x58] sm:$0xf] %vm1880_vm0, %v2196_v9  ;;  %v2197_v11 = vpack.c.bf16 %v1461_v10, %v1461_v10 }
 0x174   :  { %v1176_v12 = vpop.f32.mrb[48].mxu1 }
 0x175   :  { %1904 = vst.msk [vmem:[%s3451_s3 + $0x5c] sm:$0xf] %vm1880_vm0, %v2197_v11  ;;  %v1177_v13 = vadd.f32 %v3074_v15, %v1176_v12  ;;  %v1465_v14 = vpop.f32.mrb[48].mxu0  ;;  %v1178_v16 = vpop.f32.mrb[49].mxu1 }
 0x176   :  { %v1467_v17 = vpop.f32.mrb[49].mxu0  ;;  %v1179_v18 = vpop.f32.mrb[50].mxu1 }
 0x177   :  { %v1466_v19 = vadd.f32 %v1465_v14, %v1177_v13  ;;  %v1180_v20 = vadd.f32 %v3074_v15, %v1179_v18  ;;  %v1468_v21 = vpop.f32.mrb[50].mxu0  ;;  %v1181_v22 = vpop.f32.mrb[51].mxu1 }
 0x178   :  { %v1470_v23 = vpop.f32.mrb[51].mxu0 }
 0x179   :  { %v2198_v24 = vpack.c.bf16 %v1466_v19, %v1466_v19  ;;  %v1469_v25 = vadd.f32 %v1468_v21, %v1180_v20 }
 0x17b   :  { %1905 = vst.msk [vmem:[%s3451_s3 + $0x60] sm:$0xf] %vm1880_vm0, %v2198_v24  ;;  %v2199_v26 = vpack.c.bf16 %v1469_v25, %v1469_v25 }
 0x17c   :  { %v1184_v27 = vpop.f32.mrb[52].mxu1 }
 0x17d   :  { %1906 = vst.msk [vmem:[%s3451_s3 + $0x64] sm:$0xf] %vm1880_vm0, %v2199_v26  ;;  %v1185_v28 = vadd.f32 %v3074_v15, %v1184_v27  ;;  %v1473_v29 = vpop.f32.mrb[52].mxu0  ;;  %v1186_v30 = vpop.f32.mrb[53].mxu1 }
 0x17e   :  { %v1475_v31 = vpop.f32.mrb[53].mxu0  ;;  %v1187_v32 = vpop.f32.mrb[54].mxu1 }
 0x17f   :  { %v1474_v33 = vadd.f32 %v1473_v29, %v1185_v28  ;;  %v1188_v34 = vadd.f32 %v3074_v15, %v1187_v32  ;;  %v1476_v35 = vpop.f32.mrb[54].mxu0  ;;  %v1189_v36 = vpop.f32.mrb[55].mxu1 }
 0x180   :  { %v1478_v37 = vpop.f32.mrb[55].mxu0 }
 0x181   :  { %v2200_v38 = vpack.c.bf16 %v1474_v33, %v1474_v33  ;;  %v1477_v39 = vadd.f32 %v1476_v35, %v1188_v34 }
 0x183   :  { %1907 = vst.msk [vmem:[%s3451_s3 + $0x68] sm:$0xf] %vm1880_vm0, %v2200_v38  ;;  %v2201_v40 = vpack.c.bf16 %v1477_v39, %v1477_v39 }
 0x184   :  { %v1192_v41 = vpop.f32.mrb[56].mxu1 }
 0x185   :  { %1908 = vst.msk [vmem:[%s3451_s3 + $0x6c] sm:$0xf] %vm1880_vm0, %v2201_v40  ;;  %v1193_v42 = vadd.f32 %v3074_v15, %v1192_v41  ;;  %v1481_v43 = vpop.f32.mrb[56].mxu0  ;;  %v1194_v44 = vpop.f32.mrb[57].mxu1 }
 0x186   :  { %v1483_v45 = vpop.f32.mrb[57].mxu0  ;;  %v1195_v46 = vpop.f32.mrb[58].mxu1 }
 0x187   :  { %v1482_v47 = vadd.f32 %v1481_v43, %v1193_v42  ;;  %v1196_v48 = vadd.f32 %v3074_v15, %v1195_v46  ;;  %v1484_v49 = vpop.f32.mrb[58].mxu0  ;;  %v1197_v50 = vpop.f32.mrb[59].mxu1 }
 0x188   :  { %v1486_v51 = vpop.f32.mrb[59].mxu0 }
 0x189   :  { %v2202_v52 = vpack.c.bf16 %v1482_v47, %v1482_v47  ;;  %v1485_v53 = vadd.f32 %v1484_v49, %v1196_v48 }
 0x18b   :  { %1909 = vst.msk [vmem:[%s3451_s3 + $0x70] sm:$0xf] %vm1880_vm0, %v2202_v52  ;;  %v2203_v54 = vpack.c.bf16 %v1485_v53, %v1485_v53 }
 0x18c   :  { %v1200_v55 = vpop.f32.mrb[60].mxu1 }
 0x18d   :  { %1910 = vst.msk [vmem:[%s3451_s3 + $0x74] sm:$0xf] %vm1880_vm0, %v2203_v54  ;;  %v1201_v56 = vadd.f32 %v3074_v15, %v1200_v55  ;;  %v1489_v57 = vpop.f32.mrb[60].mxu0  ;;  %v1202_v58 = vpop.f32.mrb[61].mxu1 }
 0x18e   :  { %v1491_v59 = vpop.f32.mrb[61].mxu0  ;;  %v1203_v60 = vpop.f32.mrb[62].mxu1 }
 0x18f   :  { %v1490_v61 = vadd.f32 %v1489_v57, %v1201_v56  ;;  %v1204_v62 = vadd.f32 %v3074_v15, %v1203_v60  ;;  %v1492_v63 = vpop.f32.mrb[62].mxu0  ;;  %v1205_v0 = vpop.f32.mrb[63].mxu1 }
 0x190   :  { %v1494_v1 = vpop.f32.mrb[63].mxu0 }
 0x191   :  { %v2204_v2 = vpack.c.bf16 %v1490_v61, %v1490_v61  ;;  %v1493_v3 = vadd.f32 %v1492_v63, %v1204_v62 }
 0x193   :  { %1911 = vst.msk [vmem:[%s3451_s3 + $0x78] sm:$0xf] %vm1880_vm0, %v2204_v2  ;;  %v2205_v4 = vpack.c.bf16 %v1493_v3, %v1493_v3 }
 0x194   :  { %v1208_v5 = vpop.f32.mrb[64].mxu1 }
 0x195   :  { %1912 = vst.msk [vmem:[%s3451_s3 + $0x7c] sm:$0xf] %vm1880_vm0, %v2205_v4  ;;  %v1209_v6 = vadd.f32 %v3074_v15, %v1208_v5  ;;  %v1497_v7 = vpop.f32.mrb[64].mxu0  ;;  %v1210_v8 = vpop.f32.mrb[65].mxu1 }
 0x196   :  { %v1499_v9 = vpop.f32.mrb[65].mxu0  ;;  %v1211_v10 = vpop.f32.mrb[66].mxu1 }
 0x197   :  { %v1498_v11 = vadd.f32 %v1497_v7, %v1209_v6  ;;  %v1212_v12 = vadd.f32 %v3074_v15, %v1211_v10  ;;  %v1500_v13 = vpop.f32.mrb[66].mxu0  ;;  %v1213_v14 = vpop.f32.mrb[67].mxu1 }
 0x198   :  { %v1502_v16 = vpop.f32.mrb[67].mxu0 }
 0x199   :  { %v2206_v17 = vpack.c.bf16 %v1498_v11, %v1498_v11  ;;  %v1501_v18 = vadd.f32 %v1500_v13, %v1212_v12 }
 0x19b   :  { %1913 = vst.msk [vmem:[%s3451_s3 + $0x80] sm:$0xf] %vm1880_vm0, %v2206_v17  ;;  %v2207_v19 = vpack.c.bf16 %v1501_v18, %v1501_v18 }
 0x19c   :  { %v1216_v20 = vpop.f32.mrb[68].mxu1 }
 0x19d   :  { %1914 = vst.msk [vmem:[%s3451_s3 + $0x84] sm:$0xf] %vm1880_vm0, %v2207_v19  ;;  %v1217_v21 = vadd.f32 %v3074_v15, %v1216_v20  ;;  %v1505_v22 = vpop.f32.mrb[68].mxu0  ;;  %v1218_v23 = vpop.f32.mrb[69].mxu1 }
 0x19e   :  { %v1507_v24 = vpop.f32.mrb[69].mxu0  ;;  %v1219_v25 = vpop.f32.mrb[70].mxu1 }
 0x19f   :  { %v1506_v26 = vadd.f32 %v1505_v22, %v1217_v21  ;;  %v1220_v27 = vadd.f32 %v3074_v15, %v1219_v25  ;;  %v1508_v28 = vpop.f32.mrb[70].mxu0  ;;  %v1221_v29 = vpop.f32.mrb[71].mxu1 }
 0x1a0   :  { %v1510_v30 = vpop.f32.mrb[71].mxu0 }
 0x1a1   :  { %v2208_v31 = vpack.c.bf16 %v1506_v26, %v1506_v26  ;;  %v1509_v32 = vadd.f32 %v1508_v28, %v1220_v27 }
 0x1a3   :  { %1915 = vst.msk [vmem:[%s3451_s3 + $0x88] sm:$0xf] %vm1880_vm0, %v2208_v31  ;;  %v2209_v33 = vpack.c.bf16 %v1509_v32, %v1509_v32 }
 0x1a4   :  { %v1224_v34 = vpop.f32.mrb[72].mxu1 }
 0x1a5   :  { %1916 = vst.msk [vmem:[%s3451_s3 + $0x8c] sm:$0xf] %vm1880_vm0, %v2209_v33  ;;  %v1225_v35 = vadd.f32 %v3074_v15, %v1224_v34  ;;  %v1513_v36 = vpop.f32.mrb[72].mxu0  ;;  %v1226_v37 = vpop.f32.mrb[73].mxu1 }
 0x1a6   :  { %v1515_v38 = vpop.f32.mrb[73].mxu0  ;;  %v1227_v39 = vpop.f32.mrb[74].mxu1 }
 0x1a7   :  { %v1514_v40 = vadd.f32 %v1513_v36, %v1225_v35  ;;  %v1228_v41 = vadd.f32 %v3074_v15, %v1227_v39  ;;  %v1516_v42 = vpop.f32.mrb[74].mxu0  ;;  %v1229_v43 = vpop.f32.mrb[75].mxu1 }
 0x1a8   :  { %v1518_v44 = vpop.f32.mrb[75].mxu0 }
 0x1a9   :  { %v2210_v45 = vpack.c.bf16 %v1514_v40, %v1514_v40  ;;  %v1517_v46 = vadd.f32 %v1516_v42, %v1228_v41 }
 0x1ab   :  { %1917 = vst.msk [vmem:[%s3451_s3 + $0x90] sm:$0xf] %vm1880_vm0, %v2210_v45  ;;  %v2211_v47 = vpack.c.bf16 %v1517_v46, %v1517_v46 }
 0x1ac   :  { %v1232_v48 = vpop.f32.mrb[76].mxu1 }
 0x1ad   :  { %1918 = vst.msk [vmem:[%s3451_s3 + $0x94] sm:$0xf] %vm1880_vm0, %v2211_v47  ;;  %v1233_v49 = vadd.f32 %v3074_v15, %v1232_v48  ;;  %v1521_v50 = vpop.f32.mrb[76].mxu0  ;;  %v1234_v51 = vpop.f32.mrb[77].mxu1 }
 0x1ae   :  { %v1523_v52 = vpop.f32.mrb[77].mxu0  ;;  %v1235_v53 = vpop.f32.mrb[78].mxu1 }
 0x1af   :  { %v1522_v54 = vadd.f32 %v1521_v50, %v1233_v49  ;;  %v1236_v55 = vadd.f32 %v3074_v15, %v1235_v53  ;;  %v1524_v56 = vpop.f32.mrb[78].mxu0  ;;  %v1237_v57 = vpop.f32.mrb[79].mxu1 }
 0x1b0   :  { %v1526_v58 = vpop.f32.mrb[79].mxu0 }
 0x1b1   :  { %v2212_v59 = vpack.c.bf16 %v1522_v54, %v1522_v54  ;;  %v1525_v60 = vadd.f32 %v1524_v56, %v1236_v55 }
 0x1b3   :  { %1919 = vst.msk [vmem:[%s3451_s3 + $0x98] sm:$0xf] %vm1880_vm0, %v2212_v59  ;;  %v2213_v61 = vpack.c.bf16 %v1525_v60, %v1525_v60 }
 0x1b4   :  { %v1240_v62 = vpop.f32.mrb[80].mxu1 }
 0x1b5   :  { %1920 = vst.msk [vmem:[%s3451_s3 + $0x9c] sm:$0xf] %vm1880_vm0, %v2213_v61  ;;  %v1241_v63 = vadd.f32 %v3074_v15, %v1240_v62  ;;  %v1529_v0 = vpop.f32.mrb[80].mxu0  ;;  %v1242_v1 = vpop.f32.mrb[81].mxu1 }
 0x1b6   :  { %v1531_v2 = vpop.f32.mrb[81].mxu0  ;;  %v1243_v3 = vpop.f32.mrb[82].mxu1 }
 0x1b7   :  { %v1530_v4 = vadd.f32 %v1529_v0, %v1241_v63  ;;  %v1244_v5 = vadd.f32 %v3074_v15, %v1243_v3  ;;  %v1532_v6 = vpop.f32.mrb[82].mxu0  ;;  %v1245_v7 = vpop.f32.mrb[83].mxu1 }
 0x1b8   :  { %v1534_v8 = vpop.f32.mrb[83].mxu0 }
 0x1b9   :  { %v2214_v9 = vpack.c.bf16 %v1530_v4, %v1530_v4  ;;  %v1533_v10 = vadd.f32 %v1532_v6, %v1244_v5 }
 0x1bb   :  { %1921 = vst.msk [vmem:[%s3451_s3 + $0xa0] sm:$0xf] %vm1880_vm0, %v2214_v9  ;;  %v2215_v11 = vpack.c.bf16 %v1533_v10, %v1533_v10 }
 0x1bc   :  { %v1248_v12 = vpop.f32.mrb[84].mxu1 }
 0x1bd   :  { %1922 = vst.msk [vmem:[%s3451_s3 + $0xa4] sm:$0xf] %vm1880_vm0, %v2215_v11  ;;  %v1249_v13 = vadd.f32 %v3074_v15, %v1248_v12  ;;  %v1537_v14 = vpop.f32.mrb[84].mxu0  ;;  %v1250_v16 = vpop.f32.mrb[85].mxu1 }
 0x1be   :  { %v1539_v17 = vpop.f32.mrb[85].mxu0  ;;  %v1251_v18 = vpop.f32.mrb[86].mxu1 }
 0x1bf   :  { %v1538_v19 = vadd.f32 %v1537_v14, %v1249_v13  ;;  %v1252_v20 = vadd.f32 %v3074_v15, %v1251_v18  ;;  %v1540_v21 = vpop.f32.mrb[86].mxu0  ;;  %v1253_v22 = vpop.f32.mrb[87].mxu1 }
 0x1c0   :  { %v1542_v23 = vpop.f32.mrb[87].mxu0 }
 0x1c1   :  { %v2216_v24 = vpack.c.bf16 %v1538_v19, %v1538_v19  ;;  %v1541_v25 = vadd.f32 %v1540_v21, %v1252_v20 }
 0x1c3   :  { %1923 = vst.msk [vmem:[%s3451_s3 + $0xa8] sm:$0xf] %vm1880_vm0, %v2216_v24  ;;  %v2217_v26 = vpack.c.bf16 %v1541_v25, %v1541_v25 }
 0x1c4   :  { %v1256_v27 = vpop.f32.mrb[88].mxu1 }
 0x1c5   :  { %1924 = vst.msk [vmem:[%s3451_s3 + $0xac] sm:$0xf] %vm1880_vm0, %v2217_v26  ;;  %v1257_v28 = vadd.f32 %v3074_v15, %v1256_v27  ;;  %v1545_v29 = vpop.f32.mrb[88].mxu0  ;;  %v1258_v30 = vpop.f32.mrb[89].mxu1 }
 0x1c6   :  { %v1547_v31 = vpop.f32.mrb[89].mxu0  ;;  %v1259_v32 = vpop.f32.mrb[90].mxu1 }
 0x1c7   :  { %v1546_v33 = vadd.f32 %v1545_v29, %v1257_v28  ;;  %v1260_v34 = vadd.f32 %v3074_v15, %v1259_v32  ;;  %v1548_v35 = vpop.f32.mrb[90].mxu0  ;;  %v1261_v36 = vpop.f32.mrb[91].mxu1 }
 0x1c8   :  { %v1550_v37 = vpop.f32.mrb[91].mxu0 }
 0x1c9   :  { %v2218_v38 = vpack.c.bf16 %v1546_v33, %v1546_v33  ;;  %v1549_v39 = vadd.f32 %v1548_v35, %v1260_v34 }
 0x1cb   :  { %1925 = vst.msk [vmem:[%s3451_s3 + $0xb0] sm:$0xf] %vm1880_vm0, %v2218_v38  ;;  %v2219_v40 = vpack.c.bf16 %v1549_v39, %v1549_v39 }
 0x1cc   :  { %v1264_v41 = vpop.f32.mrb[92].mxu1 }
 0x1cd   :  { %1926 = vst.msk [vmem:[%s3451_s3 + $0xb4] sm:$0xf] %vm1880_vm0, %v2219_v40  ;;  %v1265_v42 = vadd.f32 %v3074_v15, %v1264_v41  ;;  %v1553_v43 = vpop.f32.mrb[92].mxu0  ;;  %v1266_v44 = vpop.f32.mrb[93].mxu1 }
 0x1ce   :  { %v1555_v45 = vpop.f32.mrb[93].mxu0  ;;  %v1267_v46 = vpop.f32.mrb[94].mxu1 }
 0x1cf   :  { %v1554_v47 = vadd.f32 %v1553_v43, %v1265_v42  ;;  %v1268_v48 = vadd.f32 %v3074_v15, %v1267_v46  ;;  %v1556_v49 = vpop.f32.mrb[94].mxu0  ;;  %v1269_v50 = vpop.f32.mrb[95].mxu1 }
 0x1d0   :  { %v1558_v51 = vpop.f32.mrb[95].mxu0 }
 0x1d1   :  { %v2220_v52 = vpack.c.bf16 %v1554_v47, %v1554_v47  ;;  %v1557_v53 = vadd.f32 %v1556_v49, %v1268_v48 }
 0x1d3   :  { %1927 = vst.msk [vmem:[%s3451_s3 + $0xb8] sm:$0xf] %vm1880_vm0, %v2220_v52  ;;  %v2221_v54 = vpack.c.bf16 %v1557_v53, %v1557_v53 }
 0x1d4   :  { %v1272_v55 = vpop.f32.mrb[96].mxu1 }
 0x1d5   :  { %1928 = vst.msk [vmem:[%s3451_s3 + $0xbc] sm:$0xf] %vm1880_vm0, %v2221_v54  ;;  %v1273_v56 = vadd.f32 %v3074_v15, %v1272_v55  ;;  %v1561_v57 = vpop.f32.mrb[96].mxu0  ;;  %v1274_v58 = vpop.f32.mrb[97].mxu1 }
 0x1d6   :  { %v1563_v59 = vpop.f32.mrb[97].mxu0  ;;  %v1275_v60 = vpop.f32.mrb[98].mxu1 }
 0x1d7   :  { %v1562_v61 = vadd.f32 %v1561_v57, %v1273_v56  ;;  %v1276_v62 = vadd.f32 %v3074_v15, %v1275_v60  ;;  %v1564_v63 = vpop.f32.mrb[98].mxu0  ;;  %v1277_v0 = vpop.f32.mrb[99].mxu1 }
 0x1d8   :  { %v1566_v1 = vpop.f32.mrb[99].mxu0 }
 0x1d9   :  { %v2222_v2 = vpack.c.bf16 %v1562_v61, %v1562_v61  ;;  %v1565_v3 = vadd.f32 %v1564_v63, %v1276_v62 }
 0x1db   :  { %1929 = vst.msk [vmem:[%s3451_s3 + $0xc0] sm:$0xf] %vm1880_vm0, %v2222_v2  ;;  %v2223_v4 = vpack.c.bf16 %v1565_v3, %v1565_v3 }
 0x1dc   :  { %v1280_v5 = vpop.f32.mrb[100].mxu1 }
 0x1dd   :  { %1930 = vst.msk [vmem:[%s3451_s3 + $0xc4] sm:$0xf] %vm1880_vm0, %v2223_v4  ;;  %v1281_v6 = vadd.f32 %v3074_v15, %v1280_v5  ;;  %v1569_v7 = vpop.f32.mrb[100].mxu0  ;;  %v1282_v8 = vpop.f32.mrb[101].mxu1  ;;  %v2591_v5 = vld [vmem:[%s3450_s2] ss:$0 sm:$0xff] }
 0x1de   :  { %v1571_v9 = vpop.f32.mrb[101].mxu0  ;;  %v1283_v10 = vpop.f32.mrb[102].mxu1 }
 0x1df   :  { %v1570_v11 = vadd.f32 %v1569_v7, %v1281_v6  ;;  %v1284_v12 = vadd.f32 %v3074_v15, %v1283_v10  ;;  %v1572_v13 = vpop.f32.mrb[102].mxu0  ;;  %v1285_v14 = vpop.f32.mrb[103].mxu1 }
 0x1e0   :  { %v1574_v16 = vpop.f32.mrb[103].mxu0 }
 0x1e1   :  { %v2224_v17 = vpack.c.bf16 %v1570_v11, %v1570_v11  ;;  %v1573_v18 = vadd.f32 %v1572_v13, %v1284_v12 }
 0x1e3   :  { %1931 = vst.msk [vmem:[%s3451_s3 + $0xc8] sm:$0xf] %vm1880_vm0, %v2224_v17  ;;  %v2225_v19 = vpack.c.bf16 %v1573_v18, %v1573_v18 }
 0x1e4   :  { %v1288_v20 = vpop.f32.mrb[104].mxu1 }
 0x1e5   :  { %1932 = vst.msk [vmem:[%s3451_s3 + $0xcc] sm:$0xf] %vm1880_vm0, %v2225_v19  ;;  %v1289_v21 = vadd.f32 %v3074_v15, %v1288_v20  ;;  %v1577_v22 = vpop.f32.mrb[104].mxu0  ;;  %v1290_v23 = vpop.f32.mrb[105].mxu1 }
 0x1e6   :  { %v1579_v24 = vpop.f32.mrb[105].mxu0  ;;  %v1291_v25 = vpop.f32.mrb[106].mxu1 }
 0x1e7   :  { %v1578_v26 = vadd.f32 %v1577_v22, %v1289_v21  ;;  %v1292_v27 = vadd.f32 %v3074_v15, %v1291_v25  ;;  %v1580_v28 = vpop.f32.mrb[106].mxu0  ;;  %v1293_v29 = vpop.f32.mrb[107].mxu1 }
 0x1e8   :  { %v1582_v30 = vpop.f32.mrb[107].mxu0 }
 0x1e9   :  { %v2226_v31 = vpack.c.bf16 %v1578_v26, %v1578_v26  ;;  %v1581_v32 = vadd.f32 %v1580_v28, %v1292_v27 }
 0x1eb   :  { %1933 = vst.msk [vmem:[%s3451_s3 + $0xd0] sm:$0xf] %vm1880_vm0, %v2226_v31  ;;  %v2227_v33 = vpack.c.bf16 %v1581_v32, %v1581_v32 }
 0x1ec   :  { %v1296_v34 = vpop.f32.mrb[108].mxu1 }
 0x1ed   :  { %1934 = vst.msk [vmem:[%s3451_s3 + $0xd4] sm:$0xf] %vm1880_vm0, %v2227_v33  ;;  %v1297_v35 = vadd.f32 %v3074_v15, %v1296_v34  ;;  %v1585_v36 = vpop.f32.mrb[108].mxu0  ;;  %v1298_v37 = vpop.f32.mrb[109].mxu1 }
 0x1ee   :  { %v1587_v38 = vpop.f32.mrb[109].mxu0  ;;  %v1299_v39 = vpop.f32.mrb[110].mxu1 }
 0x1ef   :  { %v1586_v40 = vadd.f32 %v1585_v36, %v1297_v35  ;;  %v1300_v41 = vadd.f32 %v3074_v15, %v1299_v39  ;;  %v1588_v42 = vpop.f32.mrb[110].mxu0  ;;  %v1301_v43 = vpop.f32.mrb[111].mxu1 }
 0x1f0   :  { %v1590_v44 = vpop.f32.mrb[111].mxu0 }
 0x1f1   :  { %v2228_v45 = vpack.c.bf16 %v1586_v40, %v1586_v40  ;;  %v1589_v46 = vadd.f32 %v1588_v42, %v1300_v41 }
 0x1f3   :  { %1935 = vst.msk [vmem:[%s3451_s3 + $0xd8] sm:$0xf] %vm1880_vm0, %v2228_v45  ;;  %v2229_v47 = vpack.c.bf16 %v1589_v46, %v1589_v46 }
 0x1f4   :  { %v1304_v48 = vpop.f32.mrb[112].mxu1 }
 0x1f5   :  { %1936 = vst.msk [vmem:[%s3451_s3 + $0xdc] sm:$0xf] %vm1880_vm0, %v2229_v47  ;;  %v1305_v49 = vadd.f32 %v3074_v15, %v1304_v48  ;;  %v1593_v50 = vpop.f32.mrb[112].mxu0  ;;  %v1306_v51 = vpop.f32.mrb[113].mxu1 }
 0x1f6   :  { %v1595_v52 = vpop.f32.mrb[113].mxu0  ;;  %v1307_v53 = vpop.f32.mrb[114].mxu1 }
 0x1f7   :  { %v1594_v54 = vadd.f32 %v1593_v50, %v1305_v49  ;;  %v1308_v55 = vadd.f32 %v3074_v15, %v1307_v53  ;;  %v1596_v56 = vpop.f32.mrb[114].mxu0  ;;  %v1309_v57 = vpop.f32.mrb[115].mxu1 }
 0x1f8   :  { %v1598_v58 = vpop.f32.mrb[115].mxu0 }
 0x1f9   :  { %v2230_v59 = vpack.c.bf16 %v1594_v54, %v1594_v54  ;;  %v1597_v60 = vadd.f32 %v1596_v56, %v1308_v55 }
 0x1fb   :  { %1937 = vst.msk [vmem:[%s3451_s3 + $0xe0] sm:$0xf] %vm1880_vm0, %v2230_v59  ;;  %v2231_v61 = vpack.c.bf16 %v1597_v60, %v1597_v60 }
 0x1fc   :  { %v1312_v62 = vpop.f32.mrb[116].mxu1 }
 0x1fd   :  { %1938 = vst.msk [vmem:[%s3451_s3 + $0xe4] sm:$0xf] %vm1880_vm0, %v2231_v61  ;;  %v1313_v63 = vadd.f32 %v3074_v15, %v1312_v62  ;;  %v1601_v0 = vpop.f32.mrb[116].mxu0  ;;  %v1314_v1 = vpop.f32.mrb[117].mxu1 }
 0x1fe   :  { %v1603_v2 = vpop.f32.mrb[117].mxu0  ;;  %v1315_v3 = vpop.f32.mrb[118].mxu1 }
 0x1ff   :  { %v1602_v4 = vadd.f32 %v1601_v0, %v1313_v63  ;;  %v1316_v6 = vadd.f32 %v2591_v5, %v1315_v3  ;;  %v1604_v7 = vpop.f32.mrb[118].mxu0  ;;  %v1317_v8 = vpop.f32.mrb[119].mxu1 }
 0x200   :  { %v1606_v9 = vpop.f32.mrb[119].mxu0 }
 0x201   :  { %v2232_v10 = vpack.c.bf16 %v1602_v4, %v1602_v4  ;;  %v1605_v11 = vadd.f32 %v1604_v7, %v1316_v6 }
 0x203   :  { %1939 = vst.msk [vmem:[%s3451_s3 + $0xe8] sm:$0xf] %vm1880_vm0, %v2232_v10  ;;  %v2233_v15 = vpack.c.bf16 %v1605_v11, %v1605_v11 }
 0x204   :  { %v1320_v12 = vpop.f32.mrb[120].mxu1 }
 0x205   :  { %1940 = vst.msk [vmem:[%s3451_s3 + $0xec] sm:$0xf] %vm1880_vm0, %v2233_v15  ;;  %v1321_v13 = vadd.f32 %v2591_v5, %v1320_v12  ;;  %v1609_v14 = vpop.f32.mrb[120].mxu0  ;;  %v1322_v16 = vpop.f32.mrb[121].mxu1 }
 0x206   :  { %v1611_v17 = vpop.f32.mrb[121].mxu0  ;;  %v1323_v18 = vpop.f32.mrb[122].mxu1 }
 0x207   :  { %v1610_v19 = vadd.f32 %v1609_v14, %v1321_v13  ;;  %v1324_v20 = vadd.f32 %v2591_v5, %v1323_v18  ;;  %v1612_v21 = vpop.f32.mrb[122].mxu0  ;;  %v1325_v22 = vpop.f32.mrb[123].mxu1 }
 0x208   :  { %v1614_v23 = vpop.f32.mrb[123].mxu0 }
 0x209   :  { %v2234_v24 = vpack.c.bf16 %v1610_v19, %v1610_v19  ;;  %v1613_v25 = vadd.f32 %v1612_v21, %v1324_v20 }
 0x20b   :  { %1941 = vst.msk [vmem:[%s3451_s3 + $0xf0] sm:$0xf] %vm1880_vm0, %v2234_v24  ;;  %v2235_v26 = vpack.c.bf16 %v1613_v25, %v1613_v25 }
 0x20c   :  { %v1328_v27 = vpop.f32.mrb[124].mxu1 }
 0x20d   :  { %1942 = vst.msk [vmem:[%s3451_s3 + $0xf4] sm:$0xf] %vm1880_vm0, %v2235_v26  ;;  %v1329_v28 = vadd.f32 %v2591_v5, %v1328_v27  ;;  %v1617_v29 = vpop.f32.mrb[124].mxu0  ;;  %v1330_v30 = vpop.f32.mrb[125].mxu1 }
 0x20e   :  { %v1619_v31 = vpop.f32.mrb[125].mxu0  ;;  %v1331_v32 = vpop.f32.mrb[126].mxu1 }
 0x20f   :  { %v1618_v33 = vadd.f32 %v1617_v29, %v1329_v28  ;;  %v1332_v34 = vadd.f32 %v2591_v5, %v1331_v32  ;;  %v1620_v35 = vpop.f32.mrb[126].mxu0  ;;  %v1333_v36 = vpop.f32.mrb[127].mxu1 }
 0x210   :  { %v1622_v37 = vpop.f32.mrb[127].mxu0 }
 0x211   :  { %v2236_v38 = vpack.c.bf16 %v1618_v33, %v1618_v33  ;;  %v1621_v39 = vadd.f32 %v1620_v35, %v1332_v34 }
 0x213   :  { %1943 = vst.msk [vmem:[%s3451_s3 + $0xf8] sm:$0xf] %vm1880_vm0, %v2236_v38  ;;  %v2237_v40 = vpack.c.bf16 %v1621_v39, %v1621_v39 }
 0x215   :  { %1944 = vst.msk [vmem:[%s3451_s3 + $0xfc] sm:$0xf] %vm1880_vm0, %v2237_v40 }

// kernel: munit_forward.96
= control target key start
LH: loop header
LB: loop body
LE: loop exit
PB: predicated region body
PF: predicated region fallthrough
CT: control target
= control target key end

     0   :  { %s1368_s12 = smov 0   ;;  %s1370_s13 = smov 0   ;;  %s1732_s0 = inlined_call_operand.vmem [shape: bf16[2,256,8], index: 0, kind: input, shape index: {}]   ;;  %s1733_s1 = inlined_call_operand.vmem [shape: f32[1,1,8], index: 1, kind: input, shape index: {}]   ;;  %s1734_s2 = inlined_call_operand.vmem [shape: f32[1,1,8], index: 2, kind: input, shape index: {}]   ;;  %s1735_s3 = inlined_call_operand.vmem [shape: bf16[2,256,8], index: 3, kind: output, shape index: {}]  }
   0x1   :  { %s1372_s14 = smov 0   ;;  %s1374_s15 = smov 0  }
   0x2   :  { %s1376_s16 = smov 0  }
   0x3 LB: > { %s28_s17 = sadd.s32 1, %s1337_s14  ;;  %s32_s18 = sadd.s32 1, %s1341_s15  ;;  %s1345_s16 = sphi %s1376_s16, %s13_s16   ;;  %s1341_s15 = sphi %s1374_s15, %s1739_s15   ;;  %s1337_s14 = sphi %s1372_s14, %s1738_s14   ;;  %s1333_s13 = sphi %s1370_s13, %s1737_s13   ;;  %s1329_s12 = sphi %s1368_s12, %s1736_s12  }
   0x4   : > { %p30_p0 = scmp.ge.s32.totalorder %s28_s17, 2  ;;  %p1021_p1 = scmp.ge.s32.totalorder %s1345_s16, 1 }
   0x5   : > { %p167_p2 = scmp.lt.s32.totalorder %s1345_s16, 5 }
   0x6   : > { %s1741_s17 = smov (%p30_p0, %s28_s17), 0  ;;  %s1743_s18 = smov (!%p30_p0, %s32_s18), %s1341_s15 }
   0x7   : > { %p168_p3 = pnand %p1021_p1, %p167_p2  ;;  %p34_p4 = scmp.ge.s32.totalorder %s1743_s18, 2 }
   0x8   : > { %p201_p5 = scmp.lt.s32.totalorder (!%p168_p3), %s1333_s13, 1  ;;  %p222_p6 = scmp.eq.s32.totalorder (!%p168_p3), %s1329_s12, 0 }
   0x9   : > { %s1745_s18 = smov (%p34_p4, %s1743_s18), 0  ;;  %171 = sbr.rel (%p168_p3) target bundleno = 410 (0x19a), region = 32 }
  0x10   : > { %s1747_s13 = smov (!%p201_p5, %s1333_s13), 1  ;;  %227 = sbr.rel (!%p222_p6) target bundleno = 23 (0x17), region = 36 }
  0x11   : > { %s1065_s19 = sshll.u32 %s1747_s13, 7  ;;  %vm228_vm0 = vcmask (%p222_p6), 57344   ;;  %v1347_v0 = vmov (%p222_p6), 0.0  }
  0x12   : > { %s1404_s22 = scalar_lea.vmem %s1732_s0, %s1065_s19  ;;  %s1409_s25 = scalar_lea.vmem %s1735_s3, %s1065_s19  ;;  %229 = vst.msk [vmem:[#allocation2] sm:$0x1] (%p222_p6), %vm228_vm0, %v1347_v0  ;;  %230 = vst.msk [vmem:[#allocation3] sm:$0x1] (%p222_p6), %vm228_vm0, %v1347_v0 }
  0x17 PF: > { %p1027_p7 = scmp.ne.s32.totalorder %s1329_s12, 0 }
  0x18   : > { %v1101_v1 = vld [vmem:[%s1404_s22] sm:$0xff] (!%p1027_p7)   ;;  %v1228_v2 = vld [vmem:[%s1404_s22 + $0x8] sm:$0xff] (!%p1027_p7)   ;;  %vm299_vm1 = vcmask (!%p1027_p7), 64512   ;;  %v1229_v6 = vld [vmem:[%s1404_s22 + $0x10] sm:$0xff] (!%p1027_p7)   ;;  %vm370_vm2 = vcmask (!%p1027_p7), 57344  }
  0x19   : > { %233 = sbr.rel (%p1027_p7) target bundleno = 111 (0x6f), region = 40  ;;  %v1102_v3 = vunpack.c.l.bf16 (!%p1027_p7), %v1101_v1  ;;  %v1103_v4 = vunpack.c.h.bf16 (!%p1027_p7), %v1101_v1  ;;  %v1106_v5 = vunpack.c.l.bf16 (!%p1027_p7), %v1228_v2  ;;  %v1107_v7 = vunpack.c.h.bf16 (!%p1027_p7), %v1228_v2  ;;  %v1230_v14 = vld [vmem:[%s1404_s22 + $0x18] sm:$0xff] (!%p1027_p7)   ;;  %v1231_v21 = vld [vmem:[%s1404_s22 + $0x20] sm:$0xff] (!%p1027_p7)   ;;  %v1232_v27 = vld [vmem:[%s1404_s22 + $0x28] sm:$0xff] (!%p1027_p7)  }
  0x1a   : > { %v1110_v12 = vunpack.c.l.bf16 (!%p1027_p7), %v1229_v6  ;;  %v1111_v16 = vunpack.c.h.bf16 (!%p1027_p7), %v1229_v6  ;;  %v1114_v19 = vunpack.c.l.bf16 (!%p1027_p7), %v1230_v14  ;;  %v1115_v23 = vunpack.c.h.bf16 (!%p1027_p7), %v1230_v14  ;;  %v1233_v34 = vld [vmem:[%s1404_s22 + $0x30] sm:$0xff] (!%p1027_p7)   ;;  %v1234_v50 = vld [vmem:[%s1404_s22 + $0x38] sm:$0xff] (!%p1027_p7)   ;;  %v1235_v63 = vld [vmem:[%s1404_s22 + $0x40] sm:$0xff] (!%p1027_p7)  }
  0x1b   : > { %v300_v8 = vsel (!%p1027_p7), %vm299_vm1, %v1102_v3, 0.0  ;;  %v301_v9 = vsel (!%p1027_p7), %vm299_vm1, %v1103_v4, 0.0  ;;  %v303_v10 = vsel (!%p1027_p7), %vm299_vm1, %v1106_v5, 0.0  ;;  %v305_v13 = vsel (!%p1027_p7), %vm299_vm1, %v1107_v7, 0.0 }
  0x1c   : > { %v302_v11 = vadd.f32 (!%p1027_p7), %v301_v9, %v300_v8  ;;  %v307_v17 = vsel (!%p1027_p7), %vm299_vm1, %v1110_v12, 0.0  ;;  %v309_v20 = vsel (!%p1027_p7), %vm299_vm1, %v1111_v16, 0.0  ;;  %v311_v24 = vsel (!%p1027_p7), %vm299_vm1, %v1114_v19, 0.0 }
  0x1d   : > { %v1118_v26 = vunpack.c.l.bf16 (!%p1027_p7), %v1231_v21  ;;  %v313_v28 = vsel (!%p1027_p7), %vm299_vm1, %v1115_v23, 0.0  ;;  %v1119_v30 = vunpack.c.h.bf16 (!%p1027_p7), %v1231_v21  ;;  %v1122_v32 = vunpack.c.l.bf16 (!%p1027_p7), %v1232_v27 }
  0x1e   : > { %v304_v15 = vadd.f32 (!%p1027_p7), %v303_v10, %v302_v11  ;;  %v373_v36 = vmul.f32 (!%p1027_p7), %v1102_v3, %v1102_v3  ;;  %v374_v37 = vmul.f32 (!%p1027_p7), %v1103_v4, %v1103_v4  ;;  %v375_v38 = vmul.f32 (!%p1027_p7), %v1106_v5, %v1106_v5 }
  0x1f   : > { %v315_v31 = vsel (!%p1027_p7), %vm299_vm1, %v1118_v26, 0.0  ;;  %v317_v35 = vsel (!%p1027_p7), %vm299_vm1, %v1119_v30, 0.0  ;;  %v1123_v39 = vunpack.c.h.bf16 (!%p1027_p7), %v1232_v27  ;;  %v319_v41 = vsel (!%p1027_p7), %vm299_vm1, %v1122_v32, 0.0 }
  0x20   : > { %v306_v18 = vadd.f32 %v305_v13, %v304_v15  ;;  %v376_v42 = vmul.f32 %v1107_v7, %v1107_v7  ;;  %v1126_v43 = vunpack.c.l.bf16 %v1233_v34  ;;  %v377_v46 = vmul.f32 %v1110_v12, %v1110_v12  ;;  %v1236_v12 = vld [vmem:[%s1404_s22 + $0x48] sm:$0xff]  }
  0x21   : > { %v321_v45 = vsel %vm299_vm1, %v1123_v39, 0.0  ;;  %v405_v47 = vsel %vm299_vm1, %v373_v36, 0.0  ;;  %v406_v48 = vsel %vm299_vm1, %v374_v37, 0.0  ;;  %v408_v49 = vsel %vm299_vm1, %v375_v38, 0.0  ;;  %v1238_v38 = vld [vmem:[%s1404_s22 + $0x58] sm:$0xff]  }
  0x22   : > { %v308_v22 = vadd.f32 %v307_v17, %v306_v18  ;;  %v407_v52 = vadd.f32 %v406_v48, %v405_v47  ;;  %v1127_v53 = vunpack.c.h.bf16 %v1233_v34  ;;  %v323_v54 = vsel %vm299_vm1, %v1126_v43, 0.0 }
  0x23   : > { %v378_v55 = vmul.f32 %v1111_v16, %v1111_v16  ;;  %v410_v56 = vsel %vm299_vm1, %v376_v42, 0.0  ;;  %v1130_v59 = vunpack.c.l.bf16 %v1234_v50  ;;  %v379_v61 = vmul.f32 %v1114_v19, %v1114_v19 }
  0x24   : > { %v310_v25 = vadd.f32 %v309_v20, %v308_v22  ;;  %v409_v58 = vadd.f32 %v408_v49, %v407_v52  ;;  %v325_v60 = vsel %vm299_vm1, %v1127_v53, 0.0  ;;  %v412_v62 = vsel %vm299_vm1, %v377_v46, 0.0 }
  0x25   : > { %v1131_v2 = vunpack.c.h.bf16 %v1234_v50  ;;  %v327_v3 = vsel %vm299_vm1, %v1130_v59, 0.0  ;;  %v380_v4 = vmul.f32 %v1115_v23, %v1115_v23  ;;  %v414_v5 = vsel %vm299_vm1, %v378_v55, 0.0 }
  0x26   : > { %v312_v29 = vadd.f32 %v311_v24, %v310_v25  ;;  %v411_v1 = vadd.f32 %v410_v56, %v409_v58  ;;  %v1134_v8 = vunpack.c.l.bf16 %v1235_v63  ;;  %v381_v10 = vmul.f32 %v1118_v26, %v1118_v26  ;;  %v1237_v25 = vld [vmem:[%s1404_s22 + $0x50] sm:$0xff]  }
  0x27   : > { %v329_v9 = vsel %vm299_vm1, %v1131_v2, 0.0  ;;  %v416_v11 = vsel %vm299_vm1, %v379_v61, 0.0  ;;  %v1135_v15 = vunpack.c.h.bf16 %v1235_v63  ;;  %v382_v17 = vmul.f32 %v1119_v30, %v1119_v30 }
  0x28   : > { %v314_v33 = vadd.f32 %v313_v28, %v312_v29  ;;  %v413_v7 = vadd.f32 %v412_v62, %v411_v1  ;;  %v331_v16 = vsel %vm299_vm1, %v1134_v8, 0.0  ;;  %v418_v18 = vsel %vm299_vm1, %v380_v4, 0.0 }
  0x29   : > { %v1138_v21 = vunpack.c.l.bf16 %v1236_v12  ;;  %v333_v22 = vsel %vm299_vm1, %v1135_v15, 0.0  ;;  %v383_v23 = vmul.f32 %v1122_v32, %v1122_v32  ;;  %v420_v24 = vsel %vm299_vm1, %v381_v10, 0.0 }
  0x2a   : > { %v316_v40 = vadd.f32 %v315_v31, %v314_v33  ;;  %v415_v14 = vadd.f32 %v414_v5, %v413_v7  ;;  %v1139_v28 = vunpack.c.h.bf16 %v1236_v12  ;;  %v384_v31 = vmul.f32 %v1123_v39, %v1123_v39 }
  0x2b   : > { %v335_v29 = vsel %vm299_vm1, %v1138_v21, 0.0  ;;  %v422_v30 = vsel %vm299_vm1, %v382_v17, 0.0  ;;  %v385_v37 = vmul.f32 %v1126_v43, %v1126_v43  ;;  %v424_v32 = vsel %vm299_vm1, %v383_v23, 0.0 }
  0x2c   : > { %v318_v44 = vadd.f32 %v317_v35, %v316_v40  ;;  %v417_v20 = vadd.f32 %v416_v11, %v415_v14  ;;  %v1142_v35 = vunpack.c.l.bf16 %v1237_v25  ;;  %v337_v36 = vsel %vm299_vm1, %v1139_v28, 0.0 }
  0x2d   : > { %v1143_v42 = vunpack.c.h.bf16 %v1237_v25  ;;  %v426_v39 = vsel %vm299_vm1, %v384_v31, 0.0  ;;  %v1146_v48 = vunpack.c.l.bf16 %v1238_v38  ;;  %v387_v50 = vmul.f32 %v1130_v59, %v1130_v59 }
  0x2e   : > { %v320_v51 = vadd.f32 %v319_v41, %v318_v44  ;;  %v419_v27 = vadd.f32 %v418_v18, %v417_v20  ;;  %v339_v44 = vsel %vm299_vm1, %v1142_v35, 0.0  ;;  %v428_v43 = vsel %vm299_vm1, %v385_v37, 0.0 }
  0x2f   : > { %v341_v49 = vsel %vm299_vm1, %v1143_v42, 0.0  ;;  %v1147_v55 = vunpack.c.h.bf16 %v1238_v38  ;;  %v343_v56 = vsel %vm299_vm1, %v1146_v48, 0.0  ;;  %v389_v63 = vmul.f32 %v1134_v8, %v1134_v8 }
  0x30   : > { %v322_v57 = vadd.f32 %v321_v45, %v320_v51  ;;  %v421_v34 = vadd.f32 %v420_v24, %v419_v27  ;;  %v386_v45 = vmul.f32 %v1127_v53, %v1127_v53  ;;  %v1239_v51 = vld [vmem:[%s1404_s22 + $0x60] sm:$0xff]   ;;  %v432_v59 = vsel %vm299_vm1, %v387_v50, 0.0 }
  0x31   : > { %v1150_v61 = vunpack.c.l.bf16 %v1239_v51  ;;  %v345_v62 = vsel %vm299_vm1, %v1147_v55, 0.0  ;;  %v1151_v4 = vunpack.c.h.bf16 %v1239_v51  ;;  %v391_v12 = vmul.f32 %v1138_v21, %v1138_v21  ;;  %v1242_v21 = vld [vmem:[%s1404_s22 + $0x78] sm:$0xff]  }
  0x32   : > { %v324_v0 = vadd.f32 %v323_v54, %v322_v57  ;;  %v423_v41 = vadd.f32 %v422_v30, %v421_v34  ;;  %v388_v57 = vmul.f32 %v1131_v2, %v1131_v2  ;;  %v430_v53 = vsel %vm299_vm1, %v386_v45, 0.0 }
  0x33   : > { %v347_v5 = vsel %vm299_vm1, %v1150_v61, 0.0  ;;  %v349_v11 = vsel %vm299_vm1, %v1151_v4, 0.0  ;;  %v436_v8 = vsel %vm299_vm1, %v389_v63, 0.0  ;;  %v393_v25 = vmul.f32 %v1142_v35, %v1142_v35 }
  0x34   : > { %v326_v6 = vadd.f32 %v325_v60, %v324_v0  ;;  %v425_v47 = vadd.f32 %v424_v32, %v423_v41  ;;  %v1240_v0 = vld [vmem:[%s1404_s22 + $0x68] sm:$0xff]   ;;  %v434_v2 = vsel %vm299_vm1, %v388_v57, 0.0  ;;  %v1162_v37 = vunpack.c.l.bf16 %v1242_v21 }
  0x35   : > { %v1154_v10 = vunpack.c.l.bf16 %v1240_v0  ;;  %v1155_v17 = vunpack.c.h.bf16 %v1240_v0  ;;  %v395_v38 = vmul.f32 %v1146_v48, %v1146_v48  ;;  %v397_v50 = vmul.f32 %v1150_v61, %v1150_v61 }
  0x36   : > { %v328_v13 = vadd.f32 %v327_v3, %v326_v6  ;;  %v427_v54 = vadd.f32 %v426_v39, %v425_v47  ;;  %v390_v6 = vmul.f32 %v1135_v15, %v1135_v15  ;;  %v359_v45 = vsel %vm299_vm1, %v1162_v37, 0.0 }
  0x37   : > { %v351_v18 = vsel %vm299_vm1, %v1154_v10, 0.0  ;;  %v353_v24 = vsel %vm299_vm1, %v1155_v17, 0.0  ;;  %v396_v39 = vmul.f32 %v1147_v55, %v1147_v55  ;;  %v398_v48 = vmul.f32 %v1151_v4, %v1151_v4 }
  0x38   : > { %v330_v19 = vadd.f32 %v329_v9, %v328_v13  ;;  %v429_v60 = vadd.f32 %v428_v43, %v427_v54  ;;  %v1241_v13 = vld [vmem:[%s1404_s22 + $0x70] sm:$0xff]   ;;  %v438_v15 = vsel %vm299_vm1, %v390_v6, 0.0  ;;  %v448_v43 = vsel %vm299_vm1, %v395_v38, 0.0 }
  0x39   : > { %v1158_v23 = vunpack.c.l.bf16 %v1241_v13  ;;  %v1159_v31 = vunpack.c.h.bf16 %v1241_v13  ;;  %v450_v54 = vsel %vm299_vm1, %v396_v39, 0.0  ;;  %v454_v63 = vsel %vm299_vm1, %v398_v48, 0.0 }
  0x3a   : > { %v332_v26 = vadd.f32 %v331_v16, %v330_v19  ;;  %v431_v3 = vadd.f32 %v430_v53, %v429_v60  ;;  %v392_v19 = vmul.f32 %v1139_v28, %v1139_v28  ;;  %v399_v53 = vmul.f32 %v1154_v10, %v1154_v10 }
  0x3b   : > { %v355_v30 = vsel %vm299_vm1, %v1158_v23, 0.0  ;;  %v357_v32 = vsel %vm299_vm1, %v1159_v31, 0.0  ;;  %v401_v61 = vmul.f32 %v1158_v23, %v1158_v23  ;;  %v402_v4 = vmul.f32 %v1159_v31, %v1159_v31 }
  0x3c   : > { %v334_v33 = vadd.f32 %v333_v22, %v332_v26  ;;  %v433_v9 = vadd.f32 %v432_v59, %v431_v3  ;;  %v440_v26 = vsel %vm299_vm1, %v391_v12, 0.0  ;;  %v442_v34 = vsel %vm299_vm1, %v392_v19, 0.0 }
  0x3d   : > { %v460_v10 = vsel %vm299_vm1, %v401_v61, 0.0 }
  0x3e   : > { %v336_v40 = vadd.f32 %v335_v29, %v334_v33  ;;  %v435_v16 = vadd.f32 %v434_v2, %v433_v9  ;;  %v394_v33 = vmul.f32 %v1143_v42, %v1143_v42  ;;  %v403_v9 = vmul.f32 %v1162_v37, %v1162_v37 }
  0x40   : > { %v338_v46 = vadd.f32 %v337_v36, %v336_v40  ;;  %v437_v22 = vadd.f32 %v436_v8, %v435_v16  ;;  %v444_v40 = vsel %vm299_vm1, %v393_v25, 0.0  ;;  %v298_v8 = vld [vmem:[#allocation2] sm:$0x1] }
  0x42   : > { %v340_v52 = vadd.f32 %v339_v44, %v338_v46  ;;  %v439_v29 = vadd.f32 %v438_v15, %v437_v22  ;;  %v1163_v44 = vunpack.c.h.bf16 %v1242_v21  ;;  %v446_v46 = vsel %vm299_vm1, %v394_v33, 0.0 }
  0x44   : > { %v342_v58 = vadd.f32 %v341_v49, %v340_v52  ;;  %v441_v36 = vadd.f32 %v440_v26, %v439_v29  ;;  %v361_v49 = vsel %vm299_vm1, %v1163_v44, 0.0  ;;  %v404_v13 = vmul.f32 %v1163_v44, %v1163_v44  ;;  %v372_v29 = vld [vmem:[#allocation3] sm:$0x1] }
  0x46   : > { %v344_v1 = vadd.f32 %v343_v56, %v342_v58  ;;  %v443_v41 = vadd.f32 %v442_v34, %v441_v36  ;;  %v452_v58 = vsel %vm299_vm1, %v397_v50, 0.0 }
  0x48   : > { %v346_v7 = vadd.f32 %v345_v62, %v344_v1  ;;  %v445_v42 = vadd.f32 %v444_v40, %v443_v41  ;;  %v400_v62 = vmul.f32 %v1155_v17, %v1155_v17  ;;  %v456_v1 = vsel %vm299_vm1, %v399_v53, 0.0 }
  0x4a   : > { %v348_v14 = vadd.f32 %v347_v5, %v346_v7  ;;  %v447_v52 = vadd.f32 %v446_v46, %v445_v42  ;;  %v458_v6 = vsel %vm299_vm1, %v400_v62, 0.0 }
  0x4c   : > { %v350_v20 = vadd.f32 %v349_v11, %v348_v14  ;;  %v449_v57 = vadd.f32 %v448_v43, %v447_v52  ;;  %v462_v14 = vsel %vm299_vm1, %v402_v4, 0.0 }
  0x4e   : > { %v352_v27 = vadd.f32 %v351_v18, %v350_v20  ;;  %v451_v60 = vadd.f32 %v450_v54, %v449_v57  ;;  %v464_v18 = vsel %vm299_vm1, %v403_v9, 0.0  ;;  %v466_v20 = vsel %vm299_vm1, %v404_v13, 0.0 }
  0x50   : > { %v354_v28 = vadd.f32 %v353_v24, %v352_v27  ;;  %v453_v0 = vadd.f32 %v452_v58, %v451_v60 }
  0x52   : > { %v356_v35 = vadd.f32 %v355_v30, %v354_v28  ;;  %v455_v5 = vadd.f32 %v454_v63, %v453_v0 }
  0x54   : > { %v358_v47 = vadd.f32 %v357_v32, %v356_v35  ;;  %v457_v7 = vadd.f32 %v456_v1, %v455_v5 }
  0x56   : > { %v360_v51 = vadd.f32 %v359_v45, %v358_v47  ;;  %v459_v12 = vadd.f32 %v458_v6, %v457_v7 }
  0x58   : > { %v362_v56 = vadd.f32 %v361_v49, %v360_v51  ;;  %v461_v17 = vadd.f32 %v460_v10, %v459_v12 }
  0x5a   : > { %v363_v55 = vrot.slane %v362_v56, 4  ;;  %v463_v15 = vadd.f32 %v462_v14, %v461_v17 }
  0x5c   : > { %v364_v59 = vadd.f32 %v363_v55, %v362_v56  ;;  %v465_v22 = vadd.f32 %v464_v18, %v463_v15 }
  0x5e   : > { %v365_v3 = vrot.slane %v364_v59, 2  ;;  %v467_v23 = vadd.f32 %v466_v20, %v465_v22 }
  0x60   : > { %v366_v2 = vadd.f32 %v365_v3, %v364_v59  ;;  %v468_v24 = vrot.slane %v467_v23, 4 }
  0x62   : > { %v367_v11 = vrot.slane %v366_v2, 1  ;;  %v469_v25 = vadd.f32 %v468_v24, %v467_v23 }
  0x64   : > { %v368_v16 = vadd.f32 %v367_v11, %v366_v2  ;;  %v470_v26 = vrot.slane %v469_v25, 2 }
  0x66   : > { %v369_v19 = vadd.f32 %v368_v16, %v298_v8  ;;  %v471_v21 = vadd.f32 %v470_v26, %v469_v25 }
  0x68   : > { %371 = vst.msk [vmem:[#allocation2] sm:$0x1] %vm370_vm2, %v369_v19  ;;  %v472_v27 = vrot.slane %v471_v21, 1 }
  0x6a   : > { %v473_v31 = vadd.f32 %v472_v27, %v471_v21 }
  0x6c   : > { %v474_v30 = vadd.f32 %v473_v31, %v372_v29 }
  0x6e   : > { %475 = vst.msk [vmem:[#allocation3] sm:$0x1] %vm370_vm2, %v474_v30 }
  0x6f PF: > { %p1028_p8 = scmp.ne.s32.totalorder %s1329_s12, 1 }
  0x70   : > { %v544_v33 = vld [vmem:[#allocation2] sm:$0x1] (!%p1028_p8)  ;;  %vm545_vm3 = vcmask (!%p1028_p8), 57344   ;;  %v1243_v55 = vld [vmem:[%s1404_s22 + $0x8] sm:$0xff] (!%p1028_p8)   ;;  %v1244_v60 = vld [vmem:[%s1404_s22 + $0x10] sm:$0xff] (!%p1028_p8)   ;;  %vm888_vm6 = vcmask (!%p1028_p8), 60416  }
  0x71   : > { %479 = sbr.rel (%p1028_p8) target bundleno = 410 (0x19a), region = 44  ;;  %v546_v28 = vsel (!%p1028_p8), %vm545_vm3, %v544_v33, 0.0  ;;  %v1165_v58 = vld [vmem:[%s1404_s22] sm:$0xff] (!%p1028_p8)   ;;  %v1245_v62 = vld [vmem:[%s1404_s22 + $0x18] sm:$0xff] (!%p1028_p8)   ;;  %v1170_v1 = vunpack.c.l.bf16 (!%p1028_p8), %v1243_v55  ;;  %v1171_v3 = vunpack.c.h.bf16 (!%p1028_p8), %v1243_v55  ;;  %v1247_v5 = vld [vmem:[%s1404_s22 + $0x28] sm:$0xff] (!%p1028_p8)   ;;  %v1174_v4 = vunpack.c.l.bf16 (!%p1028_p8), %v1244_v60 }
  0x72   : > { %547 = vadd.xlane.f32.xlu0 (!%p1028_p8), %v546_v28  ;;  %v1504_v63 = vld [vmem:[%s1404_s22 + $0x20] sm:$0xff] (!%p1028_p8)   ;;  %v1166_v0 = vunpack.c.l.bf16 (!%p1028_p8), %v1165_v58  ;;  %v1167_v61 = vunpack.c.h.bf16 (!%p1028_p8), %v1165_v58  ;;  %v1175_v6 = vunpack.c.h.bf16 (!%p1028_p8), %v1244_v60  ;;  %v1178_v2 = vunpack.c.l.bf16 (!%p1028_p8), %v1245_v62  ;;  %v1248_v7 = vld [vmem:[%s1404_s22 + $0x30] sm:$0xff] (!%p1028_p8)   ;;  %v1249_v12 = vld [vmem:[%s1404_s22 + $0x38] sm:$0xff] (!%p1028_p8)  }
  0x73   : > { %v1179_v10 = vunpack.c.h.bf16 (!%p1028_p8), %v1245_v62  ;;  %v1182_v11 = vunpack.c.l.bf16 (!%p1028_p8), %v1504_v63  ;;  %v1250_v8 = vld [vmem:[%s1404_s22 + $0x40] sm:$0xff] (!%p1028_p8)   ;;  %v1183_v14 = vunpack.c.h.bf16 (!%p1028_p8), %v1504_v63  ;;  %v1186_v16 = vunpack.c.l.bf16 (!%p1028_p8), %v1247_v5  ;;  %v1251_v17 = vld [vmem:[%s1404_s22 + $0x48] sm:$0xff] (!%p1028_p8)   ;;  %v1252_v18 = vld [vmem:[%s1404_s22 + $0x50] sm:$0xff] (!%p1028_p8)  }
  0x74   : > { %v1187_v15 = vunpack.c.h.bf16 (!%p1028_p8), %v1247_v5  ;;  %v1190_v20 = vunpack.c.l.bf16 (!%p1028_p8), %v1248_v7  ;;  %v1191_v22 = vunpack.c.h.bf16 (!%p1028_p8), %v1248_v7  ;;  %v1253_v23 = vld [vmem:[%s1404_s22 + $0x58] sm:$0xff] (!%p1028_p8)   ;;  %v1194_v25 = vunpack.c.l.bf16 (!%p1028_p8), %v1249_v12  ;;  %v1254_v27 = vld [vmem:[%s1404_s22 + $0x60] sm:$0xff] (!%p1028_p8)   ;;  %v1255_v29 = vld [vmem:[%s1404_s22 + $0x68] sm:$0xff] (!%p1028_p8)  }
  0x75   : > { %v557_v34 = vld [vmem:[#allocation3] sm:$0x1] (!%p1028_p8)  ;;  %v1195_v26 = vunpack.c.h.bf16 (!%p1028_p8), %v1249_v12  ;;  %v1198_v21 = vunpack.c.l.bf16 (!%p1028_p8), %v1250_v8  ;;  %v1199_v30 = vunpack.c.h.bf16 (!%p1028_p8), %v1250_v8  ;;  %v1202_v33 = vunpack.c.l.bf16 (!%p1028_p8), %v1251_v17 }
  0x76   : > { %v558_v36 = vsel (!%p1028_p8), %vm545_vm3, %v557_v34, 0.0  ;;  %v1203_v34 = vunpack.c.h.bf16 (!%p1028_p8), %v1251_v17  ;;  %v1206_v28 = vunpack.c.l.bf16 (!%p1028_p8), %v1252_v18 }
  0x77   : > { %559 = vadd.xlane.f32.xlu0 (!%p1028_p8), %v558_v36  ;;  %v1256_v36 = vld [vmem:[%s1404_s22 + $0x70] sm:$0xff] (!%p1028_p8)  }
  0xff   : > { %v548_v37 = vpop.xlane.xlu0 %547 }
 0x100   : > { %v549_v32 = vrot.slane %v548_v37, 4 }
 0x102   : > { %v550_v38 = vadd.f32 %v549_v32, %v548_v37  ;;  %v1257_v37 = vld [vmem:[%s1404_s22 + $0x78] sm:$0xff]   ;;  %v1207_v32 = vunpack.c.h.bf16 %v1252_v18 }
 0x104   : > { %v560_v40 = vpop.xlane.xlu0 %559  ;;  %v551_v35 = vrot.slane %v550_v38, 2 }
 0x105   : > { %v561_v41 = vrot.slane %v560_v40, 4 }
 0x106   : > { %v552_v45 = vadd.f32 %v551_v35, %v550_v38  ;;  %v1210_v38 = vunpack.c.l.bf16 %v1253_v23  ;;  %v1214_v35 = vunpack.c.l.bf16 %v1254_v27 }
 0x107   : > { %v562_v44 = vadd.f32 %v561_v41, %v560_v40  ;;  %v1211_v40 = vunpack.c.h.bf16 %v1253_v23  ;;  %v1215_v41 = vunpack.c.h.bf16 %v1254_v27 }
 0x108   : > { %v553_v46 = vrot.slane %v552_v45, 1 }
 0x109   : > { %v563_v39 = vrot.slane %v562_v44, 2 }
 0x10a   : > { %v554_v42 = vadd.f32 %v553_v46, %v552_v45  ;;  %v1219_v45 = vunpack.c.h.bf16 %v1255_v29  ;;  %v1223_v46 = vunpack.c.h.bf16 %v1256_v36 }
 0x10b   : > { %v564_v47 = vadd.f32 %v563_v39, %v562_v44  ;;  %v1218_v44 = vunpack.c.l.bf16 %v1255_v29  ;;  %v1222_v39 = vunpack.c.l.bf16 %v1256_v36 }
 0x10c   : > { %1258 = vpush %v554_v42  ;;  %v1227_v42 = vunpack.c.h.bf16 %v1257_v37 }
 0x10d   : > { %v565_v49 = vrot.slane %v564_v47, 1 }
 0x10f   : > { %v566_v50 = vadd.f32 %v565_v49, %v564_v47  ;;  %v1226_v47 = vunpack.c.l.bf16 %v1257_v37 }
 0x111   : > { %1260 = vpush %v566_v50 }
 0x13d   : > { %s1259_s26 = spop %1258 }
 0x13e   : > { %v556_v43 = vstv %s1259_s26 }
 0x13f   : > { %v1495_v51 = vmul.f32 0.00048828125, %v556_v43 }
 0x141   : > { %v571_v52 = vmul.f32 2048.0, %v1495_v51  ;;  %v586_v49 = vsub.f32 %v1166_v0, %v1495_v51  ;;  %v587_v50 = vsub.f32 %v1167_v61, %v1495_v51  ;;  %v588_v43 = vsub.f32 %v1170_v1, %v1495_v51 }
 0x142   : > { %s1261_s27 = spop %1260  ;;  %v595_v58 = vsub.f32 %v1183_v14, %v1495_v51  ;;  %v596_v55 = vsub.f32 %v1186_v16, %v1495_v51  ;;  %v597_v60 = vsub.f32 %v1187_v15, %v1495_v51  ;;  %v598_v62 = vsub.f32 %v1190_v20, %v1495_v51 }
 0x143   : > { %v572_v48 = vmul.f32 %v571_v52, %v1495_v51  ;;  %v568_v54 = vstv %s1261_s27  ;;  %v589_v52 = vsub.f32 %v1171_v3, %v1495_v51  ;;  %v599_v63 = vsub.f32 %v1191_v22, %v1495_v51 }
 0x144   : > { %v601_v0 = vsub.f32 %v1195_v26, %v1495_v51  ;;  %v602_v61 = vsub.f32 %v1198_v21, %v1495_v51  ;;  %v603_v1 = vsub.f32 %v1199_v30, %v1495_v51  ;;  %v604_v3 = vsub.f32 %v1202_v33, %v1495_v51 }
 0x145   : > { %v573_v56 = vsub.f32 %v568_v54, %v572_v48  ;;  %v590_v48 = vsub.f32 %v1174_v4, %v1495_v51  ;;  %v591_v54 = vsub.f32 %v1175_v6, %v1495_v51  ;;  %v605_v5 = vsub.f32 %v1203_v34, %v1495_v51 }
 0x146   : > { %v606_v4 = vsub.f32 %v1206_v28, %v1495_v51  ;;  %v607_v6 = vsub.f32 %v1207_v32, %v1495_v51  ;;  %v609_v7 = vsub.f32 %v1211_v40, %v1495_v51  ;;  %v613_v12 = vsub.f32 %v1219_v45, %v1495_v51 }
 0x147   : > { %v575_v57 = vmul.f32 0.0004885198, %v573_v56  ;;  %v592_v56 = vsub.f32 %v1178_v2, %v1495_v51  ;;  %v608_v2 = vsub.f32 %v1210_v38, %v1495_v51  ;;  %v615_v14 = vsub.f32 %v1223_v46, %v1495_v51 }
 0x148   : > { %v616_v16 = vsub.f32 %v1226_v47, %v1495_v51  ;;  %v617_v17 = vsub.f32 %v1227_v42, %v1495_v51 }
 0x149   : > { %v576_v53 = vmax.f32 %v575_v57, 0.0  ;;  %v593_v57 = vsub.f32 %v1179_v10, %v1495_v51  ;;  %v611_v10 = vsub.f32 %v1215_v41, %v1495_v51  ;;  %v1029_v41 = vld [vmem:[%s1733_s1] ss:$0 sm:$0xff] }
 0x14b   : > { %1303 = vrsqrt.f32 %v576_v53  ;;  %vm579_vm4 = vcmp.eq.f32.partialorder %v576_v53, inf  ;;  %v582_v13 = vand.u32 2147483648, %v576_v53  ;;  %vm581_vm5 = vcmp.eq.f32.partialorder %v576_v53, 0.0 }
 0x155   : > { %v1304_v59 = vpop.eup %1303 }
 0x156   : > { %v578_v9 = vmul.f32 %v1304_v59, %v576_v53  ;;  %v600_v59 = vsub.f32 %v1194_v25, %v1495_v51 }
 0x158   : > { %v580_v19 = vsel %vm579_vm4, %v576_v53, %v578_v9  ;;  %v594_v53 = vsub.f32 %v1182_v11, %v1495_v51  ;;  %v610_v9 = vsub.f32 %v1214_v35, %v1495_v51  ;;  %v612_v11 = vsub.f32 %v1218_v44, %v1495_v51 }
 0x159   : > { %v583_v24 = vsel %vm581_vm5, %v582_v13, %v580_v19  ;;  %v614_v13 = vsub.f32 %v1222_v39, %v1495_v51 }
 0x15a   : > { %v584_v31 = vadd.f32 1e-05, %v583_v24 }
 0x15c   : > { %1305 = vrcp.f32 %v584_v31 }
 0x166   : > { %v1306_v8 = vpop.eup %1305 }
 0x167   : > { %v618_v18 = vmul.f32 %v1306_v8, %v586_v49  ;;  %v619_v19 = vmul.f32 %v1306_v8, %v587_v50  ;;  %v620_v15 = vmul.f32 %v1306_v8, %v588_v43  ;;  %v621_v20 = vmul.f32 %v1306_v8, %v589_v52 }
 0x168   : > { %v622_v22 = vmul.f32 %v1306_v8, %v590_v48  ;;  %v623_v23 = vmul.f32 %v1306_v8, %v591_v54  ;;  %v624_v24 = vmul.f32 %v1306_v8, %v592_v56  ;;  %v625_v25 = vmul.f32 %v1306_v8, %v593_v57 }
 0x169   : > { %v626_v26 = vmul.f32 %v1306_v8, %v594_v53  ;;  %v627_v21 = vmul.f32 %v1306_v8, %v595_v58  ;;  %v628_v27 = vmul.f32 %v1306_v8, %v596_v55  ;;  %v629_v29 = vmul.f32 %v1306_v8, %v597_v60 }
 0x16a   : > { %v630_v31 = vmul.f32 %v1306_v8, %v598_v62  ;;  %v631_v30 = vmul.f32 %v1306_v8, %v599_v63  ;;  %v632_v33 = vmul.f32 %v1306_v8, %v600_v59  ;;  %v633_v34 = vmul.f32 %v1306_v8, %v601_v0 }
 0x16b   : > { %v634_v28 = vmul.f32 %v1306_v8, %v602_v61  ;;  %v635_v36 = vmul.f32 %v1306_v8, %v603_v1  ;;  %v636_v37 = vmul.f32 %v1306_v8, %v604_v3  ;;  %v637_v51 = vmul.f32 %v1306_v8, %v605_v5 }
 0x16c   : > { %v638_v32 = vmul.f32 %v1306_v8, %v606_v4  ;;  %v639_v38 = vmul.f32 %v1306_v8, %v607_v6  ;;  %v640_v40 = vmul.f32 %v1306_v8, %v608_v2  ;;  %v641_v35 = vmul.f32 %v1306_v8, %v609_v7 }
 0x16d   : > { %v642_v44 = vmul.f32 %v1306_v8, %v610_v9  ;;  %v643_v45 = vmul.f32 %v1306_v8, %v611_v10  ;;  %v644_v39 = vmul.f32 %v1306_v8, %v612_v11  ;;  %v645_v46 = vmul.f32 %v1306_v8, %v613_v12  ;;  %v1030_v11 = vld [vmem:[%s1734_s2] ss:$0 sm:$0xff] }
 0x16e   : > { %v646_v47 = vmul.f32 %v1306_v8, %v614_v13  ;;  %v647_v42 = vmul.f32 %v1306_v8, %v615_v14  ;;  %v648_v49 = vmul.f32 %v1306_v8, %v616_v16  ;;  %v649_v50 = vmul.f32 %v1306_v8, %v617_v17 }
 0x16f   : > { %v657_v43 = vmul.f32 %v1029_v41, %v618_v18  ;;  %v658_v52 = vmul.f32 %v1029_v41, %v619_v19  ;;  %v659_v48 = vmul.f32 %v1029_v41, %v620_v15  ;;  %v660_v54 = vmul.f32 %v1029_v41, %v621_v20 }
 0x170   : > { %v661_v56 = vmul.f32 %v1029_v41, %v622_v22  ;;  %v662_v57 = vmul.f32 %v1029_v41, %v623_v23  ;;  %v663_v53 = vmul.f32 %v1029_v41, %v624_v24  ;;  %v664_v58 = vmul.f32 %v1029_v41, %v625_v25 }
 0x171   : > { %v665_v55 = vmul.f32 %v1029_v41, %v626_v26  ;;  %v666_v60 = vmul.f32 %v1029_v41, %v627_v21  ;;  %v667_v62 = vmul.f32 %v1029_v41, %v628_v27  ;;  %v668_v63 = vmul.f32 %v1029_v41, %v629_v29 }
 0x172   : > { %v669_v59 = vmul.f32 %v1029_v41, %v630_v31  ;;  %v670_v0 = vmul.f32 %v1029_v41, %v631_v30  ;;  %v671_v61 = vmul.f32 %v1029_v41, %v632_v33  ;;  %v672_v1 = vmul.f32 %v1029_v41, %v633_v34 }
 0x173   : > { %v673_v3 = vmul.f32 %v1029_v41, %v634_v28  ;;  %v674_v5 = vmul.f32 %v1029_v41, %v635_v36  ;;  %v675_v4 = vmul.f32 %v1029_v41, %v636_v37  ;;  %v676_v6 = vmul.f32 %v1029_v41, %v637_v51 }
 0x174   : > { %v677_v2 = vmul.f32 %v1029_v41, %v638_v32  ;;  %v678_v7 = vmul.f32 %v1029_v41, %v639_v38  ;;  %v679_v9 = vmul.f32 %v1029_v41, %v640_v40  ;;  %v680_v10 = vmul.f32 %v1029_v41, %v641_v35 }
 0x175   : > { %v681_v12 = vmul.f32 %v1029_v41, %v642_v44  ;;  %v682_v8 = vmul.f32 %v1029_v41, %v643_v45  ;;  %v683_v13 = vmul.f32 %v1029_v41, %v644_v39  ;;  %v684_v14 = vmul.f32 %v1029_v41, %v645_v46 }
 0x176   : > { %v685_v16 = vmul.f32 %v1029_v41, %v646_v47  ;;  %v686_v17 = vmul.f32 %v1029_v41, %v647_v42  ;;  %v687_v18 = vmul.f32 %v1029_v41, %v648_v49  ;;  %v688_v19 = vmul.f32 %v1029_v41, %v649_v50 }
 0x177   : > { %v1557_v15 = vadd.f32 %v1030_v11, %v657_v43  ;;  %v1559_v20 = vadd.f32 %v1030_v11, %v658_v52  ;;  %v1561_v22 = vadd.f32 %v1030_v11, %v659_v48  ;;  %v1563_v23 = vadd.f32 %v1030_v11, %v660_v54 }
 0x178   : > { %v1565_v24 = vadd.f32 %v1030_v11, %v661_v56  ;;  %v1567_v25 = vadd.f32 %v1030_v11, %v662_v57  ;;  %v1569_v26 = vadd.f32 %v1030_v11, %v663_v53  ;;  %v1571_v21 = vadd.f32 %v1030_v11, %v664_v58 }
 0x179   : > { %v1573_v27 = vadd.f32 %v1030_v11, %v665_v55  ;;  %v1575_v29 = vadd.f32 %v1030_v11, %v666_v60  ;;  %v1577_v31 = vadd.f32 %v1030_v11, %v667_v62  ;;  %v1579_v30 = vadd.f32 %v1030_v11, %v668_v63 }
 0x17a   : > { %v1581_v33 = vadd.f32 %v1030_v11, %v669_v59  ;;  %v1583_v34 = vadd.f32 %v1030_v11, %v670_v0  ;;  %v1585_v28 = vadd.f32 %v1030_v11, %v671_v61  ;;  %v1587_v36 = vadd.f32 %v1030_v11, %v672_v1 }
 0x17b   : > { %v1589_v37 = vadd.f32 %v1030_v11, %v673_v3  ;;  %v1591_v51 = vadd.f32 %v1030_v11, %v674_v5  ;;  %v1593_v32 = vadd.f32 %v1030_v11, %v675_v4  ;;  %v1595_v38 = vadd.f32 %v1030_v11, %v676_v6 }
 0x17c   : > { %v1597_v40 = vadd.f32 %v1030_v11, %v677_v2  ;;  %v1599_v35 = vadd.f32 %v1030_v11, %v678_v7  ;;  %v1601_v41 = vadd.f32 %v1030_v11, %v679_v9  ;;  %v1603_v44 = vadd.f32 %v1030_v11, %v680_v10 }
 0x17d   : > { %v1605_v45 = vadd.f32 %v1030_v11, %v681_v12  ;;  %v1607_v39 = vadd.f32 %v1030_v11, %v682_v8  ;;  %v1609_v46 = vadd.f32 %v1030_v11, %v683_v13  ;;  %v1611_v47 = vadd.f32 %v1030_v11, %v684_v14 }
 0x17e   : > { %v1613_v42 = vadd.f32 %v1030_v11, %v685_v16  ;;  %v1615_v49 = vadd.f32 %v1030_v11, %v686_v17  ;;  %v1617_v50 = vadd.f32 %v1030_v11, %v687_v18  ;;  %v1619_v43 = vadd.f32 %v1030_v11, %v688_v19 }
 0x17f   : > { %v728_v52 = vmax.f32 %v1557_v15, 0.0  ;;  %v729_v48 = vmax.f32 %v1559_v20, 0.0  ;;  %v730_v54 = vmax.f32 %v1561_v22, 0.0  ;;  %v731_v56 = vmax.f32 %v1563_v23, 0.0 }
 0x180   : > { %v732_v57 = vmax.f32 %v1565_v24, 0.0  ;;  %v733_v53 = vmax.f32 %v1567_v25, 0.0  ;;  %v734_v58 = vmax.f32 %v1569_v26, 0.0  ;;  %v735_v55 = vmax.f32 %v1571_v21, 0.0 }
 0x181   : > { %v736_v60 = vmax.f32 %v1573_v27, 0.0  ;;  %v737_v62 = vmax.f32 %v1575_v29, 0.0  ;;  %v738_v63 = vmax.f32 %v1577_v31, 0.0  ;;  %v739_v59 = vmax.f32 %v1579_v30, 0.0 }
 0x182   : > { %v740_v0 = vmax.f32 %v1581_v33, 0.0  ;;  %v741_v61 = vmax.f32 %v1583_v34, 0.0  ;;  %v742_v1 = vmax.f32 %v1585_v28, 0.0  ;;  %v743_v3 = vmax.f32 %v1587_v36, 0.0 }
 0x183   : > { %v744_v5 = vmax.f32 %v1589_v37, 0.0  ;;  %v745_v4 = vmax.f32 %v1591_v51, 0.0  ;;  %v746_v6 = vmax.f32 %v1593_v32, 0.0  ;;  %v747_v2 = vmax.f32 %v1595_v38, 0.0 }
 0x184   : > { %v748_v7 = vmax.f32 %v1597_v40, 0.0  ;;  %v749_v9 = vmax.f32 %v1599_v35, 0.0  ;;  %v750_v10 = vmax.f32 %v1601_v41, 0.0  ;;  %v751_v11 = vmax.f32 %v1603_v44, 0.0 }
 0x185   : > { %v752_v12 = vmax.f32 %v1605_v45, 0.0  ;;  %v753_v8 = vmax.f32 %v1607_v39, 0.0  ;;  %v754_v13 = vmax.f32 %v1609_v46, 0.0  ;;  %v755_v14 = vmax.f32 %v1611_v47, 0.0 }
 0x186   : > { %v756_v16 = vmax.f32 %v1613_v42, 0.0  ;;  %v757_v17 = vmax.f32 %v1615_v49, 0.0  ;;  %v758_v18 = vmax.f32 %v1617_v50, 0.0  ;;  %v759_v19 = vmax.f32 %v1619_v43, 0.0 }
 0x187   : > { %v1068_v15 = vpack.c.bf16 %v728_v52, %v728_v52  ;;  %v1069_v20 = vpack.c.bf16 %v729_v48, %v729_v48  ;;  %v1070_v22 = vpack.c.bf16 %v730_v54, %v730_v54  ;;  %v1071_v23 = vpack.c.bf16 %v731_v56, %v731_v56 }
 0x188   : > { %v1072_v24 = vpack.c.bf16 %v732_v57, %v732_v57  ;;  %v1073_v25 = vpack.c.bf16 %v733_v53, %v733_v53  ;;  %v1074_v26 = vpack.c.bf16 %v734_v58, %v734_v58  ;;  %v1075_v21 = vpack.c.bf16 %v735_v55, %v735_v55 }
 0x189   : > { %v1076_v27 = vpack.c.bf16 %v736_v60, %v736_v60  ;;  %v1077_v29 = vpack.c.bf16 %v737_v62, %v737_v62  ;;  %v1078_v31 = vpack.c.bf16 %v738_v63, %v738_v63  ;;  %v1079_v30 = vpack.c.bf16 %v739_v59, %v739_v59  ;;  %889 = vst.msk [vmem:[%s1409_s25] sm:$0xf] %vm888_vm6, %v1068_v15 }
 0x18a   : > { %890 = vst.msk [vmem:[%s1409_s25 + $0x4] sm:$0xf] %vm888_vm6, %v1069_v20  ;;  %891 = vst.msk [vmem:[%s1409_s25 + $0x8] sm:$0xf] %vm888_vm6, %v1070_v22  ;;  %v1080_v33 = vpack.c.bf16 %v740_v0, %v740_v0  ;;  %v1081_v34 = vpack.c.bf16 %v741_v61, %v741_v61  ;;  %v1082_v28 = vpack.c.bf16 %v742_v1, %v742_v1 }
 0x18b   : > { %892 = vst.msk [vmem:[%s1409_s25 + $0xc] sm:$0xf] %vm888_vm6, %v1071_v23  ;;  %v1083_v36 = vpack.c.bf16 %v743_v3, %v743_v3  ;;  %893 = vst.msk [vmem:[%s1409_s25 + $0x10] sm:$0xf] %vm888_vm6, %v1072_v24  ;;  %v1084_v37 = vpack.c.bf16 %v744_v5, %v744_v5  ;;  %v1085_v51 = vpack.c.bf16 %v745_v4, %v745_v4 }
 0x18c   : > { %894 = vst.msk [vmem:[%s1409_s25 + $0x14] sm:$0xf] %vm888_vm6, %v1073_v25  ;;  %895 = vst.msk [vmem:[%s1409_s25 + $0x18] sm:$0xf] %vm888_vm6, %v1074_v26  ;;  %v1086_v32 = vpack.c.bf16 %v746_v6, %v746_v6  ;;  %v1087_v38 = vpack.c.bf16 %v747_v2, %v747_v2  ;;  %v1088_v40 = vpack.c.bf16 %v748_v7, %v748_v7 }
 0x18d   : > { %896 = vst.msk [vmem:[%s1409_s25 + $0x1c] sm:$0xf] %vm888_vm6, %v1075_v21  ;;  %897 = vst.msk [vmem:[%s1409_s25 + $0x20] sm:$0xf] %vm888_vm6, %v1076_v27  ;;  %v1089_v35 = vpack.c.bf16 %v749_v9, %v749_v9  ;;  %v1090_v41 = vpack.c.bf16 %v750_v10, %v750_v10  ;;  %v1091_v44 = vpack.c.bf16 %v751_v11, %v751_v11 }
 0x18e   : > { %898 = vst.msk [vmem:[%s1409_s25 + $0x24] sm:$0xf] %vm888_vm6, %v1077_v29  ;;  %899 = vst.msk [vmem:[%s1409_s25 + $0x28] sm:$0xf] %vm888_vm6, %v1078_v31  ;;  %v1092_v45 = vpack.c.bf16 %v752_v12, %v752_v12  ;;  %v1093_v39 = vpack.c.bf16 %v753_v8, %v753_v8  ;;  %v1094_v46 = vpack.c.bf16 %v754_v13, %v754_v13 }
 0x18f   : > { %900 = vst.msk [vmem:[%s1409_s25 + $0x2c] sm:$0xf] %vm888_vm6, %v1079_v30  ;;  %901 = vst.msk [vmem:[%s1409_s25 + $0x30] sm:$0xf] %vm888_vm6, %v1080_v33  ;;  %v1095_v47 = vpack.c.bf16 %v755_v14, %v755_v14  ;;  %v1096_v42 = vpack.c.bf16 %v756_v16, %v756_v16  ;;  %v1097_v49 = vpack.c.bf16 %v757_v17, %v757_v17 }
 0x190   : > { %902 = vst.msk [vmem:[%s1409_s25 + $0x34] sm:$0xf] %vm888_vm6, %v1081_v34  ;;  %903 = vst.msk [vmem:[%s1409_s25 + $0x38] sm:$0xf] %vm888_vm6, %v1082_v28  ;;  %v1098_v50 = vpack.c.bf16 %v758_v18, %v758_v18  ;;  %v1099_v43 = vpack.c.bf16 %v759_v19, %v759_v19 }
 0x191   : > { %904 = vst.msk [vmem:[%s1409_s25 + $0x3c] sm:$0xf] %vm888_vm6, %v1083_v36  ;;  %905 = vst.msk [vmem:[%s1409_s25 + $0x40] sm:$0xf] %vm888_vm6, %v1084_v37 }
 0x192   : > { %906 = vst.msk [vmem:[%s1409_s25 + $0x44] sm:$0xf] %vm888_vm6, %v1085_v51  ;;  %907 = vst.msk [vmem:[%s1409_s25 + $0x48] sm:$0xf] %vm888_vm6, %v1086_v32 }
 0x193   : > { %908 = vst.msk [vmem:[%s1409_s25 + $0x4c] sm:$0xf] %vm888_vm6, %v1087_v38  ;;  %909 = vst.msk [vmem:[%s1409_s25 + $0x50] sm:$0xf] %vm888_vm6, %v1088_v40 }
 0x194   : > { %910 = vst.msk [vmem:[%s1409_s25 + $0x54] sm:$0xf] %vm888_vm6, %v1089_v35  ;;  %911 = vst.msk [vmem:[%s1409_s25 + $0x58] sm:$0xf] %vm888_vm6, %v1090_v41 }
 0x195   : > { %912 = vst.msk [vmem:[%s1409_s25 + $0x5c] sm:$0xf] %vm888_vm6, %v1091_v44  ;;  %913 = vst.msk [vmem:[%s1409_s25 + $0x60] sm:$0xf] %vm888_vm6, %v1092_v45 }
 0x196   : > { %914 = vst.msk [vmem:[%s1409_s25 + $0x64] sm:$0xf] %vm888_vm6, %v1093_v39  ;;  %915 = vst.msk [vmem:[%s1409_s25 + $0x68] sm:$0xf] %vm888_vm6, %v1094_v46 }
 0x197   : > { %916 = vst.msk [vmem:[%s1409_s25 + $0x6c] sm:$0xf] %vm888_vm6, %v1095_v47  ;;  %917 = vst.msk [vmem:[%s1409_s25 + $0x70] sm:$0xf] %vm888_vm6, %v1096_v42 }
 0x198   : > { %918 = vst.msk [vmem:[%s1409_s25 + $0x74] sm:$0xf] %vm888_vm6, %v1097_v49  ;;  %919 = vst.msk [vmem:[%s1409_s25 + $0x78] sm:$0xf] %vm888_vm6, %v1098_v50 }
 0x199   : > { %920 = vst.msk [vmem:[%s1409_s25 + $0x7c] sm:$0xf] %vm888_vm6, %v1099_v43 }
 0x19a PF: > { %s13_s16 = sadd.s32 1, %s1345_s16   ;;  %s1736_s12 = smov %s1337_s14 }
 0x19b   : > { %p10_p9 = scmp.ge.s32.totalorder %s13_s16, 6   ;;  %s1737_s13 = smov %s1341_s15 }
 0x19c   : > { %s1738_s14 = smov %s1741_s17  ;;  %s1739_s15 = smov %s1745_s18 }
 0x19d   :  { %12 = sbr.rel (!%p10_p9) target bundleno = 3 (0x3), region = 74 }

// kernel: munit_forward.97
= control target key start
LH: loop header
LB: loop body
LE: loop exit
PB: predicated region body
PF: predicated region fallthrough
CT: control target
= control target key end

     0   :  { %v2400_v0 = vmov 0   ;;  %vm1688_vm0 = vcmask 23552   ;;  %s3263_s1 = inlined_call_operand.vmem [shape: bf16[512,3], index: 1, kind: input, shape index: {}]   ;;  %s3264_s0 = inlined_call_operand.vmem [shape: bf16[512,512], index: 0, kind: input, shape index: {}]   ;;  %s3265_s2 = inlined_call_operand.vmem [shape: f32[1,3], index: 2, kind: input, shape index: {}]   ;;  %s3266_s3 = inlined_call_operand.vmem [shape: f32[512,3], index: 3, kind: output, shape index: {}]  }
   0x1   :  { %1046 = vmatprep.subr.bf16.mxu1 %v2400_v0  ;;  %1335 = vmatprep.subr.bf16.mxu0 %v2400_v0  ;;  %v2047_v1 = vld [vmem:[%s3263_s1] sm:$0xff]   ;;  %v2049_v3 = vld [vmem:[%s3263_s1 + $0x8] sm:$0xff]   ;;  %v2051_v5 = vld [vmem:[%s3263_s1 + $0x10] sm:$0xff]  }
   0x2   :  { %v2048_v2 = vld [vmem:[%s3263_s1 + $0x80] sm:$0xff]   ;;  %1047 = vmatpush1.bf16.msra.mxu1 %v2047_v1  ;;  %v2050_v4 = vld [vmem:[%s3263_s1 + $0x88] sm:$0xff]   ;;  %v2052_v6 = vld [vmem:[%s3263_s1 + $0x90] sm:$0xff]  }
   0x3   :  { %1336 = vmatpush1.bf16.msra.mxu0 %v2048_v2  ;;  %1048 = vmatprep.subr.bf16.mxu1 %v2400_v0  ;;  %v2053_v7 = vld [vmem:[%s3263_s1 + $0x18] sm:$0xff]   ;;  %v2055_v9 = vld [vmem:[%s3263_s1 + $0x20] sm:$0xff]   ;;  %v2057_v11 = vld [vmem:[%s3263_s1 + $0x28] sm:$0xff]  }
   0x4   :  { %1337 = vmatprep.subr.bf16.mxu0 %v2400_v0  ;;  %v2054_v8 = vld [vmem:[%s3263_s1 + $0x98] sm:$0xff]   ;;  %v2056_v10 = vld [vmem:[%s3263_s1 + $0xa0] sm:$0xff]   ;;  %v2058_v12 = vld [vmem:[%s3263_s1 + $0xa8] sm:$0xff]  }
   0x5   :  { %v2059_v13 = vld [vmem:[%s3263_s1 + $0x30] sm:$0xff]   ;;  %v2061_v15 = vld [vmem:[%s3263_s1 + $0x38] sm:$0xff]   ;;  %v2063_v17 = vld [vmem:[%s3263_s1 + $0x40] sm:$0xff]  }
   0x6   :  { %1049 = vmatpush1.bf16.msra.mxu1 %v2049_v3  ;;  %v2060_v14 = vld [vmem:[%s3263_s1 + $0xb0] sm:$0xff]   ;;  %v2062_v16 = vld [vmem:[%s3263_s1 + $0xb8] sm:$0xff]   ;;  %v2064_v18 = vld [vmem:[%s3263_s1 + $0xc0] sm:$0xff]  }
   0x7   :  { %1338 = vmatpush1.bf16.msra.mxu0 %v2050_v4  ;;  %1050 = vmatprep.subr.bf16.mxu1 %v2400_v0  ;;  %v2081_v19 = vld [vmem:[%s3264_s0 + $0x4] ss:$16 sps:$4 sm:$0xff]   ;;  %v2065_v20 = vld [vmem:[%s3263_s1 + $0x48] sm:$0xff]   ;;  %v2069_v25 = vld [vmem:[%s3263_s1 + $0x58] sm:$0xff]  }
   0x8   :  { %1339 = vmatprep.subr.bf16.mxu0 %v2400_v0  ;;  %v2084_v21 = vld [vmem:[%s3264_s0 + $0xc] ss:$16 sps:$4 sm:$0xff]   ;;  %1078 = vmatprep.mubr.bf16.mxu1 %v2081_v19  ;;  %v2067_v23 = vld [vmem:[%s3263_s1 + $0x50] sm:$0xff]   ;;  %v2071_v27 = vld [vmem:[%s3263_s1 + $0x60] sm:$0xff]  }
   0x9   :  { %v2066_v22 = vld [vmem:[%s3263_s1 + $0xc8] sm:$0xff]   ;;  %1367 = vmatprep.mubr.bf16.mxu0 %v2084_v21  ;;  %v2068_v24 = vld [vmem:[%s3263_s1 + $0xd0] sm:$0xff]   ;;  %v2070_v26 = vld [vmem:[%s3263_s1 + $0xd8] sm:$0xff]  }
   0xa   :  { %1051 = vmatpush1.bf16.msra.mxu1 %v2051_v5  ;;  %v2072_v28 = vld [vmem:[%s3263_s1 + $0xe0] sm:$0xff]   ;;  %v2073_v29 = vld [vmem:[%s3263_s1 + $0x68] sm:$0xff]   ;;  %v2075_v31 = vld [vmem:[%s3263_s1 + $0x70] sm:$0xff]  }
   0xb   :  { %1340 = vmatpush1.bf16.msra.mxu0 %v2052_v6  ;;  %1052 = vmatprep.subr.bf16.mxu1 %v2400_v0  ;;  %v2074_v30 = vld [vmem:[%s3263_s1 + $0xe8] sm:$0xff]   ;;  %v2076_v32 = vld [vmem:[%s3263_s1 + $0xf0] sm:$0xff]   ;;  %v2077_v33 = vld [vmem:[%s3263_s1 + $0x78] sm:$0xff]  }
   0xc   :  { %1341 = vmatprep.subr.bf16.mxu0 %v2400_v0  ;;  %v2078_v34 = vld [vmem:[%s3263_s1 + $0xf8] sm:$0xff]   ;;  %v2079_v35 = vld [vmem:[%s3264_s0] ss:$16 sps:$4 sm:$0xff]   ;;  %v2085_v37 = vld [vmem:[%s3264_s0 + $0x24] ss:$16 sps:$4 sm:$0xff]  }
   0xd   :  { %v2082_v36 = vld [vmem:[%s3264_s0 + $0x8] ss:$16 sps:$4 sm:$0xff]   ;;  %v2087_v38 = vld [vmem:[%s3264_s0 + $0x2c] ss:$16 sps:$4 sm:$0xff]   ;;  %v2089_v39 = vld [vmem:[%s3264_s0 + $0x20] ss:$16 sps:$4 sm:$0xff]  }
   0xe   :  { %1053 = vmatpush1.bf16.msra.mxu1 %v2053_v7  ;;  %v2090_v40 = vld [vmem:[%s3264_s0 + $0x28] ss:$16 sps:$4 sm:$0xff]   ;;  %v2091_v41 = vld [vmem:[%s3264_s0 + $0x44] ss:$16 sps:$4 sm:$0xff]   ;;  %v2093_v42 = vld [vmem:[%s3264_s0 + $0x4c] ss:$16 sps:$4 sm:$0xff]  }
   0xf   :  { %1342 = vmatpush1.bf16.msra.mxu0 %v2054_v8  ;;  %1054 = vmatprep.subr.bf16.mxu1 %v2400_v0  ;;  %v2095_v43 = vld [vmem:[%s3264_s0 + $0x40] ss:$16 sps:$4 sm:$0xff]   ;;  %v2096_v44 = vld [vmem:[%s3264_s0 + $0x48] ss:$16 sps:$4 sm:$0xff]   ;;  %v2097_v45 = vld [vmem:[%s3264_s0 + $0x64] ss:$16 sps:$4 sm:$0xff]  }
  0x10   :  { %1343 = vmatprep.subr.bf16.mxu0 %v2400_v0  ;;  %v2099_v46 = vld [vmem:[%s3264_s0 + $0x6c] ss:$16 sps:$4 sm:$0xff]   ;;  %v2101_v47 = vld [vmem:[%s3264_s0 + $0x60] ss:$16 sps:$4 sm:$0xff]   ;;  %v2102_v48 = vld [vmem:[%s3264_s0 + $0x68] ss:$16 sps:$4 sm:$0xff]  }
  0x11   :  { %v2103_v49 = vld [vmem:[%s3264_s0 + $0x84] ss:$16 sps:$4 sm:$0xff]   ;;  %v2105_v50 = vld [vmem:[%s3264_s0 + $0x8c] ss:$16 sps:$4 sm:$0xff]   ;;  %v2107_v51 = vld [vmem:[%s3264_s0 + $0x80] ss:$16 sps:$4 sm:$0xff]  }
  0x12   :  { %1055 = vmatpush1.bf16.msra.mxu1 %v2055_v9  ;;  %v2108_v52 = vld [vmem:[%s3264_s0 + $0x88] ss:$16 sps:$4 sm:$0xff]   ;;  %v2109_v53 = vld [vmem:[%s3264_s0 + $0xa4] ss:$16 sps:$4 sm:$0xff]   ;;  %v2111_v54 = vld [vmem:[%s3264_s0 + $0xac] ss:$16 sps:$4 sm:$0xff]  }
  0x13   :  { %1344 = vmatpush1.bf16.msra.mxu0 %v2056_v10  ;;  %1056 = vmatprep.subr.bf16.mxu1 %v2400_v0  ;;  %v2113_v55 = vld [vmem:[%s3264_s0 + $0xa0] ss:$16 sps:$4 sm:$0xff]   ;;  %v2114_v56 = vld [vmem:[%s3264_s0 + $0xa8] ss:$16 sps:$4 sm:$0xff]   ;;  %v2115_v57 = vld [vmem:[%s3264_s0 + $0xc4] ss:$16 sps:$4 sm:$0xff]  }
  0x14   :  { %1345 = vmatprep.subr.bf16.mxu0 %v2400_v0  ;;  %v2117_v58 = vld [vmem:[%s3264_s0 + $0xcc] ss:$16 sps:$4 sm:$0xff]   ;;  %v2119_v59 = vld [vmem:[%s3264_s0 + $0xc0] ss:$16 sps:$4 sm:$0xff]   ;;  %v2120_v60 = vld [vmem:[%s3264_s0 + $0xc8] ss:$16 sps:$4 sm:$0xff]  }
  0x15   :  { %v2121_v61 = vld [vmem:[%s3264_s0 + $0xe4] ss:$16 sps:$4 sm:$0xff]   ;;  %v2123_v62 = vld [vmem:[%s3264_s0 + $0xec] ss:$16 sps:$4 sm:$0xff]   ;;  %v2125_v63 = vld [vmem:[%s3264_s0 + $0xe0] ss:$16 sps:$4 sm:$0xff]  }
  0x16   :  { %1057 = vmatpush1.bf16.msra.mxu1 %v2057_v11  ;;  %v2127_v1 = vld [vmem:[%s3264_s0 + $0x104] ss:$16 sps:$4 sm:$0xff]   ;;  %v2129_v2 = vld [vmem:[%s3264_s0 + $0x10c] ss:$16 sps:$4 sm:$0xff]   ;;  %v2131_v3 = vld [vmem:[%s3264_s0 + $0x100] ss:$16 sps:$4 sm:$0xff]  }
  0x17   :  { %1346 = vmatpush1.bf16.msra.mxu0 %v2058_v12  ;;  %1058 = vmatprep.subr.bf16.mxu1 %v2400_v0  ;;  %v2132_v4 = vld [vmem:[%s3264_s0 + $0x108] ss:$16 sps:$4 sm:$0xff]   ;;  %v2133_v5 = vld [vmem:[%s3264_s0 + $0x124] ss:$16 sps:$4 sm:$0xff]   ;;  %v2135_v6 = vld [vmem:[%s3264_s0 + $0x12c] ss:$16 sps:$4 sm:$0xff]  }
  0x18   :  { %1347 = vmatprep.subr.bf16.mxu0 %v2400_v0  ;;  %v2137_v7 = vld [vmem:[%s3264_s0 + $0x120] ss:$16 sps:$4 sm:$0xff]   ;;  %v2138_v8 = vld [vmem:[%s3264_s0 + $0x128] ss:$16 sps:$4 sm:$0xff]   ;;  %v2139_v9 = vld [vmem:[%s3264_s0 + $0x144] ss:$16 sps:$4 sm:$0xff]  }
  0x19   :  { %v2141_v10 = vld [vmem:[%s3264_s0 + $0x14c] ss:$16 sps:$4 sm:$0xff]   ;;  %v2143_v11 = vld [vmem:[%s3264_s0 + $0x140] ss:$16 sps:$4 sm:$0xff]   ;;  %v2144_v12 = vld [vmem:[%s3264_s0 + $0x148] ss:$16 sps:$4 sm:$0xff]  }
  0x1a   :  { %1059 = vmatpush1.bf16.msra.mxu1 %v2059_v13  ;;  %v2145_v13 = vld [vmem:[%s3264_s0 + $0x164] ss:$16 sps:$4 sm:$0xff]   ;;  %v2155_v19 = vld [vmem:[%s3264_s0 + $0x180] ss:$16 sps:$4 sm:$0xff]  }
  0x1b   :  { %1348 = vmatpush1.bf16.msra.mxu0 %v2060_v14  ;;  %1060 = vmatprep.subr.bf16.mxu1 %v2400_v0  ;;  %v2147_v14 = vld [vmem:[%s3264_s0 + $0x16c] ss:$16 sps:$4 sm:$0xff]   ;;  %v2157_v21 = vld [vmem:[%s3264_s0 + $0x1a4] ss:$16 sps:$4 sm:$0xff]  }
  0x1c   :  { %1349 = vmatprep.subr.bf16.mxu0 %v2400_v0 }
  0x1e   :  { %1061 = vmatpush1.bf16.msra.mxu1 %v2061_v15  ;;  %v2149_v15 = vld [vmem:[%s3264_s0 + $0x160] ss:$16 sps:$4 sm:$0xff]  }
  0x1f   :  { %1350 = vmatpush1.bf16.msra.mxu0 %v2062_v16  ;;  %1062 = vmatprep.subr.bf16.mxu1 %v2400_v0  ;;  %v2150_v16 = vld [vmem:[%s3264_s0 + $0x168] ss:$16 sps:$4 sm:$0xff]  }
  0x20   :  { %1351 = vmatprep.subr.bf16.mxu0 %v2400_v0 }
  0x22   :  { %1063 = vmatpush1.bf16.msra.mxu1 %v2063_v17  ;;  %v2151_v17 = vld [vmem:[%s3264_s0 + $0x184] ss:$16 sps:$4 sm:$0xff]  }
  0x23   :  { %1352 = vmatpush1.bf16.msra.mxu0 %v2064_v18  ;;  %1064 = vmatprep.subr.bf16.mxu1 %v2400_v0  ;;  %v2153_v18 = vld [vmem:[%s3264_s0 + $0x18c] ss:$16 sps:$4 sm:$0xff]  }
  0x24   :  { %1353 = vmatprep.subr.bf16.mxu0 %v2400_v0 }
  0x26   :  { %1065 = vmatpush1.bf16.msra.mxu1 %v2065_v20  ;;  %v2156_v20 = vld [vmem:[%s3264_s0 + $0x188] ss:$16 sps:$4 sm:$0xff]  }
  0x27   :  { %1354 = vmatpush1.bf16.msra.mxu0 %v2066_v22  ;;  %1066 = vmatprep.subr.bf16.mxu1 %v2400_v0  ;;  %v2159_v22 = vld [vmem:[%s3264_s0 + $0x1ac] ss:$16 sps:$4 sm:$0xff]  }
  0x28   :  { %1355 = vmatprep.subr.bf16.mxu0 %v2400_v0 }
  0x2a   :  { %1067 = vmatpush1.bf16.msra.mxu1 %v2067_v23  ;;  %v2161_v23 = vld [vmem:[%s3264_s0 + $0x1a0] ss:$16 sps:$4 sm:$0xff]  }
  0x2b   :  { %1356 = vmatpush1.bf16.msra.mxu0 %v2068_v24  ;;  %1068 = vmatprep.subr.bf16.mxu1 %v2400_v0  ;;  %v2162_v24 = vld [vmem:[%s3264_s0 + $0x1a8] ss:$16 sps:$4 sm:$0xff]  }
  0x2c   :  { %1357 = vmatprep.subr.bf16.mxu0 %v2400_v0 }
  0x2e   :  { %1069 = vmatpush1.bf16.msra.mxu1 %v2069_v25  ;;  %v2163_v25 = vld [vmem:[%s3264_s0 + $0x1c4] ss:$16 sps:$4 sm:$0xff]  }
  0x2f   :  { %1358 = vmatpush1.bf16.msra.mxu0 %v2070_v26  ;;  %1070 = vmatprep.subr.bf16.mxu1 %v2400_v0  ;;  %v2165_v26 = vld [vmem:[%s3264_s0 + $0x1cc] ss:$16 sps:$4 sm:$0xff]  }
  0x30   :  { %1359 = vmatprep.subr.bf16.mxu0 %v2400_v0 }
  0x32   :  { %1071 = vmatpush1.bf16.msra.mxu1 %v2071_v27  ;;  %v2167_v27 = vld [vmem:[%s3264_s0 + $0x1c0] ss:$16 sps:$4 sm:$0xff]  }
  0x33   :  { %1360 = vmatpush1.bf16.msra.mxu0 %v2072_v28  ;;  %1072 = vmatprep.subr.bf16.mxu1 %v2400_v0  ;;  %v2168_v28 = vld [vmem:[%s3264_s0 + $0x1c8] ss:$16 sps:$4 sm:$0xff]  }
  0x34   :  { %1361 = vmatprep.subr.bf16.mxu0 %v2400_v0 }
  0x36   :  { %1073 = vmatpush1.bf16.msra.mxu1 %v2073_v29  ;;  %v2169_v29 = vld [vmem:[%s3264_s0 + $0x1e4] ss:$16 sps:$4 sm:$0xff]  }
  0x37   :  { %1362 = vmatpush1.bf16.msra.mxu0 %v2074_v30  ;;  %1074 = vmatprep.subr.bf16.mxu1 %v2400_v0  ;;  %v2171_v30 = vld [vmem:[%s3264_s0 + $0x1ec] ss:$16 sps:$4 sm:$0xff]  }
  0x38   :  { %1363 = vmatprep.subr.bf16.mxu0 %v2400_v0 }
  0x3a   :  { %1075 = vmatpush1.bf16.msra.mxu1 %v2075_v31  ;;  %v2173_v31 = vld [vmem:[%s3264_s0 + $0x1e0] ss:$16 sps:$4 sm:$0xff]  }
  0x3b   :  { %1364 = vmatpush1.bf16.msra.mxu0 %v2076_v32  ;;  %1076 = vmatprep.subr.bf16.mxu1 %v2400_v0  ;;  %v2174_v32 = vld [vmem:[%s3264_s0 + $0x1e8] ss:$16 sps:$4 sm:$0xff]  }
  0x3c   :  { %1365 = vmatprep.subr.bf16.mxu0 %v2400_v0  ;;  %v2126_v0 = vld [vmem:[%s3264_s0 + $0xe8] ss:$16 sps:$4 sm:$0xff]  }
  0x3e   :  { %1077 = vmatpush1.bf16.msra.mxu1 %v2077_v33  ;;  %v2175_v33 = vld [vmem:[%s3264_s0 + $0x204] ss:$16 sps:$4 sm:$0xff]  }
  0x3f   :  { %1366 = vmatpush1.bf16.msra.mxu0 %v2078_v34  ;;  %v2177_v34 = vld [vmem:[%s3264_s0 + $0x20c] ss:$16 sps:$4 sm:$0xff]  }
  0x41   :  { %1079 = vmatmul.mubr.bf16.vlgmr.msra.gmra.mrb[0].mxu1 %v2079_v35  ;;  %v2179_v35 = vld [vmem:[%s3264_s0 + $0x200] ss:$16 sps:$4 sm:$0xff]  }
  0x42   :  { %1368 = vmatmul.mubr.bf16.vlgmr.msra.gmra.mrb[0].mxu0 %v2082_v36  ;;  %1086 = vmatprep.mubr.bf16.mxu1 %v2085_v37  ;;  %v2180_v36 = vld [vmem:[%s3264_s0 + $0x208] ss:$16 sps:$4 sm:$0xff]   ;;  %v2181_v37 = vld [vmem:[%s3264_s0 + $0x224] ss:$16 sps:$4 sm:$0xff]  }
  0x43   :  { %1375 = vmatprep.mubr.bf16.mxu0 %v2087_v38  ;;  %v2183_v38 = vld [vmem:[%s3264_s0 + $0x22c] ss:$16 sps:$4 sm:$0xff]  }
  0x49   :  { %1087 = vmatmul.mubr.bf16.gmra.mrb[4].mxu1 %v2089_v39  ;;  %v2185_v39 = vld [vmem:[%s3264_s0 + $0x220] ss:$16 sps:$4 sm:$0xff]  }
  0x4a   :  { %1376 = vmatmul.mubr.bf16.gmra.mrb[4].mxu0 %v2090_v40  ;;  %1094 = vmatprep.mubr.bf16.mxu1 %v2091_v41  ;;  %v2186_v40 = vld [vmem:[%s3264_s0 + $0x228] ss:$16 sps:$4 sm:$0xff]   ;;  %v2187_v41 = vld [vmem:[%s3264_s0 + $0x244] ss:$16 sps:$4 sm:$0xff]  }
  0x4b   :  { %1383 = vmatprep.mubr.bf16.mxu0 %v2093_v42  ;;  %v2189_v42 = vld [vmem:[%s3264_s0 + $0x24c] ss:$16 sps:$4 sm:$0xff]  }
  0x51   :  { %1095 = vmatmul.mubr.bf16.gmra.mrb[8].mxu1 %v2095_v43  ;;  %v2191_v43 = vld [vmem:[%s3264_s0 + $0x240] ss:$16 sps:$4 sm:$0xff]  }
  0x52   :  { %1384 = vmatmul.mubr.bf16.gmra.mrb[8].mxu0 %v2096_v44  ;;  %1102 = vmatprep.mubr.bf16.mxu1 %v2097_v45  ;;  %v2192_v44 = vld [vmem:[%s3264_s0 + $0x248] ss:$16 sps:$4 sm:$0xff]   ;;  %v2193_v45 = vld [vmem:[%s3264_s0 + $0x264] ss:$16 sps:$4 sm:$0xff]  }
  0x53   :  { %1391 = vmatprep.mubr.bf16.mxu0 %v2099_v46  ;;  %v2195_v46 = vld [vmem:[%s3264_s0 + $0x26c] ss:$16 sps:$4 sm:$0xff]  }
  0x59   :  { %1103 = vmatmul.mubr.bf16.gmra.mrb[12].mxu1 %v2101_v47  ;;  %v2197_v47 = vld [vmem:[%s3264_s0 + $0x260] ss:$16 sps:$4 sm:$0xff]  }
  0x5a   :  { %1392 = vmatmul.mubr.bf16.gmra.mrb[12].mxu0 %v2102_v48  ;;  %1110 = vmatprep.mubr.bf16.mxu1 %v2103_v49  ;;  %v2198_v48 = vld [vmem:[%s3264_s0 + $0x268] ss:$16 sps:$4 sm:$0xff]   ;;  %v2199_v49 = vld [vmem:[%s3264_s0 + $0x284] ss:$16 sps:$4 sm:$0xff]  }
  0x5b   :  { %1399 = vmatprep.mubr.bf16.mxu0 %v2105_v50  ;;  %v2201_v50 = vld [vmem:[%s3264_s0 + $0x28c] ss:$16 sps:$4 sm:$0xff]  }
  0x61   :  { %1111 = vmatmul.mubr.bf16.gmra.mrb[16].mxu1 %v2107_v51  ;;  %v2203_v51 = vld [vmem:[%s3264_s0 + $0x280] ss:$16 sps:$4 sm:$0xff]  }
  0x62   :  { %1400 = vmatmul.mubr.bf16.gmra.mrb[16].mxu0 %v2108_v52  ;;  %1118 = vmatprep.mubr.bf16.mxu1 %v2109_v53  ;;  %v2204_v52 = vld [vmem:[%s3264_s0 + $0x288] ss:$16 sps:$4 sm:$0xff]   ;;  %v2205_v53 = vld [vmem:[%s3264_s0 + $0x2a4] ss:$16 sps:$4 sm:$0xff]  }
  0x63   :  { %1407 = vmatprep.mubr.bf16.mxu0 %v2111_v54  ;;  %v2207_v54 = vld [vmem:[%s3264_s0 + $0x2ac] ss:$16 sps:$4 sm:$0xff]  }
  0x69   :  { %1119 = vmatmul.mubr.bf16.gmra.mrb[20].mxu1 %v2113_v55  ;;  %v2209_v55 = vld [vmem:[%s3264_s0 + $0x2a0] ss:$16 sps:$4 sm:$0xff]  }
  0x6a   :  { %1408 = vmatmul.mubr.bf16.gmra.mrb[20].mxu0 %v2114_v56  ;;  %1126 = vmatprep.mubr.bf16.mxu1 %v2115_v57  ;;  %v2210_v56 = vld [vmem:[%s3264_s0 + $0x2a8] ss:$16 sps:$4 sm:$0xff]   ;;  %v2211_v57 = vld [vmem:[%s3264_s0 + $0x2c4] ss:$16 sps:$4 sm:$0xff]  }
  0x6b   :  { %1415 = vmatprep.mubr.bf16.mxu0 %v2117_v58  ;;  %v2213_v58 = vld [vmem:[%s3264_s0 + $0x2cc] ss:$16 sps:$4 sm:$0xff]  }
  0x71   :  { %1127 = vmatmul.mubr.bf16.gmra.mrb[24].mxu1 %v2119_v59  ;;  %v2215_v59 = vld [vmem:[%s3264_s0 + $0x2c0] ss:$16 sps:$4 sm:$0xff]  }
  0x72   :  { %1416 = vmatmul.mubr.bf16.gmra.mrb[24].mxu0 %v2120_v60  ;;  %1134 = vmatprep.mubr.bf16.mxu1 %v2121_v61  ;;  %v2216_v60 = vld [vmem:[%s3264_s0 + $0x2c8] ss:$16 sps:$4 sm:$0xff]   ;;  %v2217_v61 = vld [vmem:[%s3264_s0 + $0x2e4] ss:$16 sps:$4 sm:$0xff]  }
  0x73   :  { %1423 = vmatprep.mubr.bf16.mxu0 %v2123_v62  ;;  %v2219_v62 = vld [vmem:[%s3264_s0 + $0x2ec] ss:$16 sps:$4 sm:$0xff]  }
  0x79   :  { %1135 = vmatmul.mubr.bf16.gmra.mrb[28].mxu1 %v2125_v63  ;;  %v2221_v63 = vld [vmem:[%s3264_s0 + $0x2e0] ss:$16 sps:$4 sm:$0xff]  }
  0x7a   :  { %1424 = vmatmul.mubr.bf16.gmra.mrb[28].mxu0 %v2126_v0  ;;  %1142 = vmatprep.mubr.bf16.mxu1 %v2127_v1  ;;  %v2222_v0 = vld [vmem:[%s3264_s0 + $0x2e8] ss:$16 sps:$4 sm:$0xff]   ;;  %v2223_v1 = vld [vmem:[%s3264_s0 + $0x304] ss:$16 sps:$4 sm:$0xff]  }
  0x7b   :  { %1431 = vmatprep.mubr.bf16.mxu0 %v2129_v2  ;;  %v2225_v2 = vld [vmem:[%s3264_s0 + $0x30c] ss:$16 sps:$4 sm:$0xff]  }
  0x81   :  { %1143 = vmatmul.mubr.bf16.gmra.mrb[32].mxu1 %v2131_v3  ;;  %v2227_v3 = vld [vmem:[%s3264_s0 + $0x300] ss:$16 sps:$4 sm:$0xff]  }
  0x82   :  { %1432 = vmatmul.mubr.bf16.gmra.mrb[32].mxu0 %v2132_v4  ;;  %1150 = vmatprep.mubr.bf16.mxu1 %v2133_v5  ;;  %v2228_v4 = vld [vmem:[%s3264_s0 + $0x308] ss:$16 sps:$4 sm:$0xff]   ;;  %v2229_v5 = vld [vmem:[%s3264_s0 + $0x324] ss:$16 sps:$4 sm:$0xff]  }
  0x83   :  { %1439 = vmatprep.mubr.bf16.mxu0 %v2135_v6  ;;  %v2231_v6 = vld [vmem:[%s3264_s0 + $0x32c] ss:$16 sps:$4 sm:$0xff]  }
  0x89   :  { %1151 = vmatmul.mubr.bf16.gmra.mrb[36].mxu1 %v2137_v7  ;;  %v2233_v7 = vld [vmem:[%s3264_s0 + $0x320] ss:$16 sps:$4 sm:$0xff]  }
  0x8a   :  { %1440 = vmatmul.mubr.bf16.gmra.mrb[36].mxu0 %v2138_v8  ;;  %1158 = vmatprep.mubr.bf16.mxu1 %v2139_v9  ;;  %v2234_v8 = vld [vmem:[%s3264_s0 + $0x328] ss:$16 sps:$4 sm:$0xff]   ;;  %v2235_v9 = vld [vmem:[%s3264_s0 + $0x344] ss:$16 sps:$4 sm:$0xff]  }
  0x8b   :  { %1447 = vmatprep.mubr.bf16.mxu0 %v2141_v10  ;;  %v2237_v10 = vld [vmem:[%s3264_s0 + $0x34c] ss:$16 sps:$4 sm:$0xff]  }
  0x91   :  { %1159 = vmatmul.mubr.bf16.gmra.mrb[40].mxu1 %v2143_v11  ;;  %v2239_v11 = vld [vmem:[%s3264_s0 + $0x340] ss:$16 sps:$4 sm:$0xff]  }
  0x92   :  { %1448 = vmatmul.mubr.bf16.gmra.mrb[40].mxu0 %v2144_v12  ;;  %1166 = vmatprep.mubr.bf16.mxu1 %v2145_v13  ;;  %v2240_v12 = vld [vmem:[%s3264_s0 + $0x348] ss:$16 sps:$4 sm:$0xff]   ;;  %v2241_v13 = vld [vmem:[%s3264_s0 + $0x364] ss:$16 sps:$4 sm:$0xff]  }
  0x93   :  { %1455 = vmatprep.mubr.bf16.mxu0 %v2147_v14  ;;  %v2243_v14 = vld [vmem:[%s3264_s0 + $0x36c] ss:$16 sps:$4 sm:$0xff]  }
  0x99   :  { %1167 = vmatmul.mubr.bf16.gmra.mrb[44].mxu1 %v2149_v15  ;;  %v2882_v15 = vld [vmem:[%s3265_s2] ss:$0 sm:$0xff] }
  0x9a   :  { %1456 = vmatmul.mubr.bf16.gmra.mrb[44].mxu0 %v2150_v16  ;;  %1174 = vmatprep.mubr.bf16.mxu1 %v2151_v17 }
  0x9b   :  { %1463 = vmatprep.mubr.bf16.mxu0 %v2153_v18 }
  0xa1   :  { %1175 = vmatmul.mubr.bf16.gmra.mrb[48].mxu1 %v2155_v19 }
  0xa2   :  { %1464 = vmatmul.mubr.bf16.gmra.mrb[48].mxu0 %v2156_v20  ;;  %1182 = vmatprep.mubr.bf16.mxu1 %v2157_v21  ;;  %v2245_v20 = vld [vmem:[%s3264_s0 + $0x360] ss:$16 sps:$4 sm:$0xff]  }
  0xa3   :  { %1471 = vmatprep.mubr.bf16.mxu0 %v2159_v22 }
  0xa9   :  { %1183 = vmatmul.mubr.bf16.gmra.mrb[52].mxu1 %v2161_v23  ;;  %v2246_v23 = vld [vmem:[%s3264_s0 + $0x368] ss:$16 sps:$4 sm:$0xff]  }
  0xaa   :  { %1472 = vmatmul.mubr.bf16.gmra.mrb[52].mxu0 %v2162_v24  ;;  %1190 = vmatprep.mubr.bf16.mxu1 %v2163_v25  ;;  %v2247_v24 = vld [vmem:[%s3264_s0 + $0x384] ss:$16 sps:$4 sm:$0xff]  }
  0xab   :  { %1479 = vmatprep.mubr.bf16.mxu0 %v2165_v26 }
  0xb1   :  { %1191 = vmatmul.mubr.bf16.gmra.mrb[56].mxu1 %v2167_v27 }
  0xb2   :  { %1480 = vmatmul.mubr.bf16.gmra.mrb[56].mxu0 %v2168_v28  ;;  %1198 = vmatprep.mubr.bf16.mxu1 %v2169_v29  ;;  %v2249_v29 = vld [vmem:[%s3264_s0 + $0x38c] ss:$16 sps:$4 sm:$0xff]  }
  0xb3   :  { %1487 = vmatprep.mubr.bf16.mxu0 %v2171_v30 }
  0xb9   :  { %1199 = vmatmul.mubr.bf16.gmra.mrb[60].mxu1 %v2173_v31 }
  0xba   :  { %1488 = vmatmul.mubr.bf16.gmra.mrb[60].mxu0 %v2174_v32  ;;  %1206 = vmatprep.mubr.bf16.mxu1 %v2175_v33 }
  0xbb   :  { %1495 = vmatprep.mubr.bf16.mxu0 %v2177_v34 }
  0xc1   :  { %1207 = vmatmul.mubr.bf16.gmra.mrb[64].mxu1 %v2179_v35 }
  0xc2   :  { %1496 = vmatmul.mubr.bf16.gmra.mrb[64].mxu0 %v2180_v36  ;;  %1214 = vmatprep.mubr.bf16.mxu1 %v2181_v37  ;;  %v2251_v36 = vld [vmem:[%s3264_s0 + $0x380] ss:$16 sps:$4 sm:$0xff]  }
  0xc3   :  { %1503 = vmatprep.mubr.bf16.mxu0 %v2183_v38 }
  0xc9   :  { %1215 = vmatmul.mubr.bf16.gmra.mrb[68].mxu1 %v2185_v39  ;;  %v2252_v39 = vld [vmem:[%s3264_s0 + $0x388] ss:$16 sps:$4 sm:$0xff]  }
  0xca   :  { %1504 = vmatmul.mubr.bf16.gmra.mrb[68].mxu0 %v2186_v40  ;;  %1222 = vmatprep.mubr.bf16.mxu1 %v2187_v41  ;;  %v2253_v40 = vld [vmem:[%s3264_s0 + $0x3a4] ss:$16 sps:$4 sm:$0xff]  }
  0xcb   :  { %1511 = vmatprep.mubr.bf16.mxu0 %v2189_v42 }
  0xd1   :  { %1223 = vmatmul.mubr.bf16.gmra.mrb[72].mxu1 %v2191_v43 }
  0xd2   :  { %1512 = vmatmul.mubr.bf16.gmra.mrb[72].mxu0 %v2192_v44  ;;  %1230 = vmatprep.mubr.bf16.mxu1 %v2193_v45  ;;  %v2255_v45 = vld [vmem:[%s3264_s0 + $0x3ac] ss:$16 sps:$4 sm:$0xff]  }
  0xd3   :  { %1519 = vmatprep.mubr.bf16.mxu0 %v2195_v46 }
  0xd9   :  { %1231 = vmatmul.mubr.bf16.gmra.mrb[76].mxu1 %v2197_v47 }
  0xda   :  { %1520 = vmatmul.mubr.bf16.gmra.mrb[76].mxu0 %v2198_v48  ;;  %1238 = vmatprep.mubr.bf16.mxu1 %v2199_v49 }
  0xdb   :  { %1527 = vmatprep.mubr.bf16.mxu0 %v2201_v50 }
  0xe1   :  { %1239 = vmatmul.mubr.bf16.gmra.mrb[80].mxu1 %v2203_v51 }
  0xe2   :  { %1528 = vmatmul.mubr.bf16.gmra.mrb[80].mxu0 %v2204_v52  ;;  %1246 = vmatprep.mubr.bf16.mxu1 %v2205_v53 }
  0xe3   :  { %1535 = vmatprep.mubr.bf16.mxu0 %v2207_v54  ;;  %v2257_v54 = vld [vmem:[%s3264_s0 + $0x3a0] ss:$16 sps:$4 sm:$0xff]  }
  0xe9   :  { %1247 = vmatmul.mubr.bf16.gmra.mrb[84].mxu1 %v2209_v55 }
  0xea   :  { %1536 = vmatmul.mubr.bf16.gmra.mrb[84].mxu0 %v2210_v56  ;;  %1254 = vmatprep.mubr.bf16.mxu1 %v2211_v57  ;;  %v2258_v57 = vld [vmem:[%s3264_s0 + $0x3a8] ss:$16 sps:$4 sm:$0xff]  }
  0xeb   :  { %1543 = vmatprep.mubr.bf16.mxu0 %v2213_v58  ;;  %v2259_v58 = vld [vmem:[%s3264_s0 + $0x3c4] ss:$16 sps:$4 sm:$0xff]  }
  0xf1   :  { %1255 = vmatmul.mubr.bf16.gmra.mrb[88].mxu1 %v2215_v59 }
  0xf2   :  { %1544 = vmatmul.mubr.bf16.gmra.mrb[88].mxu0 %v2216_v60  ;;  %1262 = vmatprep.mubr.bf16.mxu1 %v2217_v61 }
  0xf3   :  { %1551 = vmatprep.mubr.bf16.mxu0 %v2219_v62 }
  0xf9   :  { %1263 = vmatmul.mubr.bf16.gmra.mrb[92].mxu1 %v2221_v63  ;;  %v2261_v63 = vld [vmem:[%s3264_s0 + $0x3cc] ss:$16 sps:$4 sm:$0xff]  }
  0xfa   :  { %1552 = vmatmul.mubr.bf16.gmra.mrb[92].mxu0 %v2222_v0  ;;  %1270 = vmatprep.mubr.bf16.mxu1 %v2223_v1 }
  0xfb   :  { %1559 = vmatprep.mubr.bf16.mxu0 %v2225_v2 }
 0x101   :  { %1271 = vmatmul.mubr.bf16.gmra.mrb[96].mxu1 %v2227_v3 }
 0x102   :  { %1560 = vmatmul.mubr.bf16.gmra.mrb[96].mxu0 %v2228_v4  ;;  %1278 = vmatprep.mubr.bf16.mxu1 %v2229_v5 }
 0x103   :  { %1567 = vmatprep.mubr.bf16.mxu0 %v2231_v6 }
 0x109   :  { %1279 = vmatmul.mubr.bf16.gmra.mrb[100].mxu1 %v2233_v7 }
 0x10a   :  { %1568 = vmatmul.mubr.bf16.gmra.mrb[100].mxu0 %v2234_v8  ;;  %1286 = vmatprep.mubr.bf16.mxu1 %v2235_v9  ;;  %v2263_v8 = vld [vmem:[%s3264_s0 + $0x3c0] ss:$16 sps:$4 sm:$0xff]  }
 0x10b   :  { %1575 = vmatprep.mubr.bf16.mxu0 %v2237_v10 }
 0x111   :  { %1287 = vmatmul.mubr.bf16.gmra.mrb[104].mxu1 %v2239_v11  ;;  %v2264_v11 = vld [vmem:[%s3264_s0 + $0x3c8] ss:$16 sps:$4 sm:$0xff]  }
 0x112   :  { %1576 = vmatmul.mubr.bf16.gmra.mrb[104].mxu0 %v2240_v12  ;;  %1294 = vmatprep.mubr.bf16.mxu1 %v2241_v13  ;;  %v2265_v12 = vld [vmem:[%s3264_s0 + $0x3e4] ss:$16 sps:$4 sm:$0xff]  }
 0x113   :  { %1583 = vmatprep.mubr.bf16.mxu0 %v2243_v14 }
 0x114   :  { %v1080_v16 = vpop.f32.mrb[0].mxu1 }
 0x115   :  { %v1081_v17 = vadd.f32 %v2882_v15, %v1080_v16  ;;  %v1369_v18 = vpop.f32.mrb[0].mxu0  ;;  %v1082_v19 = vpop.f32.mrb[1].mxu1 }
 0x116   :  { %v1371_v21 = vpop.f32.mrb[1].mxu0  ;;  %v1083_v22 = vpop.f32.mrb[2].mxu1 }
 0x117   :  { %v1370_v25 = vadd.f32 %v1369_v18, %v1081_v17  ;;  %v1084_v26 = vadd.f32 %v2882_v15, %v1083_v22  ;;  %v1372_v27 = vpop.f32.mrb[2].mxu0  ;;  %v1085_v28 = vpop.f32.mrb[3].mxu1  ;;  %v2267_v18 = vld [vmem:[%s3264_s0 + $0x3ec] ss:$16 sps:$4 sm:$0xff]  }
 0x118   :  { %v1374_v30 = vpop.f32.mrb[3].mxu0 }
 0x119   :  { %2271 = vtanh.f32 %v1370_v25  ;;  %v1373_v31 = vadd.f32 %v1372_v27, %v1084_v26  ;;  %1295 = vmatmul.mubr.bf16.gmra.mrb[108].mxu1 %v2245_v20  ;;  %v2269_v27 = vld [vmem:[%s3264_s0 + $0x3e0] ss:$16 sps:$4 sm:$0xff]   ;;  %v2270_v30 = vld [vmem:[%s3264_s0 + $0x3e8] ss:$16 sps:$4 sm:$0xff]  }
 0x11a   :  { %1584 = vmatmul.mubr.bf16.gmra.mrb[108].mxu0 %v2246_v23  ;;  %1302 = vmatprep.mubr.bf16.mxu1 %v2247_v24 }
 0x11b   :  { %2273 = vtanh.f32 %v1373_v31  ;;  %1591 = vmatprep.mubr.bf16.mxu0 %v2249_v29 }
 0x11c   :  { %v1088_v32 = vpop.f32.mrb[4].mxu1 }
 0x11d   :  { %v1089_v33 = vadd.f32 %v2882_v15, %v1088_v32  ;;  %v1377_v34 = vpop.f32.mrb[4].mxu0  ;;  %v1090_v35 = vpop.f32.mrb[5].mxu1 }
 0x11e   :  { %v1379_v37 = vpop.f32.mrb[5].mxu0  ;;  %v1091_v38 = vpop.f32.mrb[6].mxu1 }
 0x11f   :  { %v1378_v41 = vadd.f32 %v1377_v34, %v1089_v33  ;;  %v1092_v42 = vadd.f32 %v2882_v15, %v1091_v38  ;;  %v1380_v43 = vpop.f32.mrb[6].mxu0  ;;  %v1093_v44 = vpop.f32.mrb[7].mxu1 }
 0x120   :  { %v1382_v46 = vpop.f32.mrb[7].mxu0 }
 0x121   :  { %2275 = vtanh.f32 %v1378_v41  ;;  %v1381_v47 = vadd.f32 %v1380_v43, %v1092_v42  ;;  %1303 = vmatmul.mubr.bf16.gmra.mrb[112].mxu1 %v2251_v36 }
 0x122   :  { %1592 = vmatmul.mubr.bf16.gmra.mrb[112].mxu0 %v2252_v39  ;;  %1310 = vmatprep.mubr.bf16.mxu1 %v2253_v40 }
 0x123   :  { %v2272_v48 = vpop.eup %2271  ;;  %2277 = vtanh.f32 %v1381_v47  ;;  %1599 = vmatprep.mubr.bf16.mxu0 %v2255_v45 }
 0x124   :  { %1689 = vst.msk [vmem:[%s3266_s3] sm:$0xff] %vm1688_vm0, %v2272_v48  ;;  %v1096_v49 = vpop.f32.mrb[8].mxu1 }
 0x125   :  { %v2274_v50 = vpop.eup %2273  ;;  %v1097_v51 = vadd.f32 %v2882_v15, %v1096_v49  ;;  %v1385_v52 = vpop.f32.mrb[8].mxu0 }
 0x126   :  { %v1098_v53 = vpop.f32.mrb[9].mxu1  ;;  %1690 = vst.msk [vmem:[%s3266_s3 + $0x8] sm:$0xff] %vm1688_vm0, %v2274_v50  ;;  %v1387_v55 = vpop.f32.mrb[9].mxu0 }
 0x127   :  { %v1099_v56 = vpop.f32.mrb[10].mxu1  ;;  %v1386_v59 = vadd.f32 %v1385_v52, %v1097_v51  ;;  %v1388_v61 = vpop.f32.mrb[10].mxu0 }
 0x128   :  { %v1100_v60 = vadd.f32 %v2882_v15, %v1099_v56  ;;  %v1101_v62 = vpop.f32.mrb[11].mxu1  ;;  %v1390_v0 = vpop.f32.mrb[11].mxu0 }
 0x129   :  { %2279 = vtanh.f32 %v1386_v59  ;;  %1311 = vmatmul.mubr.bf16.gmra.mrb[116].mxu1 %v2257_v54 }
 0x12a   :  { %v1389_v1 = vadd.f32 %v1388_v61, %v1100_v60  ;;  %1600 = vmatmul.mubr.bf16.gmra.mrb[116].mxu0 %v2258_v57  ;;  %1318 = vmatprep.mubr.bf16.mxu1 %v2259_v58 }
 0x12b   :  { %v2276_v2 = vpop.eup %2275  ;;  %1607 = vmatprep.mubr.bf16.mxu0 %v2261_v63 }
 0x12c   :  { %2281 = vtanh.f32 %v1389_v1  ;;  %1691 = vst.msk [vmem:[%s3266_s3 + $0x10] sm:$0xff] %vm1688_vm0, %v2276_v2  ;;  %v1104_v3 = vpop.f32.mrb[12].mxu1 }
 0x12d   :  { %v2278_v4 = vpop.eup %2277  ;;  %v1105_v5 = vadd.f32 %v2882_v15, %v1104_v3  ;;  %v1393_v6 = vpop.f32.mrb[12].mxu0 }
 0x12e   :  { %v1106_v7 = vpop.f32.mrb[13].mxu1  ;;  %1692 = vst.msk [vmem:[%s3266_s3 + $0x18] sm:$0xff] %vm1688_vm0, %v2278_v4  ;;  %v1395_v9 = vpop.f32.mrb[13].mxu0 }
 0x12f   :  { %v1107_v10 = vpop.f32.mrb[14].mxu1  ;;  %v1394_v13 = vadd.f32 %v1393_v6, %v1105_v5  ;;  %v1396_v16 = vpop.f32.mrb[14].mxu0 }
 0x130   :  { %v1108_v14 = vadd.f32 %v2882_v15, %v1107_v10  ;;  %v1109_v17 = vpop.f32.mrb[15].mxu1  ;;  %v1398_v19 = vpop.f32.mrb[15].mxu0 }
 0x131   :  { %2283 = vtanh.f32 %v1394_v13  ;;  %1319 = vmatmul.mubr.bf16.gmra.mrb[120].mxu1 %v2263_v8 }
 0x132   :  { %v1397_v20 = vadd.f32 %v1396_v16, %v1108_v14  ;;  %1608 = vmatmul.mubr.bf16.gmra.mrb[120].mxu0 %v2264_v11  ;;  %1326 = vmatprep.mubr.bf16.mxu1 %v2265_v12 }
 0x133   :  { %v2280_v21 = vpop.eup %2279  ;;  %1615 = vmatprep.mubr.bf16.mxu0 %v2267_v18 }
 0x134   :  { %2285 = vtanh.f32 %v1397_v20  ;;  %1693 = vst.msk [vmem:[%s3266_s3 + $0x20] sm:$0xff] %vm1688_vm0, %v2280_v21  ;;  %v1112_v22 = vpop.f32.mrb[16].mxu1 }
 0x135   :  { %v1113_v24 = vadd.f32 %v2882_v15, %v1112_v22  ;;  %v1401_v25 = vpop.f32.mrb[16].mxu0  ;;  %v1114_v26 = vpop.f32.mrb[17].mxu1 }
 0x136   :  { %v2282_v23 = vpop.eup %2281  ;;  %v1403_v28 = vpop.f32.mrb[17].mxu0 }
 0x137   :  { %1694 = vst.msk [vmem:[%s3266_s3 + $0x28] sm:$0xff] %vm1688_vm0, %v2282_v23  ;;  %v1115_v29 = vpop.f32.mrb[18].mxu1  ;;  %v1402_v31 = vadd.f32 %v1401_v25, %v1113_v24  ;;  %v1404_v33 = vpop.f32.mrb[18].mxu0 }
 0x138   :  { %v1116_v32 = vadd.f32 %v2882_v15, %v1115_v29  ;;  %v1117_v34 = vpop.f32.mrb[19].mxu1  ;;  %v1406_v35 = vpop.f32.mrb[19].mxu0 }
 0x139   :  { %2287 = vtanh.f32 %v1402_v31  ;;  %1327 = vmatmul.mubr.bf16.gmra.mrb[124].mxu1 %v2269_v27 }
 0x13a   :  { %v1405_v36 = vadd.f32 %v1404_v33, %v1116_v32  ;;  %1616 = vmatmul.mubr.bf16.gmra.mrb[124].mxu0 %v2270_v30 }
 0x13b   :  { %v2284_v37 = vpop.eup %2283 }
 0x13c   :  { %2289 = vtanh.f32 %v1405_v36  ;;  %1695 = vst.msk [vmem:[%s3266_s3 + $0x30] sm:$0xff] %vm1688_vm0, %v2284_v37  ;;  %v1120_v38 = vpop.f32.mrb[20].mxu1 }
 0x13d   :  { %v1121_v40 = vadd.f32 %v2882_v15, %v1120_v38  ;;  %v1409_v41 = vpop.f32.mrb[20].mxu0  ;;  %v1122_v42 = vpop.f32.mrb[21].mxu1 }
 0x13e   :  { %v2286_v39 = vpop.eup %2285  ;;  %v1411_v43 = vpop.f32.mrb[21].mxu0 }
 0x13f   :  { %1696 = vst.msk [vmem:[%s3266_s3 + $0x38] sm:$0xff] %vm1688_vm0, %v2286_v39  ;;  %v1123_v44 = vpop.f32.mrb[22].mxu1  ;;  %v1410_v45 = vadd.f32 %v1409_v41, %v1121_v40  ;;  %v1412_v47 = vpop.f32.mrb[22].mxu0 }
 0x140   :  { %v1124_v46 = vadd.f32 %v2882_v15, %v1123_v44  ;;  %v1125_v48 = vpop.f32.mrb[23].mxu1  ;;  %v1414_v49 = vpop.f32.mrb[23].mxu0 }
 0x141   :  { %2291 = vtanh.f32 %v1410_v45 }
 0x142   :  { %v1413_v50 = vadd.f32 %v1412_v47, %v1124_v46 }
 0x143   :  { %v2288_v51 = vpop.eup %2287 }
 0x144   :  { %2293 = vtanh.f32 %v1413_v50  ;;  %1697 = vst.msk [vmem:[%s3266_s3 + $0x40] sm:$0xff] %vm1688_vm0, %v2288_v51  ;;  %v1128_v52 = vpop.f32.mrb[24].mxu1 }
 0x145   :  { %v1129_v54 = vadd.f32 %v2882_v15, %v1128_v52  ;;  %v1417_v55 = vpop.f32.mrb[24].mxu0  ;;  %v1130_v56 = vpop.f32.mrb[25].mxu1 }
 0x146   :  { %v2290_v53 = vpop.eup %2289  ;;  %v1419_v57 = vpop.f32.mrb[25].mxu0 }
 0x147   :  { %1698 = vst.msk [vmem:[%s3266_s3 + $0x48] sm:$0xff] %vm1688_vm0, %v2290_v53  ;;  %v1131_v58 = vpop.f32.mrb[26].mxu1  ;;  %v1418_v59 = vadd.f32 %v1417_v55, %v1129_v54  ;;  %v1420_v61 = vpop.f32.mrb[26].mxu0 }
 0x148   :  { %v1132_v60 = vadd.f32 %v2882_v15, %v1131_v58  ;;  %v1133_v62 = vpop.f32.mrb[27].mxu1  ;;  %v1422_v63 = vpop.f32.mrb[27].mxu0 }
 0x149   :  { %2295 = vtanh.f32 %v1418_v59 }
 0x14a   :  { %v1421_v0 = vadd.f32 %v1420_v61, %v1132_v60 }
 0x14b   :  { %v2292_v1 = vpop.eup %2291 }
 0x14c   :  { %2297 = vtanh.f32 %v1421_v0  ;;  %1699 = vst.msk [vmem:[%s3266_s3 + $0x50] sm:$0xff] %vm1688_vm0, %v2292_v1  ;;  %v1136_v2 = vpop.f32.mrb[28].mxu1 }
 0x14d   :  { %v1137_v4 = vadd.f32 %v2882_v15, %v1136_v2  ;;  %v1425_v5 = vpop.f32.mrb[28].mxu0  ;;  %v1138_v6 = vpop.f32.mrb[29].mxu1 }
 0x14e   :  { %v2294_v3 = vpop.eup %2293  ;;  %v1427_v7 = vpop.f32.mrb[29].mxu0 }
 0x14f   :  { %1700 = vst.msk [vmem:[%s3266_s3 + $0x58] sm:$0xff] %vm1688_vm0, %v2294_v3  ;;  %v1139_v8 = vpop.f32.mrb[30].mxu1  ;;  %v1426_v9 = vadd.f32 %v1425_v5, %v1137_v4  ;;  %v1428_v11 = vpop.f32.mrb[30].mxu0 }
 0x150   :  { %v1140_v10 = vadd.f32 %v2882_v15, %v1139_v8  ;;  %v1141_v12 = vpop.f32.mrb[31].mxu1  ;;  %v1430_v13 = vpop.f32.mrb[31].mxu0 }
 0x151   :  { %2299 = vtanh.f32 %v1426_v9 }
 0x152   :  { %v1429_v14 = vadd.f32 %v1428_v11, %v1140_v10 }
 0x153   :  { %v2296_v16 = vpop.eup %2295 }
 0x154   :  { %2301 = vtanh.f32 %v1429_v14  ;;  %1701 = vst.msk [vmem:[%s3266_s3 + $0x60] sm:$0xff] %vm1688_vm0, %v2296_v16  ;;  %v1144_v17 = vpop.f32.mrb[32].mxu1 }
 0x155   :  { %v1145_v19 = vadd.f32 %v2882_v15, %v1144_v17  ;;  %v1433_v20 = vpop.f32.mrb[32].mxu0  ;;  %v1146_v21 = vpop.f32.mrb[33].mxu1 }
 0x156   :  { %v2298_v18 = vpop.eup %2297  ;;  %v1435_v22 = vpop.f32.mrb[33].mxu0 }
 0x157   :  { %1702 = vst.msk [vmem:[%s3266_s3 + $0x68] sm:$0xff] %vm1688_vm0, %v2298_v18  ;;  %v1147_v23 = vpop.f32.mrb[34].mxu1  ;;  %v1434_v24 = vadd.f32 %v1433_v20, %v1145_v19  ;;  %v1436_v26 = vpop.f32.mrb[34].mxu0 }
 0x158   :  { %v1148_v25 = vadd.f32 %v2882_v15, %v1147_v23  ;;  %v1149_v27 = vpop.f32.mrb[35].mxu1  ;;  %v1438_v28 = vpop.f32.mrb[35].mxu0 }
 0x159   :  { %2303 = vtanh.f32 %v1434_v24 }
 0x15a   :  { %v1437_v29 = vadd.f32 %v1436_v26, %v1148_v25 }
 0x15b   :  { %v2300_v30 = vpop.eup %2299 }
 0x15c   :  { %2305 = vtanh.f32 %v1437_v29  ;;  %1703 = vst.msk [vmem:[%s3266_s3 + $0x70] sm:$0xff] %vm1688_vm0, %v2300_v30  ;;  %v1152_v31 = vpop.f32.mrb[36].mxu1 }
 0x15d   :  { %v1153_v33 = vadd.f32 %v2882_v15, %v1152_v31  ;;  %v1441_v34 = vpop.f32.mrb[36].mxu0  ;;  %v1154_v35 = vpop.f32.mrb[37].mxu1 }
 0x15e   :  { %v2302_v32 = vpop.eup %2301  ;;  %v1443_v36 = vpop.f32.mrb[37].mxu0 }
 0x15f   :  { %1704 = vst.msk [vmem:[%s3266_s3 + $0x78] sm:$0xff] %vm1688_vm0, %v2302_v32  ;;  %v1155_v37 = vpop.f32.mrb[38].mxu1  ;;  %v1442_v38 = vadd.f32 %v1441_v34, %v1153_v33  ;;  %v1444_v40 = vpop.f32.mrb[38].mxu0 }
 0x160   :  { %v1156_v39 = vadd.f32 %v2882_v15, %v1155_v37  ;;  %v1157_v41 = vpop.f32.mrb[39].mxu1  ;;  %v1446_v42 = vpop.f32.mrb[39].mxu0 }
 0x161   :  { %2307 = vtanh.f32 %v1442_v38 }
 0x162   :  { %v1445_v43 = vadd.f32 %v1444_v40, %v1156_v39 }
 0x163   :  { %v2304_v44 = vpop.eup %2303 }
 0x164   :  { %2309 = vtanh.f32 %v1445_v43  ;;  %1705 = vst.msk [vmem:[%s3266_s3 + $0x80] sm:$0xff] %vm1688_vm0, %v2304_v44  ;;  %v1160_v45 = vpop.f32.mrb[40].mxu1 }
 0x165   :  { %v1161_v47 = vadd.f32 %v2882_v15, %v1160_v45  ;;  %v1449_v48 = vpop.f32.mrb[40].mxu0  ;;  %v1162_v49 = vpop.f32.mrb[41].mxu1 }
 0x166   :  { %v2306_v46 = vpop.eup %2305  ;;  %v1451_v50 = vpop.f32.mrb[41].mxu0 }
 0x167   :  { %1706 = vst.msk [vmem:[%s3266_s3 + $0x88] sm:$0xff] %vm1688_vm0, %v2306_v46  ;;  %v1163_v51 = vpop.f32.mrb[42].mxu1  ;;  %v1450_v52 = vadd.f32 %v1449_v48, %v1161_v47  ;;  %v1452_v54 = vpop.f32.mrb[42].mxu0 }
 0x168   :  { %v1164_v53 = vadd.f32 %v2882_v15, %v1163_v51  ;;  %v1165_v55 = vpop.f32.mrb[43].mxu1  ;;  %v1454_v56 = vpop.f32.mrb[43].mxu0 }
 0x169   :  { %2311 = vtanh.f32 %v1450_v52 }
 0x16a   :  { %v1453_v57 = vadd.f32 %v1452_v54, %v1164_v53 }
 0x16b   :  { %v2308_v58 = vpop.eup %2307 }
 0x16c   :  { %2313 = vtanh.f32 %v1453_v57  ;;  %1707 = vst.msk [vmem:[%s3266_s3 + $0x90] sm:$0xff] %vm1688_vm0, %v2308_v58  ;;  %v1168_v59 = vpop.f32.mrb[44].mxu1 }
 0x16d   :  { %v1169_v61 = vadd.f32 %v2882_v15, %v1168_v59  ;;  %v1457_v62 = vpop.f32.mrb[44].mxu0  ;;  %v1170_v63 = vpop.f32.mrb[45].mxu1 }
 0x16e   :  { %v2310_v60 = vpop.eup %2309  ;;  %v1459_v0 = vpop.f32.mrb[45].mxu0 }
 0x16f   :  { %1708 = vst.msk [vmem:[%s3266_s3 + $0x98] sm:$0xff] %vm1688_vm0, %v2310_v60  ;;  %v1171_v1 = vpop.f32.mrb[46].mxu1  ;;  %v1458_v2 = vadd.f32 %v1457_v62, %v1169_v61  ;;  %v1460_v4 = vpop.f32.mrb[46].mxu0 }
 0x170   :  { %v1172_v3 = vadd.f32 %v2882_v15, %v1171_v1  ;;  %v1173_v5 = vpop.f32.mrb[47].mxu1  ;;  %v1462_v6 = vpop.f32.mrb[47].mxu0 }
 0x171   :  { %2315 = vtanh.f32 %v1458_v2 }
 0x172   :  { %v1461_v7 = vadd.f32 %v1460_v4, %v1172_v3 }
 0x173   :  { %v2312_v8 = vpop.eup %2311 }
 0x174   :  { %2317 = vtanh.f32 %v1461_v7  ;;  %1709 = vst.msk [vmem:[%s3266_s3 + $0xa0] sm:$0xff] %vm1688_vm0, %v2312_v8  ;;  %v1176_v9 = vpop.f32.mrb[48].mxu1 }
 0x175   :  { %v1177_v11 = vadd.f32 %v2882_v15, %v1176_v9  ;;  %v1465_v12 = vpop.f32.mrb[48].mxu0  ;;  %v1178_v13 = vpop.f32.mrb[49].mxu1 }
 0x176   :  { %v2314_v10 = vpop.eup %2313  ;;  %v1467_v14 = vpop.f32.mrb[49].mxu0 }
 0x177   :  { %1710 = vst.msk [vmem:[%s3266_s3 + $0xa8] sm:$0xff] %vm1688_vm0, %v2314_v10  ;;  %v1179_v16 = vpop.f32.mrb[50].mxu1  ;;  %v1466_v17 = vadd.f32 %v1465_v12, %v1177_v11  ;;  %v1468_v19 = vpop.f32.mrb[50].mxu0 }
 0x178   :  { %v1180_v18 = vadd.f32 %v2882_v15, %v1179_v16  ;;  %v1181_v20 = vpop.f32.mrb[51].mxu1  ;;  %v1470_v21 = vpop.f32.mrb[51].mxu0 }
 0x179   :  { %2319 = vtanh.f32 %v1466_v17 }
 0x17a   :  { %v1469_v22 = vadd.f32 %v1468_v19, %v1180_v18 }
 0x17b   :  { %v2316_v23 = vpop.eup %2315 }
 0x17c   :  { %2321 = vtanh.f32 %v1469_v22  ;;  %1711 = vst.msk [vmem:[%s3266_s3 + $0xb0] sm:$0xff] %vm1688_vm0, %v2316_v23  ;;  %v1184_v24 = vpop.f32.mrb[52].mxu1 }
 0x17d   :  { %v1185_v26 = vadd.f32 %v2882_v15, %v1184_v24  ;;  %v1473_v27 = vpop.f32.mrb[52].mxu0  ;;  %v1186_v28 = vpop.f32.mrb[53].mxu1 }
 0x17e   :  { %v2318_v25 = vpop.eup %2317  ;;  %v1475_v29 = vpop.f32.mrb[53].mxu0 }
 0x17f   :  { %1712 = vst.msk [vmem:[%s3266_s3 + $0xb8] sm:$0xff] %vm1688_vm0, %v2318_v25  ;;  %v1187_v30 = vpop.f32.mrb[54].mxu1  ;;  %v1474_v31 = vadd.f32 %v1473_v27, %v1185_v26  ;;  %v1476_v33 = vpop.f32.mrb[54].mxu0 }
 0x180   :  { %v1188_v32 = vadd.f32 %v2882_v15, %v1187_v30  ;;  %v1189_v34 = vpop.f32.mrb[55].mxu1  ;;  %v1478_v35 = vpop.f32.mrb[55].mxu0 }
 0x181   :  { %2323 = vtanh.f32 %v1474_v31 }
 0x182   :  { %v1477_v36 = vadd.f32 %v1476_v33, %v1188_v32 }
 0x183   :  { %v2320_v37 = vpop.eup %2319 }
 0x184   :  { %2325 = vtanh.f32 %v1477_v36  ;;  %1713 = vst.msk [vmem:[%s3266_s3 + $0xc0] sm:$0xff] %vm1688_vm0, %v2320_v37  ;;  %v1192_v38 = vpop.f32.mrb[56].mxu1 }
 0x185   :  { %v1193_v40 = vadd.f32 %v2882_v15, %v1192_v38  ;;  %v1481_v41 = vpop.f32.mrb[56].mxu0  ;;  %v1194_v42 = vpop.f32.mrb[57].mxu1 }
 0x186   :  { %v2322_v39 = vpop.eup %2321  ;;  %v1483_v43 = vpop.f32.mrb[57].mxu0 }
 0x187   :  { %1714 = vst.msk [vmem:[%s3266_s3 + $0xc8] sm:$0xff] %vm1688_vm0, %v2322_v39  ;;  %v1195_v44 = vpop.f32.mrb[58].mxu1  ;;  %v1482_v45 = vadd.f32 %v1481_v41, %v1193_v40  ;;  %v1484_v47 = vpop.f32.mrb[58].mxu0 }
 0x188   :  { %v1196_v46 = vadd.f32 %v2882_v15, %v1195_v44  ;;  %v1197_v48 = vpop.f32.mrb[59].mxu1  ;;  %v1486_v49 = vpop.f32.mrb[59].mxu0 }
 0x189   :  { %2327 = vtanh.f32 %v1482_v45 }
 0x18a   :  { %v1485_v50 = vadd.f32 %v1484_v47, %v1196_v46 }
 0x18b   :  { %v2324_v51 = vpop.eup %2323 }
 0x18c   :  { %2329 = vtanh.f32 %v1485_v50  ;;  %1715 = vst.msk [vmem:[%s3266_s3 + $0xd0] sm:$0xff] %vm1688_vm0, %v2324_v51  ;;  %v1200_v52 = vpop.f32.mrb[60].mxu1 }
 0x18d   :  { %v1201_v54 = vadd.f32 %v2882_v15, %v1200_v52  ;;  %v1489_v55 = vpop.f32.mrb[60].mxu0  ;;  %v1202_v56 = vpop.f32.mrb[61].mxu1 }
 0x18e   :  { %v2326_v53 = vpop.eup %2325  ;;  %v1491_v57 = vpop.f32.mrb[61].mxu0 }
 0x18f   :  { %1716 = vst.msk [vmem:[%s3266_s3 + $0xd8] sm:$0xff] %vm1688_vm0, %v2326_v53  ;;  %v1203_v58 = vpop.f32.mrb[62].mxu1  ;;  %v1490_v59 = vadd.f32 %v1489_v55, %v1201_v54  ;;  %v1492_v61 = vpop.f32.mrb[62].mxu0 }
 0x190   :  { %v1204_v60 = vadd.f32 %v2882_v15, %v1203_v58  ;;  %v1205_v62 = vpop.f32.mrb[63].mxu1  ;;  %v1494_v63 = vpop.f32.mrb[63].mxu0 }
 0x191   :  { %2331 = vtanh.f32 %v1490_v59 }
 0x192   :  { %v1493_v0 = vadd.f32 %v1492_v61, %v1204_v60 }
 0x193   :  { %v2328_v1 = vpop.eup %2327 }
 0x194   :  { %2333 = vtanh.f32 %v1493_v0  ;;  %1717 = vst.msk [vmem:[%s3266_s3 + $0xe0] sm:$0xff] %vm1688_vm0, %v2328_v1  ;;  %v1208_v2 = vpop.f32.mrb[64].mxu1 }
 0x195   :  { %v1209_v4 = vadd.f32 %v2882_v15, %v1208_v2  ;;  %v1497_v5 = vpop.f32.mrb[64].mxu0  ;;  %v1210_v6 = vpop.f32.mrb[65].mxu1 }
 0x196   :  { %v2330_v3 = vpop.eup %2329  ;;  %v1499_v7 = vpop.f32.mrb[65].mxu0 }
 0x197   :  { %1718 = vst.msk [vmem:[%s3266_s3 + $0xe8] sm:$0xff] %vm1688_vm0, %v2330_v3  ;;  %v1211_v8 = vpop.f32.mrb[66].mxu1  ;;  %v1498_v9 = vadd.f32 %v1497_v5, %v1209_v4  ;;  %v1500_v11 = vpop.f32.mrb[66].mxu0 }
 0x198   :  { %v1212_v10 = vadd.f32 %v2882_v15, %v1211_v8  ;;  %v1213_v12 = vpop.f32.mrb[67].mxu1  ;;  %v1502_v13 = vpop.f32.mrb[67].mxu0 }
 0x199   :  { %2335 = vtanh.f32 %v1498_v9 }
 0x19a   :  { %v1501_v14 = vadd.f32 %v1500_v11, %v1212_v10 }
 0x19b   :  { %v2332_v16 = vpop.eup %2331 }
 0x19c   :  { %2337 = vtanh.f32 %v1501_v14  ;;  %1719 = vst.msk [vmem:[%s3266_s3 + $0xf0] sm:$0xff] %vm1688_vm0, %v2332_v16  ;;  %v1216_v17 = vpop.f32.mrb[68].mxu1 }
 0x19d   :  { %v1217_v19 = vadd.f32 %v2882_v15, %v1216_v17  ;;  %v1505_v20 = vpop.f32.mrb[68].mxu0  ;;  %v1218_v21 = vpop.f32.mrb[69].mxu1 }
 0x19e   :  { %v2334_v18 = vpop.eup %2333  ;;  %v1507_v22 = vpop.f32.mrb[69].mxu0 }
 0x19f   :  { %1720 = vst.msk [vmem:[%s3266_s3 + $0xf8] sm:$0xff] %vm1688_vm0, %v2334_v18  ;;  %v1219_v23 = vpop.f32.mrb[70].mxu1  ;;  %v1506_v24 = vadd.f32 %v1505_v20, %v1217_v19  ;;  %v1508_v26 = vpop.f32.mrb[70].mxu0 }
 0x1a0   :  { %v1220_v25 = vadd.f32 %v2882_v15, %v1219_v23  ;;  %v1221_v27 = vpop.f32.mrb[71].mxu1  ;;  %v1510_v28 = vpop.f32.mrb[71].mxu0 }
 0x1a1   :  { %2339 = vtanh.f32 %v1506_v24 }
 0x1a2   :  { %v1509_v29 = vadd.f32 %v1508_v26, %v1220_v25 }
 0x1a3   :  { %v2336_v30 = vpop.eup %2335 }
 0x1a4   :  { %2341 = vtanh.f32 %v1509_v29  ;;  %1721 = vst.msk [vmem:[%s3266_s3 + $0x100] sm:$0xff] %vm1688_vm0, %v2336_v30  ;;  %v1224_v31 = vpop.f32.mrb[72].mxu1 }
 0x1a5   :  { %v1225_v33 = vadd.f32 %v2882_v15, %v1224_v31  ;;  %v1513_v34 = vpop.f32.mrb[72].mxu0  ;;  %v1226_v35 = vpop.f32.mrb[73].mxu1 }
 0x1a6   :  { %v2338_v32 = vpop.eup %2337  ;;  %v1515_v36 = vpop.f32.mrb[73].mxu0 }
 0x1a7   :  { %1722 = vst.msk [vmem:[%s3266_s3 + $0x108] sm:$0xff] %vm1688_vm0, %v2338_v32  ;;  %v1227_v37 = vpop.f32.mrb[74].mxu1  ;;  %v1514_v38 = vadd.f32 %v1513_v34, %v1225_v33  ;;  %v1516_v40 = vpop.f32.mrb[74].mxu0 }
 0x1a8   :  { %v1228_v39 = vadd.f32 %v2882_v15, %v1227_v37  ;;  %v1229_v41 = vpop.f32.mrb[75].mxu1  ;;  %v1518_v42 = vpop.f32.mrb[75].mxu0 }
 0x1a9   :  { %2343 = vtanh.f32 %v1514_v38 }
 0x1aa   :  { %v1517_v43 = vadd.f32 %v1516_v40, %v1228_v39 }
 0x1ab   :  { %v2340_v44 = vpop.eup %2339 }
 0x1ac   :  { %2345 = vtanh.f32 %v1517_v43  ;;  %1723 = vst.msk [vmem:[%s3266_s3 + $0x110] sm:$0xff] %vm1688_vm0, %v2340_v44  ;;  %v1232_v45 = vpop.f32.mrb[76].mxu1 }
 0x1ad   :  { %v1233_v47 = vadd.f32 %v2882_v15, %v1232_v45  ;;  %v1521_v48 = vpop.f32.mrb[76].mxu0  ;;  %v1234_v49 = vpop.f32.mrb[77].mxu1 }
 0x1ae   :  { %v2342_v46 = vpop.eup %2341  ;;  %v1523_v50 = vpop.f32.mrb[77].mxu0 }
 0x1af   :  { %1724 = vst.msk [vmem:[%s3266_s3 + $0x118] sm:$0xff] %vm1688_vm0, %v2342_v46  ;;  %v1235_v51 = vpop.f32.mrb[78].mxu1  ;;  %v1522_v52 = vadd.f32 %v1521_v48, %v1233_v47  ;;  %v1524_v54 = vpop.f32.mrb[78].mxu0 }
 0x1b0   :  { %v1236_v53 = vadd.f32 %v2882_v15, %v1235_v51  ;;  %v1237_v55 = vpop.f32.mrb[79].mxu1  ;;  %v1526_v56 = vpop.f32.mrb[79].mxu0 }
 0x1b1   :  { %2347 = vtanh.f32 %v1522_v52 }
 0x1b2   :  { %v1525_v57 = vadd.f32 %v1524_v54, %v1236_v53 }
 0x1b3   :  { %v2344_v58 = vpop.eup %2343 }
 0x1b4   :  { %2349 = vtanh.f32 %v1525_v57  ;;  %1725 = vst.msk [vmem:[%s3266_s3 + $0x120] sm:$0xff] %vm1688_vm0, %v2344_v58  ;;  %v1240_v59 = vpop.f32.mrb[80].mxu1 }
 0x1b5   :  { %v1241_v61 = vadd.f32 %v2882_v15, %v1240_v59  ;;  %v1529_v62 = vpop.f32.mrb[80].mxu0  ;;  %v1242_v63 = vpop.f32.mrb[81].mxu1 }
 0x1b6   :  { %v2346_v60 = vpop.eup %2345  ;;  %v1531_v0 = vpop.f32.mrb[81].mxu0 }
 0x1b7   :  { %1726 = vst.msk [vmem:[%s3266_s3 + $0x128] sm:$0xff] %vm1688_vm0, %v2346_v60  ;;  %v1243_v1 = vpop.f32.mrb[82].mxu1  ;;  %v1530_v2 = vadd.f32 %v1529_v62, %v1241_v61  ;;  %v1532_v4 = vpop.f32.mrb[82].mxu0 }
 0x1b8   :  { %v1244_v3 = vadd.f32 %v2882_v15, %v1243_v1  ;;  %v1245_v5 = vpop.f32.mrb[83].mxu1  ;;  %v1534_v6 = vpop.f32.mrb[83].mxu0 }
 0x1b9   :  { %2351 = vtanh.f32 %v1530_v2 }
 0x1ba   :  { %v1533_v7 = vadd.f32 %v1532_v4, %v1244_v3 }
 0x1bb   :  { %v2348_v8 = vpop.eup %2347 }
 0x1bc   :  { %2353 = vtanh.f32 %v1533_v7  ;;  %1727 = vst.msk [vmem:[%s3266_s3 + $0x130] sm:$0xff] %vm1688_vm0, %v2348_v8  ;;  %v1248_v9 = vpop.f32.mrb[84].mxu1 }
 0x1bd   :  { %v1249_v11 = vadd.f32 %v2882_v15, %v1248_v9  ;;  %v1537_v12 = vpop.f32.mrb[84].mxu0  ;;  %v1250_v13 = vpop.f32.mrb[85].mxu1 }
 0x1be   :  { %v2350_v10 = vpop.eup %2349  ;;  %v1539_v14 = vpop.f32.mrb[85].mxu0 }
 0x1bf   :  { %1728 = vst.msk [vmem:[%s3266_s3 + $0x138] sm:$0xff] %vm1688_vm0, %v2350_v10  ;;  %v1251_v16 = vpop.f32.mrb[86].mxu1  ;;  %v1538_v17 = vadd.f32 %v1537_v12, %v1249_v11  ;;  %v1540_v19 = vpop.f32.mrb[86].mxu0 }
 0x1c0   :  { %v1252_v18 = vadd.f32 %v2882_v15, %v1251_v16  ;;  %v1253_v20 = vpop.f32.mrb[87].mxu1  ;;  %v1542_v21 = vpop.f32.mrb[87].mxu0 }
 0x1c1   :  { %2355 = vtanh.f32 %v1538_v17 }
 0x1c2   :  { %v1541_v22 = vadd.f32 %v1540_v19, %v1252_v18 }
 0x1c3   :  { %v2352_v23 = vpop.eup %2351 }
 0x1c4   :  { %2357 = vtanh.f32 %v1541_v22  ;;  %1729 = vst.msk [vmem:[%s3266_s3 + $0x140] sm:$0xff] %vm1688_vm0, %v2352_v23  ;;  %v1256_v24 = vpop.f32.mrb[88].mxu1 }
 0x1c5   :  { %v1257_v26 = vadd.f32 %v2882_v15, %v1256_v24  ;;  %v1545_v27 = vpop.f32.mrb[88].mxu0  ;;  %v1258_v28 = vpop.f32.mrb[89].mxu1 }
 0x1c6   :  { %v2354_v25 = vpop.eup %2353  ;;  %v1547_v29 = vpop.f32.mrb[89].mxu0 }
 0x1c7   :  { %1730 = vst.msk [vmem:[%s3266_s3 + $0x148] sm:$0xff] %vm1688_vm0, %v2354_v25  ;;  %v1259_v30 = vpop.f32.mrb[90].mxu1  ;;  %v1546_v31 = vadd.f32 %v1545_v27, %v1257_v26  ;;  %v1548_v33 = vpop.f32.mrb[90].mxu0  ;;  %v3194_v25 = vld [vmem:[%s3265_s2] ss:$0 sm:$0xff] }
 0x1c8   :  { %v1260_v32 = vadd.f32 %v2882_v15, %v1259_v30  ;;  %v1261_v34 = vpop.f32.mrb[91].mxu1  ;;  %v1550_v35 = vpop.f32.mrb[91].mxu0 }
 0x1c9   :  { %2359 = vtanh.f32 %v1546_v31 }
 0x1ca   :  { %v1549_v36 = vadd.f32 %v1548_v33, %v1260_v32 }
 0x1cb   :  { %v2356_v37 = vpop.eup %2355 }
 0x1cc   :  { %2361 = vtanh.f32 %v1549_v36  ;;  %1731 = vst.msk [vmem:[%s3266_s3 + $0x150] sm:$0xff] %vm1688_vm0, %v2356_v37  ;;  %v1264_v38 = vpop.f32.mrb[92].mxu1 }
 0x1cd   :  { %v1265_v40 = vadd.f32 %v2882_v15, %v1264_v38  ;;  %v1553_v41 = vpop.f32.mrb[92].mxu0  ;;  %v1266_v42 = vpop.f32.mrb[93].mxu1 }
 0x1ce   :  { %v2358_v39 = vpop.eup %2357  ;;  %v1555_v43 = vpop.f32.mrb[93].mxu0 }
 0x1cf   :  { %1732 = vst.msk [vmem:[%s3266_s3 + $0x158] sm:$0xff] %vm1688_vm0, %v2358_v39  ;;  %v1267_v44 = vpop.f32.mrb[94].mxu1  ;;  %v1554_v45 = vadd.f32 %v1553_v41, %v1265_v40  ;;  %v1556_v47 = vpop.f32.mrb[94].mxu0 }
 0x1d0   :  { %v1268_v46 = vadd.f32 %v2882_v15, %v1267_v44  ;;  %v1269_v48 = vpop.f32.mrb[95].mxu1  ;;  %v1558_v49 = vpop.f32.mrb[95].mxu0 }
 0x1d1   :  { %2363 = vtanh.f32 %v1554_v45 }
 0x1d2   :  { %v1557_v50 = vadd.f32 %v1556_v47, %v1268_v46 }
 0x1d3   :  { %v2360_v51 = vpop.eup %2359 }
 0x1d4   :  { %2365 = vtanh.f32 %v1557_v50  ;;  %1733 = vst.msk [vmem:[%s3266_s3 + $0x160] sm:$0xff] %vm1688_vm0, %v2360_v51  ;;  %v1272_v52 = vpop.f32.mrb[96].mxu1 }
 0x1d5   :  { %v1273_v54 = vadd.f32 %v2882_v15, %v1272_v52  ;;  %v1561_v55 = vpop.f32.mrb[96].mxu0  ;;  %v1274_v56 = vpop.f32.mrb[97].mxu1 }
 0x1d6   :  { %v2362_v53 = vpop.eup %2361  ;;  %v1563_v57 = vpop.f32.mrb[97].mxu0 }
 0x1d7   :  { %1734 = vst.msk [vmem:[%s3266_s3 + $0x168] sm:$0xff] %vm1688_vm0, %v2362_v53  ;;  %v1275_v58 = vpop.f32.mrb[98].mxu1  ;;  %v1562_v59 = vadd.f32 %v1561_v55, %v1273_v54  ;;  %v1564_v61 = vpop.f32.mrb[98].mxu0 }
 0x1d8   :  { %v1276_v60 = vadd.f32 %v2882_v15, %v1275_v58  ;;  %v1277_v62 = vpop.f32.mrb[99].mxu1  ;;  %v1566_v63 = vpop.f32.mrb[99].mxu0 }
 0x1d9   :  { %2367 = vtanh.f32 %v1562_v59 }
 0x1da   :  { %v1565_v0 = vadd.f32 %v1564_v61, %v1276_v60 }
 0x1db   :  { %v2364_v1 = vpop.eup %2363 }
 0x1dc   :  { %2369 = vtanh.f32 %v1565_v0  ;;  %1735 = vst.msk [vmem:[%s3266_s3 + $0x170] sm:$0xff] %vm1688_vm0, %v2364_v1  ;;  %v1280_v2 = vpop.f32.mrb[100].mxu1 }
 0x1dd   :  { %v1281_v4 = vadd.f32 %v2882_v15, %v1280_v2  ;;  %v1569_v5 = vpop.f32.mrb[100].mxu0  ;;  %v1282_v6 = vpop.f32.mrb[101].mxu1 }
 0x1de   :  { %v2366_v3 = vpop.eup %2365  ;;  %v1571_v7 = vpop.f32.mrb[101].mxu0 }
 0x1df   :  { %1736 = vst.msk [vmem:[%s3266_s3 + $0x178] sm:$0xff] %vm1688_vm0, %v2366_v3  ;;  %v1283_v8 = vpop.f32.mrb[102].mxu1  ;;  %v1570_v9 = vadd.f32 %v1569_v5, %v1281_v4  ;;  %v1572_v11 = vpop.f32.mrb[102].mxu0 }
 0x1e0   :  { %v1284_v10 = vadd.f32 %v2882_v15, %v1283_v8  ;;  %v1285_v12 = vpop.f32.mrb[103].mxu1  ;;  %v1574_v13 = vpop.f32.mrb[103].mxu0 }
 0x1e1   :  { %2371 = vtanh.f32 %v1570_v9 }
 0x1e2   :  { %v1573_v14 = vadd.f32 %v1572_v11, %v1284_v10 }
 0x1e3   :  { %v2368_v16 = vpop.eup %2367 }
 0x1e4   :  { %2373 = vtanh.f32 %v1573_v14  ;;  %1737 = vst.msk [vmem:[%s3266_s3 + $0x180] sm:$0xff] %vm1688_vm0, %v2368_v16  ;;  %v1288_v17 = vpop.f32.mrb[104].mxu1 }
 0x1e5   :  { %v1289_v19 = vadd.f32 %v2882_v15, %v1288_v17  ;;  %v1577_v20 = vpop.f32.mrb[104].mxu0  ;;  %v1290_v21 = vpop.f32.mrb[105].mxu1 }
 0x1e6   :  { %v2370_v18 = vpop.eup %2369  ;;  %v1579_v22 = vpop.f32.mrb[105].mxu0 }
 0x1e7   :  { %1738 = vst.msk [vmem:[%s3266_s3 + $0x188] sm:$0xff] %vm1688_vm0, %v2370_v18  ;;  %v1291_v23 = vpop.f32.mrb[106].mxu1  ;;  %v1578_v24 = vadd.f32 %v1577_v20, %v1289_v19  ;;  %v1580_v27 = vpop.f32.mrb[106].mxu0 }
 0x1e8   :  { %v1292_v26 = vadd.f32 %v3194_v25, %v1291_v23  ;;  %v1293_v28 = vpop.f32.mrb[107].mxu1  ;;  %v1582_v15 = vpop.f32.mrb[107].mxu0 }
 0x1e9   :  { %2375 = vtanh.f32 %v1578_v24 }
 0x1ea   :  { %v1581_v29 = vadd.f32 %v1580_v27, %v1292_v26 }
 0x1eb   :  { %v2372_v30 = vpop.eup %2371 }
 0x1ec   :  { %2377 = vtanh.f32 %v1581_v29  ;;  %1739 = vst.msk [vmem:[%s3266_s3 + $0x190] sm:$0xff] %vm1688_vm0, %v2372_v30  ;;  %v1296_v31 = vpop.f32.mrb[108].mxu1 }
 0x1ed   :  { %v1297_v33 = vadd.f32 %v3194_v25, %v1296_v31  ;;  %v1585_v34 = vpop.f32.mrb[108].mxu0  ;;  %v1298_v35 = vpop.f32.mrb[109].mxu1 }
 0x1ee   :  { %v2374_v32 = vpop.eup %2373  ;;  %v1587_v36 = vpop.f32.mrb[109].mxu0 }
 0x1ef   :  { %1740 = vst.msk [vmem:[%s3266_s3 + $0x198] sm:$0xff] %vm1688_vm0, %v2374_v32  ;;  %v1299_v37 = vpop.f32.mrb[110].mxu1  ;;  %v1586_v38 = vadd.f32 %v1585_v34, %v1297_v33  ;;  %v1588_v40 = vpop.f32.mrb[110].mxu0 }
 0x1f0   :  { %v1300_v39 = vadd.f32 %v3194_v25, %v1299_v37  ;;  %v1301_v41 = vpop.f32.mrb[111].mxu1  ;;  %v1590_v42 = vpop.f32.mrb[111].mxu0 }
 0x1f1   :  { %2379 = vtanh.f32 %v1586_v38 }
 0x1f2   :  { %v1589_v43 = vadd.f32 %v1588_v40, %v1300_v39 }
 0x1f3   :  { %v2376_v44 = vpop.eup %2375 }
 0x1f4   :  { %2381 = vtanh.f32 %v1589_v43  ;;  %1741 = vst.msk [vmem:[%s3266_s3 + $0x1a0] sm:$0xff] %vm1688_vm0, %v2376_v44  ;;  %v1304_v45 = vpop.f32.mrb[112].mxu1 }
 0x1f5   :  { %v1305_v47 = vadd.f32 %v3194_v25, %v1304_v45  ;;  %v1593_v48 = vpop.f32.mrb[112].mxu0  ;;  %v1306_v49 = vpop.f32.mrb[113].mxu1 }
 0x1f6   :  { %v2378_v46 = vpop.eup %2377  ;;  %v1595_v50 = vpop.f32.mrb[113].mxu0 }
 0x1f7   :  { %1742 = vst.msk [vmem:[%s3266_s3 + $0x1a8] sm:$0xff] %vm1688_vm0, %v2378_v46  ;;  %v1307_v51 = vpop.f32.mrb[114].mxu1  ;;  %v1594_v52 = vadd.f32 %v1593_v48, %v1305_v47  ;;  %v1596_v54 = vpop.f32.mrb[114].mxu0 }
 0x1f8   :  { %v1308_v53 = vadd.f32 %v3194_v25, %v1307_v51  ;;  %v1309_v55 = vpop.f32.mrb[115].mxu1  ;;  %v1598_v56 = vpop.f32.mrb[115].mxu0 }
 0x1f9   :  { %2383 = vtanh.f32 %v1594_v52 }
 0x1fa   :  { %v1597_v57 = vadd.f32 %v1596_v54, %v1308_v53 }
 0x1fb   :  { %v2380_v58 = vpop.eup %2379 }
 0x1fc   :  { %2385 = vtanh.f32 %v1597_v57  ;;  %1743 = vst.msk [vmem:[%s3266_s3 + $0x1b0] sm:$0xff] %vm1688_vm0, %v2380_v58  ;;  %v1312_v59 = vpop.f32.mrb[116].mxu1 }
 0x1fd   :  { %v1313_v61 = vadd.f32 %v3194_v25, %v1312_v59  ;;  %v1601_v62 = vpop.f32.mrb[116].mxu0  ;;  %v1314_v63 = vpop.f32.mrb[117].mxu1 }
 0x1fe   :  { %v2382_v60 = vpop.eup %2381  ;;  %v1603_v0 = vpop.f32.mrb[117].mxu0 }
 0x1ff   :  { %1744 = vst.msk [vmem:[%s3266_s3 + $0x1b8] sm:$0xff] %vm1688_vm0, %v2382_v60  ;;  %v1315_v1 = vpop.f32.mrb[118].mxu1  ;;  %v1602_v2 = vadd.f32 %v1601_v62, %v1313_v61  ;;  %v1604_v4 = vpop.f32.mrb[118].mxu0 }
 0x200   :  { %v1316_v3 = vadd.f32 %v3194_v25, %v1315_v1  ;;  %v1317_v5 = vpop.f32.mrb[119].mxu1  ;;  %v1606_v6 = vpop.f32.mrb[119].mxu0 }
 0x201   :  { %2387 = vtanh.f32 %v1602_v2 }
 0x202   :  { %v1605_v7 = vadd.f32 %v1604_v4, %v1316_v3 }
 0x203   :  { %v2384_v8 = vpop.eup %2383 }
 0x204   :  { %2389 = vtanh.f32 %v1605_v7  ;;  %1745 = vst.msk [vmem:[%s3266_s3 + $0x1c0] sm:$0xff] %vm1688_vm0, %v2384_v8  ;;  %v1320_v9 = vpop.f32.mrb[120].mxu1 }
 0x205   :  { %v1321_v11 = vadd.f32 %v3194_v25, %v1320_v9  ;;  %v1609_v12 = vpop.f32.mrb[120].mxu0  ;;  %v1322_v13 = vpop.f32.mrb[121].mxu1 }
 0x206   :  { %v2386_v10 = vpop.eup %2385  ;;  %v1611_v14 = vpop.f32.mrb[121].mxu0 }
 0x207   :  { %1746 = vst.msk [vmem:[%s3266_s3 + $0x1c8] sm:$0xff] %vm1688_vm0, %v2386_v10  ;;  %v1323_v16 = vpop.f32.mrb[122].mxu1  ;;  %v1610_v17 = vadd.f32 %v1609_v12, %v1321_v11  ;;  %v1612_v19 = vpop.f32.mrb[122].mxu0 }
 0x208   :  { %v1324_v18 = vadd.f32 %v3194_v25, %v1323_v16  ;;  %v1325_v20 = vpop.f32.mrb[123].mxu1  ;;  %v1614_v21 = vpop.f32.mrb[123].mxu0 }
 0x209   :  { %2391 = vtanh.f32 %v1610_v17 }
 0x20a   :  { %v1613_v22 = vadd.f32 %v1612_v19, %v1324_v18 }
 0x20b   :  { %v2388_v23 = vpop.eup %2387 }
 0x20c   :  { %2393 = vtanh.f32 %v1613_v22  ;;  %1747 = vst.msk [vmem:[%s3266_s3 + $0x1d0] sm:$0xff] %vm1688_vm0, %v2388_v23  ;;  %v1328_v24 = vpop.f32.mrb[124].mxu1 }
 0x20d   :  { %v1329_v27 = vadd.f32 %v3194_v25, %v1328_v24  ;;  %v1617_v28 = vpop.f32.mrb[124].mxu0  ;;  %v1330_v15 = vpop.f32.mrb[125].mxu1 }
 0x20e   :  { %v2390_v26 = vpop.eup %2389  ;;  %v1619_v29 = vpop.f32.mrb[125].mxu0 }
 0x20f   :  { %1748 = vst.msk [vmem:[%s3266_s3 + $0x1d8] sm:$0xff] %vm1688_vm0, %v2390_v26  ;;  %v1331_v30 = vpop.f32.mrb[126].mxu1  ;;  %v1618_v31 = vadd.f32 %v1617_v28, %v1329_v27  ;;  %v1620_v33 = vpop.f32.mrb[126].mxu0 }
 0x210   :  { %v1332_v32 = vadd.f32 %v3194_v25, %v1331_v30  ;;  %v1333_v34 = vpop.f32.mrb[127].mxu1  ;;  %v1622_v35 = vpop.f32.mrb[127].mxu0 }
 0x211   :  { %2395 = vtanh.f32 %v1618_v31 }
 0x212   :  { %v1621_v36 = vadd.f32 %v1620_v33, %v1332_v32 }
 0x213   :  { %v2392_v37 = vpop.eup %2391 }
 0x214   :  { %2397 = vtanh.f32 %v1621_v36  ;;  %1749 = vst.msk [vmem:[%s3266_s3 + $0x1e0] sm:$0xff] %vm1688_vm0, %v2392_v37 }
 0x216   :  { %v2394_v38 = vpop.eup %2393 }
 0x217   :  { %1750 = vst.msk [vmem:[%s3266_s3 + $0x1e8] sm:$0xff] %vm1688_vm0, %v2394_v38 }
 0x21b   :  { %v2396_v39 = vpop.eup %2395 }
 0x21c   :  { %1751 = vst.msk [vmem:[%s3266_s3 + $0x1f0] sm:$0xff] %vm1688_vm0, %v2396_v39 }
 0x21e   :  { %v2398_v25 = vpop.eup %2397 }
 0x21f   :  { %1752 = vst.msk [vmem:[%s3266_s3 + $0x1f8] sm:$0xff] %vm1688_vm0, %v2398_v25 }

</bundles_post_ra>
